<compile_context>
chip_gen: v6e
topology: v6e:2x2x1
jax: 0.10.0
libtpu: 0.0.40
codegen_flags: <defaults>
</compile_context>

<pallas_src>
import math
from functools import partial

import jax
import jax.numpy as jnp
from jax.experimental import pallas as pl
from jax.experimental.pallas import tpu as pltpu


def _round_up(n, m):
    return ((n + m - 1) // m) * m


def _pick_tile(n, candidates):
    for c in candidates:
        if n % c == 0:
            return c
    return n


# Raise toward ~100 MiB on v5e/v6e (128 MiB physical); keep <= ~48 MiB on v7x (64 MiB).
_VMEM_LIMIT = 64 * 1024 * 1024


def _cparams(*sem):
    return pltpu.CompilerParams(dimension_semantics=tuple(sem),
                                vmem_limit_bytes=_VMEM_LIMIT)


# ------------------- multi-output linear: resident-weight path + K-tiled fallback -------------------

def _multi_linear_resident_kernel(*refs, n_out):
    x_ref = refs[0]
    w_refs = refs[1:1 + n_out]
    o_refs = refs[1 + n_out:]
    x = x_ref[...].astype(jnp.bfloat16)                       # (tm, K); no-op if already bf16
    for w_ref, o_ref in zip(w_refs, o_refs):
        # (K, N) bf16 weight, canonical MXU orientation; weight block index is constant
        # over the M grid axis so it is DMA'd once and stays resident in VMEM.
        o_ref[...] = jax.lax.dot_general(
            x, w_ref[...], (((1,), (0,)), ((), ())),
            preferred_element_type=jnp.float32).astype(o_ref.dtype)


def _multi_linear_ktiled_kernel(*refs, n_out):
    x_ref = refs[0]
    w_refs = refs[1:1 + n_out]
    o_refs = refs[1 + n_out:1 + 2 * n_out]
    acc_refs = refs[1 + 2 * n_out:]
    kk = pl.program_id(1)
    nk = pl.num_programs(1)
    x = x_ref[...].astype(jnp.bfloat16)                       # (tm, tk)
    for w_ref, o_ref, acc_ref in zip(w_refs, o_refs, acc_refs):
        @pl.when(kk == 0)
        def _init(acc_ref=acc_ref):
            acc_ref[...] = jnp.zeros(acc_ref.shape, jnp.float32)

        acc_ref[...] += jax.lax.dot_general(
            x, w_ref[...], (((1,), (0,)), ((), ())),
            preferred_element_type=jnp.float32)

        @pl.when(kk == nk - 1)
        def _write(o_ref=o_ref, acc_ref=acc_ref):
            o_ref[...] = acc_ref[...].astype(o_ref.dtype)


def multi_linear_pallas(x2d, weights, *, out_dtype=jnp.bfloat16):
    """x2d: (M, K); weights: tuple of (K, N_i) bf16. Returns list of (M, N_i) out_dtype."""
    M, K = x2d.shape
    Ns = [int(w.shape[1]) for w in weights]
    Mp = _round_up(M, 8)
    if Mp != M:
        x2d = jnp.pad(x2d, ((0, Mp - M), (0, 0)))
    tm = _pick_tile(Mp, (512, 256, 128, 64, 32, 16, 8))
    # TODO(synk): on v7x, when Mp//tm == 1 halve tm so both TensorCores get an M block.

    # VMEM estimate: resident weights (single-buffered once index is constant) + pipelined
    # x tile and outputs (double-buffered).
    w_bytes = sum(K * N * 2 for N in Ns)
    x_bytes = 2 * tm * K * x2d.dtype.itemsize
    o_bytes = sum(2 * tm * N * jnp.dtype(out_dtype).itemsize for N in Ns)

    if w_bytes + x_bytes + o_bytes <= 24 * 1024 * 1024:
        # Resident-weight path: tk = K, no K grid axis -> each weight fetched exactly once.
        outs = pl.pallas_call(
            partial(_multi_linear_resident_kernel, n_out=len(weights)),
            out_shape=[jax.ShapeDtypeStruct((Mp, N), out_dtype) for N in Ns],
            grid=(Mp // tm,),
            in_specs=[pl.BlockSpec((tm, K), lambda i: (i, 0))]
                     + [pl.BlockSpec((K, N), lambda i: (0, 0)) for N in Ns],
            out_specs=[pl.BlockSpec((tm, N), lambda i: (i, 0)) for N in Ns],
            compiler_params=_cparams("parallel"),
        )(x2d, *weights)
    else:
        # TODO(synk): for v7x with very large sum(N_i) also tile N ('parallel') to shrink
        # the per-step VMEM footprint.
        tk = _pick_tile(K, (512, 256, 128)) if K % 128 == 0 else K
        outs = pl.pallas_call(
            partial(_multi_linear_ktiled_kernel, n_out=len(weights)),
            out_shape=[jax.ShapeDtypeStruct((Mp, N), out_dtype) for N in Ns],
            grid=(Mp // tm, K // tk),
            in_specs=[pl.BlockSpec((tm, tk), lambda i, k: (i, k))]
                     + [pl.BlockSpec((tk, N), lambda i, k: (k, 0)) for N in Ns],
            out_specs=[pl.BlockSpec((tm, N), lambda i, k: (i, 0)) for N in Ns],
            scratch_shapes=[pltpu.VMEM((tm, N), jnp.float32) for N in Ns],
            compiler_params=_cparams("parallel", "arbitrary"),
        )(x2d, *weights)

    if Mp != M:
        outs = [o[:M] for o in outs]
    return list(outs)


# ------------------- depthwise 3x3 conv + bias + SiLU (NHWC, in-kernel halo, no HBM pad) -------------------

def _dwconv_silu_kernel(x_ref, w_ref, b_ref, o_ref):
    H, W, C = o_ref.shape
    x = x_ref[...].astype(jnp.float32)                        # (H, W, tc)
    w = w_ref[...].astype(jnp.float32)                        # (3, 3, tc)
    zrow = jnp.zeros((1, W, C), jnp.float32)
    zcol = jnp.zeros((H, 1, C), jnp.float32)
    acc = jnp.zeros((H, W, C), jnp.float32)
    for dy in range(3):                                       # static 3x3 unroll
        if dy == 0:                                           # tap reads x[i-1, :]
            xr = jnp.concatenate([zrow, x[:H - 1]], axis=0)
        elif dy == 2:                                         # tap reads x[i+1, :]
            xr = jnp.concatenate([x[1:], zrow], axis=0)
        else:
            xr = x
        for dx in range(3):
            if dx == 0:                                       # tap reads x[:, j-1]
                xs = jnp.concatenate([zcol, xr[:, :W - 1]], axis=1)
            elif dx == 2:                                     # tap reads x[:, j+1]
                xs = jnp.concatenate([xr[:, 1:], zcol], axis=1)
            else:
                xs = xr
            acc = acc + xs * w[dy, dx]
    acc = acc + b_ref[...].astype(jnp.float32)
    o_ref[...] = (acc * jax.nn.sigmoid(acc)).astype(o_ref.dtype)   # SiLU in f32


def dwconv_silu_pallas(x_nhwc, w_conv, b_conv, *, out_dtype=jnp.bfloat16):
    """Depthwise 3x3 conv (padding=1, groups=C) + bias + SiLU. w_conv: (3,3,C), b_conv: (C,)."""
    B, H, W, C = x_nhwc.shape
    tc = _pick_tile(C, (256, 128)) if C % 128 == 0 else C     # cap channel tile (v7x VMEM)
    # TODO(synk): for production H,W also tile H into strips with a 2-row halo so the per-block
    # frame stays inside v7x's 64 MiB VMEM.
    return pl.pallas_call(
        _dwconv_silu_kernel,
        out_shape=jax.ShapeDtypeStruct((B, H, W, C), out_dtype),
        grid=(B, C // tc),
        in_specs=[pl.BlockSpec((None, H, W, tc), lambda b, c: (b, 0, 0, c)),
                  pl.BlockSpec((3, 3, tc), lambda b, c: (0, 0, c)),
                  pl.BlockSpec((1, 1, tc), lambda b, c: (0, 0, c))],
        out_specs=pl.BlockSpec((None, H, W, tc), lambda b, c: (b, 0, 0, c)),
        compiler_params=_cparams("parallel", "parallel"),
    )(x_nhwc, w_conv, b_conv.reshape(1, 1, C))


# ------------------- flash-style attention, lane-dense (tq, nh*hd) layout, bf16 I/O -------------------

def _flash_attn_kernel(q_ref, k_ref, v_ref, o_ref, m_sc, l_sc, acc_sc, *, nh, hd, scale):
    ki = pl.program_id(2)
    nk = pl.num_programs(2)

    @pl.when(ki == 0)
    def _init():
        m_sc[...] = jnp.full(m_sc.shape, -jnp.inf, jnp.float32)
        l_sc[...] = jnp.zeros(l_sc.shape, jnp.float32)
        acc_sc[...] = jnp.zeros(acc_sc.shape, jnp.float32)

    for h in range(nh):                       # static head unroll; per-head slices from refs
        sl = slice(h * hd, (h + 1) * hd)
        qh = (q_ref[:, sl].astype(jnp.float32) * scale).astype(jnp.bfloat16)  # pre-scaled Q
        kh = k_ref[:, sl]                     # bf16
        vh = v_ref[:, sl]
        s = jax.lax.dot_general(qh, kh, (((1,), (1,)), ((), ())),
                                preferred_element_type=jnp.float32)           # (tq, tkv)
        m_prev = m_sc[:, h:h + 1]
        l_prev = l_sc[:, h:h + 1]
        m_new = jnp.maximum(m_prev, jnp.max(s, axis=-1, keepdims=True))
        alpha = jnp.exp(m_prev - m_new)
        p = jnp.exp(s - m_new)
        l_new = alpha * l_prev + jnp.sum(p, axis=-1, keepdims=True)
        acc_new = alpha * acc_sc[:, sl] + jnp.dot(
            p.astype(jnp.bfloat16), vh, preferred_element_type=jnp.float32)
        # In-place per-head slice writes (no concatenate rebuilds, fewer live vregs).
        m_sc[:, h:h + 1] = m_new
        l_sc[:, h:h + 1] = l_new
        acc_sc[:, sl] = acc_new

    @pl.when(ki == nk - 1)
    def _finalize():
        acc = acc_sc[...]
        inv_l = pl.reciprocal(l_sc[...], approx=True)          # EUP; (tq, nh)
        outs = [acc[:, h * hd:(h + 1) * hd] * inv_l[:, h:h + 1] for h in range(nh)]
        o_ref[...] = jnp.concatenate(outs, axis=-1).astype(o_ref.dtype)   # lane-dense store


def attention_pallas(q, k, v, *, num_heads, out_dtype=jnp.bfloat16):
    """q, k, v: (B, L, nh*hd) head-contiguous bf16; returns (B, L, nh*hd) in the same layout."""
    B, L, Din = q.shape
    hd = Din // num_heads
    tq = _pick_tile(L, (512, 256, 128, 64, 32, 16, 8))   # keep tq <= 256 on v7x
    tkv = _pick_tile(L, (512, 256, 128, 64, 32, 16, 8))
    kernel = partial(_flash_attn_kernel, nh=num_heads, hd=hd, scale=hd ** -0.5)
    q_spec = pl.BlockSpec((None, tq, Din), lambda b, qi, ki: (b, qi, 0))
    kv_spec = pl.BlockSpec((None, tkv, Din), lambda b, qi, ki: (b, ki, 0))
    out_spec = pl.BlockSpec((None, tq, Din), lambda b, qi, ki: (b, qi, 0))
    return pl.pallas_call(
        kernel,
        out_shape=jax.ShapeDtypeStruct((B, L, Din), out_dtype),
        grid=(B, L // tq, L // tkv),
        in_specs=[q_spec, kv_spec, kv_spec],
        out_specs=out_spec,
        scratch_shapes=[pltpu.VMEM((tq, num_heads), jnp.float32),
                        pltpu.VMEM((tq, num_heads), jnp.float32),
                        pltpu.VMEM((tq, Din), jnp.float32)],
        compiler_params=_cparams("parallel", "parallel", "arbitrary"),
    )(q, k, v)


# ------------------- fused proj -> LayerNorm -> SiLU(z) gate -> out_proj -------------------

def _proj_ln_gate_out_kernel(xa_ref, z_ref, wp_ref, g_ref, b_ref, wo_ref, o_ref, *, eps):
    xa = xa_ref[...].astype(jnp.bfloat16)                      # (tm, Din) bf16
    y = jax.lax.dot_general(xa, wp_ref[...], (((1,), (0,)), ((), ())),
                            preferred_element_type=jnp.float32)           # proj
    mu = jnp.mean(y, axis=-1, keepdims=True)
    var = jnp.mean(jnp.square(y - mu), axis=-1, keepdims=True)
    yn = (y - mu) * jax.lax.rsqrt(var + eps)
    yn = yn * g_ref[...].astype(jnp.float32) + b_ref[...].astype(jnp.float32)  # LN affine
    z = z_ref[...].astype(jnp.float32)
    yn = yn * (z * jax.nn.sigmoid(z))                          # gate with SiLU(z)
    out = jax.lax.dot_general(yn.astype(jnp.bfloat16), wo_ref[...], (((1,), (0,)), ((), ())),
                              preferred_element_type=jnp.float32)          # out_proj
    o_ref[...] = out.astype(o_ref.dtype)


def proj_ln_gate_out_pallas(x_attn, z, w_proj, gamma, beta, w_out, *, eps=1e-5,
                            out_dtype=jnp.float32):
    """x_attn, z: (M, d_inner) bf16; w_proj: (Din, Din) bf16; w_out: (Din, d_model) bf16."""
    M, Din = x_attn.shape
    Dout = int(w_out.shape[1])
    Mp = _round_up(M, 8)
    if Mp != M:
        x_attn = jnp.pad(x_attn, ((0, Mp - M), (0, 0)))
        z = jnp.pad(z, ((0, Mp - M), (0, 0)))
    tm = _pick_tile(Mp, (512, 256, 128, 64, 32, 16, 8))
    # TODO(synk): for d_inner >= ~4096 on v7x, tile w_out's N axis and K-chunk the proj matmul
    # instead of holding both full weights resident.
    out = pl.pallas_call(
        partial(_proj_ln_gate_out_kernel, eps=eps),
        out_shape=jax.ShapeDtypeStruct((Mp, Dout), out_dtype),
        grid=(Mp // tm,),
        in_specs=[pl.BlockSpec((tm, Din), lambda i: (i, 0)),
                  pl.BlockSpec((tm, Din), lambda i: (i, 0)),
                  pl.BlockSpec((Din, Din), lambda i: (0, 0)),    # constant index -> resident
                  pl.BlockSpec((1, Din), lambda i: (0, 0)),
                  pl.BlockSpec((1, Din), lambda i: (0, 0)),
                  pl.BlockSpec((Din, Dout), lambda i: (0, 0))],
        out_specs=pl.BlockSpec((tm, Dout), lambda i: (i, 0)),
        compiler_params=_cparams("parallel"),
    )(x_attn, z, w_proj, gamma.reshape(1, Din), beta.reshape(1, Din), w_out)
    if Mp != M:
        out = out[:M]
    return out


# ------------------- parameter preparation (one-time: bf16, (K, N) layout) -------------------

def init_params(key, d_model, expand=2):
    """Torch-layout f32 parameters, matching nn.Module initializers."""
    d_inner = int(expand * d_model)
    ks = jax.random.split(key, 6)

    def lin(k, out_f, in_f):   # torch Linear default: U(-1/sqrt(fan_in), 1/sqrt(fan_in))
        bound = 1.0 / math.sqrt(in_f)
        return jax.random.uniform(k, (out_f, in_f), jnp.float32, -bound, bound)

    conv_bound = 1.0 / math.sqrt(9.0)   # depthwise: fan_in = 1*3*3
    return dict(
        w_in=lin(ks[0], 2 * d_inner, d_model),
        w_conv=jax.random.uniform(ks[1], (3, 3, d_inner), jnp.float32, -conv_bound, conv_bound),
        b_conv=jax.random.uniform(ks[2], (d_inner,), jnp.float32, -conv_bound, conv_bound),
        w_qkv=lin(ks[3], 3 * d_inner, d_inner),
        w_proj=lin(ks[4], d_inner, d_inner),
        ln_gamma=jnp.ones((d_inner,), jnp.float32),
        ln_beta=jnp.zeros((d_inner,), jnp.float32),
        w_out=lin(ks[5], d_model, d_inner),
    )


def prepare_params(p):
    """One-time conversion: projection weights -> bf16, transposed to (K, N) MXU layout,
    and row-split so the kernels emit (x, z) and (q, k, v) directly."""
    d_inner = p["w_in"].shape[0] // 2

    def t(w):   # (N, K) torch layout -> (K, N) bf16
        return jnp.asarray(w, jnp.float32).T.astype(jnp.bfloat16)

    w_qkv = p["w_qkv"]
    return dict(
        w_in_x=t(p["w_in"][:d_inner]),
        w_in_z=t(p["w_in"][d_inner:]),
        w_conv=jnp.asarray(p["w_conv"], jnp.float32),
        b_conv=jnp.asarray(p["b_conv"], jnp.float32),
        w_q=t(w_qkv[:d_inner]),
        w_k=t(w_qkv[d_inner:2 * d_inner]),
        w_v=t(w_qkv[2 * d_inner:]),
        w_proj=t(p["w_proj"]),
        ln_gamma=jnp.asarray(p["ln_gamma"], jnp.float32),
        ln_beta=jnp.asarray(p["ln_beta"], jnp.float32),
        w_out=t(p["w_out"]),
    )


# ------------------- module forward (glue; reshapes are free / row-major) -------------------

def simplified_ss2d_forward(x, params, *, num_heads=8, eps=1e-5):
    B, H, W, C = x.shape
    d_inner = params["w_in_x"].shape[1]
    M = B * H * W
    L = H * W

    # in_proj, split into (x_inner, z) directly; bf16 activations out.
    x_inner, z = multi_linear_pallas(x.reshape(M, C), (params["w_in_x"], params["w_in_z"]),
                                     out_dtype=jnp.bfloat16)

    x_conv = dwconv_silu_pallas(x_inner.reshape(B, H, W, d_inner),
                                params["w_conv"], params["b_conv"],
                                out_dtype=jnp.bfloat16)                    # (B,H,W,d_inner)

    # qkv emitted as three head-contiguous (M, d_inner) bf16 tensors.
    q, k, v = multi_linear_pallas(x_conv.reshape(M, d_inner),
                                  (params["w_q"], params["w_k"], params["w_v"]),
                                  out_dtype=jnp.bfloat16)
    q = q.reshape(B, L, d_inner)
    k = k.reshape(B, L, d_inner)
    v = v.reshape(B, L, d_inner)

    x_attn = attention_pallas(q, k, v, num_heads=num_heads,
                              out_dtype=jnp.bfloat16)                      # (B, L, d_inner)

    out = proj_ln_gate_out_pallas(x_attn.reshape(M, d_inner), z,
                                  params["w_proj"], params["ln_gamma"], params["ln_beta"],
                                  params["w_out"], eps=eps, out_dtype=x.dtype)
    # TODO(synk): nn.Dropout with default dropout=0.0 is an identity; omitted.
    return out.reshape(B, H, W, C)


# ------------------- pure-JAX reference mirroring the kernel dataflow (bf16 boundaries) -------------------

def reference_forward(x, torch_params, *, num_heads=8, eps=1e-5):
    B, H, W, C = x.shape
    w_in = torch_params["w_in"]
    d_inner = w_in.shape[0] // 2
    hd = d_inner // num_heads
    L = H * W

    def mm(a, w):   # torch-layout (N, K) weight; bf16 MXU inputs, f32 accumulation
        return jax.lax.dot_general(a.astype(jnp.bfloat16), w.astype(jnp.bfloat16),
                                   (((a.ndim - 1,), (1,)), ((), ())),
                                   preferred_element_type=jnp.float32)

    xz = mm(x, w_in)
    x_inner = xz[..., :d_inner].astype(jnp.bfloat16)
    z = xz[..., d_inner:].astype(jnp.bfloat16)

    xf = x_inner.astype(jnp.float32)
    xp = jnp.pad(xf, ((0, 0), (1, 1), (1, 1), (0, 0)))
    conv = jnp.zeros_like(xf)
    for dy in range(3):
        for dx in range(3):
            conv = conv + xp[:, dy:dy + H, dx:dx + W, :] * torch_params["w_conv"][dy, dx]
    conv = conv + torch_params["b_conv"]
    conv = (conv * jax.nn.sigmoid(conv)).astype(jnp.bfloat16)

    x_flat = conv.reshape(B, L, d_inner)
    w_qkv = torch_params["w_qkv"]
    q = mm(x_flat, w_qkv[:d_inner]).astype(jnp.bfloat16).reshape(B, L, num_heads, hd)
    k = mm(x_flat, w_qkv[d_inner:2 * d_inner]).astype(jnp.bfloat16).reshape(B, L, num_heads, hd)
    v = mm(x_flat, w_qkv[2 * d_inner:]).astype(jnp.bfloat16).reshape(B, L, num_heads, hd)

    scale = hd ** -0.5
    qs = (q.astype(jnp.float32) * scale).astype(jnp.bfloat16)
    s = jnp.einsum("blhd,bmhd->bhlm", qs, k, preferred_element_type=jnp.float32)
    m = jnp.max(s, axis=-1, keepdims=True)
    p = jnp.exp(s - m)
    l = jnp.sum(p, axis=-1, keepdims=True)
    o = jnp.einsum("bhlm,bmhd->blhd", p.astype(jnp.bfloat16), v,
                   preferred_element_type=jnp.float32)
    o = o / jnp.transpose(l, (0, 2, 1, 3))
    x_attn = o.reshape(B, L, d_inner).astype(jnp.bfloat16)

    y = mm(x_attn, torch_params["w_proj"])
    mu = y.mean(-1, keepdims=True)
    var = ((y - mu) ** 2).mean(-1, keepdims=True)
    y = (y - mu) * jax.lax.rsqrt(var + eps) * torch_params["ln_gamma"] + torch_params["ln_beta"]
    zf = z.reshape(B, L, d_inner).astype(jnp.float32)
    y = y * (zf * jax.nn.sigmoid(zf))
    out = mm(y, torch_params["w_out"])
    return out.reshape(B, H, W, C)


if __name__ == "__main__":
    B, H, W, d_model = 2, 8, 8, 32     # d_inner = 64, num_heads = 8, head_dim = 8, L = 64
    key = jax.random.PRNGKey(0)
    kx, kp = jax.random.split(key)
    x = jax.random.normal(kx, (B, H, W, d_model), jnp.float32)
    torch_params = init_params(kp, d_model)
    params = prepare_params(torch_params)   # one-time: bf16, (K, N) layout

    fwd = jax.jit(partial(simplified_ss2d_forward, num_heads=8))
    out = jax.block_until_ready(fwd(x, params))
    assert out.shape == (B, H, W, d_model)

    ref = reference_forward(x, torch_params)
    err = float(jnp.max(jnp.abs(out - ref)))
    assert err < 5e-3, f"max abs err {err}"
    print("KERNEL_OK")
</pallas_src>

<mosaic_0001>
module attributes {stable_mosaic.version = 11 : i64} {
  func.func @_multi_linear_resident_kernel(%arg0: i32, %arg1: memref<128x64xbf16, #tpu.memory_space<vmem>>, %arg2: memref<64x64xbf16, #tpu.memory_space<vmem>>, %arg3: memref<64x64xbf16, #tpu.memory_space<vmem>>, %arg4: memref<64x64xbf16, #tpu.memory_space<vmem>>, %arg5: memref<128x64xbf16, #tpu.memory_space<vmem>>, %arg6: memref<128x64xbf16, #tpu.memory_space<vmem>>, %arg7: memref<128x64xbf16, #tpu.memory_space<vmem>>) attributes {dimension_semantics = [#tpu.dimension_semantics<parallel>], iteration_bounds = array<i64: 1>, scalar_prefetch = 0 : i64, scratch_operands = 0 : i64, tpu.core_type = #tpu.core_type<tc>, window_params = [{transform_indices = @transform_0, window_bounds = array<i64: 128, 64>}, {pipeline_mode = #tpu.pipeline_mode<synchronous>, transform_indices = @transform_1, window_bounds = array<i64: 64, 64>}, {pipeline_mode = #tpu.pipeline_mode<synchronous>, transform_indices = @transform_2, window_bounds = array<i64: 64, 64>}, {pipeline_mode = #tpu.pipeline_mode<synchronous>, transform_indices = @transform_3, window_bounds = array<i64: 64, 64>}, {transform_indices = @transform_4, window_bounds = array<i64: 128, 64>}, {transform_indices = @transform_5, window_bounds = array<i64: 128, 64>}, {transform_indices = @transform_6, window_bounds = array<i64: 128, 64>}]} {
    %c0 = arith.constant 0 : index
    %c0_0 = arith.constant 0 : index
    %0 = vector.load %arg1[%c0, %c0_0] : memref<128x64xbf16, #tpu.memory_space<vmem>>, vector<128x64xbf16>
    %c0_1 = arith.constant 0 : index
    %c0_2 = arith.constant 0 : index
    %1 = vector.load %arg2[%c0_1, %c0_2] : memref<64x64xbf16, #tpu.memory_space<vmem>>, vector<64x64xbf16>
    %cst = arith.constant dense<0.000000e+00> : vector<128x64xf32>
    %2 = tpu.matmul %0, %1, %cst {dimension_numbers = #tpu.dot_dimension_numbers<[1], [0], [0], [1], [0, 0, 1, 1], [], []>} : vector<128x64xbf16>, vector<64x64xbf16>, vector<128x64xf32> -> vector<128x64xf32>
    %3 = arith.truncf %2 : vector<128x64xf32> to vector<128x64xbf16>
    %c0_3 = arith.constant 0 : index
    %c0_4 = arith.constant 0 : index
    %4 = vector.load %arg5[%c0_3, %c0_4] : memref<128x64xbf16, #tpu.memory_space<vmem>>, vector<128x64xbf16>
    tpu.vector_store %arg5[%c0_3, %c0_4], %3 {strides = array<i32>} : memref<128x64xbf16, #tpu.memory_space<vmem>>, vector<128x64xbf16>,
    %c0_5 = arith.constant 0 : index
    %c0_6 = arith.constant 0 : index
    %5 = vector.load %arg3[%c0_5, %c0_6] : memref<64x64xbf16, #tpu.memory_space<vmem>>, vector<64x64xbf16>
    %cst_7 = arith.constant dense<0.000000e+00> : vector<128x64xf32>
    %6 = tpu.matmul %0, %5, %cst_7 {dimension_numbers = #tpu.dot_dimension_numbers<[1], [0], [0], [1], [0, 0, 1, 1], [], []>} : vector<128x64xbf16>, vector<64x64xbf16>, vector<128x64xf32> -> vector<128x64xf32>
    %7 = arith.truncf %6 : vector<128x64xf32> to vector<128x64xbf16>
    %c0_8 = arith.constant 0 : index
    %c0_9 = arith.constant 0 : index
    %8 = vector.load %arg6[%c0_8, %c0_9] : memref<128x64xbf16, #tpu.memory_space<vmem>>, vector<128x64xbf16>
    tpu.vector_store %arg6[%c0_8, %c0_9], %7 {strides = array<i32>} : memref<128x64xbf16, #tpu.memory_space<vmem>>, vector<128x64xbf16>,
    %c0_10 = arith.constant 0 : index
    %c0_11 = arith.constant 0 : index
    %9 = vector.load %arg4[%c0_10, %c0_11] : memref<64x64xbf16, #tpu.memory_space<vmem>>, vector<64x64xbf16>
    %cst_12 = arith.constant dense<0.000000e+00> : vector<128x64xf32>
    %10 = tpu.matmul %0, %9, %cst_12 {dimension_numbers = #tpu.dot_dimension_numbers<[1], [0], [0], [1], [0, 0, 1, 1], [], []>} : vector<128x64xbf16>, vector<64x64xbf16>, vector<128x64xf32> -> vector<128x64xf32>
    %11 = arith.truncf %10 : vector<128x64xf32> to vector<128x64xbf16>
    %c0_13 = arith.constant 0 : index
    %c0_14 = arith.constant 0 : index
    %12 = vector.load %arg7[%c0_13, %c0_14] : memref<128x64xbf16, #tpu.memory_space<vmem>>, vector<128x64xbf16>
    tpu.vector_store %arg7[%c0_13, %c0_14], %11 {strides = array<i32>} : memref<128x64xbf16, #tpu.memory_space<vmem>>, vector<128x64xbf16>,
    return
  }
  func.func @transform_0(%arg0: i32) -> (i32, i32) {
    %c0_i32 = arith.constant 0 : i32
    %c0_i32_0 = arith.constant 0 : i32
    return %arg0, %c0_i32 : i32, i32
  }
  func.func @transform_1(%arg0: i32) -> (i32, i32) {
    %c0_i32 = arith.constant 0 : i32
    %c0_i32_0 = arith.constant 0 : i32
    %c0_i32_1 = arith.constant 0 : i32
    return %c0_i32, %c0_i32_0 : i32, i32
  }
  func.func @transform_2(%arg0: i32) -> (i32, i32) {
    %c0_i32 = arith.constant 0 : i32
    %c0_i32_0 = arith.constant 0 : i32
    %c0_i32_1 = arith.constant 0 : i32
    return %c0_i32, %c0_i32_0 : i32, i32
  }
  func.func @transform_3(%arg0: i32) -> (i32, i32) {
    %c0_i32 = arith.constant 0 : i32
    %c0_i32_0 = arith.constant 0 : i32
    %c0_i32_1 = arith.constant 0 : i32
    return %c0_i32, %c0_i32_0 : i32, i32
  }
  func.func @transform_4(%arg0: i32) -> (i32, i32) {
    %c0_i32 = arith.constant 0 : i32
    %c0_i32_0 = arith.constant 0 : i32
    return %arg0, %c0_i32 : i32, i32
  }
  func.func @transform_5(%arg0: i32) -> (i32, i32) {
    %c0_i32 = arith.constant 0 : i32
    %c0_i32_0 = arith.constant 0 : i32
    return %arg0, %c0_i32 : i32, i32
  }
  func.func @transform_6(%arg0: i32) -> (i32, i32) {
    %c0_i32 = arith.constant 0 : i32
    %c0_i32_0 = arith.constant 0 : i32
    return %arg0, %c0_i32 : i32, i32
  }
}

module attributes {stable_mosaic.version = 11 : i64} {
  func.func @_multi_linear_resident_kernel(%arg0: i32, %arg1: memref<128x32xf32, #tpu.memory_space<vmem>>, %arg2: memref<32x64xbf16, #tpu.memory_space<vmem>>, %arg3: memref<32x64xbf16, #tpu.memory_space<vmem>>, %arg4: memref<128x64xbf16, #tpu.memory_space<vmem>>, %arg5: memref<128x64xbf16, #tpu.memory_space<vmem>>) attributes {dimension_semantics = [#tpu.dimension_semantics<parallel>], iteration_bounds = array<i64: 1>, scalar_prefetch = 0 : i64, scratch_operands = 0 : i64, tpu.core_type = #tpu.core_type<tc>, window_params = [{transform_indices = @transform_0, window_bounds = array<i64: 128, 32>}, {pipeline_mode = #tpu.pipeline_mode<synchronous>, transform_indices = @transform_1, window_bounds = array<i64: 32, 64>}, {pipeline_mode = #tpu.pipeline_mode<synchronous>, transform_indices = @transform_2, window_bounds = array<i64: 32, 64>}, {transform_indices = @transform_3, window_bounds = array<i64: 128, 64>}, {transform_indices = @transform_4, window_bounds = array<i64: 128, 64>}]} {
    %c0 = arith.constant 0 : index
    %c0_0 = arith.constant 0 : index
    %0 = vector.load %arg1[%c0, %c0_0] : memref<128x32xf32, #tpu.memory_space<vmem>>, vector<128x32xf32>
    %1 = arith.truncf %0 : vector<128x32xf32> to vector<128x32xbf16>
    %c0_1 = arith.constant 0 : index
    %c0_2 = arith.constant 0 : index
    %2 = vector.load %arg2[%c0_1, %c0_2] : memref<32x64xbf16, #tpu.memory_space<vmem>>, vector<32x64xbf16>
    %cst = arith.constant dense<0.000000e+00> : vector<128x64xf32>
    %3 = tpu.matmul %1, %2, %cst {dimension_numbers = #tpu.dot_dimension_numbers<[1], [0], [0], [1], [0, 0, 1, 1], [], []>} : vector<128x32xbf16>, vector<32x64xbf16>, vector<128x64xf32> -> vector<128x64xf32>
    %4 = arith.truncf %3 : vector<128x64xf32> to vector<128x64xbf16>
    %c0_3 = arith.constant 0 : index
    %c0_4 = arith.constant 0 : index
    %5 = vector.load %arg4[%c0_3, %c0_4] : memref<128x64xbf16, #tpu.memory_space<vmem>>, vector<128x64xbf16>
    tpu.vector_store %arg4[%c0_3, %c0_4], %4 {strides = array<i32>} : memref<128x64xbf16, #tpu.memory_space<vmem>>, vector<128x64xbf16>,
    %c0_5 = arith.constant 0 : index
    %c0_6 = arith.constant 0 : index
    %6 = vector.load %arg3[%c0_5, %c0_6] : memref<32x64xbf16, #tpu.memory_space<vmem>>, vector<32x64xbf16>
    %cst_7 = arith.constant dense<0.000000e+00> : vector<128x64xf32>
    %7 = tpu.matmul %1, %6, %cst_7 {dimension_numbers = #tpu.dot_dimension_numbers<[1], [0], [0], [1], [0, 0, 1, 1], [], []>} : vector<128x32xbf16>, vector<32x64xbf16>, vector<128x64xf32> -> vector<128x64xf32>
    %8 = arith.truncf %7 : vector<128x64xf32> to vector<128x64xbf16>
    %c0_8 = arith.constant 0 : index
    %c0_9 = arith.constant 0 : index
    %9 = vector.load %arg5[%c0_8, %c0_9] : memref<128x64xbf16, #tpu.memory_space<vmem>>, vector<128x64xbf16>
    tpu.vector_store %arg5[%c0_8, %c0_9], %8 {strides = array<i32>} : memref<128x64xbf16, #tpu.memory_space<vmem>>, vector<128x64xbf16>,
    return
  }
  func.func @transform_0(%arg0: i32) -> (i32, i32) {
    %c0_i32 = arith.constant 0 : i32
    %c0_i32_0 = arith.constant 0 : i32
    return %arg0, %c0_i32 : i32, i32
  }
  func.func @transform_1(%arg0: i32) -> (i32, i32) {
    %c0_i32 = arith.constant 0 : i32
    %c0_i32_0 = arith.constant 0 : i32
    %c0_i32_1 = arith.constant 0 : i32
    return %c0_i32, %c0_i32_0 : i32, i32
  }
  func.func @transform_2(%arg0: i32) -> (i32, i32) {
    %c0_i32 = arith.constant 0 : i32
    %c0_i32_0 = arith.constant 0 : i32
    %c0_i32_1 = arith.constant 0 : i32
    return %c0_i32, %c0_i32_0 : i32, i32
  }
  func.func @transform_3(%arg0: i32) -> (i32, i32) {
    %c0_i32 = arith.constant 0 : i32
    %c0_i32_0 = arith.constant 0 : i32
    return %arg0, %c0_i32 : i32, i32
  }
  func.func @transform_4(%arg0: i32) -> (i32, i32) {
    %c0_i32 = arith.constant 0 : i32
    %c0_i32_0 = arith.constant 0 : i32
    return %arg0, %c0_i32 : i32, i32
  }
}

module attributes {stable_mosaic.version = 11 : i64} {
  func.func @_dwconv_silu_kernel(%arg0: i32, %arg1: i32, %arg2: memref<1x8x8x64xbf16, #tpu.memory_space<vmem>>, %arg3: memref<3x3x64xf32, #tpu.memory_space<vmem>>, %arg4: memref<1x1x64xf32, #tpu.memory_space<vmem>>, %arg5: memref<1x8x8x64xbf16, #tpu.memory_space<vmem>>) attributes {dimension_semantics = [#tpu.dimension_semantics<parallel>, #tpu.dimension_semantics<parallel>], iteration_bounds = array<i64: 2, 1>, scalar_prefetch = 0 : i64, scratch_operands = 0 : i64, tpu.core_type = #tpu.core_type<tc>, window_params = [{transform_indices = @transform_0, window_bounds = array<i64: 1, 8, 8, 64>}, {transform_indices = @transform_1, window_bounds = array<i64: 3, 3, 64>}, {transform_indices = @transform_2, window_bounds = array<i64: 1, 1, 64>}, {transform_indices = @transform_3, window_bounds = array<i64: 1, 8, 8, 64>}]} {
    %c0 = arith.constant 0 : index
    %c0_0 = arith.constant 0 : index
    %c0_1 = arith.constant 0 : index
    %c0_2 = arith.constant 0 : index
    %0 = vector.load %arg2[%c0, %c0_0, %c0_1, %c0_2] : memref<1x8x8x64xbf16, #tpu.memory_space<vmem>>, vector<1x8x8x64xbf16>
    %1 = vector.shape_cast %0 : vector<1x8x8x64xbf16> to vector<8x8x64xbf16>
    %2 = arith.extf %1 : vector<8x8x64xbf16> to vector<8x8x64xf32>
    %c0_3 = arith.constant 0 : index
    %c0_4 = arith.constant 0 : index
    %c0_5 = arith.constant 0 : index
    %3 = vector.load %arg3[%c0_3, %c0_4, %c0_5] : memref<3x3x64xf32, #tpu.memory_space<vmem>>, vector<3x3x64xf32>
    %cst = arith.constant 0.000000e+00 : f32
    %4 = vector.broadcast %cst : f32 to vector<1x8x64xf32>
    %cst_6 = arith.constant 0.000000e+00 : f32
    %5 = vector.broadcast %cst_6 : f32 to vector<8x1x64xf32>
    %cst_7 = arith.constant 0.000000e+00 : f32
    %6 = vector.broadcast %cst_7 : f32 to vector<8x8x64xf32>
    %7 = vector.extract_strided_slice %2 {offsets = [0, 0, 0], sizes = [7, 8, 64], strides = [1, 1, 1]} : vector<8x8x64xf32> to vector<7x8x64xf32>
    %8 = tpu.concatenate %4, %7 in 0 : vector<1x8x64xf32>, vector<7x8x64xf32> -> vector<8x8x64xf32>
    %9 = vector.extract_strided_slice %8 {offsets = [0, 0, 0], sizes = [8, 7, 64], strides = [1, 1, 1]} : vector<8x8x64xf32> to vector<8x7x64xf32>
    %10 = tpu.concatenate %5, %9 in 1 : vector<8x1x64xf32>, vector<8x7x64xf32> -> vector<8x8x64xf32>
    %11 = vector.extract_strided_slice %3 {offsets = [0, 0, 0], sizes = [1, 1, 64], strides = [1, 1, 1]} : vector<3x3x64xf32> to vector<1x1x64xf32>
    %12 = vector.shape_cast %11 : vector<1x1x64xf32> to vector<64xf32>
    %13 = vector.shape_cast %12 : vector<64xf32> to vector<1x1x64xf32>
    %14 = vector.broadcast %13 : vector<1x1x64xf32> to vector<8x8x64xf32>
    %15 = arith.mulf %10, %14 : vector<8x8x64xf32>
    %16 = arith.addf %6, %15 : vector<8x8x64xf32>
    %17 = vector.extract_strided_slice %3 {offsets = [0, 1, 0], sizes = [1, 1, 64], strides = [1, 1, 1]} : vector<3x3x64xf32> to vector<1x1x64xf32>
    %18 = vector.shape_cast %17 : vector<1x1x64xf32> to vector<64xf32>
    %19 = vector.shape_cast %18 : vector<64xf32> to vector<1x1x64xf32>
    %20 = vector.broadcast %19 : vector<1x1x64xf32> to vector<8x8x64xf32>
    %21 = arith.mulf %8, %20 : vector<8x8x64xf32>
    %22 = arith.addf %16, %21 : vector<8x8x64xf32>
    %23 = vector.extract_strided_slice %8 {offsets = [0, 1, 0], sizes = [8, 7, 64], strides = [1, 1, 1]} : vector<8x8x64xf32> to vector<8x7x64xf32>
    %24 = tpu.concatenate %23, %5 in 1 : vector<8x7x64xf32>, vector<8x1x64xf32> -> vector<8x8x64xf32>
    %25 = vector.extract_strided_slice %3 {offsets = [0, 2, 0], sizes = [1, 1, 64], strides = [1, 1, 1]} : vector<3x3x64xf32> to vector<1x1x64xf32>
    %26 = vector.shape_cast %25 : vector<1x1x64xf32> to vector<64xf32>
    %27 = vector.shape_cast %26 : vector<64xf32> to vector<1x1x64xf32>
    %28 = vector.broadcast %27 : vector<1x1x64xf32> to vector<8x8x64xf32>
    %29 = arith.mulf %24, %28 : vector<8x8x64xf32>
    %30 = arith.addf %22, %29 : vector<8x8x64xf32>
    %31 = vector.extract_strided_slice %2 {offsets = [0, 0, 0], sizes = [8, 7, 64], strides = [1, 1, 1]} : vector<8x8x64xf32> to vector<8x7x64xf32>
    %32 = tpu.concatenate %5, %31 in 1 : vector<8x1x64xf32>, vector<8x7x64xf32> -> vector<8x8x64xf32>
    %33 = vector.extract_strided_slice %3 {offsets = [1, 0, 0], sizes = [1, 1, 64], strides = [1, 1, 1]} : vector<3x3x64xf32> to vector<1x1x64xf32>
    %34 = vector.shape_cast %33 : vector<1x1x64xf32> to vector<64xf32>
    %35 = vector.shape_cast %34 : vector<64xf32> to vector<1x1x64xf32>
    %36 = vector.broadcast %35 : vector<1x1x64xf32> to vector<8x8x64xf32>
    %37 = arith.mulf %32, %36 : vector<8x8x64xf32>
    %38 = arith.addf %30, %37 : vector<8x8x64xf32>
    %39 = vector.extract_strided_slice %3 {offsets = [1, 1, 0], sizes = [1, 1, 64], strides = [1, 1, 1]} : vector<3x3x64xf32> to vector<1x1x64xf32>
    %40 = vector.shape_cast %39 : vector<1x1x64xf32> to vector<64xf32>
    %41 = vector.shape_cast %40 : vector<64xf32> to vector<1x1x64xf32>
    %42 = vector.broadcast %41 : vector<1x1x64xf32> to vector<8x8x64xf32>
    %43 = arith.mulf %2, %42 : vector<8x8x64xf32>
    %44 = arith.addf %38, %43 : vector<8x8x64xf32>
    %45 = vector.extract_strided_slice %2 {offsets = [0, 1, 0], sizes = [8, 7, 64], strides = [1, 1, 1]} : vector<8x8x64xf32> to vector<8x7x64xf32>
    %46 = tpu.concatenate %45, %5 in 1 : vector<8x7x64xf32>, vector<8x1x64xf32> -> vector<8x8x64xf32>
    %47 = vector.extract_strided_slice %3 {offsets = [1, 2, 0], sizes = [1, 1, 64], strides = [1, 1, 1]} : vector<3x3x64xf32> to vector<1x1x64xf32>
    %48 = vector.shape_cast %47 : vector<1x1x64xf32> to vector<64xf32>
    %49 = vector.shape_cast %48 : vector<64xf32> to vector<1x1x64xf32>
    %50 = vector.broadcast %49 : vector<1x1x64xf32> to vector<8x8x64xf32>
    %51 = arith.mulf %46, %50 : vector<8x8x64xf32>
    %52 = arith.addf %44, %51 : vector<8x8x64xf32>
    %53 = vector.extract_strided_slice %2 {offsets = [1, 0, 0], sizes = [7, 8, 64], strides = [1, 1, 1]} : vector<8x8x64xf32> to vector<7x8x64xf32>
    %54 = tpu.concatenate %53, %4 in 0 : vector<7x8x64xf32>, vector<1x8x64xf32> -> vector<8x8x64xf32>
    %55 = vector.extract_strided_slice %54 {offsets = [0, 0, 0], sizes = [8, 7, 64], strides = [1, 1, 1]} : vector<8x8x64xf32> to vector<8x7x64xf32>
    %56 = tpu.concatenate %5, %55 in 1 : vector<8x1x64xf32>, vector<8x7x64xf32> -> vector<8x8x64xf32>
    %57 = vector.extract_strided_slice %3 {offsets = [2, 0, 0], sizes = [1, 1, 64], strides = [1, 1, 1]} : vector<3x3x64xf32> to vector<1x1x64xf32>
    %58 = vector.shape_cast %57 : vector<1x1x64xf32> to vector<64xf32>
    %59 = vector.shape_cast %58 : vector<64xf32> to vector<1x1x64xf32>
    %60 = vector.broadcast %59 : vector<1x1x64xf32> to vector<8x8x64xf32>
    %61 = arith.mulf %56, %60 : vector<8x8x64xf32>
    %62 = arith.addf %52, %61 : vector<8x8x64xf32>
    %63 = vector.extract_strided_slice %3 {offsets = [2, 1, 0], sizes = [1, 1, 64], strides = [1, 1, 1]} : vector<3x3x64xf32> to vector<1x1x64xf32>
    %64 = vector.shape_cast %63 : vector<1x1x64xf32> to vector<64xf32>
    %65 = vector.shape_cast %64 : vector<64xf32> to vector<1x1x64xf32>
    %66 = vector.broadcast %65 : vector<1x1x64xf32> to vector<8x8x64xf32>
    %67 = arith.mulf %54, %66 : vector<8x8x64xf32>
    %68 = arith.addf %62, %67 : vector<8x8x64xf32>
    %69 = vector.extract_strided_slice %54 {offsets = [0, 1, 0], sizes = [8, 7, 64], strides = [1, 1, 1]} : vector<8x8x64xf32> to vector<8x7x64xf32>
    %70 = tpu.concatenate %69, %5 in 1 : vector<8x7x64xf32>, vector<8x1x64xf32> -> vector<8x8x64xf32>
    %71 = vector.extract_strided_slice %3 {offsets = [2, 2, 0], sizes = [1, 1, 64], strides = [1, 1, 1]} : vector<3x3x64xf32> to vector<1x1x64xf32>
    %72 = vector.shape_cast %71 : vector<1x1x64xf32> to vector<64xf32>
    %73 = vector.shape_cast %72 : vector<64xf32> to vector<1x1x64xf32>
    %74 = vector.broadcast %73 : vector<1x1x64xf32> to vector<8x8x64xf32>
    %75 = arith.mulf %70, %74 : vector<8x8x64xf32>
    %76 = arith.addf %68, %75 : vector<8x8x64xf32>
    %c0_8 = arith.constant 0 : index
    %c0_9 = arith.constant 0 : index
    %c0_10 = arith.constant 0 : index
    %77 = vector.load %arg4[%c0_8, %c0_9, %c0_10] : memref<1x1x64xf32, #tpu.memory_space<vmem>>, vector<1x1x64xf32>
    %78 = vector.broadcast %77 : vector<1x1x64xf32> to vector<8x8x64xf32>
    %79 = arith.addf %76, %78 : vector<8x8x64xf32>
    %80 = arith.negf %79 : vector<8x8x64xf32>
    %81 = math.exp %80 : vector<8x8x64xf32>
    %cst_11 = arith.constant 1.000000e+00 : f32
    %82 = vector.broadcast %cst_11 : f32 to vector<8x8x64xf32>
    %83 = arith.addf %82, %81 : vector<8x8x64xf32>
    %84 = arith.divf %82, %83 : vector<8x8x64xf32>
    %85 = arith.mulf %79, %84 : vector<8x8x64xf32>
    %86 = arith.truncf %85 : vector<8x8x64xf32> to vector<8x8x64xbf16>
    %c0_12 = arith.constant 0 : index
    %c0_13 = arith.constant 0 : index
    %c0_14 = arith.constant 0 : index
    %c0_15 = arith.constant 0 : index
    %87 = vector.load %arg5[%c0_12, %c0_13, %c0_14, %c0_15] : memref<1x8x8x64xbf16, #tpu.memory_space<vmem>>, vector<1x8x8x64xbf16>
    %88 = vector.shape_cast %87 : vector<1x8x8x64xbf16> to vector<8x8x64xbf16>
    %89 = vector.shape_cast %86 : vector<8x8x64xbf16> to vector<1x8x8x64xbf16>
    tpu.vector_store %arg5[%c0_12, %c0_13, %c0_14, %c0_15], %89 {strides = array<i32>} : memref<1x8x8x64xbf16, #tpu.memory_space<vmem>>, vector<1x8x8x64xbf16>,
    return
  }
  func.func @transform_0(%arg0: i32, %arg1: i32) -> (i32, i32, i32, i32) {
    %c0_i32 = arith.constant 0 : i32
    %c0_i32_0 = arith.constant 0 : i32
    %c0_i32_1 = arith.constant 0 : i32
    return %arg0, %c0_i32, %c0_i32_0, %arg1 : i32, i32, i32, i32
  }
  func.func @transform_1(%arg0: i32, %arg1: i32) -> (i32, i32, i32) {
    %c0_i32 = arith.constant 0 : i32
    %c0_i32_0 = arith.constant 0 : i32
    %c0_i32_1 = arith.constant 0 : i32
    return %c0_i32, %c0_i32_0, %arg1 : i32, i32, i32
  }
  func.func @transform_2(%arg0: i32, %arg1: i32) -> (i32, i32, i32) {
    %c0_i32 = arith.constant 0 : i32
    %c0_i32_0 = arith.constant 0 : i32
    %c0_i32_1 = arith.constant 0 : i32
    return %c0_i32, %c0_i32_0, %arg1 : i32, i32, i32
  }
  func.func @transform_3(%arg0: i32, %arg1: i32) -> (i32, i32, i32, i32) {
    %c0_i32 = arith.constant 0 : i32
    %c0_i32_0 = arith.constant 0 : i32
    %c0_i32_1 = arith.constant 0 : i32
    return %arg0, %c0_i32, %c0_i32_0, %arg1 : i32, i32, i32, i32
  }
}

module attributes {stable_mosaic.version = 11 : i64} {
  func.func @_flash_attn_kernel(%arg0: i32, %arg1: i32, %arg2: i32, %arg3: memref<1x64x64xbf16, #tpu.memory_space<vmem>>, %arg4: memref<1x64x64xbf16, #tpu.memory_space<vmem>>, %arg5: memref<1x64x64xbf16, #tpu.memory_space<vmem>>, %arg6: memref<1x64x64xbf16, #tpu.memory_space<vmem>>, %arg7: memref<64x8xf32, #tpu.memory_space<vmem>>, %arg8: memref<64x8xf32, #tpu.memory_space<vmem>>, %arg9: memref<64x64xf32, #tpu.memory_space<vmem>>) attributes {dimension_semantics = [#tpu.dimension_semantics<parallel>, #tpu.dimension_semantics<parallel>, #tpu.dimension_semantics<arbitrary>], iteration_bounds = array<i64: 2, 1, 1>, scalar_prefetch = 0 : i64, scratch_operands = 3 : i64, tpu.core_type = #tpu.core_type<tc>, window_params = [{transform_indices = @transform_0, window_bounds = array<i64: 1, 64, 64>}, {transform_indices = @transform_1, window_bounds = array<i64: 1, 64, 64>}, {transform_indices = @transform_2, window_bounds = array<i64: 1, 64, 64>}, {transform_indices = @transform_3, window_bounds = array<i64: 1, 64, 64>}]} {
    %c0_i32 = arith.constant 0 : i32
    %0 = arith.cmpi eq, %arg2, %c0_i32 : i32
    %1 = arith.extui %0 : i1 to i32
    %c0_i32_0 = arith.constant 0 : i32
    %2 = arith.cmpi ne, %1, %c0_i32_0 : i32
    scf.if %2 {
      %cst_195 = arith.constant 0xFF800000 : f32
      %278 = vector.broadcast %cst_195 : f32 to vector<64x8xf32>
      %c0_196 = arith.constant 0 : index
      %c0_197 = arith.constant 0 : index
      %279 = vector.load %arg7[%c0_196, %c0_197] : memref<64x8xf32, #tpu.memory_space<vmem>>, vector<64x8xf32>
      tpu.vector_store %arg7[%c0_196, %c0_197], %278 {strides = array<i32>} : memref<64x8xf32, #tpu.memory_space<vmem>>, vector<64x8xf32>,
      %cst_198 = arith.constant 0.000000e+00 : f32
      %280 = vector.broadcast %cst_198 : f32 to vector<64x8xf32>
      %c0_199 = arith.constant 0 : index
      %c0_200 = arith.constant 0 : index
      %281 = vector.load %arg8[%c0_199, %c0_200] : memref<64x8xf32, #tpu.memory_space<vmem>>, vector<64x8xf32>
      tpu.vector_store %arg8[%c0_199, %c0_200], %280 {strides = array<i32>} : memref<64x8xf32, #tpu.memory_space<vmem>>, vector<64x8xf32>,
      %cst_201 = arith.constant 0.000000e+00 : f32
      %282 = vector.broadcast %cst_201 : f32 to vector<64x64xf32>
      %c0_202 = arith.constant 0 : index
      %c0_203 = arith.constant 0 : index
      %283 = vector.load %arg9[%c0_202, %c0_203] : memref<64x64xf32, #tpu.memory_space<vmem>>, vector<64x64xf32>
      tpu.vector_store %arg9[%c0_202, %c0_203], %282 {strides = array<i32>} : memref<64x64xf32, #tpu.memory_space<vmem>>, vector<64x64xf32>,
    } else {
    }
    %c0 = arith.constant 0 : index
    %c0_1 = arith.constant 0 : index
    %c0_2 = arith.constant 0 : index
    %3 = vector.load %arg3[%c0, %c0_1, %c0_2] : memref<1x64x64xbf16, #tpu.memory_space<vmem>>, vector<1x64x8xbf16>
    %4 = vector.shape_cast %3 : vector<1x64x8xbf16> to vector<64x8xbf16>
    %5 = arith.extf %4 : vector<64x8xbf16> to vector<64x8xf32>
    %cst = arith.constant 0.353553385 : f32
    %6 = vector.broadcast %cst : f32 to vector<64x8xf32>
    %7 = arith.mulf %5, %6 : vector<64x8xf32>
    %8 = arith.truncf %7 : vector<64x8xf32> to vector<64x8xbf16>
    %c0_3 = arith.constant 0 : index
    %c0_4 = arith.constant 0 : index
    %c0_5 = arith.constant 0 : index
    %9 = vector.load %arg4[%c0_3, %c0_4, %c0_5] : memref<1x64x64xbf16, #tpu.memory_space<vmem>>, vector<1x64x8xbf16>
    %10 = vector.shape_cast %9 : vector<1x64x8xbf16> to vector<64x8xbf16>
    %c0_6 = arith.constant 0 : index
    %c0_7 = arith.constant 0 : index
    %c0_8 = arith.constant 0 : index
    %11 = vector.load %arg5[%c0_6, %c0_7, %c0_8] : memref<1x64x64xbf16, #tpu.memory_space<vmem>>, vector<1x64x8xbf16>
    %12 = vector.shape_cast %11 : vector<1x64x8xbf16> to vector<64x8xbf16>
    %cst_9 = arith.constant dense<0.000000e+00> : vector<64x64xf32>
    %13 = tpu.matmul %8, %10, %cst_9 {dimension_numbers = #tpu.dot_dimension_numbers<[1], [1], [0], [0], [0, 0, 1, 0], [], []>} : vector<64x8xbf16>, vector<64x8xbf16>, vector<64x64xf32> -> vector<64x64xf32>
    %c0_10 = arith.constant 0 : index
    %c0_11 = arith.constant 0 : index
    %14 = vector.load %arg7[%c0_10, %c0_11] : memref<64x8xf32, #tpu.memory_space<vmem>>, vector<64x1xf32>
    %c0_12 = arith.constant 0 : index
    %c0_13 = arith.constant 0 : index
    %15 = vector.load %arg8[%c0_12, %c0_13] : memref<64x8xf32, #tpu.memory_space<vmem>>, vector<64x1xf32>
    %cst_14 = arith.constant dense<0xFF800000> : vector<64xf32>
    %16 = vector.multi_reduction <maximumf>, %13, %cst_14 [1] : vector<64x64xf32> to vector<64xf32>
    %17 = vector.shape_cast %16 : vector<64xf32> to vector<64x1xf32>
    %18 = arith.maximumf %14, %17 : vector<64x1xf32>
    %19 = arith.subf %14, %18 : vector<64x1xf32>
    %20 = math.exp %19 : vector<64x1xf32>
    %21 = vector.broadcast %18 : vector<64x1xf32> to vector<64x64xf32>
    %22 = arith.subf %13, %21 : vector<64x64xf32>
    %23 = math.exp %22 : vector<64x64xf32>
    %24 = arith.mulf %20, %15 : vector<64x1xf32>
    %cst_15 = arith.constant dense<0.000000e+00> : vector<64xf32>
    %25 = vector.multi_reduction <add>, %23, %cst_15 [1] : vector<64x64xf32> to vector<64xf32>
    %26 = vector.shape_cast %25 : vector<64xf32> to vector<64x1xf32>
    %27 = arith.addf %24, %26 : vector<64x1xf32>
    %c0_16 = arith.constant 0 : index
    %c0_17 = arith.constant 0 : index
    %28 = vector.load %arg9[%c0_16, %c0_17] : memref<64x64xf32, #tpu.memory_space<vmem>>, vector<64x8xf32>
    %29 = vector.broadcast %20 : vector<64x1xf32> to vector<64x8xf32>
    %30 = arith.mulf %29, %28 : vector<64x8xf32>
    %31 = arith.truncf %23 : vector<64x64xf32> to vector<64x64xbf16>
    %cst_18 = arith.constant dense<0.000000e+00> : vector<64x8xf32>
    %32 = tpu.matmul %31, %12, %cst_18 {dimension_numbers = #tpu.dot_dimension_numbers<[1], [0], [0], [1], [0, 0, 1, 1], [], []>} : vector<64x64xbf16>, vector<64x8xbf16>, vector<64x8xf32> -> vector<64x8xf32>
    %33 = arith.addf %30, %32 : vector<64x8xf32>
    %c0_19 = arith.constant 0 : index
    %c0_20 = arith.constant 0 : index
    %34 = vector.load %arg7[%c0_19, %c0_20] : memref<64x8xf32, #tpu.memory_space<vmem>>, vector<64x1xf32>
    tpu.vector_store %arg7[%c0_19, %c0_20], %18 {strides = array<i32>} : memref<64x8xf32, #tpu.memory_space<vmem>>, vector<64x1xf32>,
    %c0_21 = arith.constant 0 : index
    %c0_22 = arith.constant 0 : index
    %35 = vector.load %arg8[%c0_21, %c0_22] : memref<64x8xf32, #tpu.memory_space<vmem>>, vector<64x1xf32>
    tpu.vector_store %arg8[%c0_21, %c0_22], %27 {strides = array<i32>} : memref<64x8xf32, #tpu.memory_space<vmem>>, vector<64x1xf32>,
    %c0_23 = arith.constant 0 : index
    %c0_24 = arith.constant 0 : index
    %36 = vector.load %arg9[%c0_23, %c0_24] : memref<64x64xf32, #tpu.memory_space<vmem>>, vector<64x8xf32>
    tpu.vector_store %arg9[%c0_23, %c0_24], %33 {strides = array<i32>} : memref<64x64xf32, #tpu.memory_space<vmem>>, vector<64x8xf32>,
    %c0_25 = arith.constant 0 : index
    %c0_26 = arith.constant 0 : index
    %c8 = arith.constant 8 : index
    %37 = vector.load %arg3[%c0_25, %c0_26, %c8] : memref<1x64x64xbf16, #tpu.memory_space<vmem>>, vector<1x64x8xbf16>
    %38 = vector.shape_cast %37 : vector<1x64x8xbf16> to vector<64x8xbf16>
    %39 = arith.extf %38 : vector<64x8xbf16> to vector<64x8xf32>
    %cst_27 = arith.constant 0.353553385 : f32
    %40 = vector.broadcast %cst_27 : f32 to vector<64x8xf32>
    %41 = arith.mulf %39, %40 : vector<64x8xf32>
    %42 = arith.truncf %41 : vector<64x8xf32> to vector<64x8xbf16>
    %c0_28 = arith.constant 0 : index
    %c0_29 = arith.constant 0 : index
    %c8_30 = arith.constant 8 : index
    %43 = vector.load %arg4[%c0_28, %c0_29, %c8_30] : memref<1x64x64xbf16, #tpu.memory_space<vmem>>, vector<1x64x8xbf16>
    %44 = vector.shape_cast %43 : vector<1x64x8xbf16> to vector<64x8xbf16>
    %c0_31 = arith.constant 0 : index
    %c0_32 = arith.constant 0 : index
    %c8_33 = arith.constant 8 : index
    %45 = vector.load %arg5[%c0_31, %c0_32, %c8_33] : memref<1x64x64xbf16, #tpu.memory_space<vmem>>, vector<1x64x8xbf16>
    %46 = vector.shape_cast %45 : vector<1x64x8xbf16> to vector<64x8xbf16>
    %cst_34 = arith.constant dense<0.000000e+00> : vector<64x64xf32>
    %47 = tpu.matmul %42, %44, %cst_34 {dimension_numbers = #tpu.dot_dimension_numbers<[1], [1], [0], [0], [0, 0, 1, 0], [], []>} : vector<64x8xbf16>, vector<64x8xbf16>, vector<64x64xf32> -> vector<64x64xf32>
    %c0_35 = arith.constant 0 : index
    %c1 = arith.constant 1 : index
    %48 = vector.load %arg7[%c0_35, %c1] : memref<64x8xf32, #tpu.memory_space<vmem>>, vector<64x1xf32>
    %c0_36 = arith.constant 0 : index
    %c1_37 = arith.constant 1 : index
    %49 = vector.load %arg8[%c0_36, %c1_37] : memref<64x8xf32, #tpu.memory_space<vmem>>, vector<64x1xf32>
    %cst_38 = arith.constant dense<0xFF800000> : vector<64xf32>
    %50 = vector.multi_reduction <maximumf>, %47, %cst_38 [1] : vector<64x64xf32> to vector<64xf32>
    %51 = vector.shape_cast %50 : vector<64xf32> to vector<64x1xf32>
    %52 = arith.maximumf %48, %51 : vector<64x1xf32>
    %53 = arith.subf %48, %52 : vector<64x1xf32>
    %54 = math.exp %53 : vector<64x1xf32>
    %55 = vector.broadcast %52 : vector<64x1xf32> to vector<64x64xf32>
    %56 = arith.subf %47, %55 : vector<64x64xf32>
    %57 = math.exp %56 : vector<64x64xf32>
    %58 = arith.mulf %54, %49 : vector<64x1xf32>
    %cst_39 = arith.constant dense<0.000000e+00> : vector<64xf32>
    %59 = vector.multi_reduction <add>, %57, %cst_39 [1] : vector<64x64xf32> to vector<64xf32>
    %60 = vector.shape_cast %59 : vector<64xf32> to vector<64x1xf32>
    %61 = arith.addf %58, %60 : vector<64x1xf32>
    %c0_40 = arith.constant 0 : index
    %c8_41 = arith.constant 8 : index
    %62 = vector.load %arg9[%c0_40, %c8_41] : memref<64x64xf32, #tpu.memory_space<vmem>>, vector<64x8xf32>
    %63 = vector.broadcast %54 : vector<64x1xf32> to vector<64x8xf32>
    %64 = arith.mulf %63, %62 : vector<64x8xf32>
    %65 = arith.truncf %57 : vector<64x64xf32> to vector<64x64xbf16>
    %cst_42 = arith.constant dense<0.000000e+00> : vector<64x8xf32>
    %66 = tpu.matmul %65, %46, %cst_42 {dimension_numbers = #tpu.dot_dimension_numbers<[1], [0], [0], [1], [0, 0, 1, 1], [], []>} : vector<64x64xbf16>, vector<64x8xbf16>, vector<64x8xf32> -> vector<64x8xf32>
    %67 = arith.addf %64, %66 : vector<64x8xf32>
    %c0_43 = arith.constant 0 : index
    %c1_44 = arith.constant 1 : index
    %68 = vector.load %arg7[%c0_43, %c1_44] : memref<64x8xf32, #tpu.memory_space<vmem>>, vector<64x1xf32>
    tpu.vector_store %arg7[%c0_43, %c1_44], %52 {strides = array<i32>} : memref<64x8xf32, #tpu.memory_space<vmem>>, vector<64x1xf32>,
    %c0_45 = arith.constant 0 : index
    %c1_46 = arith.constant 1 : index
    %69 = vector.load %arg8[%c0_45, %c1_46] : memref<64x8xf32, #tpu.memory_space<vmem>>, vector<64x1xf32>
    tpu.vector_store %arg8[%c0_45, %c1_46], %61 {strides = array<i32>} : memref<64x8xf32, #tpu.memory_space<vmem>>, vector<64x1xf32>,
    %c0_47 = arith.constant 0 : index
    %c8_48 = arith.constant 8 : index
    %70 = vector.load %arg9[%c0_47, %c8_48] : memref<64x64xf32, #tpu.memory_space<vmem>>, vector<64x8xf32>
    tpu.vector_store %arg9[%c0_47, %c8_48], %67 {strides = array<i32>} : memref<64x64xf32, #tpu.memory_space<vmem>>, vector<64x8xf32>,
    %c0_49 = arith.constant 0 : index
    %c0_50 = arith.constant 0 : index
    %c16 = arith.constant 16 : index
    %71 = vector.load %arg3[%c0_49, %c0_50, %c16] : memref<1x64x64xbf16, #tpu.memory_space<vmem>>, vector<1x64x8xbf16>
    %72 = vector.shape_cast %71 : vector<1x64x8xbf16> to vector<64x8xbf16>
    %73 = arith.extf %72 : vector<64x8xbf16> to vector<64x8xf32>
    %cst_51 = arith.constant 0.353553385 : f32
    %74 = vector.broadcast %cst_51 : f32 to vector<64x8xf32>
    %75 = arith.mulf %73, %74 : vector<64x8xf32>
    %76 = arith.truncf %75 : vector<64x8xf32> to vector<64x8xbf16>
    %c0_52 = arith.constant 0 : index
    %c0_53 = arith.constant 0 : index
    %c16_54 = arith.constant 16 : index
    %77 = vector.load %arg4[%c0_52, %c0_53, %c16_54] : memref<1x64x64xbf16, #tpu.memory_space<vmem>>, vector<1x64x8xbf16>
    %78 = vector.shape_cast %77 : vector<1x64x8xbf16> to vector<64x8xbf16>
    %c0_55 = arith.constant 0 : index
    %c0_56 = arith.constant 0 : index
    %c16_57 = arith.constant 16 : index
    %79 = vector.load %arg5[%c0_55, %c0_56, %c16_57] : memref<1x64x64xbf16, #tpu.memory_space<vmem>>, vector<1x64x8xbf16>
    %80 = vector.shape_cast %79 : vector<1x64x8xbf16> to vector<64x8xbf16>
    %cst_58 = arith.constant dense<0.000000e+00> : vector<64x64xf32>
    %81 = tpu.matmul %76, %78, %cst_58 {dimension_numbers = #tpu.dot_dimension_numbers<[1], [1], [0], [0], [0, 0, 1, 0], [], []>} : vector<64x8xbf16>, vector<64x8xbf16>, vector<64x64xf32> -> vector<64x64xf32>
    %c0_59 = arith.constant 0 : index
    %c2 = arith.constant 2 : index
    %82 = vector.load %arg7[%c0_59, %c2] : memref<64x8xf32, #tpu.memory_space<vmem>>, vector<64x1xf32>
    %c0_60 = arith.constant 0 : index
    %c2_61 = arith.constant 2 : index
    %83 = vector.load %arg8[%c0_60, %c2_61] : memref<64x8xf32, #tpu.memory_space<vmem>>, vector<64x1xf32>
    %cst_62 = arith.constant dense<0xFF800000> : vector<64xf32>
    %84 = vector.multi_reduction <maximumf>, %81, %cst_62 [1] : vector<64x64xf32> to vector<64xf32>
    %85 = vector.shape_cast %84 : vector<64xf32> to vector<64x1xf32>
    %86 = arith.maximumf %82, %85 : vector<64x1xf32>
    %87 = arith.subf %82, %86 : vector<64x1xf32>
    %88 = math.exp %87 : vector<64x1xf32>
    %89 = vector.broadcast %86 : vector<64x1xf32> to vector<64x64xf32>
    %90 = arith.subf %81, %89 : vector<64x64xf32>
    %91 = math.exp %90 : vector<64x64xf32>
    %92 = arith.mulf %88, %83 : vector<64x1xf32>
    %cst_63 = arith.constant dense<0.000000e+00> : vector<64xf32>
    %93 = vector.multi_reduction <add>, %91, %cst_63 [1] : vector<64x64xf32> to vector<64xf32>
    %94 = vector.shape_cast %93 : vector<64xf32> to vector<64x1xf32>
    %95 = arith.addf %92, %94 : vector<64x1xf32>
    %c0_64 = arith.constant 0 : index
    %c16_65 = arith.constant 16 : index
    %96 = vector.load %arg9[%c0_64, %c16_65] : memref<64x64xf32, #tpu.memory_space<vmem>>, vector<64x8xf32>
    %97 = vector.broadcast %88 : vector<64x1xf32> to vector<64x8xf32>
    %98 = arith.mulf %97, %96 : vector<64x8xf32>
    %99 = arith.truncf %91 : vector<64x64xf32> to vector<64x64xbf16>
    %cst_66 = arith.constant dense<0.000000e+00> : vector<64x8xf32>
    %100 = tpu.matmul %99, %80, %cst_66 {dimension_numbers = #tpu.dot_dimension_numbers<[1], [0], [0], [1], [0, 0, 1, 1], [], []>} : vector<64x64xbf16>, vector<64x8xbf16>, vector<64x8xf32> -> vector<64x8xf32>
    %101 = arith.addf %98, %100 : vector<64x8xf32>
    %c0_67 = arith.constant 0 : index
    %c2_68 = arith.constant 2 : index
    %102 = vector.load %arg7[%c0_67, %c2_68] : memref<64x8xf32, #tpu.memory_space<vmem>>, vector<64x1xf32>
    tpu.vector_store %arg7[%c0_67, %c2_68], %86 {strides = array<i32>} : memref<64x8xf32, #tpu.memory_space<vmem>>, vector<64x1xf32>,
    %c0_69 = arith.constant 0 : index
    %c2_70 = arith.constant 2 : index
    %103 = vector.load %arg8[%c0_69, %c2_70] : memref<64x8xf32, #tpu.memory_space<vmem>>, vector<64x1xf32>
    tpu.vector_store %arg8[%c0_69, %c2_70], %95 {strides = array<i32>} : memref<64x8xf32, #tpu.memory_space<vmem>>, vector<64x1xf32>,
    %c0_71 = arith.constant 0 : index
    %c16_72 = arith.constant 16 : index
    %104 = vector.load %arg9[%c0_71, %c16_72] : memref<64x64xf32, #tpu.memory_space<vmem>>, vector<64x8xf32>
    tpu.vector_store %arg9[%c0_71, %c16_72], %101 {strides = array<i32>} : memref<64x64xf32, #tpu.memory_space<vmem>>, vector<64x8xf32>,
    %c0_73 = arith.constant 0 : index
    %c0_74 = arith.constant 0 : index
    %c24 = arith.constant 24 : index
    %105 = vector.load %arg3[%c0_73, %c0_74, %c24] : memref<1x64x64xbf16, #tpu.memory_space<vmem>>, vector<1x64x8xbf16>
    %106 = vector.shape_cast %105 : vector<1x64x8xbf16> to vector<64x8xbf16>
    %107 = arith.extf %106 : vector<64x8xbf16> to vector<64x8xf32>
    %cst_75 = arith.constant 0.353553385 : f32
    %108 = vector.broadcast %cst_75 : f32 to vector<64x8xf32>
    %109 = arith.mulf %107, %108 : vector<64x8xf32>
    %110 = arith.truncf %109 : vector<64x8xf32> to vector<64x8xbf16>
    %c0_76 = arith.constant 0 : index
    %c0_77 = arith.constant 0 : index
    %c24_78 = arith.constant 24 : index
    %111 = vector.load %arg4[%c0_76, %c0_77, %c24_78] : memref<1x64x64xbf16, #tpu.memory_space<vmem>>, vector<1x64x8xbf16>
    %112 = vector.shape_cast %111 : vector<1x64x8xbf16> to vector<64x8xbf16>
    %c0_79 = arith.constant 0 : index
    %c0_80 = arith.constant 0 : index
    %c24_81 = arith.constant 24 : index
    %113 = vector.load %arg5[%c0_79, %c0_80, %c24_81] : memref<1x64x64xbf16, #tpu.memory_space<vmem>>, vector<1x64x8xbf16>
    %114 = vector.shape_cast %113 : vector<1x64x8xbf16> to vector<64x8xbf16>
    %cst_82 = arith.constant dense<0.000000e+00> : vector<64x64xf32>
    %115 = tpu.matmul %110, %112, %cst_82 {dimension_numbers = #tpu.dot_dimension_numbers<[1], [1], [0], [0], [0, 0, 1, 0], [], []>} : vector<64x8xbf16>, vector<64x8xbf16>, vector<64x64xf32> -> vector<64x64xf32>
    %c0_83 = arith.constant 0 : index
    %c3 = arith.constant 3 : index
    %116 = vector.load %arg7[%c0_83, %c3] : memref<64x8xf32, #tpu.memory_space<vmem>>, vector<64x1xf32>
    %c0_84 = arith.constant 0 : index
    %c3_85 = arith.constant 3 : index
    %117 = vector.load %arg8[%c0_84, %c3_85] : memref<64x8xf32, #tpu.memory_space<vmem>>, vector<64x1xf32>
    %cst_86 = arith.constant dense<0xFF800000> : vector<64xf32>
    %118 = vector.multi_reduction <maximumf>, %115, %cst_86 [1] : vector<64x64xf32> to vector<64xf32>
    %119 = vector.shape_cast %118 : vector<64xf32> to vector<64x1xf32>
    %120 = arith.maximumf %116, %119 : vector<64x1xf32>
    %121 = arith.subf %116, %120 : vector<64x1xf32>
    %122 = math.exp %121 : vector<64x1xf32>
    %123 = vector.broadcast %120 : vector<64x1xf32> to vector<64x64xf32>
    %124 = arith.subf %115, %123 : vector<64x64xf32>
    %125 = math.exp %124 : vector<64x64xf32>
    %126 = arith.mulf %122, %117 : vector<64x1xf32>
    %cst_87 = arith.constant dense<0.000000e+00> : vector<64xf32>
    %127 = vector.multi_reduction <add>, %125, %cst_87 [1] : vector<64x64xf32> to vector<64xf32>
    %128 = vector.shape_cast %127 : vector<64xf32> to vector<64x1xf32>
    %129 = arith.addf %126, %128 : vector<64x1xf32>
    %c0_88 = arith.constant 0 : index
    %c24_89 = arith.constant 24 : index
    %130 = vector.load %arg9[%c0_88, %c24_89] : memref<64x64xf32, #tpu.memory_space<vmem>>, vector<64x8xf32>
    %131 = vector.broadcast %122 : vector<64x1xf32> to vector<64x8xf32>
    %132 = arith.mulf %131, %130 : vector<64x8xf32>
    %133 = arith.truncf %125 : vector<64x64xf32> to vector<64x64xbf16>
    %cst_90 = arith.constant dense<0.000000e+00> : vector<64x8xf32>
    %134 = tpu.matmul %133, %114, %cst_90 {dimension_numbers = #tpu.dot_dimension_numbers<[1], [0], [0], [1], [0, 0, 1, 1], [], []>} : vector<64x64xbf16>, vector<64x8xbf16>, vector<64x8xf32> -> vector<64x8xf32>
    %135 = arith.addf %132, %134 : vector<64x8xf32>
    %c0_91 = arith.constant 0 : index
    %c3_92 = arith.constant 3 : index
    %136 = vector.load %arg7[%c0_91, %c3_92] : memref<64x8xf32, #tpu.memory_space<vmem>>, vector<64x1xf32>
    tpu.vector_store %arg7[%c0_91, %c3_92], %120 {strides = array<i32>} : memref<64x8xf32, #tpu.memory_space<vmem>>, vector<64x1xf32>,
    %c0_93 = arith.constant 0 : index
    %c3_94 = arith.constant 3 : index
    %137 = vector.load %arg8[%c0_93, %c3_94] : memref<64x8xf32, #tpu.memory_space<vmem>>, vector<64x1xf32>
    tpu.vector_store %arg8[%c0_93, %c3_94], %129 {strides = array<i32>} : memref<64x8xf32, #tpu.memory_space<vmem>>, vector<64x1xf32>,
    %c0_95 = arith.constant 0 : index
    %c24_96 = arith.constant 24 : index
    %138 = vector.load %arg9[%c0_95, %c24_96] : memref<64x64xf32, #tpu.memory_space<vmem>>, vector<64x8xf32>
    tpu.vector_store %arg9[%c0_95, %c24_96], %135 {strides = array<i32>} : memref<64x64xf32, #tpu.memory_space<vmem>>, vector<64x8xf32>,
    %c0_97 = arith.constant 0 : index
    %c0_98 = arith.constant 0 : index
    %c32 = arith.constant 32 : index
    %139 = vector.load %arg3[%c0_97, %c0_98, %c32] : memref<1x64x64xbf16, #tpu.memory_space<vmem>>, vector<1x64x8xbf16>
    %140 = vector.shape_cast %139 : vector<1x64x8xbf16> to vector<64x8xbf16>
    %141 = arith.extf %140 : vector<64x8xbf16> to vector<64x8xf32>
    %cst_99 = arith.constant 0.353553385 : f32
    %142 = vector.broadcast %cst_99 : f32 to vector<64x8xf32>
    %143 = arith.mulf %141, %142 : vector<64x8xf32>
    %144 = arith.truncf %143 : vector<64x8xf32> to vector<64x8xbf16>
    %c0_100 = arith.constant 0 : index
    %c0_101 = arith.constant 0 : index
    %c32_102 = arith.constant 32 : index
    %145 = vector.load %arg4[%c0_100, %c0_101, %c32_102] : memref<1x64x64xbf16, #tpu.memory_space<vmem>>, vector<1x64x8xbf16>
    %146 = vector.shape_cast %145 : vector<1x64x8xbf16> to vector<64x8xbf16>
    %c0_103 = arith.constant 0 : index
    %c0_104 = arith.constant 0 : index
    %c32_105 = arith.constant 32 : index
    %147 = vector.load %arg5[%c0_103, %c0_104, %c32_105] : memref<1x64x64xbf16, #tpu.memory_space<vmem>>, vector<1x64x8xbf16>
    %148 = vector.shape_cast %147 : vector<1x64x8xbf16> to vector<64x8xbf16>
    %cst_106 = arith.constant dense<0.000000e+00> : vector<64x64xf32>
    %149 = tpu.matmul %144, %146, %cst_106 {dimension_numbers = #tpu.dot_dimension_numbers<[1], [1], [0], [0], [0, 0, 1, 0], [], []>} : vector<64x8xbf16>, vector<64x8xbf16>, vector<64x64xf32> -> vector<64x64xf32>
    %c0_107 = arith.constant 0 : index
    %c4 = arith.constant 4 : index
    %150 = vector.load %arg7[%c0_107, %c4] : memref<64x8xf32, #tpu.memory_space<vmem>>, vector<64x1xf32>
    %c0_108 = arith.constant 0 : index
    %c4_109 = arith.constant 4 : index
    %151 = vector.load %arg8[%c0_108, %c4_109] : memref<64x8xf32, #tpu.memory_space<vmem>>, vector<64x1xf32>
    %cst_110 = arith.constant dense<0xFF800000> : vector<64xf32>
    %152 = vector.multi_reduction <maximumf>, %149, %cst_110 [1] : vector<64x64xf32> to vector<64xf32>
    %153 = vector.shape_cast %152 : vector<64xf32> to vector<64x1xf32>
    %154 = arith.maximumf %150, %153 : vector<64x1xf32>
    %155 = arith.subf %150, %154 : vector<64x1xf32>
    %156 = math.exp %155 : vector<64x1xf32>
    %157 = vector.broadcast %154 : vector<64x1xf32> to vector<64x64xf32>
    %158 = arith.subf %149, %157 : vector<64x64xf32>
    %159 = math.exp %158 : vector<64x64xf32>
    %160 = arith.mulf %156, %151 : vector<64x1xf32>
    %cst_111 = arith.constant dense<0.000000e+00> : vector<64xf32>
    %161 = vector.multi_reduction <add>, %159, %cst_111 [1] : vector<64x64xf32> to vector<64xf32>
    %162 = vector.shape_cast %161 : vector<64xf32> to vector<64x1xf32>
    %163 = arith.addf %160, %162 : vector<64x1xf32>
    %c0_112 = arith.constant 0 : index
    %c32_113 = arith.constant 32 : index
    %164 = vector.load %arg9[%c0_112, %c32_113] : memref<64x64xf32, #tpu.memory_space<vmem>>, vector<64x8xf32>
    %165 = vector.broadcast %156 : vector<64x1xf32> to vector<64x8xf32>
    %166 = arith.mulf %165, %164 : vector<64x8xf32>
    %167 = arith.truncf %159 : vector<64x64xf32> to vector<64x64xbf16>
    %cst_114 = arith.constant dense<0.000000e+00> : vector<64x8xf32>
    %168 = tpu.matmul %167, %148, %cst_114 {dimension_numbers = #tpu.dot_dimension_numbers<[1], [0], [0], [1], [0, 0, 1, 1], [], []>} : vector<64x64xbf16>, vector<64x8xbf16>, vector<64x8xf32> -> vector<64x8xf32>
    %169 = arith.addf %166, %168 : vector<64x8xf32>
    %c0_115 = arith.constant 0 : index
    %c4_116 = arith.constant 4 : index
    %170 = vector.load %arg7[%c0_115, %c4_116] : memref<64x8xf32, #tpu.memory_space<vmem>>, vector<64x1xf32>
    tpu.vector_store %arg7[%c0_115, %c4_116], %154 {strides = array<i32>} : memref<64x8xf32, #tpu.memory_space<vmem>>, vector<64x1xf32>,
    %c0_117 = arith.constant 0 : index
    %c4_118 = arith.constant 4 : index
    %171 = vector.load %arg8[%c0_117, %c4_118] : memref<64x8xf32, #tpu.memory_space<vmem>>, vector<64x1xf32>
    tpu.vector_store %arg8[%c0_117, %c4_118], %163 {strides = array<i32>} : memref<64x8xf32, #tpu.memory_space<vmem>>, vector<64x1xf32>,
    %c0_119 = arith.constant 0 : index
    %c32_120 = arith.constant 32 : index
    %172 = vector.load %arg9[%c0_119, %c32_120] : memref<64x64xf32, #tpu.memory_space<vmem>>, vector<64x8xf32>
    tpu.vector_store %arg9[%c0_119, %c32_120], %169 {strides = array<i32>} : memref<64x64xf32, #tpu.memory_space<vmem>>, vector<64x8xf32>,
    %c0_121 = arith.constant 0 : index
    %c0_122 = arith.constant 0 : index
    %c40 = arith.constant 40 : index
    %173 = vector.load %arg3[%c0_121, %c0_122, %c40] : memref<1x64x64xbf16, #tpu.memory_space<vmem>>, vector<1x64x8xbf16>
    %174 = vector.shape_cast %173 : vector<1x64x8xbf16> to vector<64x8xbf16>
    %175 = arith.extf %174 : vector<64x8xbf16> to vector<64x8xf32>
    %cst_123 = arith.constant 0.353553385 : f32
    %176 = vector.broadcast %cst_123 : f32 to vector<64x8xf32>
    %177 = arith.mulf %175, %176 : vector<64x8xf32>
    %178 = arith.truncf %177 : vector<64x8xf32> to vector<64x8xbf16>
    %c0_124 = arith.constant 0 : index
    %c0_125 = arith.constant 0 : index
    %c40_126 = arith.constant 40 : index
    %179 = vector.load %arg4[%c0_124, %c0_125, %c40_126] : memref<1x64x64xbf16, #tpu.memory_space<vmem>>, vector<1x64x8xbf16>
    %180 = vector.shape_cast %179 : vector<1x64x8xbf16> to vector<64x8xbf16>
    %c0_127 = arith.constant 0 : index
    %c0_128 = arith.constant 0 : index
    %c40_129 = arith.constant 40 : index
    %181 = vector.load %arg5[%c0_127, %c0_128, %c40_129] : memref<1x64x64xbf16, #tpu.memory_space<vmem>>, vector<1x64x8xbf16>
    %182 = vector.shape_cast %181 : vector<1x64x8xbf16> to vector<64x8xbf16>
    %cst_130 = arith.constant dense<0.000000e+00> : vector<64x64xf32>
    %183 = tpu.matmul %178, %180, %cst_130 {dimension_numbers = #tpu.dot_dimension_numbers<[1], [1], [0], [0], [0, 0, 1, 0], [], []>} : vector<64x8xbf16>, vector<64x8xbf16>, vector<64x64xf32> -> vector<64x64xf32>
    %c0_131 = arith.constant 0 : index
    %c5 = arith.constant 5 : index
    %184 = vector.load %arg7[%c0_131, %c5] : memref<64x8xf32, #tpu.memory_space<vmem>>, vector<64x1xf32>
    %c0_132 = arith.constant 0 : index
    %c5_133 = arith.constant 5 : index
    %185 = vector.load %arg8[%c0_132, %c5_133] : memref<64x8xf32, #tpu.memory_space<vmem>>, vector<64x1xf32>
    %cst_134 = arith.constant dense<0xFF800000> : vector<64xf32>
    %186 = vector.multi_reduction <maximumf>, %183, %cst_134 [1] : vector<64x64xf32> to vector<64xf32>
    %187 = vector.shape_cast %186 : vector<64xf32> to vector<64x1xf32>
    %188 = arith.maximumf %184, %187 : vector<64x1xf32>
    %189 = arith.subf %184, %188 : vector<64x1xf32>
    %190 = math.exp %189 : vector<64x1xf32>
    %191 = vector.broadcast %188 : vector<64x1xf32> to vector<64x64xf32>
    %192 = arith.subf %183, %191 : vector<64x64xf32>
    %193 = math.exp %192 : vector<64x64xf32>
    %194 = arith.mulf %190, %185 : vector<64x1xf32>
    %cst_135 = arith.constant dense<0.000000e+00> : vector<64xf32>
    %195 = vector.multi_reduction <add>, %193, %cst_135 [1] : vector<64x64xf32> to vector<64xf32>
    %196 = vector.shape_cast %195 : vector<64xf32> to vector<64x1xf32>
    %197 = arith.addf %194, %196 : vector<64x1xf32>
    %c0_136 = arith.constant 0 : index
    %c40_137 = arith.constant 40 : index
    %198 = vector.load %arg9[%c0_136, %c40_137] : memref<64x64xf32, #tpu.memory_space<vmem>>, vector<64x8xf32>
    %199 = vector.broadcast %190 : vector<64x1xf32> to vector<64x8xf32>
    %200 = arith.mulf %199, %198 : vector<64x8xf32>
    %201 = arith.truncf %193 : vector<64x64xf32> to vector<64x64xbf16>
    %cst_138 = arith.constant dense<0.000000e+00> : vector<64x8xf32>
    %202 = tpu.matmul %201, %182, %cst_138 {dimension_numbers = #tpu.dot_dimension_numbers<[1], [0], [0], [1], [0, 0, 1, 1], [], []>} : vector<64x64xbf16>, vector<64x8xbf16>, vector<64x8xf32> -> vector<64x8xf32>
    %203 = arith.addf %200, %202 : vector<64x8xf32>
    %c0_139 = arith.constant 0 : index
    %c5_140 = arith.constant 5 : index
    %204 = vector.load %arg7[%c0_139, %c5_140] : memref<64x8xf32, #tpu.memory_space<vmem>>, vector<64x1xf32>
    tpu.vector_store %arg7[%c0_139, %c5_140], %188 {strides = array<i32>} : memref<64x8xf32, #tpu.memory_space<vmem>>, vector<64x1xf32>,
    %c0_141 = arith.constant 0 : index
    %c5_142 = arith.constant 5 : index
    %205 = vector.load %arg8[%c0_141, %c5_142] : memref<64x8xf32, #tpu.memory_space<vmem>>, vector<64x1xf32>
    tpu.vector_store %arg8[%c0_141, %c5_142], %197 {strides = array<i32>} : memref<64x8xf32, #tpu.memory_space<vmem>>, vector<64x1xf32>,
    %c0_143 = arith.constant 0 : index
    %c40_144 = arith.constant 40 : index
    %206 = vector.load %arg9[%c0_143, %c40_144] : memref<64x64xf32, #tpu.memory_space<vmem>>, vector<64x8xf32>
    tpu.vector_store %arg9[%c0_143, %c40_144], %203 {strides = array<i32>} : memref<64x64xf32, #tpu.memory_space<vmem>>, vector<64x8xf32>,
    %c0_145 = arith.constant 0 : index
    %c0_146 = arith.constant 0 : index
    %c48 = arith.constant 48 : index
    %207 = vector.load %arg3[%c0_145, %c0_146, %c48] : memref<1x64x64xbf16, #tpu.memory_space<vmem>>, vector<1x64x8xbf16>
    %208 = vector.shape_cast %207 : vector<1x64x8xbf16> to vector<64x8xbf16>
    %209 = arith.extf %208 : vector<64x8xbf16> to vector<64x8xf32>
    %cst_147 = arith.constant 0.353553385 : f32
    %210 = vector.broadcast %cst_147 : f32 to vector<64x8xf32>
    %211 = arith.mulf %209, %210 : vector<64x8xf32>
    %212 = arith.truncf %211 : vector<64x8xf32> to vector<64x8xbf16>
    %c0_148 = arith.constant 0 : index
    %c0_149 = arith.constant 0 : index
    %c48_150 = arith.constant 48 : index
    %213 = vector.load %arg4[%c0_148, %c0_149, %c48_150] : memref<1x64x64xbf16, #tpu.memory_space<vmem>>, vector<1x64x8xbf16>
    %214 = vector.shape_cast %213 : vector<1x64x8xbf16> to vector<64x8xbf16>
    %c0_151 = arith.constant 0 : index
    %c0_152 = arith.constant 0 : index
    %c48_153 = arith.constant 48 : index
    %215 = vector.load %arg5[%c0_151, %c0_152, %c48_153] : memref<1x64x64xbf16, #tpu.memory_space<vmem>>, vector<1x64x8xbf16>
    %216 = vector.shape_cast %215 : vector<1x64x8xbf16> to vector<64x8xbf16>
    %cst_154 = arith.constant dense<0.000000e+00> : vector<64x64xf32>
    %217 = tpu.matmul %212, %214, %cst_154 {dimension_numbers = #tpu.dot_dimension_numbers<[1], [1], [0], [0], [0, 0, 1, 0], [], []>} : vector<64x8xbf16>, vector<64x8xbf16>, vector<64x64xf32> -> vector<64x64xf32>
    %c0_155 = arith.constant 0 : index
    %c6 = arith.constant 6 : index
    %218 = vector.load %arg7[%c0_155, %c6] : memref<64x8xf32, #tpu.memory_space<vmem>>, vector<64x1xf32>
    %c0_156 = arith.constant 0 : index
    %c6_157 = arith.constant 6 : index
    %219 = vector.load %arg8[%c0_156, %c6_157] : memref<64x8xf32, #tpu.memory_space<vmem>>, vector<64x1xf32>
    %cst_158 = arith.constant dense<0xFF800000> : vector<64xf32>
    %220 = vector.multi_reduction <maximumf>, %217, %cst_158 [1] : vector<64x64xf32> to vector<64xf32>
    %221 = vector.shape_cast %220 : vector<64xf32> to vector<64x1xf32>
    %222 = arith.maximumf %218, %221 : vector<64x1xf32>
    %223 = arith.subf %218, %222 : vector<64x1xf32>
    %224 = math.exp %223 : vector<64x1xf32>
    %225 = vector.broadcast %222 : vector<64x1xf32> to vector<64x64xf32>
    %226 = arith.subf %217, %225 : vector<64x64xf32>
    %227 = math.exp %226 : vector<64x64xf32>
    %228 = arith.mulf %224, %219 : vector<64x1xf32>
    %cst_159 = arith.constant dense<0.000000e+00> : vector<64xf32>
    %229 = vector.multi_reduction <add>, %227, %cst_159 [1] : vector<64x64xf32> to vector<64xf32>
    %230 = vector.shape_cast %229 : vector<64xf32> to vector<64x1xf32>
    %231 = arith.addf %228, %230 : vector<64x1xf32>
    %c0_160 = arith.constant 0 : index
    %c48_161 = arith.constant 48 : index
    %232 = vector.load %arg9[%c0_160, %c48_161] : memref<64x64xf32, #tpu.memory_space<vmem>>, vector<64x8xf32>
    %233 = vector.broadcast %224 : vector<64x1xf32> to vector<64x8xf32>
    %234 = arith.mulf %233, %232 : vector<64x8xf32>
    %235 = arith.truncf %227 : vector<64x64xf32> to vector<64x64xbf16>
    %cst_162 = arith.constant dense<0.000000e+00> : vector<64x8xf32>
    %236 = tpu.matmul %235, %216, %cst_162 {dimension_numbers = #tpu.dot_dimension_numbers<[1], [0], [0], [1], [0, 0, 1, 1], [], []>} : vector<64x64xbf16>, vector<64x8xbf16>, vector<64x8xf32> -> vector<64x8xf32>
    %237 = arith.addf %234, %236 : vector<64x8xf32>
    %c0_163 = arith.constant 0 : index
    %c6_164 = arith.constant 6 : index
    %238 = vector.load %arg7[%c0_163, %c6_164] : memref<64x8xf32, #tpu.memory_space<vmem>>, vector<64x1xf32>
    tpu.vector_store %arg7[%c0_163, %c6_164], %222 {strides = array<i32>} : memref<64x8xf32, #tpu.memory_space<vmem>>, vector<64x1xf32>,
    %c0_165 = arith.constant 0 : index
    %c6_166 = arith.constant 6 : index
    %239 = vector.load %arg8[%c0_165, %c6_166] : memref<64x8xf32, #tpu.memory_space<vmem>>, vector<64x1xf32>
    tpu.vector_store %arg8[%c0_165, %c6_166], %231 {strides = array<i32>} : memref<64x8xf32, #tpu.memory_space<vmem>>, vector<64x1xf32>,
    %c0_167 = arith.constant 0 : index
    %c48_168 = arith.constant 48 : index
    %240 = vector.load %arg9[%c0_167, %c48_168] : memref<64x64xf32, #tpu.memory_space<vmem>>, vector<64x8xf32>
    tpu.vector_store %arg9[%c0_167, %c48_168], %237 {strides = array<i32>} : memref<64x64xf32, #tpu.memory_space<vmem>>, vector<64x8xf32>,
    %c0_169 = arith.constant 0 : index
    %c0_170 = arith.constant 0 : index
    %c56 = arith.constant 56 : index
    %241 = vector.load %arg3[%c0_169, %c0_170, %c56] : memref<1x64x64xbf16, #tpu.memory_space<vmem>>, vector<1x64x8xbf16>
    %242 = vector.shape_cast %241 : vector<1x64x8xbf16> to vector<64x8xbf16>
    %243 = arith.extf %242 : vector<64x8xbf16> to vector<64x8xf32>
    %cst_171 = arith.constant 0.353553385 : f32
    %244 = vector.broadcast %cst_171 : f32 to vector<64x8xf32>
    %245 = arith.mulf %243, %244 : vector<64x8xf32>
    %246 = arith.truncf %245 : vector<64x8xf32> to vector<64x8xbf16>
    %c0_172 = arith.constant 0 : index
    %c0_173 = arith.constant 0 : index
    %c56_174 = arith.constant 56 : index
    %247 = vector.load %arg4[%c0_172, %c0_173, %c56_174] : memref<1x64x64xbf16, #tpu.memory_space<vmem>>, vector<1x64x8xbf16>
    %248 = vector.shape_cast %247 : vector<1x64x8xbf16> to vector<64x8xbf16>
    %c0_175 = arith.constant 0 : index
    %c0_176 = arith.constant 0 : index
    %c56_177 = arith.constant 56 : index
    %249 = vector.load %arg5[%c0_175, %c0_176, %c56_177] : memref<1x64x64xbf16, #tpu.memory_space<vmem>>, vector<1x64x8xbf16>
    %250 = vector.shape_cast %249 : vector<1x64x8xbf16> to vector<64x8xbf16>
    %cst_178 = arith.constant dense<0.000000e+00> : vector<64x64xf32>
    %251 = tpu.matmul %246, %248, %cst_178 {dimension_numbers = #tpu.dot_dimension_numbers<[1], [1], [0], [0], [0, 0, 1, 0], [], []>} : vector<64x8xbf16>, vector<64x8xbf16>, vector<64x64xf32> -> vector<64x64xf32>
    %c0_179 = arith.constant 0 : index
    %c7 = arith.constant 7 : index
    %252 = vector.load %arg7[%c0_179, %c7] : memref<64x8xf32, #tpu.memory_space<vmem>>, vector<64x1xf32>
    %c0_180 = arith.constant 0 : index
    %c7_181 = arith.constant 7 : index
    %253 = vector.load %arg8[%c0_180, %c7_181] : memref<64x8xf32, #tpu.memory_space<vmem>>, vector<64x1xf32>
    %cst_182 = arith.constant dense<0xFF800000> : vector<64xf32>
    %254 = vector.multi_reduction <maximumf>, %251, %cst_182 [1] : vector<64x64xf32> to vector<64xf32>
    %255 = vector.shape_cast %254 : vector<64xf32> to vector<64x1xf32>
    %256 = arith.maximumf %252, %255 : vector<64x1xf32>
    %257 = arith.subf %252, %256 : vector<64x1xf32>
    %258 = math.exp %257 : vector<64x1xf32>
    %259 = vector.broadcast %256 : vector<64x1xf32> to vector<64x64xf32>
    %260 = arith.subf %251, %259 : vector<64x64xf32>
    %261 = math.exp %260 : vector<64x64xf32>
    %262 = arith.mulf %258, %253 : vector<64x1xf32>
    %cst_183 = arith.constant dense<0.000000e+00> : vector<64xf32>
    %263 = vector.multi_reduction <add>, %261, %cst_183 [1] : vector<64x64xf32> to vector<64xf32>
    %264 = vector.shape_cast %263 : vector<64xf32> to vector<64x1xf32>
    %265 = arith.addf %262, %264 : vector<64x1xf32>
    %c0_184 = arith.constant 0 : index
    %c56_185 = arith.constant 56 : index
    %266 = vector.load %arg9[%c0_184, %c56_185] : memref<64x64xf32, #tpu.memory_space<vmem>>, vector<64x8xf32>
    %267 = vector.broadcast %258 : vector<64x1xf32> to vector<64x8xf32>
    %268 = arith.mulf %267, %266 : vector<64x8xf32>
    %269 = arith.truncf %261 : vector<64x64xf32> to vector<64x64xbf16>
    %cst_186 = arith.constant dense<0.000000e+00> : vector<64x8xf32>
    %270 = tpu.matmul %269, %250, %cst_186 {dimension_numbers = #tpu.dot_dimension_numbers<[1], [0], [0], [1], [0, 0, 1, 1], [], []>} : vector<64x64xbf16>, vector<64x8xbf16>, vector<64x8xf32> -> vector<64x8xf32>
    %271 = arith.addf %268, %270 : vector<64x8xf32>
    %c0_187 = arith.constant 0 : index
    %c7_188 = arith.constant 7 : index
    %272 = vector.load %arg7[%c0_187, %c7_188] : memref<64x8xf32, #tpu.memory_space<vmem>>, vector<64x1xf32>
    tpu.vector_store %arg7[%c0_187, %c7_188], %256 {strides = array<i32>} : memref<64x8xf32, #tpu.memory_space<vmem>>, vector<64x1xf32>,
    %c0_189 = arith.constant 0 : index
    %c7_190 = arith.constant 7 : index
    %273 = vector.load %arg8[%c0_189, %c7_190] : memref<64x8xf32, #tpu.memory_space<vmem>>, vector<64x1xf32>
    tpu.vector_store %arg8[%c0_189, %c7_190], %265 {strides = array<i32>} : memref<64x8xf32, #tpu.memory_space<vmem>>, vector<64x1xf32>,
    %c0_191 = arith.constant 0 : index
    %c56_192 = arith.constant 56 : index
    %274 = vector.load %arg9[%c0_191, %c56_192] : memref<64x64xf32, #tpu.memory_space<vmem>>, vector<64x8xf32>
    tpu.vector_store %arg9[%c0_191, %c56_192], %271 {strides = array<i32>} : memref<64x64xf32, #tpu.memory_space<vmem>>, vector<64x8xf32>,
    %c0_i32_193 = arith.constant 0 : i32
    %275 = arith.cmpi eq, %arg2, %c0_i32_193 : i32
    %276 = arith.extui %275 : i1 to i32
    %c0_i32_194 = arith.constant 0 : i32
    %277 = arith.cmpi ne, %276, %c0_i32_194 : i32
    scf.if %277 {
      %c0_195 = arith.constant 0 : index
      %c0_196 = arith.constant 0 : index
      %278 = vector.load %arg9[%c0_195, %c0_196] : memref<64x64xf32, #tpu.memory_space<vmem>>, vector<64x64xf32>
      %c0_197 = arith.constant 0 : index
      %c0_198 = arith.constant 0 : index
      %279 = vector.load %arg8[%c0_197, %c0_198] : memref<64x8xf32, #tpu.memory_space<vmem>>, vector<64x8xf32>
      %280 = tpu.reciprocal %279 {approx = true} : vector<64x8xf32> -> vector<64x8xf32>
      %281 = vector.extract_strided_slice %278 {offsets = [0, 0], sizes = [64, 8], strides = [1, 1]} : vector<64x64xf32> to vector<64x8xf32>
      %282 = vector.extract_strided_slice %280 {offsets = [0, 0], sizes = [64, 1], strides = [1, 1]} : vector<64x8xf32> to vector<64x1xf32>
      %283 = vector.broadcast %282 : vector<64x1xf32> to vector<64x8xf32>
      %284 = arith.mulf %281, %283 : vector<64x8xf32>
      %285 = vector.extract_strided_slice %278 {offsets = [0, 8], sizes = [64, 8], strides = [1, 1]} : vector<64x64xf32> to vector<64x8xf32>
      %286 = vector.extract_strided_slice %280 {offsets = [0, 1], sizes = [64, 1], strides = [1, 1]} : vector<64x8xf32> to vector<64x1xf32>
      %287 = vector.broadcast %286 : vector<64x1xf32> to vector<64x8xf32>
      %288 = arith.mulf %285, %287 : vector<64x8xf32>
      %289 = vector.extract_strided_slice %278 {offsets = [0, 16], sizes = [64, 8], strides = [1, 1]} : vector<64x64xf32> to vector<64x8xf32>
      %290 = vector.extract_strided_slice %280 {offsets = [0, 2], sizes = [64, 1], strides = [1, 1]} : vector<64x8xf32> to vector<64x1xf32>
      %291 = vector.broadcast %290 : vector<64x1xf32> to vector<64x8xf32>
      %292 = arith.mulf %289, %291 : vector<64x8xf32>
      %293 = vector.extract_strided_slice %278 {offsets = [0, 24], sizes = [64, 8], strides = [1, 1]} : vector<64x64xf32> to vector<64x8xf32>
      %294 = vector.extract_strided_slice %280 {offsets = [0, 3], sizes = [64, 1], strides = [1, 1]} : vector<64x8xf32> to vector<64x1xf32>
      %295 = vector.broadcast %294 : vector<64x1xf32> to vector<64x8xf32>
      %296 = arith.mulf %293, %295 : vector<64x8xf32>
      %297 = vector.extract_strided_slice %278 {offsets = [0, 32], sizes = [64, 8], strides = [1, 1]} : vector<64x64xf32> to vector<64x8xf32>
      %298 = vector.extract_strided_slice %280 {offsets = [0, 4], sizes = [64, 1], strides = [1, 1]} : vector<64x8xf32> to vector<64x1xf32>
      %299 = vector.broadcast %298 : vector<64x1xf32> to vector<64x8xf32>
      %300 = arith.mulf %297, %299 : vector<64x8xf32>
      %301 = vector.extract_strided_slice %278 {offsets = [0, 40], sizes = [64, 8], strides = [1, 1]} : vector<64x64xf32> to vector<64x8xf32>
      %302 = vector.extract_strided_slice %280 {offsets = [0, 5], sizes = [64, 1], strides = [1, 1]} : vector<64x8xf32> to vector<64x1xf32>
      %303 = vector.broadcast %302 : vector<64x1xf32> to vector<64x8xf32>
      %304 = arith.mulf %301, %303 : vector<64x8xf32>
      %305 = vector.extract_strided_slice %278 {offsets = [0, 48], sizes = [64, 8], strides = [1, 1]} : vector<64x64xf32> to vector<64x8xf32>
      %306 = vector.extract_strided_slice %280 {offsets = [0, 6], sizes = [64, 1], strides = [1, 1]} : vector<64x8xf32> to vector<64x1xf32>
      %307 = vector.broadcast %306 : vector<64x1xf32> to vector<64x8xf32>
      %308 = arith.mulf %305, %307 : vector<64x8xf32>
      %309 = vector.extract_strided_slice %278 {offsets = [0, 56], sizes = [64, 8], strides = [1, 1]} : vector<64x64xf32> to vector<64x8xf32>
      %310 = vector.extract_strided_slice %280 {offsets = [0, 7], sizes = [64, 1], strides = [1, 1]} : vector<64x8xf32> to vector<64x1xf32>
      %311 = vector.broadcast %310 : vector<64x1xf32> to vector<64x8xf32>
      %312 = arith.mulf %309, %311 : vector<64x8xf32>
      %313 = tpu.concatenate %284, %288, %292, %296, %300, %304, %308, %312 in 1 : vector<64x8xf32>, vector<64x8xf32>, vector<64x8xf32>, vector<64x8xf32>, vector<64x8xf32>, vector<64x8xf32>, vector<64x8xf32>, vector<64x8xf32> -> vector<64x64xf32>
      %314 = arith.truncf %313 : vector<64x64xf32> to vector<64x64xbf16>
      %c0_199 = arith.constant 0 : index
      %c0_200 = arith.constant 0 : index
      %c0_201 = arith.constant 0 : index
      %315 = vector.load %arg6[%c0_199, %c0_200, %c0_201] : memref<1x64x64xbf16, #tpu.memory_space<vmem>>, vector<1x64x64xbf16>
      %316 = vector.shape_cast %315 : vector<1x64x64xbf16> to vector<64x64xbf16>
      %317 = vector.shape_cast %314 : vector<64x64xbf16> to vector<1x64x64xbf16>
      tpu.vector_store %arg6[%c0_199, %c0_200, %c0_201], %317 {strides = array<i32>} : memref<1x64x64xbf16, #tpu.memory_space<vmem>>, vector<1x64x64xbf16>,
    } else {
    }
    return
  }
  func.func @transform_0(%arg0: i32, %arg1: i32, %arg2: i32) -> (i32, i32, i32) {
    %c0_i32 = arith.constant 0 : i32
    %c0_i32_0 = arith.constant 0 : i32
    return %arg0, %arg1, %c0_i32 : i32, i32, i32
  }
  func.func @transform_1(%arg0: i32, %arg1: i32, %arg2: i32) -> (i32, i32, i32) {
    %c0_i32 = arith.constant 0 : i32
    %c0_i32_0 = arith.constant 0 : i32
    return %arg0, %arg2, %c0_i32 : i32, i32, i32
  }
  func.func @transform_2(%arg0: i32, %arg1: i32, %arg2: i32) -> (i32, i32, i32) {
    %c0_i32 = arith.constant 0 : i32
    %c0_i32_0 = arith.constant 0 : i32
    return %arg0, %arg2, %c0_i32 : i32, i32, i32
  }
  func.func @transform_3(%arg0: i32, %arg1: i32, %arg2: i32) -> (i32, i32, i32) {
    %c0_i32 = arith.constant 0 : i32
    %c0_i32_0 = arith.constant 0 : i32
    return %arg0, %arg1, %c0_i32 : i32, i32, i32
  }
}

module attributes {stable_mosaic.version = 11 : i64} {
  func.func @_proj_ln_gate_out_kernel(%arg0: i32, %arg1: memref<128x64xbf16, #tpu.memory_space<vmem>>, %arg2: memref<128x64xbf16, #tpu.memory_space<vmem>>, %arg3: memref<64x64xbf16, #tpu.memory_space<vmem>>, %arg4: memref<1x64xf32, #tpu.memory_space<vmem>>, %arg5: memref<1x64xf32, #tpu.memory_space<vmem>>, %arg6: memref<64x32xbf16, #tpu.memory_space<vmem>>, %arg7: memref<128x32xf32, #tpu.memory_space<vmem>>) attributes {dimension_semantics = [#tpu.dimension_semantics<parallel>], iteration_bounds = array<i64: 1>, scalar_prefetch = 0 : i64, scratch_operands = 0 : i64, tpu.core_type = #tpu.core_type<tc>, window_params = [{transform_indices = @transform_0, window_bounds = array<i64: 128, 64>}, {transform_indices = @transform_1, window_bounds = array<i64: 128, 64>}, {pipeline_mode = #tpu.pipeline_mode<synchronous>, transform_indices = @transform_2, window_bounds = array<i64: 64, 64>}, {pipeline_mode = #tpu.pipeline_mode<synchronous>, transform_indices = @transform_3, window_bounds = array<i64: 1, 64>}, {pipeline_mode = #tpu.pipeline_mode<synchronous>, transform_indices = @transform_4, window_bounds = array<i64: 1, 64>}, {pipeline_mode = #tpu.pipeline_mode<synchronous>, transform_indices = @transform_5, window_bounds = array<i64: 64, 32>}, {transform_indices = @transform_6, window_bounds = array<i64: 128, 32>}]} {
    %c0 = arith.constant 0 : index
    %c0_0 = arith.constant 0 : index
    %0 = vector.load %arg1[%c0, %c0_0] : memref<128x64xbf16, #tpu.memory_space<vmem>>, vector<128x64xbf16>
    %c0_1 = arith.constant 0 : index
    %c0_2 = arith.constant 0 : index
    %1 = vector.load %arg3[%c0_1, %c0_2] : memref<64x64xbf16, #tpu.memory_space<vmem>>, vector<64x64xbf16>
    %cst = arith.constant dense<0.000000e+00> : vector<128x64xf32>
    %2 = tpu.matmul %0, %1, %cst {dimension_numbers = #tpu.dot_dimension_numbers<[1], [0], [0], [1], [0, 0, 1, 1], [], []>} : vector<128x64xbf16>, vector<64x64xbf16>, vector<128x64xf32> -> vector<128x64xf32>
    %cst_3 = arith.constant dense<0.000000e+00> : vector<128xf32>
    %3 = vector.multi_reduction <add>, %2, %cst_3 [1] : vector<128x64xf32> to vector<128xf32>
    %4 = vector.shape_cast %3 : vector<128xf32> to vector<128x1xf32>
    %cst_4 = arith.constant 6.400000e+01 : f32
    %5 = vector.broadcast %cst_4 : f32 to vector<128x1xf32>
    %6 = arith.divf %4, %5 : vector<128x1xf32>
    %7 = vector.broadcast %6 : vector<128x1xf32> to vector<128x64xf32>
    %8 = arith.subf %2, %7 : vector<128x64xf32>
    %9 = arith.mulf %8, %8 : vector<128x64xf32>
    %cst_5 = arith.constant dense<0.000000e+00> : vector<128xf32>
    %10 = vector.multi_reduction <add>, %9, %cst_5 [1] : vector<128x64xf32> to vector<128xf32>
    %11 = vector.shape_cast %10 : vector<128xf32> to vector<128x1xf32>
    %cst_6 = arith.constant 6.400000e+01 : f32
    %12 = vector.broadcast %cst_6 : f32 to vector<128x1xf32>
    %13 = arith.divf %11, %12 : vector<128x1xf32>
    %14 = vector.broadcast %6 : vector<128x1xf32> to vector<128x64xf32>
    %15 = arith.subf %2, %14 : vector<128x64xf32>
    %cst_7 = arith.constant 9.99999974E-6 : f32
    %16 = vector.broadcast %cst_7 : f32 to vector<128x1xf32>
    %17 = arith.addf %13, %16 : vector<128x1xf32>
    %18 = math.rsqrt %17 : vector<128x1xf32>
    %19 = vector.broadcast %18 : vector<128x1xf32> to vector<128x64xf32>
    %20 = arith.mulf %15, %19 : vector<128x64xf32>
    %c0_8 = arith.constant 0 : index
    %c0_9 = arith.constant 0 : index
    %21 = vector.load %arg4[%c0_8, %c0_9] : memref<1x64xf32, #tpu.memory_space<vmem>>, vector<1x64xf32>
    %22 = vector.broadcast %21 : vector<1x64xf32> to vector<128x64xf32>
    %23 = arith.mulf %20, %22 : vector<128x64xf32>
    %c0_10 = arith.constant 0 : index
    %c0_11 = arith.constant 0 : index
    %24 = vector.load %arg5[%c0_10, %c0_11] : memref<1x64xf32, #tpu.memory_space<vmem>>, vector<1x64xf32>
    %25 = vector.broadcast %24 : vector<1x64xf32> to vector<128x64xf32>
    %26 = arith.addf %23, %25 : vector<128x64xf32>
    %c0_12 = arith.constant 0 : index
    %c0_13 = arith.constant 0 : index
    %27 = vector.load %arg2[%c0_12, %c0_13] : memref<128x64xbf16, #tpu.memory_space<vmem>>, vector<128x64xbf16>
    %28 = arith.extf %27 : vector<128x64xbf16> to vector<128x64xf32>
    %29 = arith.negf %28 : vector<128x64xf32>
    %30 = math.exp %29 : vector<128x64xf32>
    %cst_14 = arith.constant 1.000000e+00 : f32
    %31 = vector.broadcast %cst_14 : f32 to vector<128x64xf32>
    %32 = arith.addf %31, %30 : vector<128x64xf32>
    %33 = arith.divf %31, %32 : vector<128x64xf32>
    %34 = arith.mulf %28, %33 : vector<128x64xf32>
    %35 = arith.mulf %26, %34 : vector<128x64xf32>
    %36 = arith.truncf %35 : vector<128x64xf32> to vector<128x64xbf16>
    %c0_15 = arith.constant 0 : index
    %c0_16 = arith.constant 0 : index
    %37 = vector.load %arg6[%c0_15, %c0_16] : memref<64x32xbf16, #tpu.memory_space<vmem>>, vector<64x32xbf16>
    %cst_17 = arith.constant dense<0.000000e+00> : vector<128x32xf32>
    %38 = tpu.matmul %36, %37, %cst_17 {dimension_numbers = #tpu.dot_dimension_numbers<[1], [0], [0], [1], [0, 0, 1, 1], [], []>} : vector<128x64xbf16>, vector<64x32xbf16>, vector<128x32xf32> -> vector<128x32xf32>
    %c0_18 = arith.constant 0 : index
    %c0_19 = arith.constant 0 : index
    %39 = vector.load %arg7[%c0_18, %c0_19] : memref<128x32xf32, #tpu.memory_space<vmem>>, vector<128x32xf32>
    tpu.vector_store %arg7[%c0_18, %c0_19], %38 {strides = array<i32>} : memref<128x32xf32, #tpu.memory_space<vmem>>, vector<128x32xf32>,
    return
  }
  func.func @transform_0(%arg0: i32) -> (i32, i32) {
    %c0_i32 = arith.constant 0 : i32
    %c0_i32_0 = arith.constant 0 : i32
    return %arg0, %c0_i32 : i32, i32
  }
  func.func @transform_1(%arg0: i32) -> (i32, i32) {
    %c0_i32 = arith.constant 0 : i32
    %c0_i32_0 = arith.constant 0 : i32
    return %arg0, %c0_i32 : i32, i32
  }
  func.func @transform_2(%arg0: i32) -> (i32, i32) {
    %c0_i32 = arith.constant 0 : i32
    %c0_i32_0 = arith.constant 0 : i32
    %c0_i32_1 = arith.constant 0 : i32
    return %c0_i32, %c0_i32_0 : i32, i32
  }
  func.func @transform_3(%arg0: i32) -> (i32, i32) {
    %c0_i32 = arith.constant 0 : i32
    %c0_i32_0 = arith.constant 0 : i32
    %c0_i32_1 = arith.constant 0 : i32
    return %c0_i32, %c0_i32_0 : i32, i32
  }
  func.func @transform_4(%arg0: i32) -> (i32, i32) {
    %c0_i32 = arith.constant 0 : i32
    %c0_i32_0 = arith.constant 0 : i32
    %c0_i32_1 = arith.constant 0 : i32
    return %c0_i32, %c0_i32_0 : i32, i32
  }
  func.func @transform_5(%arg0: i32) -> (i32, i32) {
    %c0_i32 = arith.constant 0 : i32
    %c0_i32_0 = arith.constant 0 : i32
    %c0_i32_1 = arith.constant 0 : i32
    return %c0_i32, %c0_i32_0 : i32, i32
  }
  func.func @transform_6(%arg0: i32) -> (i32, i32) {
    %c0_i32 = arith.constant 0 : i32
    %c0_i32_0 = arith.constant 0 : i32
    return %arg0, %c0_i32 : i32, i32
  }
}

</mosaic_0001>

<bundles_post_ra>
// kernel: simplified_ss2d_forward.6
= control target key start
LH: loop header
LB: loop body
LE: loop exit
PB: predicated region body
PF: predicated region fallthrough
CT: control target
= control target key end

     0   :  { %s841_s12 = smov 0   ;;  %s843_s13 = smov 0   ;;  %s1096_s0 = inlined_call_operand.vmem [shape: bf16[2,8,8,64], index: 0, kind: input, shape index: {}]   ;;  %s1097_s1 = inlined_call_operand.vmem [shape: f32[3,3,64], index: 1, kind: input, shape index: {}]   ;;  %s1098_s2 = inlined_call_operand.vmem [shape: f32[1,1,64], index: 2, kind: input, shape index: {}]   ;;  %s1099_s3 = inlined_call_operand.vmem [shape: bf16[2,8,8,64], index: 3, kind: output, shape index: {}]  }
   0x1   :  { %s845_s14 = smov 0  }
   0x2 LB: > { %s25_s15 = sadd.s32 1, %s814_s13  ;;  %p702_p0 = scmp.ge.s32.totalorder %s818_s14, 1  ;;  %s818_s14 = sphi %s845_s14, %s13_s14   ;;  %s814_s13 = sphi %s843_s13, %s1101_s13   ;;  %s810_s12 = sphi %s841_s12, %s1100_s12  }
   0x3   : > { %p27_p1 = scmp.ge.s32.totalorder %s25_s15, 2  ;;  %p173_p2 = scmp.lt.s32.totalorder %s818_s14, 3 }
   0x5   : > { %s1103_s15 = smov (%p27_p1, %s25_s15), 0  ;;  %p174_p3 = pnand %p702_p0, %p173_p2 }
   0x6   : > { %p210_p4 = scmp.lt.s32.totalorder (!%p174_p3), %s810_s12, 1 }
   0x7   : > { %177 = sbr.rel (%p174_p3) target bundleno = 116 (0x74), region = 32 }
   0xc   : > { %v285_v0 = vlaneseq  ;;  %v820_v1 = vmov 0.0   ;;  %s1105_s12 = smov (!%p210_p4, %s810_s12), 1  ;;  %vm276_vm0 = vcmask 1040384   ;;  %v249_v5 = vld [vmem:[%s1097_s1] sm:$0x7]  ;;  %vm341_vm1 = vcmask 1046528  }
   0xd   : > { %v260_v2 = vrot.slane %v820_v1, 7  ;;  %v325_v4 = vrot.slane %v820_v1, 1  ;;  %s718_s18 = sshll.u32 %s1105_s12, 5  ;;  %v250_v6 = vld [vmem:[%s1097_s1 + $0x4] sm:$0x7]  ;;  %vm576_vm2 = vcmask 519168  }
   0xe   : > { %v286_v3 = vshrl.u32 %v285_v0, 7  ;;  %s217_s23 = scalar_lea.vmem %s1096_s0, %s718_s18  ;;  %v251_v40 = vld [vmem:[%s1097_s1 + $0x8] sm:$0x7]  ;;  %s1063_s30 = scalar_lea.vmem %s1099_s3, %s718_s18 }
   0xf   : > { %v874_v10 = vsel %vm276_vm0, 0.0, %v260_v2  ;;  %v721_v11 = vld [vmem:[%s217_s23] sm:$0xff]   ;;  %v736_v12 = vld [vmem:[%s217_s23 + $0x8] sm:$0xff]   ;;  %v737_v13 = vld [vmem:[%s217_s23 + $0x10] sm:$0xff]   ;;  %v881_v16 = vsel %vm341_vm1, %v325_v4, 0.0 }
  0x10   : > { %v287_v7 = vsub.s32 0, %v286_v3  ;;  %v307_v8 = vsub.s32 1, %v286_v3  ;;  %v352_v9 = vsub.s32 2, %v286_v3  ;;  %v722_v18 = vunpack.c.l.bf16 %v721_v11  ;;  %v897_v26 = vld [vmem:[%s217_s23 + $0x18] sm:$0xff]  }
  0x11   : > { %v723_v19 = vunpack.c.h.bf16 %v721_v11  ;;  %v885_v20 = vunpack.c.l.bf16 %v736_v12  ;;  %v889_v22 = vunpack.c.h.bf16 %v736_v12  ;;  %v891_v23 = vunpack.c.l.bf16 %v737_v13 }
  0x12   : > { %v876_v14 = vrot.slane %v249_v5, %v287_v7  ;;  %v878_v15 = vrot.slane %v249_v5, %v307_v8  ;;  %v883_v17 = vrot.slane %v249_v5, %v352_v9  ;;  %v887_v21 = vrot.slane %v250_v6, %v287_v7 }
  0x13   : > { %v893_v24 = vunpack.c.h.bf16 %v737_v13  ;;  %v261_v27 = vrot.slane %v722_v18, 7  ;;  %v262_v28 = vrot.slane %v723_v19, 7  ;;  %v326_v31 = vrot.slane %v722_v18, 1 }
  0x14   : > { %v289_v25 = vmul.f32 %v876_v14, %v874_v10  ;;  %v309_v29 = vmul.f32 0.0, %v878_v15  ;;  %v311_v30 = vmul.f32 %v723_v19, %v878_v15  ;;  %v327_v32 = vrot.slane %v723_v19, 1 }
  0x15   : > { %v354_v33 = vmul.f32 %v883_v17, %v881_v16  ;;  %v903_v34 = vrot.slane %v250_v6, %v307_v8  ;;  %v278_v35 = vsel %vm276_vm0, 0.0, %v261_v27  ;;  %v279_v36 = vsel %vm276_vm0, 0.0, %v262_v28 }
  0x16   : > { %v317_v37 = vadd.f32 %v309_v29, %v289_v25  ;;  %v907_v38 = vrot.slane %v250_v6, %v352_v9  ;;  %v910_v39 = vunpack.c.l.bf16 %v897_v26  ;;  %v291_v41 = vmul.f32 %v876_v14, %v279_v36 }
  0x17   : > { %v343_v42 = vsel %vm341_vm1, %v326_v31, 0.0  ;;  %v344_v43 = vsel %vm341_vm1, %v327_v32, 0.0  ;;  %v290_v44 = vmul.f32 %v876_v14, %v278_v35  ;;  %v378_v47 = vmul.f32 %v887_v21, %v278_v35 }
  0x18   : > { %v356_v45 = vmul.f32 %v883_v17, %v344_v43  ;;  %v362_v46 = vadd.f32 %v354_v33, %v317_v37  ;;  %v319_v48 = vadd.f32 %v311_v30, %v291_v41  ;;  %v355_v49 = vmul.f32 %v883_v17, %v343_v42 }
  0x19   : > { %v379_v50 = vmul.f32 %v887_v21, %v279_v36  ;;  %v398_v51 = vmul.f32 %v722_v18, %v903_v34  ;;  %v421_v53 = vmul.f32 %v907_v38, %v343_v42  ;;  %v925_v54 = vrot.slane %v251_v40, %v287_v7 }
  0x1a   : > { %v386_v52 = vadd.f32 %v378_v47, %v362_v46  ;;  %v927_v55 = vrot.slane %v251_v40, %v307_v8  ;;  %v422_v56 = vmul.f32 %v907_v38, %v344_v43  ;;  %v930_v57 = vrot.slane %v251_v40, %v352_v9 }
  0x1b   : > { %v263_v58 = vrot.slane %v885_v20, 7  ;;  %v310_v59 = vmul.f32 %v722_v18, %v878_v15  ;;  %v364_v60 = vadd.f32 %v356_v45, %v319_v48  ;;  %v441_v62 = vmul.f32 %v925_v54, %v279_v36  ;;  %v958_v36 = vld [vmem:[%s1098_s2] ss:$0 sm:$0xff] }
  0x1c   : > { %v406_v61 = vadd.f32 %v398_v51, %v386_v52  ;;  %v312_v63 = vmul.f32 %v885_v20, %v878_v15  ;;  %v461_v0 = vmul.f32 %v723_v19, %v927_v55  ;;  %v328_v3 = vrot.slane %v885_v20, 1 }
  0x1d   : > { %v280_v1 = vsel %vm276_vm0, 0.0, %v263_v58  ;;  %v318_v2 = vadd.f32 %v310_v59, %v290_v44  ;;  %v481_v5 = vmul.f32 %v930_v57, %v344_v43  ;;  %v399_v11 = vmul.f32 %v723_v19, %v903_v34 }
  0x1e   : > { %v429_v4 = vadd.f32 %v421_v53, %v406_v61  ;;  %v292_v6 = vmul.f32 %v876_v14, %v280_v1  ;;  %v380_v7 = vmul.f32 %v887_v21, %v280_v1  ;;  %v345_v8 = vsel %vm341_vm1, %v328_v3, 0.0 }
  0x1f   : > { %v363_v9 = vadd.f32 %v355_v49, %v318_v2  ;;  %v442_v12 = vmul.f32 %v925_v54, %v280_v1  ;;  %v357_v25 = vmul.f32 %v883_v17, %v345_v8  ;;  %v462_v27 = vmul.f32 %v885_v20, %v927_v55 }
  0x20   : > { %v449_v13 = vadd.f32 %v441_v62, %v429_v4  ;;  %v320_v18 = vadd.f32 %v312_v63, %v292_v6  ;;  %v423_v29 = vmul.f32 %v907_v38, %v345_v8  ;;  %v482_v30 = vmul.f32 %v930_v57, %v345_v8 }
  0x21   : > { %v387_v28 = vadd.f32 %v379_v50, %v363_v9  ;;  %v264_v31 = vrot.slane %v889_v22, 7  ;;  %v313_v19 = vmul.f32 %v889_v22, %v878_v15  ;;  %v329_v33 = vrot.slane %v889_v22, 1 }
  0x22   : > { %v469_v32 = vadd.f32 %v461_v0, %v449_v13  ;;  %v388_v35 = vadd.f32 %v380_v7, %v364_v60  ;;  %v365_v37 = vadd.f32 %v357_v25, %v320_v18  ;;  %v400_v42 = vmul.f32 %v885_v20, %v903_v34 }
  0x23   : > { %v407_v40 = vadd.f32 %v399_v11, %v387_v28  ;;  %v281_v41 = vsel %vm276_vm0, 0.0, %v264_v31  ;;  %v346_v45 = vsel %vm341_vm1, %v329_v33, 0.0  ;;  %v463_v50 = vmul.f32 %v889_v22, %v927_v55 }
  0x24   : > { %v489_v43 = vadd.f32 %v481_v5, %v469_v32  ;;  %v293_v44 = vmul.f32 %v876_v14, %v281_v41  ;;  %v381_v46 = vmul.f32 %v887_v21, %v281_v41  ;;  %v358_v48 = vmul.f32 %v883_v17, %v346_v45 }
  0x25   : > { %v430_v47 = vadd.f32 %v422_v56, %v407_v40  ;;  %v408_v49 = vadd.f32 %v400_v42, %v388_v35  ;;  %v424_v20 = vmul.f32 %v907_v38, %v346_v45  ;;  %v443_v53 = vmul.f32 %v925_v54, %v281_v41 }
  0x26   : > { %v970_v51 = vadd.f32 %v958_v36, %v489_v43  ;;  %v321_v52 = vadd.f32 %v313_v19, %v293_v44  ;;  %v483_v60 = vmul.f32 %v930_v57, %v346_v45  ;;  %v265_v56 = vrot.slane %v891_v23, 7 }
  0x27   : > { %v450_v58 = vadd.f32 %v442_v12, %v430_v47  ;;  %v431_v59 = vadd.f32 %v423_v29, %v408_v49  ;;  %v314_v62 = vmul.f32 %v891_v23, %v878_v15  ;;  %v330_v63 = vrot.slane %v891_v23, 1 }
  0x28   : > { %v708_v61 = vmul.f32 -1.442695, %v970_v51  ;;  %v389_v0 = vadd.f32 %v381_v46, %v365_v37  ;;  %v282_v3 = vsel %vm276_vm0, 0.0, %v265_v56  ;;  %v401_v4 = vmul.f32 %v889_v22, %v903_v34 }
  0x29   : > { %v470_v1 = vadd.f32 %v462_v27, %v450_v58  ;;  %v451_v2 = vadd.f32 %v443_v53, %v431_v59  ;;  %v366_v5 = vadd.f32 %v358_v48, %v321_v52  ;;  %v294_v6 = vmul.f32 %v876_v14, %v282_v3 }
  0x2a   : > { %764 = vpow2.f32 %v708_v61  ;;  %v347_v7 = vsel %vm341_vm1, %v330_v63, 0.0  ;;  %v382_v11 = vmul.f32 %v887_v21, %v282_v3  ;;  %v409_v12 = vadd.f32 %v401_v4, %v389_v0 }
  0x2b   : > { %v490_v8 = vadd.f32 %v482_v30, %v470_v1  ;;  %v471_v9 = vadd.f32 %v463_v50, %v451_v2  ;;  %v322_v13 = vadd.f32 %v314_v62, %v294_v6  ;;  %v359_v18 = vmul.f32 %v883_v17, %v347_v7 }
  0x2c   : > { %v425_v25 = vmul.f32 %v907_v38, %v347_v7  ;;  %v444_v27 = vmul.f32 %v925_v54, %v282_v3  ;;  %v432_v29 = vadd.f32 %v424_v20, %v409_v12  ;;  %v464_v31 = vmul.f32 %v891_v23, %v927_v55 }
  0x2d   : > { %v990_v22 = vadd.f32 %v958_v36, %v490_v8  ;;  %v491_v28 = vadd.f32 %v483_v60, %v471_v9  ;;  %v484_v30 = vmul.f32 %v930_v57, %v347_v7  ;;  %v266_v32 = vrot.slane %v893_v24, 7 }
  0x2e   : > { %v315_v19 = vmul.f32 %v893_v24, %v878_v15  ;;  %v331_v33 = vrot.slane %v893_v24, 1  ;;  %v452_v40 = vadd.f32 %v444_v27, %v432_v29  ;;  %v390_v41 = vadd.f32 %v382_v11, %v366_v5 }
  0x2f   : > { %v709_v35 = vmul.f32 -1.442695, %v990_v22  ;;  %v1001_v37 = vadd.f32 %v958_v36, %v491_v28  ;;  %v367_v42 = vadd.f32 %v359_v18, %v322_v13  ;;  %v283_v43 = vsel %vm276_vm0, 0.0, %v266_v32 }
  0x30   : > { %v348_v44 = vsel %vm341_vm1, %v331_v33, 0.0  ;;  %v402_v45 = vmul.f32 %v891_v23, %v903_v34  ;;  %v472_v47 = vadd.f32 %v464_v31, %v452_v40  ;;  %v295_v48 = vmul.f32 %v876_v14, %v283_v43 }
  0x31   : > { %766 = vpow2.f32 %v709_v35  ;;  %v710_v46 = vmul.f32 -1.442695, %v1001_v37  ;;  %v360_v49 = vmul.f32 %v883_v17, %v348_v44  ;;  %v383_v50 = vmul.f32 %v887_v21, %v283_v43 }
  0x32   : > { %v410_v52 = vadd.f32 %v402_v45, %v390_v41  ;;  %v465_v20 = vmul.f32 %v893_v24, %v927_v55  ;;  %v492_v53 = vadd.f32 %v484_v30, %v472_v47  ;;  %v323_v58 = vadd.f32 %v315_v19, %v295_v48 }
  0x33   : > { %768 = vpow2.f32 %v710_v46  ;;  %v445_v59 = vmul.f32 %v925_v54, %v283_v43  ;;  %v426_v23 = vmul.f32 %v907_v38, %v348_v44  ;;  %v485_v56 = vmul.f32 %v930_v57, %v348_v44 }
  0x34   : > { %v433_v60 = vadd.f32 %v425_v25, %v410_v52  ;;  %v267_v61 = vrot.slane %v910_v39, 7  ;;  %v1018_v62 = vadd.f32 %v958_v36, %v492_v53  ;;  %v316_v63 = vmul.f32 %v910_v39, %v878_v15 }
  0x35   : > { %v332_v0 = vrot.slane %v910_v39, 1  ;;  %v391_v1 = vadd.f32 %v383_v50, %v367_v42  ;;  %v368_v2 = vadd.f32 %v360_v49, %v323_v58  ;;  %v403_v5 = vmul.f32 %v893_v24, %v903_v34 }
  0x36   : > { %v453_v3 = vadd.f32 %v445_v59, %v433_v60  ;;  %v284_v4 = vsel %vm276_vm0, 0.0, %v267_v61  ;;  %v711_v7 = vmul.f32 -1.442695, %v1018_v62  ;;  %v466_v24 = vmul.f32 %v910_v39, %v927_v55 }
  0x37   : > { %v765_v6 = vpop.eup %764  ;;  %v296_v8 = vmul.f32 %v876_v14, %v284_v4  ;;  %v349_v9 = vsel %vm341_vm1, %v332_v0, 0.0  ;;  %v384_v11 = vmul.f32 %v887_v21, %v284_v4  ;;  %v411_v13 = vadd.f32 %v403_v5, %v391_v1 }
  0x38   : > { %v536_v15 = vadd.f32 1.0, %v765_v6  ;;  %v473_v12 = vadd.f32 %v465_v20, %v453_v3  ;;  %770 = vpow2.f32 %v711_v7  ;;  %v361_v18 = vmul.f32 %v883_v17, %v349_v9 }
  0x39   : > { %v446_v25 = vmul.f32 %v925_v54, %v284_v4  ;;  %v324_v28 = vadd.f32 %v316_v63, %v296_v8  ;;  %v434_v29 = vadd.f32 %v426_v23, %v411_v13  ;;  %v427_v14 = vmul.f32 %v907_v38, %v349_v9 }
  0x3a   : > { %772 = vrcp.f32 %v536_v15  ;;  %v493_v27 = vadd.f32 %v485_v56, %v473_v12  ;;  %v735_v31 = vunpack.c.h.bf16 %v897_v26  ;;  %v392_v30 = vadd.f32 %v384_v11, %v368_v2 }
  0x3b   : > { %v404_v32 = vmul.f32 %v910_v39, %v903_v34  ;;  %v454_v17 = vadd.f32 %v446_v25, %v434_v29  ;;  %v486_v33 = vmul.f32 %v930_v57, %v349_v9  ;;  %v369_v44 = vadd.f32 %v361_v18, %v324_v28 }
  0x3c   : > { %v1039_v19 = vadd.f32 %v958_v36, %v493_v27  ;;  %v371_v35 = vrot.slane %v735_v31, 7  ;;  %v414_v41 = vrot.slane %v735_v31, 1  ;;  %v405_v52 = vmul.f32 %v735_v31, %v903_v34 }
  0x3d   : > { %v412_v40 = vadd.f32 %v404_v32, %v392_v30  ;;  %v474_v45 = vadd.f32 %v466_v24, %v454_v17  ;;  %v467_v58 = vmul.f32 %v735_v31, %v927_v55  ;;  %v448_v34 = vmul.f32 %v925_v54, %v874_v10 }
  0x3e   : > { %v767_v42 = vpop.eup %766  ;;  %v712_v43 = vmul.f32 -1.442695, %v1039_v19  ;;  %v373_v26 = vsel %vm276_vm0, 0.0, %v371_v35  ;;  %v416_v47 = vsel %vm341_vm1, %v414_v41, 0.0  ;;  %v468_v3 = vmul.f32 0.0, %v927_v55 }
  0x3f   : > { %v537_v46 = vadd.f32 1.0, %v767_v42  ;;  %v435_v39 = vadd.f32 %v427_v14, %v412_v40  ;;  %v494_v49 = vadd.f32 %v486_v33, %v474_v45  ;;  %v385_v50 = vmul.f32 %v887_v21, %v373_v26 }
  0x40   : > { %v769_v48 = vpop.eup %768  ;;  %774 = vpow2.f32 %v712_v43  ;;  %v447_v53 = vmul.f32 %v925_v54, %v373_v26  ;;  %v428_v23 = vmul.f32 %v907_v38, %v416_v47  ;;  %v487_v61 = vmul.f32 %v930_v57, %v416_v47 }
  0x41   : > { %776 = vrcp.f32 %v537_v46  ;;  %v538_v20 = vadd.f32 1.0, %v769_v48  ;;  %v509_v59 = vadd.f32 %v958_v36, %v494_v49  ;;  %v393_v60 = vadd.f32 %v385_v50, %v369_v44 }
  0x42   : > { %v455_v56 = vadd.f32 %v447_v53, %v435_v39  ;;  %v488_v8 = vmul.f32 %v930_v57, %v881_v16 }
  0x43   : > { %778 = vrcp.f32 %v538_v20  ;;  %v713_v63 = vmul.f32 -1.442695, %v509_v59  ;;  %v413_v21 = vadd.f32 %v405_v52, %v393_v60 }
  0x44   : > { %v475_v0 = vadd.f32 %v467_v58, %v455_v56 }
  0x45   : > { %v771_v1 = vpop.eup %770  ;;  %780 = vpow2.f32 %v713_v63  ;;  %v436_v2 = vadd.f32 %v428_v23, %v413_v21 }
  0x46   : > { %v539_v5 = vadd.f32 1.0, %v771_v1  ;;  %v495_v38 = vadd.f32 %v487_v61, %v475_v0 }
  0x47   : > { %v773_v4 = vpop.eup %772  ;;  %v456_v7 = vadd.f32 %v448_v34, %v436_v2 }
  0x48   : > { %v560_v6 = vmul.f32 %v773_v4, %v970_v51  ;;  %782 = vrcp.f32 %v539_v5  ;;  %v510_v10 = vadd.f32 %v958_v36, %v495_v38 }
  0x49   : > { %v476_v55 = vadd.f32 %v468_v3, %v456_v7 }
  0x4a   : > { %v568_v54 = vpack.c.bf16 %v560_v6, %v560_v6  ;;  %v714_v9 = vmul.f32 -1.442695, %v510_v10 }
  0x4b   : > { %v496_v51 = vadd.f32 %v488_v8, %v476_v55 }
  0x4c   : > { %577 = vst.msk [vmem:[%s1063_s30] sm:$0xf] %vm576_vm2, %v568_v54  ;;  %784 = vpow2.f32 %v714_v9 }
  0x4d   : > { %v775_v11 = vpop.eup %774  ;;  %v511_v15 = vadd.f32 %v958_v36, %v496_v51 }
  0x4e   : > { %v777_v16 = vpop.eup %776  ;;  %v540_v57 = vadd.f32 1.0, %v775_v11 }
  0x4f   : > { %v561_v12 = vmul.f32 %v777_v16, %v990_v22  ;;  %v715_v18 = vmul.f32 -1.442695, %v511_v15 }
  0x50   : > { %v779_v13 = vpop.eup %778  ;;  %786 = vrcp.f32 %v540_v57 }
  0x51   : > { %v569_v25 = vpack.c.bf16 %v561_v12, %v561_v12  ;;  %v562_v24 = vmul.f32 %v779_v13, %v1001_v37  ;;  %788 = vpow2.f32 %v715_v18 }
  0x52   : > { %v781_v27 = vpop.eup %780 }
  0x53   : > { %578 = vst.msk [vmem:[%s1063_s30 + $0x4] sm:$0xf] %vm576_vm2, %v569_v25  ;;  %v570_v28 = vpack.c.bf16 %v562_v24, %v562_v24  ;;  %v541_v29 = vadd.f32 1.0, %v781_v27 }
  0x55   : > { %579 = vst.msk [vmem:[%s1063_s30 + $0x8] sm:$0xf] %vm576_vm2, %v570_v28  ;;  %v783_v14 = vpop.eup %782  ;;  %790 = vrcp.f32 %v541_v29 }
  0x56   : > { %v563_v36 = vmul.f32 %v783_v14, %v1018_v62 }
  0x58   : > { %v571_v22 = vpack.c.bf16 %v563_v36, %v563_v36 }
  0x59   : > { %v785_v31 = vpop.eup %784 }
  0x5a   : > { %580 = vst.msk [vmem:[%s1063_s30 + $0xc] sm:$0xf] %vm576_vm2, %v571_v22  ;;  %v542_v30 = vadd.f32 1.0, %v785_v31 }
  0x5c   : > { %792 = vrcp.f32 %v542_v30 }
  0x5d   : > { %v787_v37 = vpop.eup %786 }
  0x5e   : > { %v564_v32 = vmul.f32 %v787_v37, %v1039_v19  ;;  %v789_v17 = vpop.eup %788 }
  0x5f   : > { %v543_v35 = vadd.f32 1.0, %v789_v17 }
  0x60   : > { %v572_v33 = vpack.c.bf16 %v564_v32, %v564_v32 }
  0x61   : > { %794 = vrcp.f32 %v543_v35 }
  0x62   : > { %581 = vst.msk [vmem:[%s1063_s30 + $0x10] sm:$0xf] %vm576_vm2, %v572_v33  ;;  %v791_v40 = vpop.eup %790 }
  0x63   : > { %v565_v62 = vmul.f32 %v791_v40, %v509_v59 }
  0x65   : > { %v573_v41 = vpack.c.bf16 %v565_v62, %v565_v62 }
  0x67   : > { %582 = vst.msk [vmem:[%s1063_s30 + $0x14] sm:$0xf] %vm576_vm2, %v573_v41 }
  0x69   : > { %v793_v42 = vpop.eup %792 }
  0x6a   : > { %v566_v43 = vmul.f32 %v793_v42, %v510_v10 }
  0x6c   : > { %v574_v44 = vpack.c.bf16 %v566_v43, %v566_v43 }
  0x6e   : > { %v795_v45 = vpop.eup %794  ;;  %583 = vst.msk [vmem:[%s1063_s30 + $0x18] sm:$0xf] %vm576_vm2, %v574_v44 }
  0x6f   : > { %v567_v46 = vmul.f32 %v795_v45, %v511_v15 }
  0x71   : > { %v575_v19 = vpack.c.bf16 %v567_v46, %v567_v46 }
  0x73   : > { %584 = vst.msk [vmem:[%s1063_s30 + $0x1c] sm:$0xf] %vm576_vm2, %v575_v19 }
  0x74 PF: > { %s13_s14 = sadd.s32 1, %s818_s14   ;;  %s1100_s12 = smov %s814_s13 }
  0x75   : > { %p10_p5 = scmp.ge.s32.totalorder %s13_s14, 4   ;;  %s1101_s13 = smov %s1103_s15 }
  0x77   :  { %12 = sbr.rel (!%p10_p5) target bundleno = 2 (0x2), region = 68 }

// kernel: simplified_ss2d_forward.5
= control target key start
LH: loop header
LB: loop body
LE: loop exit
PB: predicated region body
PF: predicated region fallthrough
CT: control target
= control target key end

     0   :  { %10 = vsyncpa [#allocation3], 0  ;;  %s876_s0 = inlined_call_operand.hbm [shape: f32[128,32], index: 0, kind: input, shape index: {}]   ;;  %s877_s1 = inlined_call_operand.vmem [shape: bf16[32,64], index: 1, kind: input, shape index: {}]   ;;  %s878_s2 = inlined_call_operand.hbm [shape: bf16[32,64], index: 2, kind: input, shape index: {}]   ;;  %s879_s3 = inlined_call_operand.vmem [shape: bf16[128,64], index: 3, kind: output, shape index: {0}]   ;;  %s880_s4 = inlined_call_operand.vmem [shape: bf16[128,64], index: 4, kind: output, shape index: {1}]  }
   0x1   :  { %11 = vsyncpa [#allocation5], 0  ;;  %s689_s15 = smov [#allocation2]  }
   0x2   :  { %s17_s16 = sshll.u32 %s689_s15, 4  ;;  %s18_s16 = int_to_ptr.vmem [resolvable:$true] %s17_s16 }
   0x3   :  { %s653_s17 = scalar_lea.vmem %s18_s16, 2048  ;;  %p658_p1 = scmp.lt.s32.totalorder %s18_s16, %s18_s16 }
   0x4   :  { %p654_p0 = scmp.ne.s32.totalorder %s18_s16, %s653_s17  ;;  %p659_p2 = scmp.lt.s32.totalorder %s653_s17, %s653_s17 }
   0x6   :  { %p660_p3 = por %p659_p2, %p658_p1 }
   0x8   :  { %p661_p4 = pnand %p660_p3, %p654_p0 }
   0xa   :  { %664 = shalt.err (!%p661_p4)
}
   0xb   :  { %s690_s18 = smov 128   ;;  %s691_s19 = smov 8  }
   0xc   :  { %23 = dma.hbm_to_vmem [thread:$0]  %s876_s0, 2048, %s18_s16, [#allocation3], %s690_s18, %s690_s18, %s691_s19  }
   0xd   :  { %s692_s22 = smov [#allocation4]  }
   0xe   :  { %s31_s23 = sshll.u32 %s692_s22, 4  ;;  %s32_s23 = int_to_ptr.vmem [resolvable:$true] %s31_s23 }
   0xf   :  { %s673_s24 = scalar_lea.vmem %s32_s23, 256  ;;  %p678_p6 = scmp.lt.s32.totalorder %s32_s23, %s32_s23 }
  0x10   :  { %p674_p5 = scmp.ne.s32.totalorder %s32_s23, %s673_s24  ;;  %p679_p7 = scmp.lt.s32.totalorder %s673_s24, %s673_s24 }
  0x12   :  { %p680_p8 = por %p679_p7, %p678_p6 }
  0x14   :  { %p681_p9 = pnand %p680_p8, %p674_p5 }
  0x16   :  { %684 = shalt.err (!%p681_p9)
}
  0x17   :  { %s693_s25 = smov 64   ;;  %s694_s26 = smov 4  }
  0x18   :  { %37 = dma.hbm_to_vmem [thread:$0]  %s878_s2, 256, %s32_s23, [#allocation5], %s693_s25, %s693_s25, %s694_s26  }
  0x19   :  { %685 = dma.done.wait [#allocation3], 2048  }
  0x1a   :  { %686 = vsyncadd [#allocation3], 4294965248 }
  0x1b   :  { %687 = dma.done.wait [#allocation5], 256  }
  0x1c   :  { %688 = vsyncadd [#allocation5], 4294967040  ;;  %v641_v0 = vld [vmem:[%s877_s1 + $0x8] sm:$0xff]   ;;  %v643_v2 = vld [vmem:[%s877_s1] sm:$0xff]   ;;  %vm85_vm0 = vcmask 261120   ;;  %vm271_vm1 = vcmask 519168  }
  0x1d   :  { %v642_v1 = vld [vmem:[#allocation4 + $0x8] sm:$0xff]   ;;  %595 = vmatprep.subr.bf16.mxu0 %v641_v0  ;;  %v644_v3 = vld [vmem:[#allocation4] sm:$0xff]   ;;  %v47_v6 = vld [vmem:[#allocation2 + $0x10] sm:$0xff] }
  0x1e   :  { %615 = vmatprep.subr.bf16.mxu1 %v642_v1  ;;  %596 = vmatpush3.bf16.msra.mxu0 %v641_v0  ;;  %v45_v4 = vld [vmem:[#allocation2] sm:$0xff]  ;;  %v46_v5 = vld [vmem:[#allocation2 + $0x8] sm:$0xff]  ;;  %v48_v8 = vld [vmem:[#allocation2 + $0x18] sm:$0xff] }
  0x1f   :  { %616 = vmatpush3.bf16.msra.mxu1 %v642_v1  ;;  %597 = vmatprep.subr.bf16.mxu0 %v643_v2  ;;  %v61_v7 = vpack.c.bf16 %v46_v5, %v45_v4  ;;  %v49_v9 = vld [vmem:[#allocation2 + $0x20] sm:$0xff]  ;;  %v50_v10 = vld [vmem:[#allocation2 + $0x28] sm:$0xff]  ;;  %v62_v11 = vpack.c.bf16 %v48_v8, %v47_v6  ;;  %v51_v13 = vld [vmem:[#allocation2 + $0x30] sm:$0xff] }
  0x20   :  { %617 = vmatprep.subr.bf16.mxu1 %v644_v3  ;;  %v63_v12 = vpack.c.bf16 %v50_v10, %v49_v9  ;;  %v52_v14 = vld [vmem:[#allocation2 + $0x38] sm:$0xff]  ;;  %v53_v15 = vld [vmem:[#allocation2 + $0x40] sm:$0xff]  ;;  %v54_v16 = vld [vmem:[#allocation2 + $0x48] sm:$0xff] }
  0x21   :  { %599 = vmatprep.mubr.msk.bf16.mxu0 %vm85_vm0, %v61_v7  ;;  %619 = vmatprep.mubr.msk.bf16.mxu1 %vm85_vm0, %v61_v7  ;;  %v64_v17 = vpack.c.bf16 %v52_v14, %v51_v13  ;;  %v65_v18 = vpack.c.bf16 %v54_v16, %v53_v15  ;;  %v55_v19 = vld [vmem:[#allocation2 + $0x50] sm:$0xff]  ;;  %v56_v20 = vld [vmem:[#allocation2 + $0x58] sm:$0xff]  ;;  %v57_v21 = vld [vmem:[#allocation2 + $0x60] sm:$0xff] }
  0x22   :  { %598 = vmatpush3.bf16.msra.mxu0 %v643_v2  ;;  %v58_v22 = vld [vmem:[#allocation2 + $0x68] sm:$0xff]  ;;  %v66_v23 = vpack.c.bf16 %v56_v20, %v55_v19  ;;  %v59_v25 = vld [vmem:[#allocation2 + $0x70] sm:$0xff]  ;;  %v60_v26 = vld [vmem:[#allocation2 + $0x78] sm:$0xff] }
  0x23   :  { %618 = vmatpush3.bf16.msra.mxu1 %v644_v3  ;;  %v67_v24 = vpack.c.bf16 %v58_v22, %v57_v21  ;;  %v68_v27 = vpack.c.bf16 %v60_v26, %v59_v25 }
  0x25   :  { %600 = vmatmul.mubr.msk.bf16.vlgmr.msra.gmra.mxu0 %vm85_vm0, %v62_v11 }
  0x26   :  { %620 = vmatmul.mubr.msk.bf16.vlgmr.msra.gmra.mxu1 %vm85_vm0, %v62_v11  ;;  %603 = vmatprep.mubr.msk.bf16.mxu0 %vm85_vm0, %v63_v12 }
  0x27   :  { %623 = vmatprep.mubr.msk.bf16.mxu1 %vm85_vm0, %v63_v12 }
  0x2d   :  { %604 = vmatmul.mubr.msk.bf16.gmra.mxu0 %vm85_vm0, %v64_v17 }
  0x2e   :  { %624 = vmatmul.mubr.msk.bf16.gmra.mxu1 %vm85_vm0, %v64_v17  ;;  %607 = vmatprep.mubr.msk.bf16.mxu0 %vm85_vm0, %v65_v18 }
  0x2f   :  { %627 = vmatprep.mubr.msk.bf16.mxu1 %vm85_vm0, %v65_v18 }
  0x35   :  { %608 = vmatmul.mubr.msk.bf16.gmra.mxu0 %vm85_vm0, %v66_v23 }
  0x36   :  { %628 = vmatmul.mubr.msk.bf16.gmra.mxu1 %vm85_vm0, %v66_v23  ;;  %611 = vmatprep.mubr.msk.bf16.mxu0 %vm85_vm0, %v67_v24 }
  0x37   :  { %631 = vmatprep.mubr.msk.bf16.mxu1 %vm85_vm0, %v67_v24 }
  0x3d   :  { %612 = vmatmul.mubr.msk.bf16.gmra.mxu0 %vm85_vm0, %v68_v27 }
  0x3e   :  { %632 = vmatmul.mubr.msk.bf16.gmra.mxu1 %vm85_vm0, %v68_v27 }
  0xe5   :  { %v601_v28 = vpop.f32.mrf.mxu0 }
  0xe6   :  { %v545_v29 = vpack.c.bf16 %v601_v28, %v601_v28  ;;  %v621_v30 = vpop.f32.mrf.mxu1 }
  0xe7   :  { %v561_v31 = vpack.c.bf16 %v621_v30, %v621_v30  ;;  %v144_v32 = vpop.f32.mrf.mxu0 }
  0xe8   :  { %274 = vst.msk [vmem:[%s879_s3 + $0x8] sm:$0xf] %vm271_vm1, %v545_v29  ;;  %v543_v33 = vpack.c.bf16 %v144_v32, %v144_v32  ;;  %v338_v34 = vpop.f32.mrf.mxu1 }
  0xe9   :  { %467 = vst.msk [vmem:[%s880_s4 + $0x8] sm:$0xf] %vm271_vm1, %v561_v31  ;;  %v559_v35 = vpack.c.bf16 %v338_v34, %v338_v34  ;;  %v602_v36 = vpop.f32.mrf.mxu0 }
  0xea   :  { %272 = vst.msk [vmem:[%s879_s3] sm:$0xf] %vm271_vm1, %v543_v33  ;;  %v546_v37 = vpack.c.bf16 %v602_v36, %v602_v36  ;;  %v622_v38 = vpop.f32.mrf.mxu1 }
  0xeb   :  { %465 = vst.msk [vmem:[%s880_s4] sm:$0xf] %vm271_vm1, %v559_v35  ;;  %v562_v39 = vpack.c.bf16 %v622_v38, %v622_v38  ;;  %v147_v40 = vpop.f32.mrf.mxu0 }
  0xec   :  { %275 = vst.msk [vmem:[%s879_s3 + $0xc] sm:$0xf] %vm271_vm1, %v546_v37  ;;  %v544_v41 = vpack.c.bf16 %v147_v40, %v147_v40  ;;  %v341_v42 = vpop.f32.mrf.mxu1 }
  0xed   :  { %468 = vst.msk [vmem:[%s880_s4 + $0xc] sm:$0xf] %vm271_vm1, %v562_v39  ;;  %v560_v43 = vpack.c.bf16 %v341_v42, %v341_v42  ;;  %v605_v44 = vpop.f32.mrf.mxu0 }
  0xee   :  { %273 = vst.msk [vmem:[%s879_s3 + $0x4] sm:$0xf] %vm271_vm1, %v544_v41  ;;  %v549_v45 = vpack.c.bf16 %v605_v44, %v605_v44  ;;  %v625_v46 = vpop.f32.mrf.mxu1 }
  0xef   :  { %466 = vst.msk [vmem:[%s880_s4 + $0x4] sm:$0xf] %vm271_vm1, %v560_v43  ;;  %v565_v47 = vpack.c.bf16 %v625_v46, %v625_v46  ;;  %v160_v48 = vpop.f32.mrf.mxu0 }
  0xf0   :  { %278 = vst.msk [vmem:[%s879_s3 + $0x18] sm:$0xf] %vm271_vm1, %v549_v45  ;;  %v547_v49 = vpack.c.bf16 %v160_v48, %v160_v48  ;;  %v354_v50 = vpop.f32.mrf.mxu1 }
  0xf1   :  { %471 = vst.msk [vmem:[%s880_s4 + $0x18] sm:$0xf] %vm271_vm1, %v565_v47  ;;  %v563_v51 = vpack.c.bf16 %v354_v50, %v354_v50  ;;  %v606_v52 = vpop.f32.mrf.mxu0 }
  0xf2   :  { %276 = vst.msk [vmem:[%s879_s3 + $0x10] sm:$0xf] %vm271_vm1, %v547_v49  ;;  %v550_v53 = vpack.c.bf16 %v606_v52, %v606_v52  ;;  %v626_v54 = vpop.f32.mrf.mxu1 }
  0xf3   :  { %469 = vst.msk [vmem:[%s880_s4 + $0x10] sm:$0xf] %vm271_vm1, %v563_v51  ;;  %v566_v55 = vpack.c.bf16 %v626_v54, %v626_v54  ;;  %v163_v56 = vpop.f32.mrf.mxu0 }
  0xf4   :  { %279 = vst.msk [vmem:[%s879_s3 + $0x1c] sm:$0xf] %vm271_vm1, %v550_v53  ;;  %v548_v57 = vpack.c.bf16 %v163_v56, %v163_v56  ;;  %v357_v58 = vpop.f32.mrf.mxu1 }
  0xf5   :  { %472 = vst.msk [vmem:[%s880_s4 + $0x1c] sm:$0xf] %vm271_vm1, %v566_v55  ;;  %v564_v59 = vpack.c.bf16 %v357_v58, %v357_v58  ;;  %v609_v60 = vpop.f32.mrf.mxu0 }
  0xf6   :  { %277 = vst.msk [vmem:[%s879_s3 + $0x14] sm:$0xf] %vm271_vm1, %v548_v57  ;;  %v553_v61 = vpack.c.bf16 %v609_v60, %v609_v60  ;;  %v629_v62 = vpop.f32.mrf.mxu1 }
  0xf7   :  { %470 = vst.msk [vmem:[%s880_s4 + $0x14] sm:$0xf] %vm271_vm1, %v564_v59  ;;  %v569_v63 = vpack.c.bf16 %v629_v62, %v629_v62  ;;  %v176_v0 = vpop.f32.mrf.mxu0 }
  0xf8   :  { %282 = vst.msk [vmem:[%s879_s3 + $0x28] sm:$0xf] %vm271_vm1, %v553_v61  ;;  %v551_v1 = vpack.c.bf16 %v176_v0, %v176_v0  ;;  %v370_v2 = vpop.f32.mrf.mxu1 }
  0xf9   :  { %475 = vst.msk [vmem:[%s880_s4 + $0x28] sm:$0xf] %vm271_vm1, %v569_v63  ;;  %v567_v3 = vpack.c.bf16 %v370_v2, %v370_v2  ;;  %v610_v4 = vpop.f32.mrf.mxu0 }
  0xfa   :  { %280 = vst.msk [vmem:[%s879_s3 + $0x20] sm:$0xf] %vm271_vm1, %v551_v1  ;;  %v554_v5 = vpack.c.bf16 %v610_v4, %v610_v4  ;;  %v630_v6 = vpop.f32.mrf.mxu1 }
  0xfb   :  { %473 = vst.msk [vmem:[%s880_s4 + $0x20] sm:$0xf] %vm271_vm1, %v567_v3  ;;  %v570_v7 = vpack.c.bf16 %v630_v6, %v630_v6  ;;  %v179_v8 = vpop.f32.mrf.mxu0 }
  0xfc   :  { %283 = vst.msk [vmem:[%s879_s3 + $0x2c] sm:$0xf] %vm271_vm1, %v554_v5  ;;  %v552_v9 = vpack.c.bf16 %v179_v8, %v179_v8  ;;  %v373_v10 = vpop.f32.mrf.mxu1 }
  0xfd   :  { %476 = vst.msk [vmem:[%s880_s4 + $0x2c] sm:$0xf] %vm271_vm1, %v570_v7  ;;  %v568_v11 = vpack.c.bf16 %v373_v10, %v373_v10  ;;  %v613_v12 = vpop.f32.mrf.mxu0 }
  0xfe   :  { %281 = vst.msk [vmem:[%s879_s3 + $0x24] sm:$0xf] %vm271_vm1, %v552_v9  ;;  %v557_v13 = vpack.c.bf16 %v613_v12, %v613_v12  ;;  %v633_v14 = vpop.f32.mrf.mxu1 }
  0xff   :  { %474 = vst.msk [vmem:[%s880_s4 + $0x24] sm:$0xf] %vm271_vm1, %v568_v11  ;;  %v573_v15 = vpack.c.bf16 %v633_v14, %v633_v14  ;;  %v192_v16 = vpop.f32.mrf.mxu0 }
 0x100   :  { %286 = vst.msk [vmem:[%s879_s3 + $0x38] sm:$0xf] %vm271_vm1, %v557_v13  ;;  %v555_v17 = vpack.c.bf16 %v192_v16, %v192_v16  ;;  %v386_v18 = vpop.f32.mrf.mxu1 }
 0x101   :  { %479 = vst.msk [vmem:[%s880_s4 + $0x38] sm:$0xf] %vm271_vm1, %v573_v15  ;;  %v571_v19 = vpack.c.bf16 %v386_v18, %v386_v18  ;;  %v614_v20 = vpop.f32.mrf.mxu0 }
 0x102   :  { %284 = vst.msk [vmem:[%s879_s3 + $0x30] sm:$0xf] %vm271_vm1, %v555_v17  ;;  %v558_v21 = vpack.c.bf16 %v614_v20, %v614_v20  ;;  %v634_v22 = vpop.f32.mrf.mxu1 }
 0x103   :  { %477 = vst.msk [vmem:[%s880_s4 + $0x30] sm:$0xf] %vm271_vm1, %v571_v19  ;;  %v574_v23 = vpack.c.bf16 %v634_v22, %v634_v22  ;;  %v195_v24 = vpop.f32.mrf.mxu0 }
 0x104   :  { %287 = vst.msk [vmem:[%s879_s3 + $0x3c] sm:$0xf] %vm271_vm1, %v558_v21  ;;  %v556_v25 = vpack.c.bf16 %v195_v24, %v195_v24  ;;  %v389_v26 = vpop.f32.mrf.mxu1 }
 0x105   :  { %480 = vst.msk [vmem:[%s880_s4 + $0x3c] sm:$0xf] %vm271_vm1, %v574_v23  ;;  %v572_v27 = vpack.c.bf16 %v389_v26, %v389_v26 }
 0x106   :  { %285 = vst.msk [vmem:[%s879_s3 + $0x34] sm:$0xf] %vm271_vm1, %v556_v25 }
 0x107   :  { %478 = vst.msk [vmem:[%s880_s4 + $0x34] sm:$0xf] %vm271_vm1, %v572_v27 }
 0x108   :  { %489 = vsyncpa [#allocation3], 1 }
 0x109   :  { %490 = vsyncpa [#allocation5], 1 }

// kernel: simplified_ss2d_forward.7
= control target key start
LH: loop header
LB: loop body
LE: loop exit
PB: predicated region body
PF: predicated region fallthrough
CT: control target
= control target key end

     0   :  { %vm109_vm0 = vcmask 523264   ;;  %vm295_vm1 = vcmask 519168   ;;  %s1329_s1 = inlined_call_operand.vmem [shape: bf16[64,64], index: 1, kind: input, shape index: {}]   ;;  %s1330_s0 = inlined_call_operand.vmem [shape: bf16[128,64], index: 0, kind: input, shape index: {}]   ;;  %s1331_s2 = inlined_call_operand.vmem [shape: bf16[64,64], index: 2, kind: input, shape index: {}]   ;;  %s1332_s3 = inlined_call_operand.vmem [shape: bf16[64,64], index: 3, kind: input, shape index: {}]   ;;  %s1333_s4 = inlined_call_operand.vmem [shape: bf16[128,64], index: 4, kind: output, shape index: {0}]   ;;  %s1334_s5 = inlined_call_operand.vmem [shape: bf16[128,64], index: 5, kind: output, shape index: {1}]   ;;  %s1335_s6 = inlined_call_operand.vmem [shape: bf16[128,64], index: 6, kind: output, shape index: {2}]  }
   0x1   :  { %v998_v0 = vld [vmem:[%s1329_s1 + $0x18] sm:$0xff]   ;;  %v999_v1 = vld [vmem:[%s1329_s1 + $0x10] sm:$0xff]   ;;  %v1000_v2 = vld [vmem:[%s1329_s1 + $0x8] sm:$0xff]  }
   0x2   :  { %918 = vmatprep.subr.bf16.mxu0 %v998_v0  ;;  %990 = vmatprep.subr.bf16.mxu1 %v998_v0  ;;  %v1002_v3 = vld [vmem:[%s1330_s0] sm:$0xff]   ;;  %v1006_v6 = vld [vmem:[%s1331_s2 + $0x18] sm:$0xff]   ;;  %v1004_v7 = vld [vmem:[%s1330_s0 + $0x8] sm:$0xff]  }
   0x3   :  { %919 = vmatpush3.bf16.msra.mxu0 %v998_v0  ;;  %994 = vmatpush3.bf16.msra.mxu1 %v998_v0  ;;  %v1003_v4 = vld [vmem:[%s1330_s0 + $0x20] sm:$0xff]   ;;  %v1007_v8 = vld [vmem:[%s1332_s3 + $0x18] sm:$0xff]   ;;  %v1005_v9 = vld [vmem:[%s1330_s0 + $0x28] sm:$0xff]  }
   0x4   :  { %920 = vmatprep.subr.bf16.mxu0 %v999_v1  ;;  %991 = vmatprep.subr.bf16.mxu1 %v999_v1  ;;  %v1001_v5 = vld [vmem:[%s1329_s1] sm:$0xff]   ;;  %v1008_v10 = vld [vmem:[%s1331_s2 + $0x10] sm:$0xff]   ;;  %v1014_v14 = vld [vmem:[%s1331_s2 + $0x8] sm:$0xff]  }
   0x5   :  { %926 = vmatprep.mubr.msk.bf16.mxu0 %vm109_vm0, %v1002_v3  ;;  %934 = vmatprep.mubr.msk.bf16.mxu1 %vm109_vm0, %v1003_v4  ;;  %v1009_v11 = vld [vmem:[%s1332_s3 + $0x10] sm:$0xff]   ;;  %v1015_v15 = vld [vmem:[%s1332_s3 + $0x8] sm:$0xff]   ;;  %v1012_v16 = vld [vmem:[%s1330_s0 + $0x18] sm:$0xff]  }
   0x6   :  { %v1010_v12 = vld [vmem:[%s1330_s0 + $0x10] sm:$0xff]   ;;  %v1013_v17 = vld [vmem:[%s1330_s0 + $0x38] sm:$0xff]   ;;  %v1016_v18 = vld [vmem:[%s1331_s2] sm:$0xff]  }
   0x7   :  { %921 = vmatpush3.bf16.msra.mxu0 %v999_v1  ;;  %995 = vmatpush3.bf16.msra.mxu1 %v999_v1  ;;  %v1011_v13 = vld [vmem:[%s1330_s0 + $0x30] sm:$0xff]   ;;  %v1017_v19 = vld [vmem:[%s1332_s3] sm:$0xff]  }
   0x8   :  { %922 = vmatprep.subr.bf16.mxu0 %v1000_v2  ;;  %992 = vmatprep.subr.bf16.mxu1 %v1000_v2 }
   0xb   :  { %923 = vmatpush3.bf16.msra.mxu0 %v1000_v2  ;;  %996 = vmatpush3.bf16.msra.mxu1 %v1000_v2 }
   0xc   :  { %924 = vmatprep.subr.bf16.mxu0 %v1001_v5  ;;  %993 = vmatprep.subr.bf16.mxu1 %v1001_v5 }
   0xf   :  { %925 = vmatpush3.bf16.msra.mxu0 %v1001_v5  ;;  %997 = vmatpush3.bf16.msra.mxu1 %v1001_v5 }
  0x10   :  { %942 = vmatprep.subr.bf16.mxu1 %v1006_v6  ;;  %966 = vmatprep.subr.bf16.mxu0 %v1007_v8 }
  0x12   :  { %927 = vmatmul.mubr.msk.bf16.vlgmr.msra.gmra.mxu0 %vm109_vm0, %v1004_v7  ;;  %935 = vmatmul.mubr.msk.bf16.vlgmr.msra.gmra.mxu1 %vm109_vm0, %v1005_v9 }
  0x13   :  { %943 = vmatpush3.bf16.msra.mxu1 %v1006_v6  ;;  %967 = vmatpush3.bf16.msra.mxu0 %v1007_v8 }
  0x14   :  { %944 = vmatprep.subr.bf16.mxu1 %v1008_v10  ;;  %968 = vmatprep.subr.bf16.mxu0 %v1009_v11 }
  0x15   :  { %930 = vmatprep.mubr.msk.bf16.mxu0 %vm109_vm0, %v1010_v12  ;;  %938 = vmatprep.mubr.msk.bf16.mxu1 %vm109_vm0, %v1011_v13 }
  0x17   :  { %945 = vmatpush3.bf16.msra.mxu1 %v1008_v10  ;;  %969 = vmatpush3.bf16.msra.mxu0 %v1009_v11 }
  0x18   :  { %946 = vmatprep.subr.bf16.mxu1 %v1014_v14  ;;  %970 = vmatprep.subr.bf16.mxu0 %v1015_v15 }
  0x1a   :  { %931 = vmatmul.mubr.msk.bf16.gmra.mxu0 %vm109_vm0, %v1012_v16  ;;  %939 = vmatmul.mubr.msk.bf16.gmra.mxu1 %vm109_vm0, %v1013_v17 }
  0x1b   :  { %947 = vmatpush3.bf16.msra.mxu1 %v1014_v14  ;;  %971 = vmatpush3.bf16.msra.mxu0 %v1015_v15 }
  0x1c   :  { %948 = vmatprep.subr.bf16.mxu1 %v1016_v18  ;;  %972 = vmatprep.subr.bf16.mxu0 %v1017_v19 }
  0x1d   :  { %950 = vmatprep.mubr.msk.bf16.mxu1 %vm109_vm0, %v1002_v3  ;;  %974 = vmatprep.mubr.msk.bf16.mxu0 %vm109_vm0, %v1002_v3 }
  0x1f   :  { %949 = vmatpush3.bf16.msra.mxu1 %v1016_v18  ;;  %973 = vmatpush3.bf16.msra.mxu0 %v1017_v19 }
  0x22   :  { %951 = vmatmul.mubr.msk.bf16.vlgmr.msra.gmra.mxu1 %vm109_vm0, %v1004_v7  ;;  %975 = vmatmul.mubr.msk.bf16.vlgmr.msra.gmra.mxu0 %vm109_vm0, %v1004_v7 }
  0x23   :  { %954 = vmatprep.mubr.msk.bf16.mxu1 %vm109_vm0, %v1010_v12  ;;  %978 = vmatprep.mubr.msk.bf16.mxu0 %vm109_vm0, %v1010_v12 }
  0x2a   :  { %955 = vmatmul.mubr.msk.bf16.gmra.mxu1 %vm109_vm0, %v1012_v16  ;;  %979 = vmatmul.mubr.msk.bf16.gmra.mxu0 %vm109_vm0, %v1012_v16 }
  0x2b   :  { %958 = vmatprep.mubr.msk.bf16.mxu1 %vm109_vm0, %v1003_v4  ;;  %982 = vmatprep.mubr.msk.bf16.mxu0 %vm109_vm0, %v1003_v4 }
  0x32   :  { %959 = vmatmul.mubr.msk.bf16.gmra.mxu1 %vm109_vm0, %v1005_v9  ;;  %983 = vmatmul.mubr.msk.bf16.gmra.mxu0 %vm109_vm0, %v1005_v9 }
  0x33   :  { %962 = vmatprep.mubr.msk.bf16.mxu1 %vm109_vm0, %v1011_v13  ;;  %986 = vmatprep.mubr.msk.bf16.mxu0 %vm109_vm0, %v1011_v13 }
  0x3a   :  { %963 = vmatmul.mubr.msk.bf16.gmra.mxu1 %vm109_vm0, %v1013_v17  ;;  %987 = vmatmul.mubr.msk.bf16.gmra.mxu0 %vm109_vm0, %v1013_v17 }
  0xd2   :  { %v928_v20 = vpop.f32.mrf.mxu0  ;;  %v936_v21 = vpop.f32.mrf.mxu1 }
  0xd3   :  { %v836_v22 = vpack.c.bf16 %v928_v20, %v928_v20  ;;  %v844_v23 = vpack.c.bf16 %v936_v21, %v936_v21 }
  0xd4   :  { %v168_v24 = vpop.f32.mrf.mxu0  ;;  %v200_v25 = vpop.f32.mrf.mxu1 }
  0xd5   :  { %298 = vst.msk [vmem:[%s1333_s4 + $0x8] sm:$0xf] %vm295_vm1, %v836_v22  ;;  %306 = vst.msk [vmem:[%s1333_s4 + $0x28] sm:$0xf] %vm295_vm1, %v844_v23  ;;  %v834_v26 = vpack.c.bf16 %v168_v24, %v168_v24  ;;  %v842_v27 = vpack.c.bf16 %v200_v25, %v200_v25 }
  0xd6   :  { %v929_v28 = vpop.f32.mrf.mxu0  ;;  %v937_v29 = vpop.f32.mrf.mxu1 }
  0xd7   :  { %296 = vst.msk [vmem:[%s1333_s4] sm:$0xf] %vm295_vm1, %v834_v26  ;;  %304 = vst.msk [vmem:[%s1333_s4 + $0x20] sm:$0xf] %vm295_vm1, %v842_v27  ;;  %v837_v30 = vpack.c.bf16 %v929_v28, %v929_v28  ;;  %v845_v31 = vpack.c.bf16 %v937_v29, %v937_v29 }
  0xd8   :  { %v171_v32 = vpop.f32.mrf.mxu0  ;;  %v203_v33 = vpop.f32.mrf.mxu1 }
  0xd9   :  { %299 = vst.msk [vmem:[%s1333_s4 + $0xc] sm:$0xf] %vm295_vm1, %v837_v30  ;;  %307 = vst.msk [vmem:[%s1333_s4 + $0x2c] sm:$0xf] %vm295_vm1, %v845_v31  ;;  %v835_v34 = vpack.c.bf16 %v171_v32, %v171_v32  ;;  %v843_v35 = vpack.c.bf16 %v203_v33, %v203_v33 }
  0xda   :  { %v932_v36 = vpop.f32.mrf.mxu0  ;;  %v940_v37 = vpop.f32.mrf.mxu1 }
  0xdb   :  { %297 = vst.msk [vmem:[%s1333_s4 + $0x4] sm:$0xf] %vm295_vm1, %v835_v34  ;;  %305 = vst.msk [vmem:[%s1333_s4 + $0x24] sm:$0xf] %vm295_vm1, %v843_v35  ;;  %v840_v38 = vpack.c.bf16 %v932_v36, %v932_v36  ;;  %v848_v39 = vpack.c.bf16 %v940_v37, %v940_v37 }
  0xdc   :  { %v184_v40 = vpop.f32.mrf.mxu0  ;;  %v216_v41 = vpop.f32.mrf.mxu1 }
  0xdd   :  { %302 = vst.msk [vmem:[%s1333_s4 + $0x18] sm:$0xf] %vm295_vm1, %v840_v38  ;;  %310 = vst.msk [vmem:[%s1333_s4 + $0x38] sm:$0xf] %vm295_vm1, %v848_v39  ;;  %v838_v42 = vpack.c.bf16 %v184_v40, %v184_v40  ;;  %v846_v43 = vpack.c.bf16 %v216_v41, %v216_v41 }
  0xde   :  { %v933_v44 = vpop.f32.mrf.mxu0  ;;  %v941_v45 = vpop.f32.mrf.mxu1 }
  0xdf   :  { %300 = vst.msk [vmem:[%s1333_s4 + $0x10] sm:$0xf] %vm295_vm1, %v838_v42  ;;  %308 = vst.msk [vmem:[%s1333_s4 + $0x30] sm:$0xf] %vm295_vm1, %v846_v43  ;;  %v841_v46 = vpack.c.bf16 %v933_v44, %v933_v44  ;;  %v849_v47 = vpack.c.bf16 %v941_v45, %v941_v45 }
  0xe0   :  { %v187_v48 = vpop.f32.mrf.mxu0  ;;  %v219_v49 = vpop.f32.mrf.mxu1 }
  0xe1   :  { %303 = vst.msk [vmem:[%s1333_s4 + $0x1c] sm:$0xf] %vm295_vm1, %v841_v46  ;;  %311 = vst.msk [vmem:[%s1333_s4 + $0x3c] sm:$0xf] %vm295_vm1, %v849_v47  ;;  %v839_v50 = vpack.c.bf16 %v187_v48, %v187_v48  ;;  %v847_v51 = vpack.c.bf16 %v219_v49, %v219_v49 }
  0xe2   :  { %v952_v52 = vpop.f32.mrf.mxu1  ;;  %v976_v53 = vpop.f32.mrf.mxu0 }
  0xe3   :  { %301 = vst.msk [vmem:[%s1333_s4 + $0x14] sm:$0xf] %vm295_vm1, %v839_v50  ;;  %309 = vst.msk [vmem:[%s1333_s4 + $0x34] sm:$0xf] %vm295_vm1, %v847_v51  ;;  %v852_v54 = vpack.c.bf16 %v952_v52, %v952_v52  ;;  %v868_v55 = vpack.c.bf16 %v976_v53, %v976_v53 }
  0xe4   :  { %v378_v56 = vpop.f32.mrf.mxu1  ;;  %v587_v57 = vpop.f32.mrf.mxu0 }
  0xe5   :  { %507 = vst.msk [vmem:[%s1334_s5 + $0x8] sm:$0xf] %vm295_vm1, %v852_v54  ;;  %716 = vst.msk [vmem:[%s1335_s6 + $0x8] sm:$0xf] %vm295_vm1, %v868_v55  ;;  %v850_v58 = vpack.c.bf16 %v378_v56, %v378_v56  ;;  %v866_v59 = vpack.c.bf16 %v587_v57, %v587_v57 }
  0xe6   :  { %v953_v60 = vpop.f32.mrf.mxu1  ;;  %v977_v61 = vpop.f32.mrf.mxu0 }
  0xe7   :  { %505 = vst.msk [vmem:[%s1334_s5] sm:$0xf] %vm295_vm1, %v850_v58  ;;  %714 = vst.msk [vmem:[%s1335_s6] sm:$0xf] %vm295_vm1, %v866_v59  ;;  %v853_v62 = vpack.c.bf16 %v953_v60, %v953_v60  ;;  %v869_v63 = vpack.c.bf16 %v977_v61, %v977_v61 }
  0xe8   :  { %v381_v0 = vpop.f32.mrf.mxu1  ;;  %v590_v1 = vpop.f32.mrf.mxu0 }
  0xe9   :  { %508 = vst.msk [vmem:[%s1334_s5 + $0xc] sm:$0xf] %vm295_vm1, %v853_v62  ;;  %717 = vst.msk [vmem:[%s1335_s6 + $0xc] sm:$0xf] %vm295_vm1, %v869_v63  ;;  %v851_v2 = vpack.c.bf16 %v381_v0, %v381_v0  ;;  %v867_v3 = vpack.c.bf16 %v590_v1, %v590_v1 }
  0xea   :  { %v956_v4 = vpop.f32.mrf.mxu1  ;;  %v980_v5 = vpop.f32.mrf.mxu0 }
  0xeb   :  { %506 = vst.msk [vmem:[%s1334_s5 + $0x4] sm:$0xf] %vm295_vm1, %v851_v2  ;;  %715 = vst.msk [vmem:[%s1335_s6 + $0x4] sm:$0xf] %vm295_vm1, %v867_v3  ;;  %v856_v6 = vpack.c.bf16 %v956_v4, %v956_v4  ;;  %v872_v7 = vpack.c.bf16 %v980_v5, %v980_v5 }
  0xec   :  { %v394_v8 = vpop.f32.mrf.mxu1  ;;  %v603_v9 = vpop.f32.mrf.mxu0 }
  0xed   :  { %511 = vst.msk [vmem:[%s1334_s5 + $0x18] sm:$0xf] %vm295_vm1, %v856_v6  ;;  %720 = vst.msk [vmem:[%s1335_s6 + $0x18] sm:$0xf] %vm295_vm1, %v872_v7  ;;  %v854_v10 = vpack.c.bf16 %v394_v8, %v394_v8  ;;  %v870_v11 = vpack.c.bf16 %v603_v9, %v603_v9 }
  0xee   :  { %v957_v12 = vpop.f32.mrf.mxu1  ;;  %v981_v13 = vpop.f32.mrf.mxu0 }
  0xef   :  { %509 = vst.msk [vmem:[%s1334_s5 + $0x10] sm:$0xf] %vm295_vm1, %v854_v10  ;;  %718 = vst.msk [vmem:[%s1335_s6 + $0x10] sm:$0xf] %vm295_vm1, %v870_v11  ;;  %v857_v14 = vpack.c.bf16 %v957_v12, %v957_v12  ;;  %v873_v15 = vpack.c.bf16 %v981_v13, %v981_v13 }
  0xf0   :  { %v397_v16 = vpop.f32.mrf.mxu1  ;;  %v606_v17 = vpop.f32.mrf.mxu0 }
  0xf1   :  { %512 = vst.msk [vmem:[%s1334_s5 + $0x1c] sm:$0xf] %vm295_vm1, %v857_v14  ;;  %721 = vst.msk [vmem:[%s1335_s6 + $0x1c] sm:$0xf] %vm295_vm1, %v873_v15  ;;  %v855_v18 = vpack.c.bf16 %v397_v16, %v397_v16  ;;  %v871_v19 = vpack.c.bf16 %v606_v17, %v606_v17 }
  0xf2   :  { %v960_v20 = vpop.f32.mrf.mxu1  ;;  %v984_v21 = vpop.f32.mrf.mxu0 }
  0xf3   :  { %510 = vst.msk [vmem:[%s1334_s5 + $0x14] sm:$0xf] %vm295_vm1, %v855_v18  ;;  %719 = vst.msk [vmem:[%s1335_s6 + $0x14] sm:$0xf] %vm295_vm1, %v871_v19  ;;  %v860_v22 = vpack.c.bf16 %v960_v20, %v960_v20  ;;  %v876_v23 = vpack.c.bf16 %v984_v21, %v984_v21 }
  0xf4   :  { %v410_v24 = vpop.f32.mrf.mxu1  ;;  %v619_v25 = vpop.f32.mrf.mxu0 }
  0xf5   :  { %515 = vst.msk [vmem:[%s1334_s5 + $0x28] sm:$0xf] %vm295_vm1, %v860_v22  ;;  %724 = vst.msk [vmem:[%s1335_s6 + $0x28] sm:$0xf] %vm295_vm1, %v876_v23  ;;  %v858_v26 = vpack.c.bf16 %v410_v24, %v410_v24  ;;  %v874_v27 = vpack.c.bf16 %v619_v25, %v619_v25 }
  0xf6   :  { %v961_v28 = vpop.f32.mrf.mxu1  ;;  %v985_v29 = vpop.f32.mrf.mxu0 }
  0xf7   :  { %513 = vst.msk [vmem:[%s1334_s5 + $0x20] sm:$0xf] %vm295_vm1, %v858_v26  ;;  %722 = vst.msk [vmem:[%s1335_s6 + $0x20] sm:$0xf] %vm295_vm1, %v874_v27  ;;  %v861_v30 = vpack.c.bf16 %v961_v28, %v961_v28  ;;  %v877_v31 = vpack.c.bf16 %v985_v29, %v985_v29 }
  0xf8   :  { %v413_v32 = vpop.f32.mrf.mxu1  ;;  %v622_v33 = vpop.f32.mrf.mxu0 }
  0xf9   :  { %516 = vst.msk [vmem:[%s1334_s5 + $0x2c] sm:$0xf] %vm295_vm1, %v861_v30  ;;  %725 = vst.msk [vmem:[%s1335_s6 + $0x2c] sm:$0xf] %vm295_vm1, %v877_v31  ;;  %v859_v34 = vpack.c.bf16 %v413_v32, %v413_v32  ;;  %v875_v35 = vpack.c.bf16 %v622_v33, %v622_v33 }
  0xfa   :  { %v964_v36 = vpop.f32.mrf.mxu1  ;;  %v988_v37 = vpop.f32.mrf.mxu0 }
  0xfb   :  { %514 = vst.msk [vmem:[%s1334_s5 + $0x24] sm:$0xf] %vm295_vm1, %v859_v34  ;;  %723 = vst.msk [vmem:[%s1335_s6 + $0x24] sm:$0xf] %vm295_vm1, %v875_v35  ;;  %v864_v38 = vpack.c.bf16 %v964_v36, %v964_v36  ;;  %v880_v39 = vpack.c.bf16 %v988_v37, %v988_v37 }
  0xfc   :  { %v426_v40 = vpop.f32.mrf.mxu1  ;;  %v635_v41 = vpop.f32.mrf.mxu0 }
  0xfd   :  { %519 = vst.msk [vmem:[%s1334_s5 + $0x38] sm:$0xf] %vm295_vm1, %v864_v38  ;;  %728 = vst.msk [vmem:[%s1335_s6 + $0x38] sm:$0xf] %vm295_vm1, %v880_v39  ;;  %v862_v42 = vpack.c.bf16 %v426_v40, %v426_v40  ;;  %v878_v43 = vpack.c.bf16 %v635_v41, %v635_v41 }
  0xfe   :  { %v965_v44 = vpop.f32.mrf.mxu1  ;;  %v989_v45 = vpop.f32.mrf.mxu0 }
  0xff   :  { %517 = vst.msk [vmem:[%s1334_s5 + $0x30] sm:$0xf] %vm295_vm1, %v862_v42  ;;  %726 = vst.msk [vmem:[%s1335_s6 + $0x30] sm:$0xf] %vm295_vm1, %v878_v43  ;;  %v865_v46 = vpack.c.bf16 %v965_v44, %v965_v44  ;;  %v881_v47 = vpack.c.bf16 %v989_v45, %v989_v45 }
 0x100   :  { %v429_v48 = vpop.f32.mrf.mxu1  ;;  %v638_v49 = vpop.f32.mrf.mxu0 }
 0x101   :  { %520 = vst.msk [vmem:[%s1334_s5 + $0x3c] sm:$0xf] %vm295_vm1, %v865_v46  ;;  %729 = vst.msk [vmem:[%s1335_s6 + $0x3c] sm:$0xf] %vm295_vm1, %v881_v47  ;;  %v863_v50 = vpack.c.bf16 %v429_v48, %v429_v48  ;;  %v879_v51 = vpack.c.bf16 %v638_v49, %v638_v49 }
 0x103   :  { %518 = vst.msk [vmem:[%s1334_s5 + $0x34] sm:$0xf] %vm295_vm1, %v863_v50  ;;  %727 = vst.msk [vmem:[%s1335_s6 + $0x34] sm:$0xf] %vm295_vm1, %v879_v51 }

// kernel: simplified_ss2d_forward.9
= control target key start
LH: loop header
LB: loop body
LE: loop exit
PB: predicated region body
PF: predicated region fallthrough
CT: control target
= control target key end

     0   :  { %vm113_vm0 = vcmask 523264   ;;  %s1589_s0 = inlined_call_operand.vmem [shape: bf16[128,64], index: 0, kind: input, shape index: {}]   ;;  %s1590_s1 = inlined_call_operand.vmem [shape: bf16[128,64], index: 1, kind: input, shape index: {}]   ;;  %s1591_s2 = inlined_call_operand.vmem [shape: bf16[64,64], index: 2, kind: input, shape index: {}]   ;;  %s1592_s3 = inlined_call_operand.vmem [shape: f32[1,64], index: 3, kind: input, shape index: {}]   ;;  %s1593_s4 = inlined_call_operand.vmem [shape: f32[1,64], index: 4, kind: input, shape index: {}]   ;;  %s1594_s5 = inlined_call_operand.vmem [shape: bf16[64,32], index: 5, kind: input, shape index: {}]   ;;  %s1595_s6 = inlined_call_operand.hbm [shape: f32[128,32], index: 6, kind: output, shape index: {}]  }
   0x1   :  { %v1008_v0 = vld [vmem:[%s1591_s2 + $0x18] sm:$0xff]   ;;  %v1009_v1 = vld [vmem:[%s1591_s2 + $0x10] sm:$0xff]   ;;  %v1010_v2 = vld [vmem:[%s1591_s2 + $0x8] sm:$0xff]  }
   0x2   :  { %957 = vmatprep.subr.bf16.mxu0 %v1008_v0  ;;  %v1012_v3 = vld [vmem:[%s1589_s0] sm:$0xff]   ;;  %v1013_v5 = vld [vmem:[%s1589_s0 + $0x8] sm:$0xff]  }
   0x3   :  { %958 = vmatpush3.bf16.msra.mxu0 %v1008_v0  ;;  %965 = vmatprep.mubr.msk.bf16.mxu0 %vm113_vm0, %v1012_v3  ;;  %v1011_v4 = vld [vmem:[%s1591_s2] sm:$0xff]  }
   0x4   :  { %959 = vmatprep.subr.bf16.mxu0 %v1009_v1 }
   0x7   :  { %960 = vmatpush3.bf16.msra.mxu0 %v1009_v1 }
   0x8   :  { %961 = vmatprep.subr.bf16.mxu0 %v1010_v2 }
   0xb   :  { %962 = vmatpush3.bf16.msra.mxu0 %v1010_v2 }
   0xc   :  { %963 = vmatprep.subr.bf16.mxu0 %v1011_v4 }
   0xd   :  { %11 = vsyncpa [#allocation3], 0  ;;  %v1014_v6 = vld [vmem:[%s1589_s0 + $0x10] sm:$0xff]   ;;  %v1015_v7 = vld [vmem:[%s1589_s0 + $0x18] sm:$0xff]   ;;  %vm811_vm1 = vcmask 261120  }
   0xe   :  { %v1016_v8 = vld [vmem:[%s1589_s0 + $0x20] sm:$0xff]   ;;  %v1017_v9 = vld [vmem:[%s1589_s0 + $0x28] sm:$0xff]   ;;  %v1018_v10 = vld [vmem:[%s1589_s0 + $0x30] sm:$0xff]  }
   0xf   :  { %964 = vmatpush3.bf16.msra.mxu0 %v1011_v4  ;;  %v1019_v11 = vld [vmem:[%s1589_s0 + $0x38] sm:$0xff]  }
  0x12   :  { %966 = vmatmul.mubr.msk.bf16.vlgmr.msra.gmra.mxu0 %vm113_vm0, %v1013_v5 }
  0x13   :  { %969 = vmatprep.mubr.msk.bf16.mxu0 %vm113_vm0, %v1014_v6 }
  0x1a   :  { %970 = vmatmul.mubr.msk.bf16.gmra.mxu0 %vm113_vm0, %v1015_v7 }
  0x1b   :  { %973 = vmatprep.mubr.msk.bf16.mxu0 %vm113_vm0, %v1016_v8 }
  0x22   :  { %974 = vmatmul.mubr.msk.bf16.gmra.mxu0 %vm113_vm0, %v1017_v9 }
  0x23   :  { %977 = vmatprep.mubr.msk.bf16.mxu0 %vm113_vm0, %v1018_v10 }
  0x2a   :  { %978 = vmatmul.mubr.msk.bf16.gmra.mxu0 %vm113_vm0, %v1019_v11 }
  0xd2   :  { %v967_v12 = vpop.f32.mrf.mxu0 }
  0xd3   :  { %v241_v13 = vsel %vm113_vm0, %v967_v12, 0.0 }
  0xd4   :  { %242 = vadd.xlane.f32.xlu1 %v241_v13  ;;  %v172_v14 = vpop.f32.mrf.mxu0 }
  0xd5   :  { %v235_v15 = vsel %vm113_vm0, %v172_v14, 0.0 }
  0xd6   :  { %236 = vadd.xlane.f32.xlu0 %v235_v15  ;;  %v968_v16 = vpop.f32.mrf.mxu0 }
  0xd7   :  { %v244_v17 = vsel %vm113_vm0, %v968_v16, 0.0 }
  0xd8   :  { %245 = vadd.xlane.f32.xlu1 %v244_v17  ;;  %v175_v18 = vpop.f32.mrf.mxu0 }
  0xd9   :  { %v238_v19 = vsel %vm113_vm0, %v175_v18, 0.0 }
  0xda   :  { %239 = vadd.xlane.f32.xlu0 %v238_v19  ;;  %v1228_v20 = vpop.f32.mrf.mxu0 }
  0xdb   :  { %v253_v25 = vsel %vm113_vm0, %v1228_v20, 0.0 }
  0xdc   :  { %v188_v21 = vpop.f32.mrf.mxu0 }
  0xdd   :  { %v247_v22 = vsel %vm113_vm0, %v188_v21, 0.0 }
  0xde   :  { %248 = vadd.xlane.f32.xlu0 %v247_v22  ;;  %v1231_v23 = vpop.f32.mrf.mxu0 }
  0xdf   :  { %v256_v29 = vsel %vm113_vm0, %v1231_v23, 0.0 }
  0xe0   :  { %v191_v24 = vpop.f32.mrf.mxu0 }
  0xe1   :  { %v250_v26 = vsel %vm113_vm0, %v191_v24, 0.0 }
  0xe2   :  { %254 = vadd.xlane.f32.xlu0 %v253_v25  ;;  %251 = vadd.xlane.f32.xlu1 %v250_v26  ;;  %v1236_v27 = vpop.f32.mrf.mxu0 }
  0xe3   :  { %v265_v33 = vsel %vm113_vm0, %v1236_v27, 0.0 }
  0xe4   :  { %v1238_v28 = vpop.f32.mrf.mxu0 }
  0xe5   :  { %v259_v30 = vsel %vm113_vm0, %v1238_v28, 0.0 }
  0xe6   :  { %257 = vadd.xlane.f32.xlu1 %v256_v29  ;;  %260 = vadd.xlane.f32.xlu0 %v259_v30  ;;  %v1244_v31 = vpop.f32.mrf.mxu0 }
  0xe7   :  { %v268_v37 = vsel %vm113_vm0, %v1244_v31, 0.0 }
  0xe8   :  { %v1246_v32 = vpop.f32.mrf.mxu0 }
  0xe9   :  { %v262_v34 = vsel %vm113_vm0, %v1246_v32, 0.0 }
  0xea   :  { %266 = vadd.xlane.f32.xlu0 %v265_v33  ;;  %263 = vadd.xlane.f32.xlu1 %v262_v34  ;;  %v1252_v35 = vpop.f32.mrf.mxu0 }
  0xeb   :  { %v277_v41 = vsel %vm113_vm0, %v1252_v35, 0.0 }
  0xec   :  { %v1254_v36 = vpop.f32.mrf.mxu0 }
  0xed   :  { %v271_v38 = vsel %vm113_vm0, %v1254_v36, 0.0 }
  0xee   :  { %269 = vadd.xlane.f32.xlu1 %v268_v37  ;;  %272 = vadd.xlane.f32.xlu0 %v271_v38  ;;  %v1260_v39 = vpop.f32.mrf.mxu0 }
  0xef   :  { %v280_v43 = vsel %vm113_vm0, %v1260_v39, 0.0 }
  0xf0   :  { %v1262_v40 = vpop.f32.mrf.mxu0 }
  0xf1   :  { %v274_v42 = vsel %vm113_vm0, %v1262_v40, 0.0 }
  0xf2   :  { %278 = vadd.xlane.f32.xlu0 %v277_v41  ;;  %275 = vadd.xlane.f32.xlu1 %v274_v42 }
  0xf6   :  { %281 = vadd.xlane.f32.xlu1 %v280_v43 }
 0x15d   :  { %v243_v44 = vpop.xlane.xlu1 %242 }
 0x15e   :  { %v286_v45 = vmul.f32 0.015625, %v243_v44 }
 0x15f   :  { %v237_v46 = vpop.xlane.xlu0 %236 }
 0x160   :  { %v284_v47 = vmul.f32 0.015625, %v237_v46  ;;  %v1270_v49 = vsub.f32 %v967_v12, %v286_v45 }
 0x161   :  { %v246_v48 = vpop.xlane.xlu1 %245 }
 0x162   :  { %v1272_v50 = vsub.f32 %v172_v14, %v284_v47  ;;  %v287_v51 = vmul.f32 0.015625, %v246_v48  ;;  %v318_v58 = vmul.f32 %v1270_v49, %v1270_v49 }
 0x163   :  { %v240_v52 = vpop.xlane.xlu0 %239 }
 0x164   :  { %v285_v53 = vmul.f32 0.015625, %v240_v52  ;;  %v316_v54 = vmul.f32 %v1272_v50, %v1272_v50  ;;  %v1276_v55 = vsub.f32 %v968_v16, %v287_v51  ;;  %v338_v63 = vsel %vm113_vm0, %v318_v58, 0.0 }
 0x166   :  { %v1278_v56 = vsub.f32 %v175_v18, %v285_v53  ;;  %v332_v57 = vsel %vm113_vm0, %v316_v54, 0.0  ;;  %v319_v1 = vmul.f32 %v1276_v55, %v1276_v55 }
 0x167   :  { %v249_v59 = vpop.xlane.xlu0 %248  ;;  %333 = vadd.xlane.f32.xlu0 %v332_v57 }
 0x168   :  { %v288_v60 = vmul.f32 0.015625, %v249_v59  ;;  %v317_v61 = vmul.f32 %v1278_v56, %v1278_v56  ;;  %v341_v10 = vsel %vm113_vm0, %v319_v1, 0.0  ;;  %v1020_v1 = vld [vmem:[%s1594_s5 + $0x18] sm:$0xff]  }
 0x169   :  { %981 = vmatprep.subr.bf16.mxu1 %v1020_v1 }
 0x16a   :  { %v1285_v62 = vsub.f32 %v188_v21, %v288_v60  ;;  %v335_v0 = vsel %vm113_vm0, %v317_v61, 0.0  ;;  %982 = vmatpush3.bf16.msra.mxu1 %v1020_v1 }
 0x16b   :  { %v255_v2 = vpop.xlane.xlu0 %254  ;;  %v252_v3 = vpop.xlane.xlu1 %251  ;;  %339 = vadd.xlane.f32.xlu0 %v338_v63  ;;  %336 = vadd.xlane.f32.xlu1 %v335_v0 }
 0x16c   :  { %v290_v4 = vmul.f32 0.015625, %v255_v2  ;;  %v289_v5 = vmul.f32 0.015625, %v252_v3  ;;  %v320_v6 = vmul.f32 %v1285_v62, %v1285_v62  ;;  %v1022_v3 = vld [vmem:[%s1594_s5 + $0x8] sm:$0xff]  }
 0x16e   :  { %v1294_v7 = vsub.f32 %v1228_v20, %v290_v4  ;;  %v1296_v8 = vsub.f32 %v191_v24, %v289_v5  ;;  %v344_v9 = vsel %vm113_vm0, %v320_v6, 0.0  ;;  %v1023_v4 = vld [vmem:[%s1594_s5] sm:$0xff]  }
 0x16f   :  { %v258_v11 = vpop.xlane.xlu1 %257  ;;  %v261_v12 = vpop.xlane.xlu0 %260  ;;  %345 = vadd.xlane.f32.xlu0 %v344_v9  ;;  %342 = vadd.xlane.f32.xlu1 %v341_v10  ;;  %v1375_v5 = vld [vmem:[%s1590_s1] sm:$0xff]   ;;  %v1381_v9 = vld [vmem:[%s1590_s1 + $0x8] sm:$0xff]  }
 0x170   :  { %v291_v13 = vmul.f32 0.015625, %v258_v11  ;;  %v292_v14 = vmul.f32 0.015625, %v261_v12  ;;  %v322_v15 = vmul.f32 %v1294_v7, %v1294_v7  ;;  %v321_v16 = vmul.f32 %v1296_v8, %v1296_v8 }
 0x171   :  { %v896_v6 = vunpack.c.l.bf16 %v1375_v5  ;;  %v897_v10 = vunpack.c.h.bf16 %v1375_v5  ;;  %v900_v12 = vunpack.c.l.bf16 %v1381_v9 }
 0x172   :  { %v1305_v17 = vsub.f32 %v1231_v23, %v291_v13  ;;  %v1308_v18 = vsub.f32 %v1238_v28, %v292_v14  ;;  %v350_v19 = vsel %vm113_vm0, %v322_v15, 0.0  ;;  %v347_v20 = vsel %vm113_vm0, %v321_v16, 0.0  ;;  %v1390_v13 = vld [vmem:[%s1590_s1 + $0x10] sm:$0xff]  }
 0x173   :  { %v267_v21 = vpop.xlane.xlu0 %266  ;;  %v264_v22 = vpop.xlane.xlu1 %263  ;;  %351 = vadd.xlane.f32.xlu0 %v350_v19  ;;  %348 = vadd.xlane.f32.xlu1 %v347_v20  ;;  %v866_v11 = vmul.f32 -1.442695, %v896_v6  ;;  %v867_v14 = vmul.f32 -1.442695, %v897_v10  ;;  %v901_v15 = vunpack.c.h.bf16 %v1381_v9  ;;  %v868_v16 = vmul.f32 -1.442695, %v900_v12 }
 0x174   :  { %v294_v24 = vmul.f32 0.015625, %v267_v21  ;;  %v293_v25 = vmul.f32 0.015625, %v264_v22  ;;  %v324_v26 = vmul.f32 %v1308_v18, %v1308_v18  ;;  %v323_v23 = vmul.f32 %v1305_v17, %v1305_v17  ;;  %v1402_v21 = vld [vmem:[%s1590_s1 + $0x18] sm:$0xff]  }
 0x175   :  { %1024 = vpow2.f32 %v866_v11  ;;  %v904_v19 = vunpack.c.l.bf16 %v1390_v13  ;;  %v905_v20 = vunpack.c.h.bf16 %v1390_v13  ;;  %v869_v22 = vmul.f32 -1.442695, %v901_v15 }
 0x176   :  { %v1317_v29 = vsub.f32 %v1236_v27, %v294_v24  ;;  %v1320_v28 = vsub.f32 %v1246_v32, %v293_v25  ;;  %v356_v30 = vsel %vm113_vm0, %v324_v26, 0.0  ;;  %v353_v33 = vsel %vm113_vm0, %v323_v23, 0.0 }
 0x177   :  { %v270_v34 = vpop.xlane.xlu1 %269  ;;  %357 = vadd.xlane.f32.xlu0 %v356_v30  ;;  %v273_v37 = vpop.xlane.xlu0 %272  ;;  %354 = vadd.xlane.f32.xlu1 %v353_v33  ;;  %1026 = vpow2.f32 %v867_v14  ;;  %v870_v24 = vmul.f32 -1.442695, %v904_v19  ;;  %v908_v25 = vunpack.c.l.bf16 %v1402_v21  ;;  %v871_v26 = vmul.f32 -1.442695, %v905_v20  ;;  %v1416_v30 = vld [vmem:[%s1590_s1 + $0x20] sm:$0xff]  }
 0x178   :  { %v295_v38 = vmul.f32 0.015625, %v270_v34  ;;  %v296_v41 = vmul.f32 0.015625, %v273_v37  ;;  %v326_v42 = vmul.f32 %v1317_v29, %v1317_v29  ;;  %v325_v27 = vmul.f32 %v1320_v28, %v1320_v28 }
 0x179   :  { %1028 = vpow2.f32 %v868_v16  ;;  %v872_v23 = vmul.f32 -1.442695, %v908_v25  ;;  %v909_v34 = vunpack.c.h.bf16 %v1402_v21  ;;  %v912_v37 = vunpack.c.l.bf16 %v1416_v30 }
 0x17a   :  { %v1329_v43 = vsub.f32 %v1244_v31, %v295_v38  ;;  %v1332_v32 = vsub.f32 %v1254_v36, %v296_v41  ;;  %v362_v44 = vsel %vm113_vm0, %v326_v42, 0.0  ;;  %v359_v45 = vsel %vm113_vm0, %v325_v27, 0.0  ;;  %v1423_v38 = vld [vmem:[%s1590_s1 + $0x28] sm:$0xff]  }
 0x17b   :  { %363 = vadd.xlane.f32.xlu0 %v362_v44  ;;  %v279_v46 = vpop.xlane.xlu0 %278  ;;  %360 = vadd.xlane.f32.xlu1 %v359_v45  ;;  %v276_v47 = vpop.xlane.xlu1 %275  ;;  %1030 = vpow2.f32 %v869_v22  ;;  %v873_v44 = vmul.f32 -1.442695, %v909_v34  ;;  %v913_v45 = vunpack.c.h.bf16 %v1416_v30 }
 0x17c   :  { %v298_v48 = vmul.f32 0.015625, %v279_v46  ;;  %v297_v51 = vmul.f32 0.015625, %v276_v47  ;;  %v328_v52 = vmul.f32 %v1332_v32, %v1332_v32  ;;  %v327_v31 = vmul.f32 %v1329_v43, %v1329_v43 }
 0x17d   :  { %1032 = vpow2.f32 %v870_v24  ;;  %v874_v46 = vmul.f32 -1.442695, %v912_v37  ;;  %v916_v47 = vunpack.c.l.bf16 %v1423_v38 }
 0x17e   :  { %v1341_v53 = vsub.f32 %v1252_v35, %v298_v48  ;;  %v1344_v36 = vsub.f32 %v1262_v40, %v297_v51  ;;  %v368_v54 = vsel %vm113_vm0, %v328_v52, 0.0  ;;  %v365_v57 = vsel %vm113_vm0, %v327_v31, 0.0 }
 0x17f   :  { %369 = vadd.xlane.f32.xlu0 %v368_v54  ;;  %366 = vadd.xlane.f32.xlu1 %v365_v57  ;;  %v282_v58 = vpop.xlane.xlu1 %281  ;;  %1034 = vpow2.f32 %v871_v26  ;;  %v875_v54 = vmul.f32 -1.442695, %v913_v45  ;;  %v917_v57 = vunpack.c.h.bf16 %v1423_v38 }
 0x180   :  { %v299_v59 = vmul.f32 0.015625, %v282_v58  ;;  %v330_v60 = vmul.f32 %v1341_v53, %v1341_v53  ;;  %v329_v61 = vmul.f32 %v1344_v36, %v1344_v36  ;;  %1036 = vpow2.f32 %v872_v23  ;;  %v1437_v58 = vld [vmem:[%s1590_s1 + $0x30] sm:$0xff]  }
 0x182   :  { %v1353_v35 = vsub.f32 %v1260_v39, %v299_v59  ;;  %v374_v40 = vsel %vm113_vm0, %v330_v60, 0.0  ;;  %v371_v63 = vsel %vm113_vm0, %v329_v61, 0.0  ;;  %v1021_v39 = vld [vmem:[%s1594_s5 + $0x10] sm:$0xff]   ;;  %v1025_v33 = vpop.eup %1024  ;;  %v876_v59 = vmul.f32 -1.442695, %v916_v47 }
 0x183   :  { %375 = vadd.xlane.f32.xlu0 %v374_v40  ;;  %372 = vadd.xlane.f32.xlu1 %v371_v63  ;;  %v570_v42 = vadd.f32 1.0, %v1025_v33  ;;  %v920_v63 = vunpack.c.l.bf16 %v1437_v58 }
 0x184   :  { %v331_v0 = vmul.f32 %v1353_v35, %v1353_v35  ;;  %983 = vmatprep.subr.bf16.mxu1 %v1021_v39  ;;  %v1027_v41 = vpop.eup %1026 }
 0x185   :  { %984 = vmatpush3.bf16.msra.mxu1 %v1021_v39  ;;  %v571_v48 = vadd.f32 1.0, %v1027_v41  ;;  %1038 = vrcp.f32 %v570_v42  ;;  %v878_v14 = vmul.f32 -1.442695, %v920_v63 }
 0x186   :  { %v377_v2 = vsel %vm113_vm0, %v331_v0, 0.0  ;;  %985 = vmatprep.subr.bf16.mxu1 %v1022_v3  ;;  %v1029_v27 = vpop.eup %1028  ;;  %1040 = vpow2.f32 %v873_v44  ;;  %v877_v0 = vmul.f32 -1.442695, %v917_v57 }
 0x187   :  { %378 = vadd.xlane.f32.xlu1 %v377_v2  ;;  %v572_v52 = vadd.f32 1.0, %v1029_v27  ;;  %1042 = vpow2.f32 %v874_v46 }
 0x188   :  { %v1031_v51 = vpop.eup %1030  ;;  %1044 = vrcp.f32 %v571_v48 }
 0x189   :  { %986 = vmatpush3.bf16.msra.mxu1 %v1022_v3  ;;  %v573_v61 = vadd.f32 1.0, %v1031_v51  ;;  %1046 = vrcp.f32 %v572_v52  ;;  %v921_v3 = vunpack.c.h.bf16 %v1437_v58 }
 0x18a   :  { %987 = vmatprep.subr.bf16.mxu1 %v1023_v4  ;;  %v1033_v31 = vpop.eup %1032  ;;  %1048 = vpow2.f32 %v875_v54 }
 0x18b   :  { %v574_v40 = vadd.f32 1.0, %v1033_v31  ;;  %1050 = vpow2.f32 %v876_v59  ;;  %v879_v33 = vmul.f32 -1.442695, %v921_v3 }
 0x18c   :  { %v1035_v60 = vpop.eup %1034  ;;  %1052 = vrcp.f32 %v573_v61 }
 0x18d   :  { %988 = vmatpush3.bf16.msra.mxu1 %v1023_v4  ;;  %v1037_v1 = vpop.eup %1036  ;;  %v575_v39 = vadd.f32 1.0, %v1035_v60  ;;  %v1448_v4 = vld [vmem:[%s1590_s1 + $0x38] sm:$0xff]   ;;  %1054 = vrcp.f32 %v574_v40 }
 0x18e   :  { %v576_v22 = vadd.f32 1.0, %v1037_v1  ;;  %1056 = vpow2.f32 %v877_v0  ;;  %v1597_v24 = vunpack.c.l.bf16 %v1448_v4  ;;  %v1596_v41 = vunpack.c.h.bf16 %v1448_v4 }
 0x18f   :  { %1058 = vrcp.f32 %v575_v39 }
 0x190   :  { %v880_v51 = vmul.f32 -1.442695, %v1597_v24  ;;  %v881_v59 = vmul.f32 -1.442695, %v1596_v41 }
 0x192   :  { %v1039_v44 = vpop.eup %1038 }
 0x193   :  { %v1041_v52 = vpop.eup %1040 }
 0x194   :  { %v1043_v60 = vpop.eup %1042 }
 0x195   :  { %v1045_v0 = vpop.eup %1044 }
 0x196   :  { %v1047_v1 = vpop.eup %1046 }
 0x1f0   :  { %v334_v2 = vpop.xlane.xlu0 %333 }
 0x1f1   :  { %v380_v11 = vmul.f32 0.015625, %v334_v2 }
 0x1f3   :  { %v396_v16 = vadd.f32 1e-05, %v380_v11  ;;  %v577_v11 = vadd.f32 1.0, %v1041_v52 }
 0x1f4   :  { %v340_v26 = vpop.xlane.xlu0 %339  ;;  %v337_v23 = vpop.xlane.xlu1 %336 }
 0x1f5   :  { %1060 = vrsqrt.f32 %v396_v16  ;;  %v382_v42 = vmul.f32 0.015625, %v340_v26  ;;  %v381_v27 = vmul.f32 0.015625, %v337_v23  ;;  %v578_v26 = vadd.f32 1.0, %v1043_v60 }
 0x1f6   :  { %1062 = vpow2.f32 %v878_v14  ;;  %v1049_v14 = vpop.eup %1048 }
 0x1f7   :  { %v398_v46 = vadd.f32 1e-05, %v382_v42  ;;  %v397_v48 = vadd.f32 1e-05, %v381_v27  ;;  %1064 = vrcp.f32 %v576_v22  ;;  %v1051_v23 = vpop.eup %1050 }
 0x1f8   :  { %v346_v31 = vpop.xlane.xlu0 %345  ;;  %v343_v54 = vpop.xlane.xlu1 %342  ;;  %1066 = vpow2.f32 %v879_v33 }
 0x1f9   :  { %1068 = vrsqrt.f32 %v398_v46  ;;  %v384_v61 = vmul.f32 0.015625, %v346_v31  ;;  %v383_v40 = vmul.f32 0.015625, %v343_v54  ;;  %v1053_v27 = vpop.eup %1052 }
 0x1fa   :  { %1070 = vrsqrt.f32 %v397_v48  ;;  %v1055_v46 = vpop.eup %1054  ;;  %v579_v48 = vadd.f32 1.0, %v1049_v14 }
 0x1fb   :  { %v400_v2 = vadd.f32 1e-05, %v384_v61  ;;  %v399_v39 = vadd.f32 1e-05, %v383_v40  ;;  %1072 = vpow2.f32 %v880_v51  ;;  %v1057_v61 = vpop.eup %1056  ;;  %v580_v51 = vadd.f32 1.0, %v1051_v23 }
 0x1fc   :  { %v352_v16 = vpop.xlane.xlu0 %351  ;;  %v349_v22 = vpop.xlane.xlu1 %348  ;;  %1074 = vpow2.f32 %v881_v59 }
 0x1fd   :  { %1076 = vrsqrt.f32 %v400_v2  ;;  %v386_v33 = vmul.f32 0.015625, %v352_v16  ;;  %v385_v42 = vmul.f32 0.015625, %v349_v22  ;;  %v1059_v41 = vpop.eup %1058 }
 0x1fe   :  { %1078 = vrsqrt.f32 %v399_v39  ;;  %v1492_v9 = vmul.f32 %v1059_v41, %v905_v20 }
 0x1ff   :  { %v402_v31 = vadd.f32 1e-05, %v386_v33  ;;  %v401_v54 = vadd.f32 1e-05, %v385_v42  ;;  %1080 = vrcp.f32 %v577_v11  ;;  %v1464_v11 = vld [vmem:[%s1592_s3] ss:$0 sm:$0xff]  ;;  %v618_v33 = vmul.f32 %v1039_v44, %v896_v6 }
 0x200   :  { %v358_v40 = vpop.xlane.xlu0 %357  ;;  %v355_v52 = vpop.xlane.xlu1 %354  ;;  %1082 = vrcp.f32 %v578_v26  ;;  %v581_v42 = vadd.f32 1.0, %v1057_v61  ;;  %v620_v6 = vmul.f32 %v1047_v1, %v900_v12  ;;  %v1482_v44 = vmul.f32 %v1053_v27, %v901_v15 }
 0x201   :  { %1084 = vrsqrt.f32 %v402_v31  ;;  %v388_v60 = vmul.f32 0.015625, %v358_v40  ;;  %v387_v59 = vmul.f32 0.015625, %v355_v52  ;;  %v1476_v52 = vld [vmem:[%s1593_s4] ss:$0 sm:$0xff]  ;;  %s1142_s4 = smov [#allocation2]  }
 0x202   :  { %v1061_v24 = vpop.eup %1060  ;;  %1086 = vrsqrt.f32 %v401_v54  ;;  %s833_s19 = sshll.u32 %s1142_s4, 4  ;;  %s834_s19 = int_to_ptr.vmem [resolvable:$true] %s833_s19 }
 0x203   :  { %v1063_v2 = vpop.eup %1062  ;;  %v404_v16 = vadd.f32 1e-05, %v388_v60  ;;  %v403_v22 = vadd.f32 1e-05, %v387_v59  ;;  %v428_v39 = vmul.f32 %v1061_v24, %v1272_v50  ;;  %1088 = vrcp.f32 %v579_v48  ;;  %s1120_s0 = scalar_lea.vmem %s834_s19, 2048  ;;  %p1125_p1 = scmp.lt.s32.totalorder %s834_s19, %s834_s19 }
 0x204   :  { %v1466_v14 = vpop.eup %1064  ;;  %v364_v26 = vpop.xlane.xlu0 %363  ;;  %1090 = vrcp.f32 %v580_v51  ;;  %v619_v50 = vmul.f32 %v1045_v0, %v897_v10  ;;  %v582_v0 = vadd.f32 1.0, %v1063_v2  ;;  %p1121_p0 = scmp.ne.s32.totalorder %s834_s19, %s1120_s0  ;;  %p1126_p2 = scmp.lt.s32.totalorder %s1120_s0, %s1120_s0 }
 0x205   :  { %v361_v23 = vpop.xlane.xlu1 %360  ;;  %v1067_v31 = vpop.eup %1066  ;;  %1092 = vrsqrt.f32 %v404_v16  ;;  %v390_v54 = vmul.f32 0.015625, %v364_v26  ;;  %v451_v48 = vmul.f32 %v1464_v11, %v428_v39  ;;  %v1488_v39 = vmul.f32 %v1055_v46, %v904_v19 }
 0x206   :  { %v389_v40 = vmul.f32 0.015625, %v361_v23  ;;  %v1069_v24 = vpop.eup %1068  ;;  %1094 = vrsqrt.f32 %v403_v22  ;;  %p1127_p3 = por %p1126_p2, %p1125_p1 }
 0x207   :  { %v1071_v61 = vpop.eup %1070  ;;  %v406_v51 = vadd.f32 1e-05, %v390_v54  ;;  %v430_v10 = vmul.f32 %v1069_v24, %v1270_v49  ;;  %1096 = vrcp.f32 %v581_v42  ;;  %v583_v49 = vadd.f32 1.0, %v1067_v31 }
 0x208   :  { %v405_v5 = vadd.f32 1e-05, %v389_v40  ;;  %v1073_v60 = vpop.eup %1072  ;;  %v370_v59 = vpop.xlane.xlu0 %369  ;;  %v429_v22 = vmul.f32 %v1071_v61, %v1278_v56  ;;  %v474_v56 = vadd.f32 %v1476_v52, %v451_v48  ;;  %p1128_p4 = pnand %p1127_p3, %p1121_p0 }
 0x209   :  { %v367_v16 = vpop.xlane.xlu1 %366  ;;  %v1075_v12 = vpop.eup %1074  ;;  %1098 = vrsqrt.f32 %v406_v51  ;;  %v392_v15 = vmul.f32 0.015625, %v370_v59  ;;  %v453_v26 = vmul.f32 %v1464_v11, %v430_v10  ;;  %v584_v24 = vadd.f32 1.0, %v1073_v60 }
 0x20a   :  { %v391_v1 = vmul.f32 0.015625, %v367_v16  ;;  %v1077_v27 = vpop.eup %1076  ;;  %1100 = vrsqrt.f32 %v405_v5  ;;  %v452_v2 = vmul.f32 %v1464_v11, %v429_v22 }
 0x20b   :  { %v1079_v19 = vpop.eup %1078  ;;  %v408_v46 = vadd.f32 1e-05, %v392_v15  ;;  %v432_v13 = vmul.f32 %v1077_v27, %v1285_v62  ;;  %1102 = vrcp.f32 %v582_v0  ;;  %v476_v40 = vadd.f32 %v1476_v52, %v453_v26 }
 0x20c   :  { %v407_v23 = vadd.f32 1e-05, %v391_v1  ;;  %v1081_v20 = vpop.eup %1080  ;;  %v376_v41 = vpop.xlane.xlu0 %375  ;;  %v475_v54 = vadd.f32 %v1476_v52, %v452_v2  ;;  %v431_v31 = vmul.f32 %v1079_v19, %v1276_v55  ;;  %v634_v62 = vmul.f32 %v618_v33, %v474_v56 }
 0x20d   :  { %v373_v42 = vpop.xlane.xlu1 %372  ;;  %v1083_v61 = vpop.eup %1082  ;;  %1104 = vrsqrt.f32 %v408_v46  ;;  %v394_v48 = vmul.f32 0.015625, %v376_v41  ;;  %v455_v5 = vmul.f32 %v1464_v11, %v432_v13  ;;  %v585_v19 = vadd.f32 1.0, %v1075_v12 }
 0x20e   :  { %v393_v51 = vmul.f32 0.015625, %v373_v42  ;;  %v1085_v10 = vpop.eup %1084  ;;  %1106 = vrsqrt.f32 %v407_v23  ;;  %v635_v0 = vmul.f32 %v619_v50, %v475_v54  ;;  %v454_v59 = vmul.f32 %v1464_v11, %v431_v31 }
 0x20f   :  { %v1087_v16 = vpop.eup %1086  ;;  %v410_v22 = vadd.f32 1e-05, %v394_v48  ;;  %v434_v55 = vmul.f32 %v1085_v10, %v1294_v7  ;;  %1108 = vrcp.f32 %v583_v49  ;;  %v636_v50 = vmul.f32 %v620_v6, %v476_v40 }
 0x210   :  { %v409_v15 = vadd.f32 1e-05, %v393_v51  ;;  %v1089_v1 = vpop.eup %1088  ;;  %v650_v27 = vpack.c.bf16 %v635_v0, %v634_v62  ;;  %v477_v2 = vadd.f32 %v1476_v52, %v454_v59  ;;  %v433_v26 = vmul.f32 %v1087_v16, %v1296_v8 }
 0x211   :  { %v379_v60 = vpop.xlane.xlu1 %378  ;;  %v1091_v46 = vpop.eup %1090  ;;  %1110 = vrsqrt.f32 %v410_v22  ;;  %v478_v56 = vadd.f32 %v1476_v52, %v455_v5  ;;  %v457_v13 = vmul.f32 %v1464_v11, %v434_v55  ;;  %v625_v40 = vmul.f32 %v1081_v20, %v909_v34 }
 0x212   :  { %v395_v33 = vmul.f32 0.015625, %v379_v60  ;;  %v1093_v23 = vpop.eup %1092  ;;  %1112 = vrsqrt.f32 %v409_v15  ;;  %989 = vmatprep.mubr.msk.bf16.mxu1 %vm113_vm0, %v650_v27  ;;  %v637_v7 = vmul.f32 %v1482_v44, %v477_v2  ;;  %v456_v49 = vmul.f32 %v1464_v11, %v433_v26 }
 0x213   :  { %v1095_v41 = vpop.eup %1094  ;;  %v436_v8 = vmul.f32 %v1093_v23, %v1308_v18  ;;  %1114 = vrcp.f32 %v584_v24  ;;  %v624_v44 = vmul.f32 %v1466_v14, %v908_v25  ;;  %v638_v18 = vmul.f32 %v1488_v39, %v478_v56 }
 0x214   :  { %v411_v42 = vadd.f32 1e-05, %v395_v33  ;;  %v651_v12 = vpack.c.bf16 %v637_v7, %v636_v50  ;;  %v479_v6 = vadd.f32 %v1476_v52, %v456_v49  ;;  %v435_v54 = vmul.f32 %v1095_v41, %v1305_v17  ;;  %v1097_v31 = vpop.eup %1096 }
 0x215   :  { %1116 = vrcp.f32 %v585_v19  ;;  %v459_v48 = vmul.f32 %v1464_v11, %v436_v8  ;;  %v480_v5 = vadd.f32 %v1476_v52, %v457_v13  ;;  %v626_v39 = vmul.f32 %v1083_v61, %v912_v37 }
 0x216   :  { %1118 = vrsqrt.f32 %v411_v42  ;;  %v1099_v51 = vpop.eup %1098  ;;  %990 = vmatmul.mubr.msk.bf16.vlgmr.msra.gmra.mxu1 %vm113_vm0, %v651_v12  ;;  %v639_v24 = vmul.f32 %v1492_v9, %v479_v6  ;;  %v458_v17 = vmul.f32 %v1464_v11, %v435_v54  ;;  %v627_v9 = vmul.f32 %v1089_v1, %v913_v45 }
 0x217   :  { %v1101_v10 = vpop.eup %1100  ;;  %v438_v62 = vmul.f32 %v1099_v51, %v1317_v29  ;;  %v482_v20 = vadd.f32 %v1476_v52, %v459_v48  ;;  %v640_v59 = vmul.f32 %v624_v44, %v480_v5  ;;  %v628_v45 = vmul.f32 %v1091_v46, %v916_v47 }
 0x218   :  { %v1103_v25 = vpop.eup %1102  ;;  %v652_v14 = vpack.c.bf16 %v639_v24, %v638_v18  ;;  %v481_v21 = vadd.f32 %v1476_v52, %v458_v17  ;;  %v437_v34 = vmul.f32 %v1101_v10, %v1320_v28  ;;  %v629_v61 = vmul.f32 %v1097_v31, %v917_v57 }
 0x219   :  { %v461_v22 = vmul.f32 %v1464_v11, %v438_v62  ;;  %v642_v30 = vmul.f32 %v626_v39, %v482_v20  ;;  %v630_v46 = vmul.f32 %v1103_v25, %v920_v63  ;;  %v1599_v54 = vunpack.c.h.bf16 %v1448_v4 }
 0x21a   :  { %v1105_v0 = vpop.eup %1104  ;;  %993 = vmatprep.mubr.msk.bf16.mxu1 %vm113_vm0, %v652_v14  ;;  %v641_v16 = vmul.f32 %v625_v40, %v481_v21  ;;  %v460_v29 = vmul.f32 %v1464_v11, %v437_v34 }
 0x21b   :  { %v1107_v15 = vpop.eup %1106  ;;  %v440_v28 = vmul.f32 %v1105_v0, %v1332_v32  ;;  %v484_v32 = vadd.f32 %v1476_v52, %v461_v22 }
 0x21c   :  { %v1109_v55 = vpop.eup %1108  ;;  %v653_v60 = vpack.c.bf16 %v641_v16, %v640_v59  ;;  %v483_v27 = vadd.f32 %v1476_v52, %v460_v29  ;;  %v439_v37 = vmul.f32 %v1107_v15, %v1329_v43 }
 0x21d   :  { %v463_v19 = vmul.f32 %v1464_v11, %v440_v28  ;;  %v631_v23 = vmul.f32 %v1109_v55, %v921_v3  ;;  %v644_v13 = vmul.f32 %v628_v45, %v484_v32  ;;  %v1598_v3 = vunpack.c.l.bf16 %v1448_v4 }
 0x21e   :  { %v1111_v1 = vpop.eup %1110  ;;  %994 = vmatmul.mubr.msk.bf16.gmra.mxu1 %vm113_vm0, %v653_v60  ;;  %v643_v2 = vmul.f32 %v627_v9, %v483_v27  ;;  %v462_v26 = vmul.f32 %v1464_v11, %v439_v37 }
 0x21f   :  { %v1113_v33 = vpop.eup %1112  ;;  %v442_v43 = vmul.f32 %v1111_v1, %v1341_v53  ;;  %v486_v42 = vadd.f32 %v1476_v52, %v463_v19 }
 0x220   :  { %v1115_v50 = vpop.eup %1114  ;;  %v654_v56 = vpack.c.bf16 %v643_v2, %v642_v30  ;;  %v485_v47 = vadd.f32 %v1476_v52, %v462_v26  ;;  %v441_v38 = vmul.f32 %v1113_v33, %v1344_v36 }
 0x221   :  { %v465_v7 = vmul.f32 %v1464_v11, %v442_v43  ;;  %v632_v6 = vmul.f32 %v1115_v50, %v1598_v3  ;;  %v646_v44 = vmul.f32 %v630_v46, %v486_v42 }
 0x222   :  { %v1117_v57 = vpop.eup %1116  ;;  %997 = vmatprep.mubr.msk.bf16.mxu1 %vm113_vm0, %v654_v56  ;;  %v645_v53 = vmul.f32 %v629_v61, %v485_v47  ;;  %v464_v41 = vmul.f32 %v1464_v11, %v441_v38 }
 0x223   :  { %v1119_v49 = vpop.eup %1118  ;;  %v488_v58 = vadd.f32 %v1476_v52, %v465_v7  ;;  %v633_v31 = vmul.f32 %v1117_v57, %v1599_v54 }
 0x224   :  { %v443_v36 = vmul.f32 %v1119_v49, %v1353_v35  ;;  %v655_v8 = vpack.c.bf16 %v645_v53, %v644_v13  ;;  %v487_v12 = vadd.f32 %v1476_v52, %v464_v41 }
 0x225   :  { %v648_v51 = vmul.f32 %v632_v6, %v488_v58 }
 0x226   :  { %v466_v63 = vmul.f32 %v1464_v11, %v443_v36  ;;  %998 = vmatmul.mubr.msk.bf16.gmra.mxu1 %vm113_vm0, %v655_v8  ;;  %v647_v40 = vmul.f32 %v631_v23, %v487_v12 }
 0x228   :  { %v489_v48 = vadd.f32 %v1476_v52, %v466_v63  ;;  %v656_v35 = vpack.c.bf16 %v647_v40, %v646_v44 }
 0x22a   :  { %v649_v18 = vmul.f32 %v633_v31, %v489_v48  ;;  %1001 = vmatprep.mubr.msk.bf16.mxu1 %vm113_vm0, %v656_v35 }
 0x22c   :  { %v657_v11 = vpack.c.bf16 %v649_v18, %v648_v51 }
 0x22e   :  { %1002 = vmatmul.mubr.msk.bf16.gmra.mxu1 %vm113_vm0, %v657_v11 }
 0x2d6   :  { %v991_v24 = vpop.f32.mrf.mxu1 }
 0x2d7   :  { %814 = vst.msk [vmem:[#allocation2 + $0x10] sm:$0xff] %vm811_vm1, %v991_v24 }
 0x2d8   :  { %v748_v4 = vpop.f32.mrf.mxu1 }
 0x2d9   :  { %812 = vst.msk [vmem:[#allocation2] sm:$0xff] %vm811_vm1, %v748_v4 }
 0x2da   :  { %v992_v17 = vpop.f32.mrf.mxu1 }
 0x2db   :  { %815 = vst.msk [vmem:[#allocation2 + $0x18] sm:$0xff] %vm811_vm1, %v992_v17 }
 0x2dc   :  { %v751_v5 = vpop.f32.mrf.mxu1 }
 0x2dd   :  { %813 = vst.msk [vmem:[#allocation2 + $0x8] sm:$0xff] %vm811_vm1, %v751_v5 }
 0x2de   :  { %v995_v52 = vpop.f32.mrf.mxu1 }
 0x2df   :  { %818 = vst.msk [vmem:[#allocation2 + $0x30] sm:$0xff] %vm811_vm1, %v995_v52 }
 0x2e0   :  { %v764_v10 = vpop.f32.mrf.mxu1 }
 0x2e1   :  { %816 = vst.msk [vmem:[#allocation2 + $0x20] sm:$0xff] %vm811_vm1, %v764_v10 }
 0x2e2   :  { %v996_v62 = vpop.f32.mrf.mxu1 }
 0x2e3   :  { %819 = vst.msk [vmem:[#allocation2 + $0x38] sm:$0xff] %vm811_vm1, %v996_v62 }
 0x2e4   :  { %v767_v25 = vpop.f32.mrf.mxu1 }
 0x2e5   :  { %817 = vst.msk [vmem:[#allocation2 + $0x28] sm:$0xff] %vm811_vm1, %v767_v25 }
 0x2e6   :  { %v999_v14 = vpop.f32.mrf.mxu1 }
 0x2e7   :  { %822 = vst.msk [vmem:[#allocation2 + $0x50] sm:$0xff] %vm811_vm1, %v999_v14 }
 0x2e8   :  { %v780_v21 = vpop.f32.mrf.mxu1 }
 0x2e9   :  { %820 = vst.msk [vmem:[#allocation2 + $0x40] sm:$0xff] %vm811_vm1, %v780_v21 }
 0x2ea   :  { %v1000_v34 = vpop.f32.mrf.mxu1 }
 0x2eb   :  { %823 = vst.msk [vmem:[#allocation2 + $0x58] sm:$0xff] %vm811_vm1, %v1000_v34 }
 0x2ec   :  { %v783_v20 = vpop.f32.mrf.mxu1 }
 0x2ed   :  { %821 = vst.msk [vmem:[#allocation2 + $0x48] sm:$0xff] %vm811_vm1, %v783_v20 }
 0x2ee   :  { %v1003_v39 = vpop.f32.mrf.mxu1 }
 0x2ef   :  { %826 = vst.msk [vmem:[#allocation2 + $0x70] sm:$0xff] %vm811_vm1, %v1003_v39 }
 0x2f0   :  { %v796_v9 = vpop.f32.mrf.mxu1 }
 0x2f1   :  { %824 = vst.msk [vmem:[#allocation2 + $0x60] sm:$0xff] %vm811_vm1, %v796_v9 }
 0x2f2   :  { %v1004_v0 = vpop.f32.mrf.mxu1 }
 0x2f3   :  { %827 = vst.msk [vmem:[#allocation2 + $0x78] sm:$0xff] %vm811_vm1, %v1004_v0 }
 0x2f4   :  { %v799_v59 = vpop.f32.mrf.mxu1 }
 0x2f5   :  { %825 = vst.msk [vmem:[#allocation2 + $0x68] sm:$0xff] %vm811_vm1, %v799_v59 }
 0x2f6   :  { %1131 = shalt.err (!%p1128_p4)
}
 0x2f7   :  { %s1143_s20 = smov 128   ;;  %s1144_s21 = smov 8  }
 0x2f8   :  { %839 = dma.vmem_to_hbm [thread:$0]  %s834_s19, 2048, %s1595_s6, [#allocation3], %s1143_s20, %s1143_s20, %s1144_s21  }
 0x2f9   :  { %1140 = dma.done.wait [#allocation3], 2048  }
 0x2fa   :  { %1141 = vsyncadd [#allocation3], 4294965248 }
 0x2fb   :  { %843 = vsyncpa [#allocation3], 1 }

// kernel: simplified_ss2d_forward.8
= control target key start
LH: loop header
LB: loop body
LE: loop exit
PB: predicated region body
PF: predicated region fallthrough
CT: control target
= control target key end

     0   :  { %s6793_s12 = smov 0   ;;  %s6795_s13 = smov 0   ;;  %s9504_s0 = inlined_call_operand.vmem [shape: bf16[2,64,64], index: 0, kind: input, shape index: {}]   ;;  %s9505_s1 = inlined_call_operand.vmem [shape: bf16[2,64,64], index: 1, kind: input, shape index: {}]   ;;  %s9506_s2 = inlined_call_operand.vmem [shape: bf16[2,64,64], index: 2, kind: input, shape index: {}]   ;;  %s9507_s3 = inlined_call_operand.vmem [shape: bf16[2,64,64], index: 3, kind: output, shape index: {}]  }
   0x1   :  { %s6797_s14 = smov 0  }
   0x2 LB: > { %s32_s15 = sadd.s32 1, %s6743_s13  ;;  %p5521_p0 = scmp.ge.s32.totalorder %s6747_s14, 1  ;;  %s6747_s14 = sphi %s6797_s14, %s13_s14   ;;  %s6743_s13 = sphi %s6795_s13, %s9958_s13   ;;  %s6739_s12 = sphi %s6793_s12, %s9957_s12  }
   0x3   : > { %p34_p1 = scmp.ge.s32.totalorder %s32_s15, 2  ;;  %p199_p2 = scmp.lt.s32.totalorder %s6747_s14, 3 }
   0x5   : > { %s9960_s15 = smov (%p34_p1, %s32_s15), 0  ;;  %p200_p3 = pnand %p5521_p0, %p199_p2 }
   0x7   : > { %203 = sbr.rel (%p200_p3) target bundleno = 4771 (0x12a3), region = 32 }
   0xc   : > { %p250_p4 = scmp.lt.s32.totalorder %s6739_s12, 1  ;;  %vm294_vm0 = vcmask 64512   ;;  %v6749_v32 = vmov -inf   ;;  %vm311_vm1 = vcmask 523264   ;;  %v9510_v45 = vmov 0   ;;  %s6752_s23 = smov 120  }
   0xd   : > { %297 = vst.msk [vmem:[#allocation2 + $0x10] sm:$0xff] %vm294_vm0, %v6749_v32  ;;  %295 = vst.msk [vmem:[#allocation2] sm:$0xff] %vm294_vm0, %v6749_v32  ;;  %6297 = vset.pattern.permute.xlu1 %v9510_v45  ;;  %6296 = vset.pattern.permute.xlu0 %v9510_v45  ;;  %v6751_v50 = vmov 0.0   ;;  %vm820_vm2 = vcmask 7168   ;;  %vm1403_vm3 = vcmask 15368   ;;  %s6754_s27 = smov 112  }
   0xe   : > { %s9962_s12 = smov (!%p250_p4, %s6739_s12), 1  ;;  %296 = vst.msk [vmem:[#allocation2 + $0x8] sm:$0xff] %vm294_vm0, %v6749_v32  ;;  %298 = vst.msk [vmem:[#allocation2 + $0x18] sm:$0xff] %vm294_vm0, %v6749_v32  ;;  %vm1987_vm4 = vcmask 23568   ;;  %s6756_s28 = smov 104   ;;  %vm2571_vm5 = vcmask 31768  }
   0xf   : > { %s6811_s16 = sshll.u32 %s9962_s12, 5  ;;  %299 = vst.msk [vmem:[#allocation2 + $0x20] sm:$0xff] %vm294_vm0, %v6749_v32  ;;  %300 = vst.msk [vmem:[#allocation2 + $0x28] sm:$0xff] %vm294_vm0, %v6749_v32  ;;  %s6758_s29 = smov 96   ;;  %vm3155_vm6 = vcmask 39968   ;;  %vm3739_vm7 = vcmask 48168  }
  0x10   : > { %s6817_s19 = scalar_lea.vmem %s9505_s1, %s6811_s16  ;;  %s6825_s22 = scalar_lea.vmem %s9504_s0, %s6811_s16  ;;  %301 = vst.msk [vmem:[#allocation2 + $0x30] sm:$0xff] %vm294_vm0, %v6749_v32  ;;  %302 = vst.msk [vmem:[#allocation2 + $0x38] sm:$0xff] %vm294_vm0, %v6749_v32  ;;  %vm1420_vm8 = vcmask 130112   ;;  %vm2004_vm9 = vcmask 195712   ;;  %vm2588_vm10 = vcmask 261312   ;;  %vm4323_vm11 = vcmask 56368  }
  0x11   : > { %v6389_v0 = vld [vmem:[%s6817_s19 + $0x18] sm:$0xff]   ;;  %v6390_v1 = vld [vmem:[%s6817_s19 + $0x10] sm:$0xff]   ;;  %v6391_v3 = vld [vmem:[%s6817_s19 + $0x8] sm:$0xff]   ;;  %304 = vst.msk [vmem:[#allocation3 + $0x8] sm:$0xff] %vm294_vm0, %v6751_v50  ;;  %s6970_s26 = scalar_lea.vmem %s9506_s2, %s6811_s16  ;;  %s6760_s30 = smov 88   ;;  %vm3172_vm12 = vcmask 326912  }
  0x12   : > { %6216 = vmatprep.subr.msk.bf16.mxu0 %vm294_vm0, %v6389_v0  ;;  %v407_v2 = vsel %vm294_vm0, %v6389_v0, 0  ;;  %v5681_v4 = vld [vmem:[%s6825_s22] sm:$0xff]   ;;  %v5808_v5 = vld [vmem:[%s6825_s22 + $0x8] sm:$0xff]   ;;  %v404_v12 = vsel %vm294_vm0, %v6390_v1, 0  ;;  %v401_v13 = vsel %vm294_vm0, %v6391_v3, 0  ;;  %v5809_v17 = vld [vmem:[%s6825_s22 + $0x10] sm:$0xff]  }
  0x13   : > { %5961 = vmatpush3.bf16.xpose.msra.mxu0 %v407_v2  ;;  %v6392_v6 = vld [vmem:[%s6817_s19] sm:$0xff]   ;;  %v5682_v7 = vunpack.c.l.bf16 %v5681_v4  ;;  %v5683_v8 = vunpack.c.h.bf16 %v5681_v4  ;;  %v5686_v9 = vunpack.c.l.bf16 %v5808_v5  ;;  %v5687_v18 = vunpack.c.h.bf16 %v5808_v5  ;;  %v5810_v24 = vld [vmem:[%s6825_s22 + $0x18] sm:$0xff]   ;;  %303 = vst.msk [vmem:[#allocation3] sm:$0xff] %vm294_vm0, %v6751_v50  ;;  %305 = vst.msk [vmem:[#allocation3 + $0x10] sm:$0xff] %vm294_vm0, %v6751_v50  ;;  %s6762_s4 = smov 80   ;;  %s6763_s5 = smov 8  }
  0x14   : > { %6217 = vmatprep.subr.msk.bf16.mxu0 %vm294_vm0, %v6390_v1  ;;  %v398_v14 = vsel %vm294_vm0, %v6392_v6, 0  ;;  %v5690_v19 = vunpack.c.l.bf16 %v5809_v17  ;;  %v5691_v20 = vunpack.c.h.bf16 %v5809_v17  ;;  %v5694_v26 = vunpack.c.l.bf16 %v5810_v24  ;;  %306 = vst.msk [vmem:[#allocation3 + $0x18] sm:$0xff] %vm294_vm0, %v6751_v50  ;;  %307 = vst.msk [vmem:[#allocation3 + $0x20] sm:$0xff] %vm294_vm0, %v6751_v50  ;;  %v6915_v51 = vld [vmem:[#allocation2 + $0x10] sm:$0xff]  ;;  %v6917_v53 = vld [vmem:[#allocation2] sm:$0xff]  ;;  %s6764_s6 = smov 16  }
  0x15   : > { %v336_v10 = vmul.f32 0.35355338, %v5682_v7  ;;  %v337_v11 = vmul.f32 0.35355338, %v5683_v8  ;;  %v338_v16 = vmul.f32 0.35355338, %v5686_v9  ;;  %v5695_v27 = vunpack.c.h.bf16 %v5810_v24 }
  0x16   : > { %v339_v21 = vmul.f32 0.35355338, %v5687_v18  ;;  %v340_v22 = vmul.f32 0.35355338, %v5690_v19  ;;  %v341_v23 = vmul.f32 0.35355338, %v5691_v20 }
  0x17   : > { %v6837_v15 = vpack.c.bf16 %v337_v11, %v336_v10  ;;  %v342_v29 = vmul.f32 0.35355338, %v5694_v26  ;;  %v343_v30 = vmul.f32 0.35355338, %v5695_v27  ;;  %308 = vst.msk [vmem:[#allocation3 + $0x28] sm:$0xff] %vm294_vm0, %v6751_v50  ;;  %309 = vst.msk [vmem:[#allocation3 + $0x30] sm:$0xff] %vm294_vm0, %v6751_v50 }
  0x18   : > { %v6845_v25 = vpack.c.bf16 %v339_v21, %v338_v16  ;;  %v6847_v28 = vpack.c.bf16 %v341_v23, %v340_v22  ;;  %310 = vst.msk [vmem:[#allocation3 + $0x38] sm:$0xff] %vm294_vm0, %v6751_v50  ;;  %v6922_v56 = vld [vmem:[#allocation2 + $0x18] sm:$0xff]  ;;  %v6932_v60 = vld [vmem:[#allocation2 + $0x8] sm:$0xff]  ;;  %v6394_v63 = vld [vmem:[%s6817_s19 + $0x10] sm:$0xff]   ;;  %s6765_s7 = smov 24   ;;  %s6767_s8 = smov 72  }
  0x19   : > { %5968 = vmatprep.mubr.msk.bf16.mxu0 %vm294_vm0, %v6837_v15  ;;  %v6853_v31 = vpack.c.bf16 %v343_v30, %v342_v29  ;;  %312 = vst.msk [vmem:[#allocation4] sm:$0xff] %vm311_vm1, %v6751_v50  ;;  %313 = vst.msk [vmem:[#allocation4 + $0x8] sm:$0xff] %vm311_vm1, %v6751_v50  ;;  %v6396_v5 = vld [vmem:[%s6817_s19] sm:$0xff]   ;;  %v6962_v8 = vld [vmem:[#allocation2 + $0x30] sm:$0xff]  ;;  %s6768_s9 = smov 32   ;;  %s6769_s10 = smov 40  }
  0x1a   : > { %314 = vst.msk [vmem:[#allocation4 + $0x10] sm:$0xff] %vm311_vm1, %v6751_v50  ;;  %315 = vst.msk [vmem:[#allocation4 + $0x18] sm:$0xff] %vm311_vm1, %v6751_v50  ;;  %v6964_v9 = vld [vmem:[#allocation2 + $0x28] sm:$0xff]  ;;  %v6397_v10 = vld [vmem:[%s6970_s26 + $0x18] sm:$0xff]   ;;  %vm3756_vm13 = vcmask 392512   ;;  %s6770_s11 = smov 48  }
  0x1b   : > { %5963 = vmatpush3.bf16.xpose.msra.mxu0 %v404_v12  ;;  %316 = vst.msk [vmem:[#allocation4 + $0x20] sm:$0xff] %vm311_vm1, %v6751_v50  ;;  %317 = vst.msk [vmem:[#allocation4 + $0x28] sm:$0xff] %vm311_vm1, %v6751_v50  ;;  %5976 = vmatprep.subr.bf16.mxu1 %v6397_v10  ;;  %v6985_v17 = vld [vmem:[#allocation2 + $0x38] sm:$0xff]  ;;  %v6398_v18 = vld [vmem:[%s6970_s26 + $0x10] sm:$0xff]   ;;  %vm4340_vm14 = vcmask 458112   ;;  %vm4907_vm15 = vcmask 64568  }
  0x1c   : > { %6218 = vmatprep.subr.msk.bf16.mxu0 %vm294_vm0, %v6391_v3  ;;  %318 = vst.msk [vmem:[#allocation4 + $0x30] sm:$0xff] %vm311_vm1, %v6751_v50  ;;  %319 = vst.msk [vmem:[#allocation4 + $0x38] sm:$0xff] %vm311_vm1, %v6751_v50  ;;  %v6950_v3 = vld [vmem:[#allocation2 + $0x20] sm:$0xff]  ;;  %5977 = vmatpush3.bf16.msra.mxu1 %v6397_v10  ;;  %v6399_v23 = vld [vmem:[%s6970_s26 + $0x8] sm:$0xff]   ;;  %s6772_s12 = smov 56  }
  0x1d   : > { %5978 = vmatprep.subr.bf16.mxu1 %v6398_v18  ;;  %v6400_v26 = vld [vmem:[%s6970_s26] sm:$0xff]   ;;  %v6393_v27 = vld [vmem:[%s6817_s19 + $0x18] sm:$0xff]   ;;  %v6395_v29 = vld [vmem:[%s6817_s19 + $0x8] sm:$0xff]  }
  0x1e   : > { %v6402_v61 = vld [vmem:[%s6970_s26 + $0x10] sm:$0xff]   ;;  %v6403_v45 = vld [vmem:[%s6970_s26 + $0x8] sm:$0xff]  }
  0x20   : > { %5979 = vmatpush3.bf16.msra.mxu1 %v6398_v18 }
  0x21   : > { %5980 = vmatprep.subr.bf16.mxu1 %v6399_v23 }
  0x23   : > { %5965 = vmatpush3.bf16.xpose.msra.mxu0 %v401_v13 }
  0x24   : > { %6219 = vmatprep.subr.msk.bf16.mxu0 %vm294_vm0, %v6392_v6  ;;  %5981 = vmatpush3.bf16.msra.mxu1 %v6399_v23 }
  0x25   : > { %5982 = vmatprep.subr.bf16.mxu1 %v6400_v26 }
  0x28   : > { %5983 = vmatpush3.bf16.msra.mxu1 %v6400_v26 }
  0x2b   : > { %5967 = vmatpush3.bf16.xpose.msra.mxu0 %v398_v14 }
  0x32   : > { %5969 = vmatmul.mubr.msk.bf16.vlgmr.msra.gmra.mxu0 %vm294_vm0, %v6845_v25 }
  0x33   : > { %5972 = vmatprep.mubr.msk.bf16.mxu0 %vm294_vm0, %v6847_v28 }
  0x3a   : > { %5973 = vmatmul.mubr.msk.bf16.gmra.mxu0 %vm294_vm0, %v6853_v31 }
  0xf2   : > { %v6865_v33 = vpop.f32.mrf.mxu0 }
  0xf3   : > { %v497_v34 = vsel %vm311_vm1, %v6865_v33, -inf }
  0xf4   : > { %498 = vmax.xlane.f32.xlu1 %v497_v34  ;;  %v6869_v35 = vpop.f32.mrf.mxu0 }
  0xf5   : > { %v491_v36 = vsel %vm311_vm1, %v6869_v35, -inf }
  0xf6   : > { %492 = vmax.xlane.f32.xlu0 %v491_v36  ;;  %v6873_v37 = vpop.f32.mrf.mxu0 }
  0xf7   : > { %v500_v38 = vsel %vm311_vm1, %v6873_v37, -inf }
  0xf8   : > { %501 = vmax.xlane.f32.xlu1 %v500_v38  ;;  %v6877_v39 = vpop.f32.mrf.mxu0 }
  0xf9   : > { %v494_v40 = vsel %vm311_vm1, %v6877_v39, -inf }
  0xfa   : > { %495 = vmax.xlane.f32.xlu0 %v494_v40  ;;  %v6881_v41 = vpop.f32.mrf.mxu0 }
  0xfb   : > { %v509_v47 = vsel %vm311_vm1, %v6881_v41, -inf }
  0xfc   : > { %v6883_v42 = vpop.f32.mrf.mxu0 }
  0xfd   : > { %v503_v43 = vsel %vm311_vm1, %v6883_v42, -inf }
  0xfe   : > { %504 = vmax.xlane.f32.xlu0 %v503_v43  ;;  %v6887_v44 = vpop.f32.mrf.mxu0 }
  0xff   : > { %v512_v49 = vsel %vm311_vm1, %v6887_v44, -inf }
 0x100   : > { %v6891_v46 = vpop.f32.mrf.mxu0 }
 0x101   : > { %v506_v48 = vsel %vm311_vm1, %v6891_v46, -inf }
 0x102   : > { %510 = vmax.xlane.f32.xlu0 %v509_v47  ;;  %507 = vmax.xlane.f32.xlu1 %v506_v48 }
 0x106   : > { %513 = vmax.xlane.f32.xlu1 %v512_v49 }
 0x17d   : > { %v499_v52 = vpop.xlane.xlu1 %498 }
 0x17e   : > { %v6920_v54 = vmax.f32 %v6915_v51, %v499_v52 }
 0x17f   : > { %v493_v55 = vpop.xlane.xlu0 %492 }
 0x180   : > { %823 = vst.msk [vmem:[#allocation2 + $0x10] sm:$0xff] %vm820_vm2, %v6920_v54  ;;  %v6929_v58 = vmax.f32 %v6917_v53, %v493_v55  ;;  %559 = vperm.xlu1 %6297, %v6920_v54  }
 0x181   : > { %v502_v59 = vpop.xlane.xlu1 %501 }
 0x182   : > { %821 = vst.msk [vmem:[#allocation2] sm:$0xff] %vm820_vm2, %v6929_v58  ;;  %v6939_v62 = vmax.f32 %v6922_v56, %v502_v59  ;;  %549 = vperm.xlu0 %6296, %v6929_v58  }
 0x183   : > { %v496_v0 = vpop.xlane.xlu0 %495 }
 0x184   : > { %824 = vst.msk [vmem:[#allocation2 + $0x18] sm:$0xff] %vm820_vm2, %v6939_v62  ;;  %v6948_v2 = vmax.f32 %v6932_v60, %v496_v0 }
 0x186   : > { %822 = vst.msk [vmem:[#allocation2 + $0x8] sm:$0xff] %vm820_vm2, %v6948_v2  ;;  %554 = vperm.xlu1 %6297, %v6948_v2   ;;  %925 = vrot.lane.b32.xlu0 %v6394_v63, %s6752_s23 }
 0x187   : > { %v505_v6 = vpop.xlane.xlu0 %504 }
 0x188   : > { %v6960_v7 = vmax.f32 %v6950_v3, %v505_v6 }
 0x18a   : > { %825 = vst.msk [vmem:[#allocation2 + $0x20] sm:$0xff] %vm820_vm2, %v6960_v7  ;;  %564 = vperm.xlu1 %6297, %v6939_v62   ;;  %921 = vrot.lane.b32.xlu0 %v6396_v5, %s6752_s23 }
 0x18b   : > { %v511_v12 = vpop.xlane.xlu0 %510  ;;  %v508_v13 = vpop.xlane.xlu1 %507 }
 0x18c   : > { %v6980_v14 = vmax.f32 %v6962_v8, %v511_v12  ;;  %v6983_v16 = vmax.f32 %v6964_v9, %v508_v13 }
 0x18e   : > { %827 = vst.msk [vmem:[#allocation2 + $0x30] sm:$0xff] %vm820_vm2, %v6980_v14  ;;  %826 = vst.msk [vmem:[#allocation2 + $0x28] sm:$0xff] %vm820_vm2, %v6983_v16  ;;  %579 = vperm.xlu1 %6297, %v6980_v14   ;;  %895 = vrot.lane.b32.xlu0 %v6845_v25, %s6752_s23 }
 0x18f   : > { %v514_v21 = vpop.xlane.xlu1 %513 }
 0x190   : > { %v7000_v22 = vmax.f32 %v6985_v17, %v514_v21 }
 0x192   : > { %828 = vst.msk [vmem:[#allocation2 + $0x38] sm:$0xff] %vm820_vm2, %v7000_v22  ;;  %569 = vperm.xlu1 %6297, %v6960_v7   ;;  %899 = vrot.lane.b32.xlu0 %v6853_v31, %s6752_s23 }
 0x195   : > { %v7159_v19 = vld [vmem:[#allocation2 + $0x28] sm:$0xff] }
 0x196   : > { %584 = vperm.xlu1 %6297, %v7000_v22   ;;  %9632 = vst [vmem:[#allocation12_spill] sm:$0xff] %v7159_v19 }
 0x19a   : > { %574 = vperm.xlu1 %6297, %v6983_v16  }
 0x19e   : > { %927 = vrot.lane.b32.xlu1 %v6393_v27, %s6752_s23 }
 0x1a2   : > { %923 = vrot.lane.b32.xlu1 %v6395_v29, %s6752_s23 }
 0x1a6   : > { %893 = vrot.lane.b32.xlu1 %v6837_v15, %s6752_s23 }
 0x1aa   : > { %897 = vrot.lane.b32.xlu1 %v6847_v28, %s6752_s23 }
 0x1fb   : > { %v560_v30 = vpop.permute.xlu1 %559 }
 0x1fc   : > { %v589_v36 = vsub.f32 %v6865_v33, %v560_v30 }
 0x1fd   : > { %v550_v32 = vpop.permute.xlu0 %549 }
 0x1fe   : > { %v587_v34 = vsub.f32 %v6869_v35, %v550_v32  ;;  %v599_v48 = vmul.f32 1.442695, %v589_v36 }
 0x200   : > { %v595_v38 = vmul.f32 1.442695, %v587_v34 }
 0x201   : > { %v555_v40 = vpop.permute.xlu1 %554  ;;  %v926_v26 = vpop.permute.xlu0 %925 }
 0x202   : > { %v588_v43 = vsub.f32 %v6877_v39, %v555_v40  ;;  %6453 = vpow2.f32 %v595_v38  ;;  %v948_v27 = vsel %vm294_vm0, %v926_v26, 0 }
 0x204   : > { %v597_v47 = vmul.f32 1.442695, %v588_v43 }
 0x205   : > { %v565_v49 = vpop.permute.xlu1 %564 }
 0x206   : > { %6455 = vpow2.f32 %v597_v47  ;;  %v590_v50 = vsub.f32 %v6873_v37, %v565_v49 }
 0x207   : > { %6457 = vpow2.f32 %v599_v48  ;;  %v922_v48 = vpop.permute.xlu0 %921 }
 0x208   : > { %v601_v52 = vmul.f32 1.442695, %v590_v50  ;;  %v942_v49 = vsel %vm294_vm0, %v922_v48, 0 }
 0x209   : > { %v580_v55 = vpop.permute.xlu1 %579 }
 0x20a   : > { %6459 = vpow2.f32 %v601_v52  ;;  %v593_v5 = vsub.f32 %v6881_v41, %v580_v55 }
 0x20b   : > { %v896_v50 = vpop.permute.xlu0 %895 }
 0x20c   : > { %v607_v21 = vmul.f32 1.442695, %v593_v5 }
 0x20d   : > { %v570_v59 = vpop.permute.xlu1 %569 }
 0x20e   : > { %v591_v35 = vsub.f32 %v6883_v42, %v570_v59 }
 0x20f   : > { %v7026_v33 = vpop.eup %6453  ;;  %v900_v55 = vpop.permute.xlu0 %899 }
 0x210   : > { %v603_v6 = vmul.f32 1.442695, %v591_v35 }
 0x211   : > { %v585_v63 = vpop.permute.xlu1 %584 }
 0x212   : > { %v594_v0 = vsub.f32 %v6887_v44, %v585_v63  ;;  %6461 = vpow2.f32 %v603_v6 }
 0x213   : > { %v7029_v39 = vpop.eup %6455 }
 0x214   : > { %v707_v37 = vpack.c.bf16 %v7029_v39, %v7026_v33  ;;  %v609_v10 = vmul.f32 1.442695, %v594_v0  ;;  %v7034_v13 = vpop.eup %6457 }
 0x215   : > { %v575_v12 = vpop.permute.xlu1 %574 }
 0x216   : > { %v592_v18 = vsub.f32 %v6891_v46, %v575_v12  ;;  %5984 = vmatprep.mubr.msk.bf16.mxu1 %vm311_vm1, %v707_v37  ;;  %6463 = vpow2.f32 %v609_v10 }
 0x217   : > { %v7038_v42 = vpop.eup %6459 }
 0x218   : > { %v605_v44 = vmul.f32 1.442695, %v592_v18  ;;  %v708_v41 = vpack.c.bf16 %v7038_v42, %v7034_v13 }
 0x219   : > { %v928_v23 = vpop.permute.xlu1 %927 }
 0x21a   : > { %6465 = vpow2.f32 %v605_v44  ;;  %5985 = vmatmul.mubr.msk.bf16.vlgmr.msra.gmra.mxu1 %vm311_vm1, %v708_v41  ;;  %6220 = vmatprep.subr.msk.bf16.mxu1 %vm294_vm0, %v928_v23  ;;  %v951_v46 = vsel %vm294_vm0, %v928_v23, 0 }
 0x21b   : > { %6467 = vpow2.f32 %v607_v21  ;;  %5993 = vmatpush3.bf16.xpose.msra.mxu1 %v951_v46 }
 0x21c   : > { %6221 = vmatprep.subr.msk.bf16.mxu1 %vm294_vm0, %v926_v26 }
 0x21d   : > { %v924_v29 = vpop.permute.xlu1 %923 }
 0x21e   : > { %v945_v43 = vsel %vm294_vm0, %v924_v29, 0 }
 0x21f   : > { %v7048_v30 = vpop.eup %6461 }
 0x221   : > { %v894_v47 = vpop.permute.xlu1 %893 }
 0x223   : > { %5995 = vmatpush3.bf16.xpose.msra.mxu1 %v948_v27  ;;  %v7050_v32 = vpop.eup %6463 }
 0x224   : > { %6222 = vmatprep.subr.msk.bf16.mxu1 %vm294_vm0, %v924_v29 }
 0x225   : > { %v898_v52 = vpop.permute.xlu1 %897 }
 0x227   : > { %v7052_v34 = vpop.eup %6465 }
 0x228   : > { %v7054_v36 = vpop.eup %6467  ;;  %v709_v38 = vpack.c.bf16 %v7052_v34, %v7048_v30 }
 0x229   : > { %v710_v40 = vpack.c.bf16 %v7050_v32, %v7054_v36 }
 0x22a   : > { %5988 = vmatprep.mubr.msk.bf16.mxu1 %vm311_vm1, %v709_v38 }
 0x22b   : > { %5989 = vmatmul.mubr.msk.bf16.gmra.mxu1 %vm311_vm1, %v710_v40 }
 0x22c   : > { %5997 = vmatpush3.bf16.xpose.msra.mxu1 %v945_v43  ;;  %6000 = vmatprep.mubr.msk.bf16.mxu1 %vm294_vm0, %v894_v47 }
 0x22d   : > { %6223 = vmatprep.subr.msk.bf16.mxu1 %vm294_vm0, %v922_v48 }
 0x234   : > { %5999 = vmatpush3.bf16.xpose.msra.mxu1 %v942_v49 }
 0x23b   : > { %6001 = vmatmul.mubr.msk.bf16.vlgmr.msra.gmra.mxu1 %vm294_vm0, %v896_v50  ;;  %v9508_v50 = vmov 1  }
 0x23c   : > { %6004 = vmatprep.mubr.msk.bf16.mxu1 %vm294_vm0, %v898_v52  ;;  %6298 = vset.pattern.permute.xlu0 %v9508_v50  ;;  %v7119_v52 = vld [vmem:[#allocation2] sm:$0xff] }
 0x23d   : > { %6299 = vset.pattern.permute.xlu1 %v9508_v50  ;;  %v7147_v50 = vld [vmem:[#allocation2 + $0x10] sm:$0xff] }
 0x23e   : > { %9629 = vst [vmem:[#allocation9_spill] sm:$0xff] %v7147_v50 }
 0x243   : > { %6005 = vmatmul.mubr.msk.bf16.gmra.mxu1 %vm294_vm0, %v900_v55 }
 0x2da   : > { %v7069_v59 = vpop.f32.mrf.mxu1 }
 0x2dc   : > { %v7071_v35 = vpop.f32.mrf.mxu1 }
 0x2de   : > { %v7073_v63 = vpop.f32.mrf.mxu1 }
 0x2e0   : > { %v7075_v0 = vpop.f32.mrf.mxu1 }
 0x2eb   : > { %v7077_v5 = vpop.f32.mrf.mxu1 }
 0x2ed   : > { %v7079_v6 = vpop.f32.mrf.mxu1 }
 0x2ef   : > { %v7081_v37 = vpop.f32.mrf.mxu1 }
 0x2f1   : > { %v7083_v10 = vpop.f32.mrf.mxu1 }
 0x2fb   : > { %v7085_v12 = vpop.f32.mrf.mxu1 }
 0x2fc   : > { %v1040_v29 = vsel %vm311_vm1, %v7085_v12, -inf }
 0x2fd   : > { %v7087_v18 = vpop.f32.mrf.mxu1 }
 0x2fe   : > { %v1034_v21 = vsel %vm311_vm1, %v7087_v18, -inf }
 0x2ff   : > { %1035 = vmax.xlane.f32.xlu1 %v1034_v21  ;;  %v7091_v44 = vpop.f32.mrf.mxu1 }
 0x300   : > { %v1043_v23 = vsel %vm311_vm1, %v7091_v44, -inf }
 0x301   : > { %v7093_v41 = vpop.f32.mrf.mxu1 }
 0x302   : > { %v1037_v26 = vsel %vm311_vm1, %v7093_v41, -inf }
 0x303   : > { %1044 = vmax.xlane.f32.xlu1 %v1043_v23  ;;  %1038 = vmax.xlane.f32.xlu0 %v1037_v26  ;;  %v7099_v46 = vpop.f32.mrf.mxu1  ;;  %v7129_v26 = vld [vmem:[#allocation2 + $0x8] sm:$0xff] }
 0x304   : > { %v1052_v48 = vsel %vm311_vm1, %v7099_v46, -inf  ;;  %9625 = vst [vmem:[#allocation5_spill] sm:$0xff] %v7129_v26 }
 0x305   : > { %v7101_v27 = vpop.f32.mrf.mxu1 }
 0x306   : > { %v1046_v40 = vsel %vm311_vm1, %v7101_v27, -inf }
 0x307   : > { %1041 = vmax.xlane.f32.xlu0 %v1040_v29  ;;  %v7105_v38 = vpop.f32.mrf.mxu1 }
 0x308   : > { %v1055_v49 = vsel %vm311_vm1, %v7105_v38, -inf }
 0x309   : > { %v7109_v43 = vpop.f32.mrf.mxu1 }
 0x30a   : > { %v1049_v47 = vsel %vm311_vm1, %v7109_v43, -inf }
 0x30b   : > { %1047 = vmax.xlane.f32.xlu0 %v1046_v40  ;;  %1050 = vmax.xlane.f32.xlu1 %v1049_v47  ;;  %v7131_v40 = vld [vmem:[#allocation2 + $0x18] sm:$0xff] }
 0x30c   : > { %9626 = vst [vmem:[#allocation6_spill] sm:$0xff] %v7131_v40 }
 0x30f   : > { %1053 = vmax.xlane.f32.xlu0 %v1052_v48  ;;  %1056 = vmax.xlane.f32.xlu1 %v1055_v49 }
 0x388   : > { %v1036_v55 = vpop.xlane.xlu1 %1035 }
 0x389   : > { %v7122_v21 = vmax.f32 %v7119_v52, %v1036_v55  ;;  %v7157_v55 = vld [vmem:[#allocation2 + $0x20] sm:$0xff] }
 0x38a   : > { %9631 = vst [vmem:[#allocation11_spill] sm:$0xff] %v7157_v55 }
 0x38b   : > { %1404 = vst.msk [vmem:[#allocation2] sm:$0xff] %vm1403_vm3, %v7122_v21  ;;  %1092 = vperm.xlu0 %6298, %v7122_v21  }
 0x38c   : > { %v1039_v29 = vpop.xlane.xlu0 %1038  ;;  %v1045_v47 = vpop.xlane.xlu1 %1044 }
 0x38d   : > { %v7134_v48 = vmax.f32 %v7129_v26, %v1039_v29  ;;  %v7137_v49 = vmax.f32 %v7131_v40, %v1045_v47  ;;  %v7179_v47 = vld [vmem:[#allocation2 + $0x38] sm:$0xff] }
 0x38e   : > { %9636 = vst [vmem:[#allocation16_spill] sm:$0xff] %v7179_v47 }
 0x38f   : > { %9627 = vst [vmem:[#allocation7_spill] sm:$0xff] %v7134_v48  ;;  %9628 = vst [vmem:[#allocation8_spill] sm:$0xff] %v7137_v49 }
 0x390   : > { %1405 = vst.msk [vmem:[#allocation2 + $0x8] sm:$0xff] %vm1403_vm3, %v7134_v48  ;;  %1407 = vst.msk [vmem:[#allocation2 + $0x18] sm:$0xff] %vm1403_vm3, %v7137_v49  ;;  %v1042_v24 = vpop.xlane.xlu0 %1041 }
 0x391   : > { %v7150_v29 = vmax.f32 %v7147_v50, %v1042_v24 }
 0x392   : > { %v7326_v26 = vld [vmem:[#allocation2] sm:$0xff] }
 0x393   : > { %9630 = vst [vmem:[#allocation10_spill] sm:$0xff] %v7150_v29  ;;  %1406 = vst.msk [vmem:[#allocation2 + $0x10] sm:$0xff] %vm1403_vm3, %v7150_v29  ;;  %1102 = vperm.xlu1 %6299, %v7150_v29  }
 0x394   : > { %v1048_v23 = vpop.xlane.xlu0 %1047  ;;  %v1051_v20 = vpop.xlane.xlu1 %1050  ;;  %9652 = vst [vmem:[#allocation32_spill] sm:$0xff] %v7326_v26 }
 0x395   : > { %v7162_v11 = vmax.f32 %v7157_v55, %v1048_v23  ;;  %v7165_v24 = vmax.f32 %v7159_v19, %v1051_v20  ;;  %v7177_v20 = vld [vmem:[#allocation2 + $0x30] sm:$0xff] }
 0x396   : > { %9635 = vst [vmem:[#allocation15_spill] sm:$0xff] %v7177_v20 }
 0x397   : > { %9633 = vst [vmem:[#allocation13_spill] sm:$0xff] %v7162_v11  ;;  %9634 = vst [vmem:[#allocation14_spill] sm:$0xff] %v7165_v24  ;;  %1107 = vperm.xlu1 %6299, %v7137_v49   ;;  %1117 = vperm.xlu0 %6298, %v7165_v24  }
 0x398   : > { %1408 = vst.msk [vmem:[#allocation2 + $0x20] sm:$0xff] %vm1403_vm3, %v7162_v11  ;;  %1409 = vst.msk [vmem:[#allocation2 + $0x28] sm:$0xff] %vm1403_vm3, %v7165_v24  ;;  %v1054_v23 = vpop.xlane.xlu0 %1053  ;;  %v1057_v57 = vpop.xlane.xlu1 %1056  ;;  %v6408_v24 = vld [vmem:[%s6817_s19] sm:$0xff]  }
 0x399   : > { %v7182_v4 = vmax.f32 %v7177_v20, %v1054_v23  ;;  %v7185_v1 = vmax.f32 %v7179_v47, %v1057_v57  ;;  %v6401_v23 = vld [vmem:[%s6970_s26 + $0x18] sm:$0xff]   ;;  %v6406_v57 = vld [vmem:[%s6817_s19 + $0x10] sm:$0xff]   ;;  %v6404_v47 = vld [vmem:[%s6970_s26] sm:$0xff]  }
 0x39b   : > { %9637 = vst [vmem:[#allocation17_spill] sm:$0xff] %v7182_v4  ;;  %9638 = vst [vmem:[#allocation18_spill] sm:$0xff] %v7185_v1  ;;  %1097 = vperm.xlu1 %6299, %v7134_v48   ;;  %1127 = vperm.xlu0 %6298, %v7185_v1  }
 0x39c   : > { %1410 = vst.msk [vmem:[#allocation2 + $0x30] sm:$0xff] %vm1403_vm3, %v7182_v4  ;;  %1411 = vst.msk [vmem:[#allocation2 + $0x38] sm:$0xff] %vm1403_vm3, %v7185_v1 }
 0x39f   : > { %1280 = vrot.lane.b32.xlu1 %v6401_v23, %s6752_s23  ;;  %1509 = vrot.lane.b32.xlu0 %v6406_v57, %s6754_s27  ;;  %v6405_v23 = vld [vmem:[%s6817_s19 + $0x18] sm:$0xff]  }
 0x3a3   : > { %1278 = vrot.lane.b32.xlu1 %v6402_v61, %s6752_s23  ;;  %1505 = vrot.lane.b32.xlu0 %v6408_v24, %s6754_s27  ;;  %v6407_v61 = vld [vmem:[%s6817_s19 + $0x8] sm:$0xff]   ;;  %v7374_v49 = vld [vmem:[#allocation2 + $0x30] sm:$0xff] }
 0x3a4   : > { %9661 = vst [vmem:[#allocation41_spill] sm:$0xff] %v7374_v49 }
 0x3a7   : > { %1276 = vrot.lane.b32.xlu1 %v6403_v45, %s6752_s23  ;;  %1479 = vrot.lane.b32.xlu0 %v6845_v25, %s6754_s27 }
 0x3ab   : > { %1274 = vrot.lane.b32.xlu1 %v6404_v47, %s6752_s23  ;;  %1483 = vrot.lane.b32.xlu0 %v6853_v31, %s6754_s27 }
 0x3af   : > { %1122 = vperm.xlu1 %6299, %v7182_v4  }
 0x3b3   : > { %1112 = vperm.xlu1 %6299, %v7162_v11  }
 0x3b7   : > { %1511 = vrot.lane.b32.xlu1 %v6405_v23, %s6754_s27 }
 0x3bb   : > { %1507 = vrot.lane.b32.xlu1 %v6407_v61, %s6754_s27 }
 0x3bf   : > { %1477 = vrot.lane.b32.xlu1 %v6837_v15, %s6754_s27 }
 0x3c3   : > { %1481 = vrot.lane.b32.xlu1 %v6847_v28, %s6754_s27 }
 0x406   : > { %v1093_v45 = vpop.permute.xlu0 %1092 }
 0x407   : > { %v1130_v31 = vsub.f32 %v7087_v18, %v1093_v45 }
 0x409   : > { %v1138_v1 = vmul.f32 1.442695, %v1130_v31 }
 0x40b   : > { %6469 = vpow2.f32 %v1138_v1 }
 0x40e   : > { %v1103_v25 = vpop.permute.xlu1 %1102 }
 0x40f   : > { %v1132_v57 = vsub.f32 %v7085_v12, %v1103_v25 }
 0x411   : > { %v1142_v4 = vmul.f32 1.442695, %v1132_v57 }
 0x412   : > { %v1108_v47 = vpop.permute.xlu1 %1107 }
 0x413   : > { %v1133_v24 = vsub.f32 %v7091_v44, %v1108_v47  ;;  %v1118_v44 = vpop.permute.xlu0 %1117 }
 0x415   : > { %v1144_v19 = vmul.f32 1.442695, %v1133_v24 }
 0x416   : > { %v1098_v23 = vpop.permute.xlu1 %1097 }
 0x417   : > { %v1131_v61 = vsub.f32 %v7093_v41, %v1098_v23  ;;  %6471 = vpow2.f32 %v1144_v19  ;;  %v1135_v19 = vsub.f32 %v7109_v43, %v1118_v44 }
 0x418   : > { %v7227_v25 = vpop.eup %6469 }
 0x419   : > { %v1140_v20 = vmul.f32 1.442695, %v1131_v61  ;;  %v1148_v23 = vmul.f32 1.442695, %v1135_v19 }
 0x41a   : > { %v1281_v15 = vpop.permute.xlu1 %1280 }
 0x41b   : > { %6008 = vmatprep.subr.bf16.mxu0 %v1281_v15  ;;  %6473 = vpow2.f32 %v1140_v20  ;;  %v1128_v20 = vpop.permute.xlu0 %1127 }
 0x41c   : > { %6009 = vmatpush3.bf16.msra.mxu0 %v1281_v15  ;;  %6475 = vpow2.f32 %v1142_v4  ;;  %v1137_v57 = vsub.f32 %v7105_v38, %v1128_v20 }
 0x41d   : > { %6477 = vpow2.f32 %v1148_v23 }
 0x41e   : > { %v1279_v28 = vpop.permute.xlu1 %1278 }
 0x41f   : > { %6010 = vmatprep.subr.bf16.mxu0 %v1279_v28 }
 0x420   : > { %6011 = vmatpush3.bf16.msra.mxu0 %v1279_v28  ;;  %v1152_v28 = vmul.f32 1.442695, %v1137_v57 }
 0x422   : > { %v1277_v18 = vpop.permute.xlu1 %1276 }
 0x423   : > { %6012 = vmatprep.subr.bf16.mxu0 %v1277_v18 }
 0x424   : > { %6013 = vmatpush3.bf16.msra.mxu0 %v1277_v18  ;;  %v7229_v41 = vpop.eup %6471 }
 0x425   : > { %9639 = vst [vmem:[#allocation19_spill] sm:$0xff] %v7229_v41 }
 0x426   : > { %v1275_v12 = vpop.permute.xlu1 %1274 }
 0x427   : > { %6014 = vmatprep.subr.bf16.mxu0 %v1275_v12 }
 0x428   : > { %6015 = vmatpush3.bf16.msra.mxu0 %v1275_v12  ;;  %v7231_v1 = vpop.eup %6473  ;;  %v1510_v12 = vpop.permute.xlu0 %1509 }
 0x429   : > { %v7234_v4 = vpop.eup %6475  ;;  %v1250_v31 = vpack.c.bf16 %v7231_v1, %v7227_v25  ;;  %v1532_v38 = vsel %vm294_vm0, %v1510_v12, 0 }
 0x42a   : > { %v1123_v45 = vpop.permute.xlu1 %1122  ;;  %v1251_v47 = vpack.c.bf16 %v7229_v41, %v7234_v4 }
 0x42b   : > { %v1136_v24 = vsub.f32 %v7099_v46, %v1123_v45  ;;  %6016 = vmatprep.mubr.msk.bf16.mxu0 %vm311_vm1, %v1250_v31 }
 0x42c   : > { %6017 = vmatmul.mubr.msk.bf16.vlgmr.msra.gmra.mxu0 %vm311_vm1, %v1251_v47 }
 0x42d   : > { %v1150_v43 = vmul.f32 1.442695, %v1136_v24 }
 0x42e   : > { %v1113_v61 = vpop.permute.xlu1 %1112 }
 0x42f   : > { %v1134_v15 = vsub.f32 %v7101_v27, %v1113_v61  ;;  %6479 = vpow2.f32 %v1150_v43  ;;  %v7250_v27 = vpop.eup %6477  ;;  %v1506_v43 = vpop.permute.xlu0 %1505 }
 0x430   : > { %9640 = vst [vmem:[#allocation20_spill] sm:$0xff] %v7250_v27  ;;  %v1526_v61 = vsel %vm294_vm0, %v1506_v43, 0 }
 0x431   : > { %v1146_v18 = vmul.f32 1.442695, %v1134_v15 }
 0x432   : > { %v1512_v44 = vpop.permute.xlu1 %1511 }
 0x433   : > { %6481 = vpow2.f32 %v1146_v18  ;;  %6224 = vmatprep.subr.msk.bf16.mxu0 %vm294_vm0, %v1512_v44  ;;  %v1535_v46 = vsel %vm294_vm0, %v1512_v44, 0  ;;  %v1480_v15 = vpop.permute.xlu0 %1479 }
 0x434   : > { %6483 = vpow2.f32 %v1152_v28  ;;  %6025 = vmatpush3.bf16.xpose.msra.mxu0 %v1535_v46 }
 0x435   : > { %6225 = vmatprep.subr.msk.bf16.mxu0 %vm294_vm0, %v1510_v12 }
 0x436   : > { %v1508_v19 = vpop.permute.xlu1 %1507 }
 0x437   : > { %v1529_v57 = vsel %vm294_vm0, %v1508_v19, 0  ;;  %v1484_v18 = vpop.permute.xlu0 %1483 }
 0x43a   : > { %v1478_v23 = vpop.permute.xlu1 %1477 }
 0x43c   : > { %6027 = vmatpush3.bf16.xpose.msra.mxu0 %v1532_v38  ;;  %v7252_v20 = vpop.eup %6479 }
 0x43d   : > { %6226 = vmatprep.subr.msk.bf16.mxu0 %vm294_vm0, %v1508_v19 }
 0x43e   : > { %v1482_v28 = vpop.permute.xlu1 %1481 }
 0x440   : > { %v7254_v45 = vpop.eup %6481 }
 0x441   : > { %v7256_v31 = vpop.eup %6483  ;;  %v1252_v47 = vpack.c.bf16 %v7250_v27, %v7254_v45  ;;  %v7394_v27 = vld [vmem:[#allocation2 + $0x38] sm:$0xff] }
 0x442   : > { %9641 = vst [vmem:[#allocation21_spill] sm:$0xff] %v7256_v31  ;;  %v1253_v24 = vpack.c.bf16 %v7256_v31, %v7252_v20  ;;  %9664 = vst [vmem:[#allocation44_spill] sm:$0xff] %v7394_v27 }
 0x443   : > { %6020 = vmatprep.mubr.msk.bf16.mxu0 %vm311_vm1, %v1252_v47 }
 0x444   : > { %6021 = vmatmul.mubr.msk.bf16.gmra.mxu0 %vm311_vm1, %v1253_v24 }
 0x445   : > { %6029 = vmatpush3.bf16.xpose.msra.mxu0 %v1529_v57  ;;  %6032 = vmatprep.mubr.msk.bf16.mxu0 %vm294_vm0, %v1478_v23 }
 0x446   : > { %6227 = vmatprep.subr.msk.bf16.mxu0 %vm294_vm0, %v1506_v43 }
 0x44d   : > { %6031 = vmatpush3.bf16.xpose.msra.mxu0 %v1526_v61 }
 0x454   : > { %6033 = vmatmul.mubr.msk.bf16.vlgmr.msra.gmra.mxu0 %vm294_vm0, %v1480_v15 }
 0x455   : > { %6036 = vmatprep.mubr.msk.bf16.mxu0 %vm294_vm0, %v1482_v28 }
 0x45c   : > { %6037 = vmatmul.mubr.msk.bf16.gmra.mxu0 %vm294_vm0, %v1484_v18 }
 0x4ec   : > { %v7271_v44 = vpop.f32.mrf.mxu0 }
 0x4ed   : > { %9642 = vst [vmem:[#allocation22_spill] sm:$0xff] %v7271_v44 }
 0x4ee   : > { %v7273_v12 = vpop.f32.mrf.mxu0 }
 0x4ef   : > { %9643 = vst [vmem:[#allocation23_spill] sm:$0xff] %v7273_v12  ;;  %v9521_v12 = vmov 2  }
 0x4f0   : > { %v7275_v46 = vpop.f32.mrf.mxu0  ;;  %6300 = vset.pattern.permute.xlu1 %v9521_v12  ;;  %6301 = vset.pattern.permute.xlu0 %v9521_v12 }
 0x4f1   : > { %9644 = vst [vmem:[#allocation24_spill] sm:$0xff] %v7275_v46 }
 0x4f2   : > { %v7277_v38 = vpop.f32.mrf.mxu0 }
 0x4f3   : > { %9645 = vst [vmem:[#allocation25_spill] sm:$0xff] %v7277_v38 }
 0x504   : > { %v7279_v19 = vpop.f32.mrf.mxu0 }
 0x505   : > { %9646 = vst [vmem:[#allocation26_spill] sm:$0xff] %v7279_v19 }
 0x506   : > { %v7281_v47 = vpop.f32.mrf.mxu0 }
 0x507   : > { %9647 = vst [vmem:[#allocation27_spill] sm:$0xff] %v7281_v47 }
 0x508   : > { %v7283_v24 = vpop.f32.mrf.mxu0 }
 0x509   : > { %9648 = vst [vmem:[#allocation28_spill] sm:$0xff] %v7283_v24 }
 0x50a   : > { %v7285_v57 = vpop.f32.mrf.mxu0 }
 0x50b   : > { %9649 = vst [vmem:[#allocation29_spill] sm:$0xff] %v7285_v57 }
 0x514   : > { %v7287_v23 = vpop.f32.mrf.mxu0 }
 0x515   : > { %v1624_v43 = vsel %vm311_vm1, %v7287_v23, -inf }
 0x516   : > { %1625 = vmax.xlane.f32.xlu0 %v1624_v43  ;;  %v7291_v61 = vpop.f32.mrf.mxu0 }
 0x517   : > { %v1618_v15 = vsel %vm311_vm1, %v7291_v61, -inf }
 0x518   : > { %1619 = vmax.xlane.f32.xlu1 %v1618_v15  ;;  %v7295_v28 = vpop.f32.mrf.mxu0 }
 0x519   : > { %v1627_v43 = vsel %vm311_vm1, %v7295_v28, -inf }
 0x51a   : > { %v7297_v18 = vpop.f32.mrf.mxu0 }
 0x51b   : > { %v1621_v24 = vsel %vm311_vm1, %v7297_v18, -inf }
 0x51c   : > { %1622 = vmax.xlane.f32.xlu0 %v1621_v24  ;;  %v7301_v19 = vpop.f32.mrf.mxu0 }
 0x51d   : > { %v1636_v47 = vsel %vm311_vm1, %v7301_v19, -inf }
 0x51e   : > { %v7303_v57 = vpop.f32.mrf.mxu0 }
 0x51f   : > { %v1630_v46 = vsel %vm311_vm1, %v7303_v57, -inf }
 0x520   : > { %1628 = vmax.xlane.f32.xlu0 %v1627_v43  ;;  %1631 = vmax.xlane.f32.xlu1 %v1630_v46  ;;  %v7309_v15 = vpop.f32.mrf.mxu0  ;;  %v7321_v46 = vld [vmem:[#allocation2 + $0x10] sm:$0xff] }
 0x521   : > { %v1639_v44 = vsel %vm311_vm1, %v7309_v15, -inf  ;;  %9650 = vst [vmem:[#allocation30_spill] sm:$0xff] %v7321_v46 }
 0x522   : > { %v7313_v38 = vpop.f32.mrf.mxu0 }
 0x523   : > { %v1633_v24 = vsel %vm311_vm1, %v7313_v38, -inf }
 0x524   : > { %1637 = vmax.xlane.f32.xlu1 %v1636_v47  ;;  %1634 = vmax.xlane.f32.xlu0 %v1633_v24 }
 0x528   : > { %1640 = vmax.xlane.f32.xlu0 %v1639_v44 }
 0x59f   : > { %v1626_v43 = vpop.xlane.xlu0 %1625 }
 0x5a0   : > { %v7324_v48 = vmax.f32 %v7321_v46, %v1626_v43  ;;  %v7340_v43 = vld [vmem:[#allocation2 + $0x8] sm:$0xff]  ;;  %v7353_v46 = vld [vmem:[#allocation2 + $0x20] sm:$0xff] }
 0x5a1   : > { %v1620_v47 = vpop.xlane.xlu1 %1619  ;;  %9654 = vst [vmem:[#allocation34_spill] sm:$0xff] %v7340_v43  ;;  %9657 = vst [vmem:[#allocation37_spill] sm:$0xff] %v7353_v46 }
 0x5a2   : > { %9651 = vst [vmem:[#allocation31_spill] sm:$0xff] %v7324_v48  ;;  %1990 = vst.msk [vmem:[#allocation2 + $0x10] sm:$0xff] %vm1987_vm4, %v7324_v48  ;;  %v7333_v11 = vmax.f32 %v7326_v26, %v1620_v47  ;;  %v7351_v47 = vld [vmem:[#allocation2 + $0x18] sm:$0xff] }
 0x5a3   : > { %9656 = vst [vmem:[#allocation36_spill] sm:$0xff] %v7351_v47 }
 0x5a4   : > { %9653 = vst [vmem:[#allocation33_spill] sm:$0xff] %v7333_v11  ;;  %1988 = vst.msk [vmem:[#allocation2] sm:$0xff] %vm1987_vm4, %v7333_v11  ;;  %1676 = vperm.xlu1 %6300, %v7333_v11  }
 0x5a5   : > { %v1623_v12 = vpop.xlane.xlu0 %1622 }
 0x5a6   : > { %v7343_v55 = vmax.f32 %v7340_v43, %v1623_v12 }
 0x5a8   : > { %9655 = vst [vmem:[#allocation35_spill] sm:$0xff] %v7343_v55  ;;  %1989 = vst.msk [vmem:[#allocation2 + $0x8] sm:$0xff] %vm1987_vm4, %v7343_v55  ;;  %1681 = vperm.xlu0 %6301, %v7343_v55   ;;  %1686 = vperm.xlu1 %6300, %v7324_v48   ;;  %v5729_v55 = vld [vmem:[%s6825_s22] sm:$0xff]  }
 0x5a9   : > { %v1629_v44 = vpop.xlane.xlu0 %1628  ;;  %v1632_v11 = vpop.xlane.xlu1 %1631  ;;  %v5731_v31 = vunpack.c.h.bf16 %v5729_v55 }
 0x5aa   : > { %v7356_v12 = vmax.f32 %v7351_v47, %v1629_v44  ;;  %v7359_v26 = vmax.f32 %v7353_v46, %v1632_v11  ;;  %v6409_v44 = vld [vmem:[%s6970_s26 + $0x18] sm:$0xff]   ;;  %v7372_v11 = vld [vmem:[#allocation2 + $0x28] sm:$0xff]  ;;  %v5730_v46 = vunpack.c.l.bf16 %v5729_v55 }
 0x5ab   : > { %9660 = vst [vmem:[#allocation40_spill] sm:$0xff] %v7372_v11  ;;  %v6415_v55 = vld [vmem:[%s6817_s19 + $0x8] sm:$0xff]  }
 0x5ac   : > { %9658 = vst [vmem:[#allocation38_spill] sm:$0xff] %v7356_v12  ;;  %9659 = vst [vmem:[#allocation39_spill] sm:$0xff] %v7359_v26  ;;  %1691 = vperm.xlu1 %6300, %v7356_v12   ;;  %v2029_v40 = vmul.f32 0.35355338, %v5730_v46  ;;  %v6412_v46 = vld [vmem:[%s6970_s26] sm:$0xff]  }
 0x5ad   : > { %1991 = vst.msk [vmem:[#allocation2 + $0x18] sm:$0xff] %vm1987_vm4, %v7356_v12  ;;  %1992 = vst.msk [vmem:[#allocation2 + $0x20] sm:$0xff] %vm1987_vm4, %v7359_v26  ;;  %v1635_v43 = vpop.xlane.xlu0 %1634  ;;  %v1638_v24 = vpop.xlane.xlu1 %1637 }
 0x5ae   : > { %v7377_v47 = vmax.f32 %v7372_v11, %v1635_v43  ;;  %v7380_v48 = vmax.f32 %v7374_v49, %v1638_v24  ;;  %v6410_v24 = vld [vmem:[%s6970_s26 + $0x10] sm:$0xff]   ;;  %v6413_v43 = vld [vmem:[%s6817_s19 + $0x18] sm:$0xff]  }
 0x5af   : > { %v5818_v11 = vld [vmem:[%s6825_s22 + $0x10] sm:$0xff]  }
 0x5b0   : > { %9662 = vst [vmem:[#allocation42_spill] sm:$0xff] %v7377_v47  ;;  %9663 = vst [vmem:[#allocation43_spill] sm:$0xff] %v7380_v48  ;;  %1864 = vrot.lane.b32.xlu1 %v6409_v44, %s6754_s27  ;;  %1706 = vperm.xlu0 %6301, %v7380_v48   ;;  %v6411_v44 = vld [vmem:[%s6970_s26 + $0x8] sm:$0xff]   ;;  %v5738_v50 = vunpack.c.l.bf16 %v5818_v11 }
 0x5b1   : > { %1993 = vst.msk [vmem:[#allocation2 + $0x28] sm:$0xff] %vm1987_vm4, %v7377_v47  ;;  %1994 = vst.msk [vmem:[#allocation2 + $0x30] sm:$0xff] %vm1987_vm4, %v7380_v48  ;;  %v1641_v12 = vpop.xlane.xlu0 %1640  ;;  %v2030_v48 = vmul.f32 0.35355338, %v5731_v31 }
 0x5b2   : > { %v7398_v29 = vmax.f32 %v7394_v27, %v1641_v12  ;;  %v5739_v12 = vunpack.c.h.bf16 %v5818_v11  ;;  %v5817_v11 = vld [vmem:[%s6825_s22 + $0x8] sm:$0xff]  }
 0x5b3   : > { %v7411_v49 = vpack.c.bf16 %v2030_v48, %v2029_v40  ;;  %v6414_v40 = vld [vmem:[%s6817_s19 + $0x10] sm:$0xff]   ;;  %v5735_v48 = vunpack.c.h.bf16 %v5817_v11 }
 0x5b4   : > { %9665 = vst [vmem:[#allocation45_spill] sm:$0xff] %v7398_v29  ;;  %1995 = vst.msk [vmem:[#allocation2 + $0x38] sm:$0xff] %vm1987_vm4, %v7398_v29  ;;  %1862 = vrot.lane.b32.xlu1 %v6410_v24, %s6754_s27  ;;  %2095 = vrot.lane.b32.xlu0 %v6413_v43, %s6756_s28  ;;  %v2033_v24 = vmul.f32 0.35355338, %v5738_v50  ;;  %v2034_v27 = vmul.f32 0.35355338, %v5739_v12  ;;  %v5734_v50 = vunpack.c.l.bf16 %v5817_v11 }
 0x5b5   : > { %v5819_v43 = vld [vmem:[%s6825_s22 + $0x18] sm:$0xff]  }
 0x5b6   : > { %v7416_v31 = vpack.c.bf16 %v2034_v27, %v2033_v24  ;;  %v2032_v27 = vmul.f32 0.35355338, %v5735_v48  ;;  %v5742_v12 = vunpack.c.l.bf16 %v5819_v43 }
 0x5b8   : > { %1860 = vrot.lane.b32.xlu1 %v6411_v44, %s6754_s27  ;;  %2091 = vrot.lane.b32.xlu0 %v6415_v55, %s6756_s28  ;;  %v6416_v44 = vld [vmem:[%s6817_s19] sm:$0xff]   ;;  %v2031_v55 = vmul.f32 0.35355338, %v5734_v50 }
 0x5ba   : > { %v7429_v24 = vpack.c.bf16 %v2032_v27, %v2031_v55 }
 0x5bc   : > { %1858 = vrot.lane.b32.xlu1 %v6412_v46, %s6754_s27  ;;  %2061 = vrot.lane.b32.xlu0 %v7411_v49, %s6756_s28  ;;  %v5743_v46 = vunpack.c.h.bf16 %v5819_v43 }
 0x5c0   : > { %1696 = vperm.xlu1 %6300, %v7359_v26   ;;  %2065 = vrot.lane.b32.xlu0 %v7416_v31, %s6756_s28  ;;  %v2035_v26 = vmul.f32 0.35355338, %v5742_v12 }
 0x5c4   : > { %1701 = vperm.xlu1 %6300, %v7377_v47   ;;  %v2036_v47 = vmul.f32 0.35355338, %v5743_v46 }
 0x5c8   : > { %1711 = vperm.xlu1 %6300, %v7398_v29   ;;  %v7433_v29 = vpack.c.bf16 %v2036_v47, %v2035_v26 }
 0x5cc   : > { %2093 = vrot.lane.b32.xlu1 %v6414_v40, %s6756_s28 }
 0x5d0   : > { %2089 = vrot.lane.b32.xlu1 %v6416_v44, %s6756_s28 }
 0x5d4   : > { %2063 = vrot.lane.b32.xlu1 %v7429_v24, %s6756_s28 }
 0x5d8   : > { %2067 = vrot.lane.b32.xlu1 %v7433_v29, %s6756_s28 }
 0x61f   : > { %v1677_v11 = vpop.permute.xlu1 %1676 }
 0x620   : > { %v1714_v40 = vsub.f32 %v7291_v61, %v1677_v11 }
 0x622   : > { %v1722_v50 = vmul.f32 1.442695, %v1714_v40 }
 0x623   : > { %v1682_v48 = vpop.permute.xlu0 %1681  ;;  %v1687_v43 = vpop.permute.xlu1 %1686 }
 0x624   : > { %v1715_v44 = vsub.f32 %v7297_v18, %v1682_v48  ;;  %v1716_v55 = vsub.f32 %v7287_v23, %v1687_v43  ;;  %6485 = vpow2.f32 %v1722_v50 }
 0x626   : > { %v1724_v27 = vmul.f32 1.442695, %v1715_v44  ;;  %v1726_v12 = vmul.f32 1.442695, %v1716_v55 }
 0x627   : > { %v1692_v46 = vpop.permute.xlu1 %1691 }
 0x628   : > { %6487 = vpow2.f32 %v1724_v27  ;;  %v1717_v26 = vsub.f32 %v7295_v28, %v1692_v46 }
 0x629   : > { %6489 = vpow2.f32 %v1726_v12 }
 0x62a   : > { %v1728_v47 = vmul.f32 1.442695, %v1717_v26 }
 0x62b   : > { %v1865_v41 = vpop.permute.xlu1 %1864  ;;  %v1707_v11 = vpop.permute.xlu0 %1706 }
 0x62c   : > { %6491 = vpow2.f32 %v1728_v47  ;;  %6040 = vmatprep.subr.bf16.mxu1 %v1865_v41  ;;  %v1720_v46 = vsub.f32 %v7301_v19, %v1707_v11 }
 0x62d   : > { %6041 = vmatpush3.bf16.msra.mxu1 %v1865_v41 }
 0x62f   : > { %v1863_v61 = vpop.permute.xlu1 %1862  ;;  %v2096_v48 = vpop.permute.xlu0 %2095 }
 0x630   : > { %6042 = vmatprep.subr.bf16.mxu1 %v1863_v61  ;;  %v2119_v55 = vsel %vm294_vm0, %v2096_v48, 0 }
 0x631   : > { %6043 = vmatpush3.bf16.msra.mxu1 %v1863_v61  ;;  %v7441_v40 = vpop.eup %6485 }
 0x632   : > { %9666 = vst [vmem:[#allocation46_spill] sm:$0xff] %v7441_v40 }
 0x633   : > { %v1861_v18 = vpop.permute.xlu1 %1860 }
 0x634   : > { %6044 = vmatprep.subr.bf16.mxu1 %v1861_v18 }
 0x635   : > { %v7443_v23 = vpop.eup %6487  ;;  %6045 = vmatpush3.bf16.msra.mxu1 %v1861_v18 }
 0x636   : > { %9667 = vst [vmem:[#allocation47_spill] sm:$0xff] %v7443_v23  ;;  %v1834_v28 = vpack.c.bf16 %v7443_v23, %v7441_v40  ;;  %v7447_v43 = vpop.eup %6489 }
 0x637   : > { %v1859_v50 = vpop.permute.xlu1 %1858  ;;  %9668 = vst [vmem:[#allocation48_spill] sm:$0xff] %v7447_v43 }
 0x638   : > { %6046 = vmatprep.subr.bf16.mxu1 %v1859_v50  ;;  %6048 = vmatprep.mubr.msk.bf16.mxu1 %vm311_vm1, %v1834_v28  ;;  %v1734_v28 = vmul.f32 1.442695, %v1720_v46 }
 0x639   : > { %v7450_v41 = vpop.eup %6491  ;;  %6047 = vmatpush3.bf16.msra.mxu1 %v1859_v50 }
 0x63a   : > { %9669 = vst [vmem:[#allocation49_spill] sm:$0xff] %v7450_v41  ;;  %v1835_v44 = vpack.c.bf16 %v7450_v41, %v7447_v43  ;;  %6228 = vmatprep.subr.msk.bf16.mxu1 %vm294_vm0, %v2096_v48 }
 0x63b   : > { %v1697_v27 = vpop.permute.xlu1 %1696 }
 0x63c   : > { %v1718_v12 = vsub.f32 %v7303_v57, %v1697_v27  ;;  %6049 = vmatmul.mubr.msk.bf16.vlgmr.msra.gmra.mxu1 %vm311_vm1, %v1835_v44  ;;  %v2092_v57 = vpop.permute.xlu0 %2091 }
 0x63d   : > { %6057 = vmatpush3.bf16.xpose.msra.mxu1 %v2119_v55 }
 0x63e   : > { %v1730_v26 = vmul.f32 1.442695, %v1718_v12 }
 0x63f   : > { %v1702_v47 = vpop.permute.xlu1 %1701 }
 0x640   : > { %v1719_v61 = vsub.f32 %v7313_v38, %v1702_v47  ;;  %6493 = vpow2.f32 %v1730_v26  ;;  %v2113_v38 = vsel %vm294_vm0, %v2092_v57, 0  ;;  %v2062_v46 = vpop.permute.xlu0 %2061 }
 0x642   : > { %v1732_v18 = vmul.f32 1.442695, %v1719_v61 }
 0x643   : > { %v1712_v50 = vpop.permute.xlu1 %1711 }
 0x644   : > { %6495 = vpow2.f32 %v1732_v18  ;;  %v1721_v23 = vsub.f32 %v7309_v15, %v1712_v50  ;;  %v2066_v47 = vpop.permute.xlu0 %2065 }
 0x645   : > { %6497 = vpow2.f32 %v1734_v28 }
 0x646   : > { %v1736_v48 = vmul.f32 1.442695, %v1721_v23 }
 0x647   : > { %v2094_v41 = vpop.permute.xlu1 %2093 }
 0x648   : > { %6499 = vpow2.f32 %v1736_v48  ;;  %6229 = vmatprep.subr.msk.bf16.mxu1 %vm294_vm0, %v2094_v41  ;;  %v2116_v19 = vsel %vm294_vm0, %v2094_v41, 0 }
 0x649   : > { %6059 = vmatpush3.bf16.xpose.msra.mxu1 %v2116_v19 }
 0x64a   : > { %6230 = vmatprep.subr.msk.bf16.mxu1 %vm294_vm0, %v2092_v57 }
 0x64b   : > { %v2090_v11 = vpop.permute.xlu1 %2089 }
 0x64c   : > { %v2110_v12 = vsel %vm294_vm0, %v2090_v11, 0 }
 0x64d   : > { %v7465_v44 = vpop.eup %6493 }
 0x64e   : > { %9670 = vst [vmem:[#allocation50_spill] sm:$0xff] %v7465_v44 }
 0x64f   : > { %v2064_v26 = vpop.permute.xlu1 %2063 }
 0x651   : > { %v7467_v55 = vpop.eup %6495  ;;  %6061 = vmatpush3.bf16.xpose.msra.mxu1 %v2113_v38 }
 0x652   : > { %9671 = vst [vmem:[#allocation51_spill] sm:$0xff] %v7467_v55  ;;  %v1836_v15 = vpack.c.bf16 %v7467_v55, %v7465_v44  ;;  %6231 = vmatprep.subr.msk.bf16.mxu1 %vm294_vm0, %v2090_v11  ;;  %v7472_v23 = vpop.eup %6497  ;;  %v7607_v55 = vld [vmem:[#allocation2 + $0x38] sm:$0xff] }
 0x653   : > { %9672 = vst [vmem:[#allocation52_spill] sm:$0xff] %v7472_v23  ;;  %v2068_v61 = vpop.permute.xlu1 %2067  ;;  %9696 = vst [vmem:[#allocation76_spill] sm:$0xff] %v7607_v55 }
 0x654   : > { %6052 = vmatprep.mubr.msk.bf16.mxu1 %vm311_vm1, %v1836_v15 }
 0x655   : > { %v7475_v41 = vpop.eup %6499 }
 0x656   : > { %9673 = vst [vmem:[#allocation53_spill] sm:$0xff] %v7475_v41  ;;  %v1837_v27 = vpack.c.bf16 %v7475_v41, %v7472_v23 }
 0x658   : > { %6053 = vmatmul.mubr.msk.bf16.gmra.mxu1 %vm311_vm1, %v1837_v27 }
 0x659   : > { %6063 = vmatpush3.bf16.xpose.msra.mxu1 %v2110_v12  ;;  %6064 = vmatprep.mubr.msk.bf16.mxu1 %vm294_vm0, %v2062_v46 }
 0x660   : > { %6065 = vmatmul.mubr.msk.bf16.vlgmr.msra.gmra.mxu1 %vm294_vm0, %v2064_v26 }
 0x661   : > { %6068 = vmatprep.mubr.msk.bf16.mxu1 %vm294_vm0, %v2066_v47 }
 0x668   : > { %6069 = vmatmul.mubr.msk.bf16.gmra.mxu1 %vm294_vm0, %v2068_v61 }
 0x6fc   : > { %v7485_v18 = vpop.f32.mrf.mxu1 }
 0x6fd   : > { %9674 = vst [vmem:[#allocation54_spill] sm:$0xff] %v7485_v18 }
 0x6fe   : > { %v7487_v28 = vpop.f32.mrf.mxu1 }
 0x6ff   : > { %9675 = vst [vmem:[#allocation55_spill] sm:$0xff] %v7487_v28 }
 0x700   : > { %v7489_v50 = vpop.f32.mrf.mxu1 }
 0x701   : > { %9676 = vst [vmem:[#allocation56_spill] sm:$0xff] %v7489_v50 }
 0x702   : > { %v7491_v48 = vpop.f32.mrf.mxu1 }
 0x703   : > { %9677 = vst [vmem:[#allocation57_spill] sm:$0xff] %v7491_v48 }
 0x718   : > { %v7493_v57 = vpop.f32.mrf.mxu1 }
 0x719   : > { %9678 = vst [vmem:[#allocation58_spill] sm:$0xff] %v7493_v57 }
 0x71a   : > { %v7495_v19 = vpop.f32.mrf.mxu1 }
 0x71b   : > { %9679 = vst [vmem:[#allocation59_spill] sm:$0xff] %v7495_v19  ;;  %v9550_v19 = vmov 3  }
 0x71c   : > { %v7497_v38 = vpop.f32.mrf.mxu1  ;;  %6302 = vset.pattern.permute.xlu1 %v9550_v19  ;;  %6303 = vset.pattern.permute.xlu0 %v9550_v19  ;;  %v7547_v19 = vld [vmem:[#allocation2 + $0x8] sm:$0xff] }
 0x71d   : > { %9680 = vst [vmem:[#allocation60_spill] sm:$0xff] %v7497_v38  ;;  %9685 = vst [vmem:[#allocation65_spill] sm:$0xff] %v7547_v19 }
 0x71e   : > { %v7499_v11 = vpop.f32.mrf.mxu1 }
 0x71f   : > { %9681 = vst [vmem:[#allocation61_spill] sm:$0xff] %v7499_v11 }
 0x720   : > { %v7501_v15 = vpop.f32.mrf.mxu1 }
 0x721   : > { %v2208_v47 = vsel %vm311_vm1, %v7501_v15, -inf }
 0x722   : > { %v7503_v27 = vpop.f32.mrf.mxu1 }
 0x723   : > { %v2202_v12 = vsel %vm311_vm1, %v7503_v27, -inf }
 0x724   : > { %2203 = vmax.xlane.f32.xlu0 %v2202_v12  ;;  %v7507_v46 = vpop.f32.mrf.mxu1 }
 0x725   : > { %v2211_v50 = vsel %vm311_vm1, %v7507_v46, -inf }
 0x726   : > { %v7509_v26 = vpop.f32.mrf.mxu1 }
 0x727   : > { %v2205_v61 = vsel %vm311_vm1, %v7509_v26, -inf }
 0x728   : > { %2209 = vmax.xlane.f32.xlu0 %v2208_v47  ;;  %2206 = vmax.xlane.f32.xlu1 %v2205_v61  ;;  %v7515_v38 = vpop.f32.mrf.mxu1 }
 0x729   : > { %v2220_v28 = vsel %vm311_vm1, %v7515_v38, -inf }
 0x72a   : > { %v7517_v11 = vpop.f32.mrf.mxu1 }
 0x72b   : > { %v2214_v12 = vsel %vm311_vm1, %v7517_v11, -inf }
 0x72c   : > { %2212 = vmax.xlane.f32.xlu0 %v2211_v50  ;;  %2215 = vmax.xlane.f32.xlu1 %v2214_v12  ;;  %v7523_v48 = vpop.f32.mrf.mxu1  ;;  %v7535_v50 = vld [vmem:[#allocation2] sm:$0xff] }
 0x72d   : > { %v2223_v61 = vsel %vm311_vm1, %v7523_v48, -inf  ;;  %9682 = vst [vmem:[#allocation62_spill] sm:$0xff] %v7535_v50 }
 0x72e   : > { %v7527_v57 = vpop.f32.mrf.mxu1 }
 0x72f   : > { %v2217_v47 = vsel %vm311_vm1, %v7527_v57, -inf }
 0x730   : > { %2221 = vmax.xlane.f32.xlu1 %v2220_v28  ;;  %2218 = vmax.xlane.f32.xlu0 %v2217_v47  ;;  %v7545_v47 = vld [vmem:[#allocation2 + $0x10] sm:$0xff] }
 0x731   : > { %9684 = vst [vmem:[#allocation64_spill] sm:$0xff] %v7545_v47 }
 0x734   : > { %2224 = vmax.xlane.f32.xlu0 %v2223_v61 }
 0x7ad   : > { %v2204_v12 = vpop.xlane.xlu0 %2203 }
 0x7ae   : > { %v7538_v18 = vmax.f32 %v7535_v50, %v2204_v12  ;;  %v7567_v50 = vld [vmem:[#allocation2 + $0x20] sm:$0xff] }
 0x7af   : > { %9689 = vst [vmem:[#allocation69_spill] sm:$0xff] %v7567_v50 }
 0x7b0   : > { %9683 = vst [vmem:[#allocation63_spill] sm:$0xff] %v7538_v18  ;;  %2572 = vst.msk [vmem:[#allocation2] sm:$0xff] %vm2571_vm5, %v7538_v18  ;;  %2260 = vperm.xlu1 %6302, %v7538_v18  }
 0x7b1   : > { %v2210_v23 = vpop.xlane.xlu0 %2209  ;;  %v2207_v61 = vpop.xlane.xlu1 %2206 }
 0x7b2   : > { %v7550_v44 = vmax.f32 %v7545_v47, %v2210_v23  ;;  %v7553_v12 = vmax.f32 %v7547_v19, %v2207_v61  ;;  %v7565_v23 = vld [vmem:[#allocation2 + $0x18] sm:$0xff]  ;;  %v7587_v19 = vld [vmem:[#allocation2 + $0x30] sm:$0xff] }
 0x7b3   : > { %9688 = vst [vmem:[#allocation68_spill] sm:$0xff] %v7565_v23  ;;  %9693 = vst [vmem:[#allocation73_spill] sm:$0xff] %v7587_v19 }
 0x7b4   : > { %9686 = vst [vmem:[#allocation66_spill] sm:$0xff] %v7550_v44  ;;  %9687 = vst [vmem:[#allocation67_spill] sm:$0xff] %v7553_v12  ;;  %2270 = vperm.xlu1 %6302, %v7550_v44   ;;  %2265 = vperm.xlu0 %6303, %v7553_v12  }
 0x7b5   : > { %2574 = vst.msk [vmem:[#allocation2 + $0x10] sm:$0xff] %vm2571_vm5, %v7550_v44  ;;  %2573 = vst.msk [vmem:[#allocation2 + $0x8] sm:$0xff] %vm2571_vm5, %v7553_v12  ;;  %v2213_v61 = vpop.xlane.xlu0 %2212  ;;  %v2216_v28 = vpop.xlane.xlu1 %2215  ;;  %v7585_v12 = vld [vmem:[#allocation2 + $0x28] sm:$0xff] }
 0x7b6   : > { %v7570_v47 = vmax.f32 %v7565_v23, %v2213_v61  ;;  %v7573_v41 = vmax.f32 %v7567_v50, %v2216_v28  ;;  %v6417_v61 = vld [vmem:[%s6970_s26 + $0x18] sm:$0xff]   ;;  %9692 = vst [vmem:[#allocation72_spill] sm:$0xff] %v7585_v12 }
 0x7b8   : > { %9690 = vst [vmem:[#allocation70_spill] sm:$0xff] %v7570_v47  ;;  %9691 = vst [vmem:[#allocation71_spill] sm:$0xff] %v7573_v41  ;;  %2275 = vperm.xlu1 %6302, %v7570_v47  }
 0x7b9   : > { %2575 = vst.msk [vmem:[#allocation2 + $0x18] sm:$0xff] %vm2571_vm5, %v7570_v47  ;;  %2576 = vst.msk [vmem:[#allocation2 + $0x20] sm:$0xff] %vm2571_vm5, %v7573_v41  ;;  %v2219_v28 = vpop.xlane.xlu0 %2218  ;;  %v2222_v18 = vpop.xlane.xlu1 %2221  ;;  %v6423_v47 = vld [vmem:[%s6817_s19 + $0x8] sm:$0xff]  }
 0x7ba   : > { %v7590_v23 = vmax.f32 %v7585_v12, %v2219_v28  ;;  %v7593_v44 = vmax.f32 %v7587_v19, %v2222_v18  ;;  %v6418_v18 = vld [vmem:[%s6970_s26 + $0x10] sm:$0xff]   ;;  %v6421_v28 = vld [vmem:[%s6817_s19 + $0x18] sm:$0xff]  }
 0x7bc   : > { %9694 = vst [vmem:[#allocation74_spill] sm:$0xff] %v7590_v23  ;;  %9695 = vst [vmem:[#allocation75_spill] sm:$0xff] %v7593_v44  ;;  %2448 = vrot.lane.b32.xlu1 %v6417_v61, %s6756_s28  ;;  %2290 = vperm.xlu0 %6303, %v7593_v44   ;;  %v6419_v61 = vld [vmem:[%s6970_s26 + $0x8] sm:$0xff]  }
 0x7bd   : > { %2577 = vst.msk [vmem:[#allocation2 + $0x28] sm:$0xff] %vm2571_vm5, %v7590_v23  ;;  %2578 = vst.msk [vmem:[#allocation2 + $0x30] sm:$0xff] %vm2571_vm5, %v7593_v44  ;;  %v2225_v50 = vpop.xlane.xlu0 %2224  ;;  %v6420_v44 = vld [vmem:[%s6970_s26] sm:$0xff]  }
 0x7be   : > { %v7610_v12 = vmax.f32 %v7607_v55, %v2225_v50  ;;  %v6422_v50 = vld [vmem:[%s6817_s19 + $0x10] sm:$0xff]  }
 0x7c0   : > { %9697 = vst [vmem:[#allocation77_spill] sm:$0xff] %v7610_v12  ;;  %2579 = vst.msk [vmem:[#allocation2 + $0x38] sm:$0xff] %vm2571_vm5, %v7610_v12  ;;  %2446 = vrot.lane.b32.xlu1 %v6418_v18, %s6756_s28  ;;  %2679 = vrot.lane.b32.xlu0 %v6421_v28, %s6758_s29  ;;  %v6424_v18 = vld [vmem:[%s6817_s19] sm:$0xff]  }
 0x7c4   : > { %2444 = vrot.lane.b32.xlu1 %v6419_v61, %s6756_s28  ;;  %2675 = vrot.lane.b32.xlu0 %v6423_v47, %s6758_s29 }
 0x7c8   : > { %2442 = vrot.lane.b32.xlu1 %v6420_v44, %s6756_s28  ;;  %2645 = vrot.lane.b32.xlu0 %v7411_v49, %s6758_s29 }
 0x7cc   : > { %2280 = vperm.xlu1 %6302, %v7573_v41   ;;  %2649 = vrot.lane.b32.xlu0 %v7416_v31, %s6758_s29 }
 0x7d0   : > { %2285 = vperm.xlu1 %6302, %v7590_v23  }
 0x7d4   : > { %2295 = vperm.xlu1 %6302, %v7610_v12  }
 0x7d8   : > { %2677 = vrot.lane.b32.xlu1 %v6422_v50, %s6758_s29 }
 0x7dc   : > { %2673 = vrot.lane.b32.xlu1 %v6424_v18, %s6758_s29 }
 0x7e0   : > { %2647 = vrot.lane.b32.xlu1 %v7429_v24, %s6758_s29 }
 0x7e4   : > { %2651 = vrot.lane.b32.xlu1 %v7433_v29, %s6758_s29 }
 0x82b   : > { %v2261_v44 = vpop.permute.xlu1 %2260 }
 0x82c   : > { %v2298_v47 = vsub.f32 %v7503_v27, %v2261_v44 }
 0x82e   : > { %v2306_v28 = vmul.f32 1.442695, %v2298_v47 }
 0x82f   : > { %v2266_v61 = vpop.permute.xlu0 %2265  ;;  %v2271_v43 = vpop.permute.xlu1 %2270 }
 0x830   : > { %v2299_v12 = vsub.f32 %v7509_v26, %v2266_v61  ;;  %v2300_v55 = vsub.f32 %v7501_v15, %v2271_v43  ;;  %6501 = vpow2.f32 %v2306_v28 }
 0x832   : > { %v2308_v50 = vmul.f32 1.442695, %v2299_v12  ;;  %v2310_v19 = vmul.f32 1.442695, %v2300_v55 }
 0x833   : > { %v2276_v18 = vpop.permute.xlu1 %2275 }
 0x834   : > { %6503 = vpow2.f32 %v2308_v50  ;;  %v2301_v23 = vsub.f32 %v7507_v46, %v2276_v18 }
 0x835   : > { %6505 = vpow2.f32 %v2310_v19 }
 0x836   : > { %v2312_v41 = vmul.f32 1.442695, %v2301_v23 }
 0x837   : > { %v2449_v40 = vpop.permute.xlu1 %2448  ;;  %v2291_v44 = vpop.permute.xlu0 %2290 }
 0x838   : > { %6507 = vpow2.f32 %v2312_v41  ;;  %6072 = vmatprep.subr.bf16.mxu0 %v2449_v40  ;;  %v2304_v61 = vsub.f32 %v7515_v38, %v2291_v44 }
 0x839   : > { %6073 = vmatpush3.bf16.msra.mxu0 %v2449_v40 }
 0x83b   : > { %v2447_v27 = vpop.permute.xlu1 %2446  ;;  %v2680_v19 = vpop.permute.xlu0 %2679 }
 0x83c   : > { %6074 = vmatprep.subr.bf16.mxu0 %v2447_v27  ;;  %v2703_v12 = vsel %vm294_vm0, %v2680_v19, 0 }
 0x83d   : > { %6075 = vmatpush3.bf16.msra.mxu0 %v2447_v27  ;;  %v7643_v47 = vpop.eup %6501 }
 0x83f   : > { %v2445_v26 = vpop.permute.xlu1 %2444 }
 0x840   : > { %6076 = vmatprep.subr.bf16.mxu0 %v2445_v26 }
 0x841   : > { %v7645_v43 = vpop.eup %6503  ;;  %6077 = vmatpush3.bf16.msra.mxu0 %v2445_v26 }
 0x842   : > { %9698 = vst [vmem:[#allocation78_spill] sm:$0xff] %v7645_v43  ;;  %v2418_v55 = vpack.c.bf16 %v7645_v43, %v7643_v47  ;;  %v7649_v46 = vpop.eup %6505 }
 0x843   : > { %v2443_v15 = vpop.permute.xlu1 %2442 }
 0x844   : > { %6078 = vmatprep.subr.bf16.mxu0 %v2443_v15  ;;  %6080 = vmatprep.mubr.msk.bf16.mxu0 %vm311_vm1, %v2418_v55  ;;  %v2318_v55 = vmul.f32 1.442695, %v2304_v61 }
 0x845   : > { %v7652_v40 = vpop.eup %6507  ;;  %6079 = vmatpush3.bf16.msra.mxu0 %v2443_v15 }
 0x846   : > { %9699 = vst [vmem:[#allocation79_spill] sm:$0xff] %v7652_v40  ;;  %v2419_v41 = vpack.c.bf16 %v7652_v40, %v7649_v46  ;;  %6232 = vmatprep.subr.msk.bf16.mxu0 %vm294_vm0, %v2680_v19 }
 0x847   : > { %v2281_v23 = vpop.permute.xlu1 %2280 }
 0x848   : > { %v2302_v28 = vsub.f32 %v7517_v11, %v2281_v23  ;;  %6081 = vmatmul.mubr.msk.bf16.vlgmr.msra.gmra.mxu0 %vm311_vm1, %v2419_v41  ;;  %v2676_v11 = vpop.permute.xlu0 %2675 }
 0x849   : > { %6089 = vmatpush3.bf16.xpose.msra.mxu0 %v2703_v12 }
 0x84a   : > { %v2314_v50 = vmul.f32 1.442695, %v2302_v28 }
 0x84b   : > { %v2286_v18 = vpop.permute.xlu1 %2285 }
 0x84c   : > { %v2303_v27 = vsub.f32 %v7527_v57, %v2286_v18  ;;  %6509 = vpow2.f32 %v2314_v50  ;;  %v2697_v57 = vsel %vm294_vm0, %v2676_v11, 0  ;;  %v2646_v61 = vpop.permute.xlu0 %2645 }
 0x84e   : > { %v2316_v26 = vmul.f32 1.442695, %v2303_v27 }
 0x84f   : > { %v2296_v15 = vpop.permute.xlu1 %2295 }
 0x850   : > { %6511 = vpow2.f32 %v2316_v26  ;;  %v2305_v43 = vsub.f32 %v7523_v48, %v2296_v15  ;;  %v2650_v18 = vpop.permute.xlu0 %2649 }
 0x851   : > { %6513 = vpow2.f32 %v2318_v55 }
 0x852   : > { %v2320_v19 = vmul.f32 1.442695, %v2305_v43 }
 0x853   : > { %v2678_v40 = vpop.permute.xlu1 %2677 }
 0x854   : > { %6515 = vpow2.f32 %v2320_v19  ;;  %6233 = vmatprep.subr.msk.bf16.mxu0 %vm294_vm0, %v2678_v40  ;;  %v2700_v38 = vsel %vm294_vm0, %v2678_v40, 0 }
 0x855   : > { %6091 = vmatpush3.bf16.xpose.msra.mxu0 %v2700_v38 }
 0x856   : > { %6234 = vmatprep.subr.msk.bf16.mxu0 %vm294_vm0, %v2676_v11 }
 0x857   : > { %v2674_v44 = vpop.permute.xlu1 %2673 }
 0x858   : > { %v2694_v28 = vsel %vm294_vm0, %v2674_v44, 0 }
 0x859   : > { %v7667_v41 = vpop.eup %6509 }
 0x85a   : > { %9700 = vst [vmem:[#allocation80_spill] sm:$0xff] %v7667_v41 }
 0x85b   : > { %v2648_v50 = vpop.permute.xlu1 %2647 }
 0x85d   : > { %v7669_v12 = vpop.eup %6511  ;;  %6093 = vmatpush3.bf16.xpose.msra.mxu0 %v2697_v57 }
 0x85e   : > { %9701 = vst [vmem:[#allocation81_spill] sm:$0xff] %v7669_v12  ;;  %v2420_v48 = vpack.c.bf16 %v7669_v12, %v7667_v41  ;;  %6235 = vmatprep.subr.msk.bf16.mxu0 %vm294_vm0, %v2674_v44  ;;  %v7674_v43 = vpop.eup %6513  ;;  %v9724_v41 = vmov 0  }
 0x85f   : > { %9702 = vst [vmem:[#allocation82_spill] sm:$0xff] %v7674_v43  ;;  %v2652_v27 = vpop.permute.xlu1 %2651 }
 0x860   : > { %6084 = vmatprep.mubr.msk.bf16.mxu0 %vm311_vm1, %v2420_v48 }
 0x861   : > { %v7677_v40 = vpop.eup %6515 }
 0x862   : > { %9703 = vst [vmem:[#allocation83_spill] sm:$0xff] %v7677_v40  ;;  %v2421_v23 = vpack.c.bf16 %v7677_v40, %v7674_v43 }
 0x864   : > { %6085 = vmatmul.mubr.msk.bf16.gmra.mxu0 %vm311_vm1, %v2421_v23 }
 0x865   : > { %6095 = vmatpush3.bf16.xpose.msra.mxu0 %v2694_v28  ;;  %6096 = vmatprep.mubr.msk.bf16.mxu0 %vm294_vm0, %v2646_v61 }
 0x86c   : > { %6097 = vmatmul.mubr.msk.bf16.vlgmr.msra.gmra.mxu0 %vm294_vm0, %v2648_v50 }
 0x86d   : > { %6100 = vmatprep.mubr.msk.bf16.mxu0 %vm294_vm0, %v2650_v18 }
 0x874   : > { %6101 = vmatmul.mubr.msk.bf16.gmra.mxu0 %vm294_vm0, %v2652_v27 }
 0x908   : > { %v7687_v26 = vpop.f32.mrf.mxu0 }
 0x909   : > { %9704 = vst [vmem:[#allocation84_spill] sm:$0xff] %v7687_v26 }
 0x90a   : > { %v7689_v55 = vpop.f32.mrf.mxu0 }
 0x90b   : > { %9705 = vst [vmem:[#allocation85_spill] sm:$0xff] %v7689_v55 }
 0x90c   : > { %v7691_v15 = vpop.f32.mrf.mxu0 }
 0x90d   : > { %9706 = vst [vmem:[#allocation86_spill] sm:$0xff] %v7691_v15  ;;  %v9576_v15 = vmov 4  }
 0x90e   : > { %v7693_v19 = vpop.f32.mrf.mxu0  ;;  %6304 = vset.pattern.permute.xlu0 %v9576_v15  ;;  %6305 = vset.pattern.permute.xlu1 %v9576_v15 }
 0x90f   : > { %9707 = vst [vmem:[#allocation87_spill] sm:$0xff] %v7693_v19  ;;  %v7747_v19 = vld [vmem:[#allocation2 + $0x10] sm:$0xff] }
 0x910   : > { %9714 = vst [vmem:[#allocation94_spill] sm:$0xff] %v7747_v19 }
 0x924   : > { %v7695_v11 = vpop.f32.mrf.mxu0 }
 0x925   : > { %9708 = vst [vmem:[#allocation88_spill] sm:$0xff] %v7695_v11 }
 0x926   : > { %v7697_v38 = vpop.f32.mrf.mxu0 }
 0x927   : > { %9709 = vst [vmem:[#allocation89_spill] sm:$0xff] %v7697_v38 }
 0x928   : > { %v7699_v57 = vpop.f32.mrf.mxu0 }
 0x929   : > { %9710 = vst [vmem:[#allocation90_spill] sm:$0xff] %v7699_v57 }
 0x92a   : > { %v7701_v44 = vpop.f32.mrf.mxu0 }
 0x92b   : > { %9711 = vst [vmem:[#allocation91_spill] sm:$0xff] %v7701_v44 }
 0x92c   : > { %v7703_v48 = vpop.f32.mrf.mxu0 }
 0x92d   : > { %v2792_v18 = vsel %vm311_vm1, %v7703_v48, -inf }
 0x92e   : > { %v7705_v23 = vpop.f32.mrf.mxu0 }
 0x92f   : > { %v2786_v28 = vsel %vm311_vm1, %v7705_v23, -inf }
 0x930   : > { %2787 = vmax.xlane.f32.xlu0 %v2786_v28  ;;  %v7709_v61 = vpop.f32.mrf.mxu0 }
 0x931   : > { %v2795_v26 = vsel %vm311_vm1, %v7709_v61, -inf }
 0x932   : > { %v7711_v50 = vpop.f32.mrf.mxu0 }
 0x933   : > { %v2789_v27 = vsel %vm311_vm1, %v7711_v50, -inf }
 0x934   : > { %2793 = vmax.xlane.f32.xlu0 %v2792_v18  ;;  %2790 = vmax.xlane.f32.xlu1 %v2789_v27  ;;  %v7717_v11 = vpop.f32.mrf.mxu0 }
 0x935   : > { %v2804_v18 = vsel %vm311_vm1, %v7717_v11, -inf }
 0x936   : > { %v7719_v38 = vpop.f32.mrf.mxu0 }
 0x937   : > { %v2798_v55 = vsel %vm311_vm1, %v7719_v38, -inf }
 0x938   : > { %2796 = vmax.xlane.f32.xlu0 %v2795_v26  ;;  %v7723_v28 = vpop.f32.mrf.mxu0  ;;  %v7737_v26 = vld [vmem:[#allocation2] sm:$0xff] }
 0x939   : > { %v2807_v27 = vsel %vm311_vm1, %v7723_v28, -inf  ;;  %9712 = vst [vmem:[#allocation92_spill] sm:$0xff] %v7737_v26 }
 0x93a   : > { %v7727_v57 = vpop.f32.mrf.mxu0 }
 0x93b   : > { %v2801_v44 = vsel %vm311_vm1, %v7727_v57, -inf }
 0x93c   : > { %2799 = vmax.xlane.f32.xlu0 %v2798_v55  ;;  %2802 = vmax.xlane.f32.xlu1 %v2801_v44  ;;  %v7799_v44 = vld [vmem:[#allocation2 + $0x38] sm:$0xff] }
 0x940   : > { %2805 = vmax.xlane.f32.xlu0 %v2804_v18  ;;  %2808 = vmax.xlane.f32.xlu1 %v2807_v27  ;;  %v7749_v18 = vld [vmem:[#allocation2 + $0x8] sm:$0xff] }
 0x941   : > { %9715 = vst [vmem:[#allocation95_spill] sm:$0xff] %v7749_v18 }
 0x9b9   : > { %v2788_v40 = vpop.xlane.xlu0 %2787 }
 0x9ba   : > { %v7740_v55 = vmax.f32 %v7737_v26, %v2788_v40  ;;  %v7766_v26 = vld [vmem:[#allocation2 + $0x18] sm:$0xff] }
 0x9bb   : > { %9718 = vst [vmem:[#allocation98_spill] sm:$0xff] %v7766_v26 }
 0x9bc   : > { %9713 = vst [vmem:[#allocation93_spill] sm:$0xff] %v7740_v55  ;;  %3156 = vst.msk [vmem:[#allocation2] sm:$0xff] %vm3155_vm6, %v7740_v55  ;;  %2844 = vperm.xlu0 %6304, %v7740_v55   ;;  %v7776_v55 = vld [vmem:[#allocation2 + $0x20] sm:$0xff] }
 0x9bd   : > { %v2794_v15 = vpop.xlane.xlu0 %2793  ;;  %v2791_v27 = vpop.xlane.xlu1 %2790  ;;  %9720 = vst [vmem:[#allocation100_spill] sm:$0xff] %v7776_v55 }
 0x9be   : > { %v7752_v12 = vmax.f32 %v7747_v19, %v2794_v15  ;;  %v7755_v40 = vmax.f32 %v7749_v18, %v2791_v27  ;;  %v7778_v18 = vld [vmem:[#allocation2 + $0x28] sm:$0xff] }
 0x9bf   : > { %9721 = vst [vmem:[#allocation101_spill] sm:$0xff] %v7778_v18 }
 0x9c0   : > { %9716 = vst [vmem:[#allocation96_spill] sm:$0xff] %v7752_v12  ;;  %9717 = vst [vmem:[#allocation97_spill] sm:$0xff] %v7755_v40  ;;  %2854 = vperm.xlu1 %6305, %v7752_v12  }
 0x9c1   : > { %3158 = vst.msk [vmem:[#allocation2 + $0x10] sm:$0xff] %vm3155_vm6, %v7752_v12  ;;  %3157 = vst.msk [vmem:[#allocation2 + $0x8] sm:$0xff] %vm3155_vm6, %v7755_v40  ;;  %v2797_v15 = vpop.xlane.xlu0 %2796 }
 0x9c2   : > { %v7769_v27 = vmax.f32 %v7766_v26, %v2797_v15 }
 0x9c4   : > { %9719 = vst [vmem:[#allocation99_spill] sm:$0xff] %v7769_v27  ;;  %3159 = vst.msk [vmem:[#allocation2 + $0x18] sm:$0xff] %vm3155_vm6, %v7769_v27  ;;  %2859 = vperm.xlu1 %6305, %v7769_v27  }
 0x9c5   : > { %v2800_v19 = vpop.xlane.xlu0 %2799  ;;  %v2803_v12 = vpop.xlane.xlu1 %2802 }
 0x9c6   : > { %v7781_v43 = vmax.f32 %v7776_v55, %v2800_v19  ;;  %v7784_v15 = vmax.f32 %v7778_v18, %v2803_v12  ;;  %v6425_v12 = vld [vmem:[%s6970_s26 + $0x18] sm:$0xff]   ;;  %v7797_v19 = vld [vmem:[#allocation2 + $0x30] sm:$0xff] }
 0x9c7   : > { %9723 = vst [vmem:[#allocation103_spill] sm:$0xff] %v7797_v19 }
 0x9c8   : > { %9722 = vst [vmem:[#allocation102_spill] sm:$0xff] %v7784_v15  ;;  %3160 = vst.msk [vmem:[#allocation2 + $0x20] sm:$0xff] %vm3155_vm6, %v7781_v43  ;;  %2849 = vperm.xlu1 %6305, %v7755_v40   ;;  %2869 = vperm.xlu0 %6304, %v7784_v15   ;;  %v6428_v40 = vld [vmem:[%s6970_s26 + $0x8] sm:$0xff]  }
 0x9c9   : > { %3161 = vst.msk [vmem:[#allocation2 + $0x28] sm:$0xff] %vm3155_vm6, %v7784_v15  ;;  %v2806_v26 = vpop.xlane.xlu0 %2805  ;;  %v2809_v55 = vpop.xlane.xlu1 %2808  ;;  %v5826_v15 = vld [vmem:[%s6825_s22 + $0x8] sm:$0xff]  }
 0x9ca   : > { %v7802_v27 = vmax.f32 %v7797_v19, %v2806_v26  ;;  %v7805_v18 = vmax.f32 %v7799_v44, %v2809_v55  ;;  %v6426_v26 = vld [vmem:[%s6970_s26 + $0x10] sm:$0xff]   ;;  %v6429_v19 = vld [vmem:[%s6817_s19] sm:$0xff]  }
 0x9cb   : > { %v6427_v55 = vld [vmem:[%s6817_s19 + $0x10] sm:$0xff]  }
 0x9cc   : > { %3162 = vst.msk [vmem:[#allocation2 + $0x30] sm:$0xff] %vm3155_vm6, %v7802_v27  ;;  %3163 = vst.msk [vmem:[#allocation2 + $0x38] sm:$0xff] %vm3155_vm6, %v7805_v18  ;;  %3032 = vrot.lane.b32.xlu1 %v6425_v12, %s6758_s29  ;;  %2879 = vperm.xlu0 %6304, %v7805_v18   ;;  %v6430_v12 = vld [vmem:[%s6970_s26] sm:$0xff]  }
 0x9d0   : > { %3030 = vrot.lane.b32.xlu1 %v6426_v26, %s6758_s29  ;;  %3261 = vrot.lane.b32.xlu0 %v6427_v55, %s6760_s30  ;;  %v6431_v26 = vld [vmem:[%s6817_s19 + $0x18] sm:$0xff]   ;;  %v6432_v55 = vld [vmem:[%s6817_s19 + $0x8] sm:$0xff]  }
 0x9d1   : > { %6306 = vset.pattern.permute.xlu0 %v9724_v41 }
 0x9d4   : > { %3028 = vrot.lane.b32.xlu1 %v6428_v40, %s6758_s29  ;;  %3257 = vrot.lane.b32.xlu0 %v6429_v19, %s6760_s30  ;;  %v631_v40 = vsel %vm311_vm1, %v7048_v30, 0.0  ;;  %v637_v19 = vsel %vm311_vm1, %v7054_v36, 0.0  ;;  %v634_v30 = vsel %vm311_vm1, %v7052_v34, 0.0  ;;  %v9728_v34 = vsub.f32 %v6922_v56, %v6939_v62 }
 0x9d5   : > { %v9732_v62 = vsub.f32 %v6985_v17, %v7000_v22 }
 0x9d8   : > { %3026 = vrot.lane.b32.xlu1 %v6430_v12, %s6758_s29  ;;  %3231 = vrot.lane.b32.xlu0 %v7429_v24, %s6760_s30  ;;  %v622_v24 = vsel %vm311_vm1, %v7029_v39, 0.0  ;;  %v619_v39 = vsel %vm311_vm1, %v7026_v33, 0.0  ;;  %v640_v33 = vsel %vm311_vm1, %v7050_v32, 0.0 }
 0x9dc   : > { %2874 = vperm.xlu1 %6305, %v7802_v27   ;;  %3235 = vrot.lane.b32.xlu0 %v7433_v29, %s6760_s30  ;;  %v625_v29 = vsel %vm311_vm1, %v7034_v13, 0.0  ;;  %v628_v13 = vsel %vm311_vm1, %v7038_v42, 0.0  ;;  %v9727_v42 = vsub.f32 %v6915_v51, %v6920_v54  ;;  %v9731_v51 = vsub.f32 %v6962_v8, %v6980_v14 }
 0x9de   : > { %v535_v36 = vmul.f32 1.442695, %v9727_v42  ;;  %v543_v54 = vmul.f32 1.442695, %v9731_v51 }
 0x9e0   : > { %2864 = vperm.xlu1 %6305, %v7781_v43  }
 0x9e4   : > { %3263 = vrot.lane.b32.xlu1 %v6431_v26, %s6760_s30  ;;  %v537_v26 = vmul.f32 1.442695, %v9728_v34 }
 0x9e5   : > { %6307 = vset.pattern.permute.xlu1 %v9724_v41  ;;  %v6440_v41 = vld [vmem:[%s6817_s19] sm:$0xff]  }
 0x9e8   : > { %3259 = vrot.lane.b32.xlu1 %v6432_v55, %s6760_s30  ;;  %v9729_v55 = vsub.f32 %v6950_v3, %v6960_v7  ;;  %v545_v3 = vmul.f32 1.442695, %v9732_v62 }
 0x9ec   : > { %3229 = vrot.lane.b32.xlu1 %v7411_v49, %s6760_s30  ;;  %v9725_v49 = vsub.f32 %v6917_v53, %v6929_v58  ;;  %v9726_v53 = vsub.f32 %v6932_v60, %v6948_v2  ;;  %v539_v60 = vmul.f32 1.442695, %v9729_v55  ;;  %v9730_v2 = vsub.f32 %v6964_v9, %v6983_v16 }
 0x9ee   : > { %v533_v58 = vmul.f32 1.442695, %v9726_v53  ;;  %v541_v32 = vmul.f32 1.442695, %v9730_v2 }
 0x9f0   : > { %3233 = vrot.lane.b32.xlu1 %v7416_v31, %s6760_s30  ;;  %v531_v31 = vmul.f32 1.442695, %v9725_v49 }
 0x9f2   : > { %6517 = vpow2.f32 %v531_v31 }
 0x9f3   : > { %6519 = vpow2.f32 %v533_v58 }
 0x9f4   : > { %6521 = vpow2.f32 %v535_v36 }
 0x9f5   : > { %6523 = vpow2.f32 %v537_v26 }
 0x9f6   : > { %6525 = vpow2.f32 %v539_v60 }
 0x9f7   : > { %6527 = vpow2.f32 %v541_v32 }
 0x9f8   : > { %6529 = vpow2.f32 %v543_v54 }
 0x9f9   : > { %6531 = vpow2.f32 %v545_v3 }
 0x9fb   : > { %623 = vadd.xlane.f32.xlu0 %v622_v24 }
 0x9ff   : > { %626 = vadd.xlane.f32.xlu0 %v625_v29  ;;  %v7860_v12 = vpop.eup %6517 }
 0xa00   : > { %v7880_v24 = vpop.eup %6519 }
 0xa01   : > { %v7886_v56 = vpop.eup %6521 }
 0xa02   : > { %v7892_v7 = vpop.eup %6523 }
 0xa03   : > { %632 = vadd.xlane.f32.xlu0 %v631_v40  ;;  %v7895_v16 = vpop.eup %6525 }
 0xa04   : > { %v7899_v40 = vpop.eup %6527 }
 0xa05   : > { %v7904_v31 = vpop.eup %6529 }
 0xa06   : > { %v7908_v58 = vpop.eup %6531 }
 0xa07   : > { %638 = vadd.xlane.f32.xlu0 %v637_v19 }
 0xa14   : > { %620 = vadd.xlane.f32.xlu1 %v619_v39 }
 0xa18   : > { %629 = vadd.xlane.f32.xlu1 %v628_v13 }
 0xa1c   : > { %635 = vadd.xlane.f32.xlu1 %v634_v30 }
 0xa1d   : > { %661 = vperm.xlu0 %6306, %v7860_v12  }
 0xa20   : > { %641 = vadd.xlane.f32.xlu1 %v640_v33 }
 0xa31   : > { %666 = vperm.xlu1 %6307, %v7880_v24  }
 0xa35   : > { %671 = vperm.xlu1 %6307, %v7886_v56  }
 0xa37   : > { %v2845_v8 = vpop.permute.xlu0 %2844 }
 0xa38   : > { %v2882_v14 = vsub.f32 %v7705_v23, %v2845_v8 }
 0xa39   : > { %676 = vperm.xlu1 %6307, %v7892_v7  }
 0xa3a   : > { %v2890_v22 = vmul.f32 1.442695, %v2882_v14 }
 0xa3b   : > { %v2855_v9 = vpop.permute.xlu1 %2854 }
 0xa3c   : > { %v2884_v17 = vsub.f32 %v7703_v48, %v2855_v9  ;;  %6533 = vpow2.f32 %v2890_v22 }
 0xa3d   : > { %681 = vperm.xlu1 %6307, %v7895_v16  }
 0xa3e   : > { %v2894_v30 = vmul.f32 1.442695, %v2884_v17 }
 0xa3f   : > { %v2860_v29 = vpop.permute.xlu1 %2859 }
 0xa40   : > { %v2885_v19 = vsub.f32 %v7709_v61, %v2860_v29  ;;  %v9733_v61 = vmov 1  }
 0xa41   : > { %686 = vperm.xlu1 %6307, %v7899_v40  }
 0xa42   : > { %v2896_v39 = vmul.f32 1.442695, %v2885_v19 }
 0xa43   : > { %v2850_v49 = vpop.permute.xlu1 %2849  ;;  %v2870_v33 = vpop.permute.xlu0 %2869 }
 0xa44   : > { %v2883_v13 = vsub.f32 %v7711_v50, %v2850_v49  ;;  %6535 = vpow2.f32 %v2896_v39  ;;  %v2887_v55 = vsub.f32 %v7727_v57, %v2870_v33 }
 0xa45   : > { %691 = vperm.xlu1 %6307, %v7904_v31  }
 0xa46   : > { %v2892_v23 = vmul.f32 1.442695, %v2883_v13  ;;  %v2900_v9 = vmul.f32 1.442695, %v2887_v55  ;;  %v1162_v13 = vsel %vm311_vm1, %v7227_v25, 0.0 }
 0xa47   : > { %v3033_v53 = vpop.permute.xlu1 %3032  ;;  %v2880_v60 = vpop.permute.xlu0 %2879 }
 0xa48   : > { %6104 = vmatprep.subr.bf16.mxu1 %v3033_v53  ;;  %6537 = vpow2.f32 %v2892_v23  ;;  %v2889_v3 = vsub.f32 %v7723_v28, %v2880_v60 }
 0xa49   : > { %696 = vperm.xlu1 %6307, %v7908_v58   ;;  %6105 = vmatpush3.bf16.msra.mxu1 %v3033_v53  ;;  %6539 = vpow2.f32 %v2894_v30  ;;  %v7912_v36 = vpop.eup %6533 }
 0xa4a   : > { %v2904_v29 = vmul.f32 1.442695, %v2889_v3  ;;  %6541 = vpow2.f32 %v2900_v9  ;;  %v484_v3 = vld [vmem:[#allocation3 + $0x10] sm:$0xff] }
 0xa4b   : > { %v3031_v48 = vpop.permute.xlu1 %3030  ;;  %v3262_v22 = vpop.permute.xlu0 %3261 }
 0xa4c   : > { %6106 = vmatprep.subr.bf16.mxu1 %v3031_v48  ;;  %v3284_v28 = vsel %vm294_vm0, %v3262_v22, 0 }
 0xa4d   : > { %6107 = vmatpush3.bf16.msra.mxu1 %v3031_v48  ;;  %6308 = vset.pattern.permute.xlu1 %v9733_v61 }
 0xa4f   : > { %v3029_v50 = vpop.permute.xlu1 %3028 }
 0xa50   : > { %6108 = vmatprep.subr.bf16.mxu1 %v3029_v50 }
 0xa51   : > { %6109 = vmatpush3.bf16.msra.mxu1 %v3029_v50  ;;  %v7914_v34 = vpop.eup %6535 }
 0xa53   : > { %v3027_v42 = vpop.permute.xlu1 %3026 }
 0xa54   : > { %6110 = vmatprep.subr.bf16.mxu1 %v3027_v42 }
 0xa55   : > { %6111 = vmatpush3.bf16.msra.mxu1 %v3027_v42  ;;  %v7916_v26 = vpop.eup %6537  ;;  %v3258_v42 = vpop.permute.xlu0 %3257 }
 0xa56   : > { %v7919_v2 = vpop.eup %6539  ;;  %v3002_v51 = vpack.c.bf16 %v7916_v26, %v7912_v36  ;;  %v3278_v25 = vsel %vm294_vm0, %v3258_v42, 0 }
 0xa57   : > { %v2875_v32 = vpop.permute.xlu1 %2874  ;;  %v3003_v54 = vpack.c.bf16 %v7914_v34, %v7919_v2 }
 0xa58   : > { %v2888_v62 = vsub.f32 %v7717_v11, %v2875_v32  ;;  %6112 = vmatprep.mubr.msk.bf16.mxu1 %vm311_vm1, %v3002_v51  ;;  %v483_v51 = vld [vmem:[#allocation3 + $0x8] sm:$0xff] }
 0xa59   : > { %6113 = vmatmul.mubr.msk.bf16.vlgmr.msra.gmra.mxu1 %vm311_vm1, %v3003_v54  ;;  %v3232_v55 = vpop.permute.xlu0 %3231  ;;  %v612_v54 = vmul.f32 %v7880_v24, %v483_v51 }
 0xa5a   : > { %v2902_v57 = vmul.f32 1.442695, %v2888_v62 }
 0xa5b   : > { %v2865_v8 = vpop.permute.xlu1 %2864 }
 0xa5c   : > { %v2886_v14 = vsub.f32 %v7719_v38, %v2865_v8  ;;  %6543 = vpow2.f32 %v2902_v57  ;;  %v7935_v38 = vpop.eup %6541  ;;  %v613_v57 = vmul.f32 %v7886_v56, %v484_v3  ;;  %v651_v56 = vld [vmem:[#allocation4] sm:$0xff] }
 0xa5d   : > { %v3236_v60 = vpop.permute.xlu0 %3235 }
 0xa5e   : > { %v2898_v19 = vmul.f32 1.442695, %v2886_v14  ;;  %v486_v14 = vld [vmem:[#allocation3 + $0x20] sm:$0xff] }
 0xa5f   : > { %v3264_v17 = vpop.permute.xlu1 %3263 }
 0xa60   : > { %6545 = vpow2.f32 %v2898_v19  ;;  %6236 = vmatprep.subr.msk.bf16.mxu1 %vm294_vm0, %v3264_v17  ;;  %v3287_v11 = vsel %vm294_vm0, %v3264_v17, 0  ;;  %v615_v19 = vmul.f32 %v7895_v16, %v486_v14  ;;  %v653_v14 = vld [vmem:[#allocation4 + $0x10] sm:$0xff] }
 0xa61   : > { %6547 = vpow2.f32 %v2904_v29  ;;  %6121 = vmatpush3.bf16.xpose.msra.mxu1 %v3287_v11 }
 0xa62   : > { %6237 = vmatprep.subr.msk.bf16.mxu1 %vm294_vm0, %v3262_v22  ;;  %v488_v22 = vld [vmem:[#allocation3 + $0x30] sm:$0xff] }
 0xa63   : > { %v3260_v49 = vpop.permute.xlu1 %3259  ;;  %v617_v24 = vmul.f32 %v7904_v31, %v488_v22 }
 0xa64   : > { %v3281_v50 = vsel %vm294_vm0, %v3260_v49, 0 }
 0xa67   : > { %v3230_v33 = vpop.permute.xlu1 %3229 }
 0xa69   : > { %6123 = vmatpush3.bf16.xpose.msra.mxu1 %v3284_v28  ;;  %v7937_v39 = vpop.eup %6543 }
 0xa6a   : > { %6238 = vmatprep.subr.msk.bf16.mxu1 %vm294_vm0, %v3260_v49 }
 0xa6b   : > { %v3234_v32 = vpop.permute.xlu1 %3233 }
 0xa6d   : > { %v7941_v30 = vpop.eup %6545  ;;  %1163 = vadd.xlane.f32.xlu1 %v1162_v13 }
 0xa6e   : > { %v7943_v23 = vpop.eup %6547  ;;  %v3004_v53 = vpack.c.bf16 %v7935_v38, %v7941_v30 }
 0xa6f   : > { %v3005_v48 = vpack.c.bf16 %v7943_v23, %v7937_v39 }
 0xa70   : > { %6116 = vmatprep.mubr.msk.bf16.mxu1 %vm311_vm1, %v3004_v53 }
 0xa71   : > { %6117 = vmatmul.mubr.msk.bf16.gmra.mxu1 %vm311_vm1, %v3005_v48  ;;  %v482_v48 = vld [vmem:[#allocation3] sm:$0xff] }
 0xa72   : > { %6125 = vmatpush3.bf16.xpose.msra.mxu1 %v3281_v50  ;;  %6128 = vmatprep.mubr.msk.bf16.mxu1 %vm294_vm0, %v3230_v33  ;;  %v611_v33 = vmul.f32 %v7860_v12, %v482_v48 }
 0xa73   : > { %6239 = vmatprep.subr.msk.bf16.mxu1 %vm294_vm0, %v3258_v42  ;;  %v485_v42 = vld [vmem:[#allocation3 + $0x18] sm:$0xff] }
 0xa74   : > { %v614_v31 = vmul.f32 %v7892_v7, %v485_v42  ;;  %v658_v42 = vld [vmem:[#allocation4 + $0x38] sm:$0xff] }
 0xa7a   : > { %6127 = vmatpush3.bf16.xpose.msra.mxu1 %v3278_v25 }
 0xa81   : > { %6129 = vmatmul.mubr.msk.bf16.vlgmr.msra.gmra.mxu1 %vm294_vm0, %v3232_v55 }
 0xa82   : > { %6132 = vmatprep.mubr.msk.bf16.mxu1 %vm294_vm0, %v3234_v32 }
 0xa84   : > { %v624_v62 = vpop.xlane.xlu0 %623 }
 0xa85   : > { %v644_v9 = vadd.f32 %v624_v62, %v612_v54 }
 0xa87   : > { %830 = vst.msk [vmem:[#allocation3 + $0x8] sm:$0xff] %vm820_vm2, %v644_v9 }
 0xa88   : > { %v627_v8 = vpop.xlane.xlu0 %626 }
 0xa89   : > { %v645_v29 = vadd.f32 %v627_v8, %v613_v57  ;;  %6133 = vmatmul.mubr.msk.bf16.gmra.mxu1 %vm294_vm0, %v3236_v60  ;;  %v487_v60 = vld [vmem:[#allocation3 + $0x28] sm:$0xff] }
 0xa8a   : > { %v616_v51 = vmul.f32 %v7899_v40, %v487_v60  ;;  %v652_v57 = vld [vmem:[#allocation4 + $0x8] sm:$0xff] }
 0xa8b   : > { %831 = vst.msk [vmem:[#allocation3 + $0x10] sm:$0xff] %vm820_vm2, %v645_v29 }
 0xa8c   : > { %v633_v17 = vpop.xlane.xlu0 %632 }
 0xa8d   : > { %v647_v11 = vadd.f32 %v633_v17, %v615_v19  ;;  %v654_v17 = vld [vmem:[#allocation4 + $0x18] sm:$0xff] }
 0xa8f   : > { %833 = vst.msk [vmem:[#allocation3 + $0x20] sm:$0xff] %vm820_vm2, %v647_v11 }
 0xa90   : > { %v639_v28 = vpop.xlane.xlu0 %638 }
 0xa91   : > { %v649_v49 = vadd.f32 %v639_v28, %v617_v24  ;;  %v655_v24 = vld [vmem:[#allocation4 + $0x20] sm:$0xff] }
 0xa93   : > { %835 = vst.msk [vmem:[#allocation3 + $0x30] sm:$0xff] %vm820_vm2, %v649_v49 }
 0xa98   : > { %v662_v13 = vpop.permute.xlu0 %661 }
 0xa99   : > { %v699_v53 = vmul.f32 %v662_v13, %v651_v56  ;;  %v656_v13 = vld [vmem:[#allocation4 + $0x28] sm:$0xff] }
 0xa9b   : > { %v812_v50 = vadd.f32 %v7071_v35, %v699_v53  ;;  %v489_v35 = vld [vmem:[#allocation3 + $0x38] sm:$0xff] }
 0xa9c   : > { %v618_v12 = vmul.f32 %v7908_v58, %v489_v35 }
 0xa9d   : > { %837 = vst.msk [vmem:[#allocation4] sm:$0xff] %vm294_vm0, %v812_v50  ;;  %v621_v16 = vpop.xlane.xlu1 %620  ;;  %v657_v50 = vld [vmem:[#allocation4 + $0x30] sm:$0xff] }
 0xa9e   : > { %v643_v25 = vadd.f32 %v621_v16, %v611_v33 }
 0xaa0   : > { %829 = vst.msk [vmem:[#allocation3] sm:$0xff] %vm820_vm2, %v643_v25 }
 0xaa1   : > { %v630_v55 = vpop.xlane.xlu1 %629 }
 0xaa2   : > { %v646_v32 = vadd.f32 %v630_v55, %v614_v31  ;;  %v9734_v55 = vsub.f32 %v7119_v52, %v7122_v21 }
 0xaa4   : > { %832 = vst.msk [vmem:[#allocation3 + $0x18] sm:$0xff] %vm820_vm2, %v646_v32  ;;  %v1074_v60 = vmul.f32 1.442695, %v9734_v55  ;;  %v9741_v55 = vld [vmem:[#allocation6_spill] sm:$0xff] }
 0xaa5   : > { %v636_v54 = vpop.xlane.xlu1 %635 }
 0xaa6   : > { %v648_v62 = vadd.f32 %v636_v54, %v616_v51  ;;  %6549 = vpow2.f32 %v1074_v60  ;;  %v9742_v60 = vld [vmem:[#allocation8_spill] sm:$0xff] }
 0xaa8   : > { %834 = vst.msk [vmem:[#allocation3 + $0x28] sm:$0xff] %vm820_vm2, %v648_v62 }
 0xaa9   : > { %v642_v3 = vpop.xlane.xlu1 %641 }
 0xaaa   : > { %v650_v9 = vadd.f32 %v642_v3, %v618_v12 }
 0xaac   : > { %836 = vst.msk [vmem:[#allocation3 + $0x38] sm:$0xff] %vm820_vm2, %v650_v9  ;;  %vm5296_vm2 = vcmask 130048  }
 0xaad   : > { %v667_v7 = vpop.permute.xlu1 %666 }
 0xaae   : > { %v700_v8 = vmul.f32 %v667_v7, %v652_v57 }
 0xab0   : > { %v813_v29 = vadd.f32 %v7075_v0, %v700_v8 }
 0xab1   : > { %v672_v19 = vpop.permute.xlu1 %671 }
 0xab2   : > { %838 = vst.msk [vmem:[#allocation4 + $0x8] sm:$0xff] %vm294_vm0, %v813_v29  ;;  %v701_v40 = vmul.f32 %v672_v19, %v653_v14 }
 0xab3   : > { %v6550_v32 = vpop.eup %6549 }
 0xab4   : > { %v814_v22 = vadd.f32 %v7069_v59, %v701_v40 }
 0xab5   : > { %v677_v11 = vpop.permute.xlu1 %676 }
 0xab6   : > { %839 = vst.msk [vmem:[#allocation4 + $0x10] sm:$0xff] %vm294_vm0, %v814_v22  ;;  %v702_v58 = vmul.f32 %v677_v11, %v654_v17  ;;  %v1168_v17 = vsel %vm311_vm1, %v7234_v4, 0.0  ;;  %v1174_v11 = vsel %vm311_vm1, %v7254_v45, 0.0 }
 0xab8   : > { %v815_v28 = vadd.f32 %v7073_v63, %v702_v58 }
 0xab9   : > { %v682_v49 = vpop.permute.xlu1 %681 }
 0xaba   : > { %840 = vst.msk [vmem:[#allocation4 + $0x18] sm:$0xff] %vm294_vm0, %v815_v28  ;;  %v703_v56 = vmul.f32 %v682_v49, %v655_v24  ;;  %v1165_v24 = vsel %vm311_vm1, %v7231_v1, 0.0  ;;  %v1180_v28 = vsel %vm311_vm1, %v7252_v20, 0.0  ;;  %v9735_v49 = vld [vmem:[#allocation19_spill] sm:$0xff]  ;;  %v9593_v1 = vmov 5  }
 0xabb   : > { %6310 = vset.pattern.permute.xlu0 %v9593_v1 }
 0xabc   : > { %v816_v0 = vadd.f32 %v7079_v6, %v703_v56  ;;  %v1171_v56 = vsel %vm311_vm1, %v9735_v49, 0.0  ;;  %v9751_v49 = vld [vmem:[#allocation17_spill] sm:$0xff] }
 0xabd   : > { %v687_v53 = vpop.permute.xlu1 %686 }
 0xabe   : > { %841 = vst.msk [vmem:[#allocation4 + $0x20] sm:$0xff] %vm294_vm0, %v816_v0  ;;  %v704_v48 = vmul.f32 %v687_v53, %v656_v13  ;;  %v9736_v13 = vld [vmem:[#allocation9_spill] sm:$0xff]  ;;  %v9737_v0 = vld [vmem:[#allocation10_spill] sm:$0xff] }
 0xabf   : > { %v9738_v45 = vsub.f32 %v9736_v13, %v9737_v0  ;;  %v8075_v0 = vld [vmem:[#allocation2] sm:$0xff] }
 0xac0   : > { %v817_v59 = vadd.f32 %v7083_v10, %v704_v48  ;;  %v1026_v10 = vld [vmem:[#allocation3] sm:$0xff] }
 0xac1   : > { %v692_v33 = vpop.permute.xlu1 %691  ;;  %v1154_v51 = vmul.f32 %v6550_v32, %v1026_v10  ;;  %v1078_v53 = vmul.f32 1.442695, %v9738_v45  ;;  %v9743_v10 = vsub.f32 %v9741_v55, %v9742_v60 }
 0xac2   : > { %842 = vst.msk [vmem:[#allocation4 + $0x28] sm:$0xff] %vm294_vm0, %v817_v59  ;;  %v705_v16 = vmul.f32 %v692_v33, %v657_v50  ;;  %v9739_v50 = vld [vmem:[#allocation20_spill] sm:$0xff]  ;;  %v9740_v33 = vld [vmem:[#allocation21_spill] sm:$0xff] }
 0xac3   : > { %6551 = vpow2.f32 %v1078_v53  ;;  %v1177_v59 = vsel %vm311_vm1, %v9739_v50, 0.0  ;;  %v1028_v50 = vld [vmem:[#allocation3 + $0x10] sm:$0xff] }
 0xac4   : > { %v818_v63 = vadd.f32 %v7077_v5, %v705_v16  ;;  %v1183_v16 = vsel %vm311_vm1, %v9740_v33, 0.0 }
 0xac5   : > { %v697_v25 = vpop.permute.xlu1 %696 }
 0xac6   : > { %843 = vst.msk [vmem:[#allocation4 + $0x30] sm:$0xff] %vm294_vm0, %v818_v63  ;;  %v706_v31 = vmul.f32 %v697_v25, %v658_v42  ;;  %v6433_v63 = vld [vmem:[%s6970_s26 + $0x8] sm:$0xff]  }
 0xac8   : > { %v819_v6 = vadd.f32 %v7081_v37, %v706_v31 }
 0xaca   : > { %844 = vst.msk [vmem:[#allocation4 + $0x38] sm:$0xff] %vm294_vm0, %v819_v6 }
 0xad0   : > { %v6552_v42 = vpop.eup %6551 }
 0xad1   : > { %v1156_v60 = vmul.f32 %v6552_v42, %v1028_v50 }
 0xaf6   : > { %v1164_v54 = vpop.xlane.xlu1 %1163 }
 0xaf7   : > { %v1186_v35 = vadd.f32 %v1164_v54, %v1154_v51 }
 0xaf9   : > { %1412 = vst.msk [vmem:[#allocation3] sm:$0xff] %vm1403_vm3, %v1186_v35  ;;  %v9744_v35 = vld [vmem:[#allocation11_spill] sm:$0xff] }
 0xb19   : > { %v7994_v5 = vpop.f32.mrf.mxu1 }
 0xb1b   : > { %v7996_v62 = vpop.f32.mrf.mxu1 }
 0xb1d   : > { %v7998_v12 = vpop.f32.mrf.mxu1 }
 0xb1f   : > { %v8000_v37 = vpop.f32.mrf.mxu1 }
 0xb31   : > { %v8002_v3 = vpop.f32.mrf.mxu1 }
 0xb33   : > { %v8004_v52 = vpop.f32.mrf.mxu1 }
 0xb35   : > { %v8006_v21 = vpop.f32.mrf.mxu1 }
 0xb37   : > { %v8008_v9 = vpop.f32.mrf.mxu1 }
 0xb41   : > { %v8010_v57 = vpop.f32.mrf.mxu1 }
 0xb42   : > { %v3376_v22 = vsel %vm311_vm1, %v8010_v57, -inf }
 0xb43   : > { %v8012_v7 = vpop.f32.mrf.mxu1 }
 0xb44   : > { %v3370_v8 = vsel %vm311_vm1, %v8012_v7, -inf }
 0xb45   : > { %3371 = vmax.xlane.f32.xlu0 %v3370_v8  ;;  %v8016_v14 = vpop.f32.mrf.mxu1  ;;  %v9745_v8 = vld [vmem:[#allocation13_spill] sm:$0xff] }
 0xb46   : > { %v3379_v29 = vsel %vm311_vm1, %v8016_v14, -inf }
 0xb47   : > { %3380 = vmax.xlane.f32.xlu1 %v3379_v29  ;;  %v8020_v19 = vpop.f32.mrf.mxu1  ;;  %v9746_v29 = vsub.f32 %v9744_v35, %v9745_v8 }
 0xb48   : > { %v3373_v40 = vsel %vm311_vm1, %v8020_v19, -inf }
 0xb49   : > { %3374 = vmax.xlane.f32.xlu0 %v3373_v40  ;;  %v8030_v58 = vpop.f32.mrf.mxu1  ;;  %v1082_v40 = vmul.f32 1.442695, %v9746_v29  ;;  %v8104_v29 = vld [vmem:[#allocation2 + $0x10] sm:$0xff] }
 0xb4a   : > { %v3388_v20 = vsel %vm311_vm1, %v8030_v58, -inf }
 0xb4b   : > { %1169 = vadd.xlane.f32.xlu1 %v1168_v17  ;;  %v8036_v4 = vpop.f32.mrf.mxu1  ;;  %v9747_v17 = vld [vmem:[#allocation5_spill] sm:$0xff] }
 0xb4c   : > { %v3382_v48 = vsel %vm311_vm1, %v8036_v4, -inf }
 0xb4d   : > { %3377 = vmax.xlane.f32.xlu0 %v3376_v22  ;;  %v8054_v25 = vpop.f32.mrf.mxu1  ;;  %v9748_v22 = vld [vmem:[#allocation7_spill] sm:$0xff] }
 0xb4e   : > { %v3391_v31 = vsel %vm311_vm1, %v8054_v25, -inf }
 0xb4f   : > { %1175 = vadd.xlane.f32.xlu1 %v1174_v11  ;;  %v8058_v6 = vpop.f32.mrf.mxu1  ;;  %v9749_v11 = vsub.f32 %v9747_v17, %v9748_v22  ;;  %v1027_v17 = vld [vmem:[#allocation3 + $0x8] sm:$0xff]  ;;  %v9757_v22 = vld [vmem:[#allocation12_spill] sm:$0xff] }
 0xb50   : > { %v3385_v51 = vsel %vm311_vm1, %v8058_v6, -inf }
 0xb51   : > { %1166 = vadd.xlane.f32.xlu0 %v1165_v24  ;;  %v1076_v24 = vmul.f32 1.442695, %v9749_v11  ;;  %v9758_v11 = vld [vmem:[#allocation14_spill] sm:$0xff] }
 0xb53   : > { %1181 = vadd.xlane.f32.xlu1 %v1180_v28  ;;  %v9750_v28 = vld [vmem:[#allocation15_spill] sm:$0xff] }
 0xb55   : > { %1172 = vadd.xlane.f32.xlu0 %v1171_v56  ;;  %v9752_v56 = vsub.f32 %v9750_v28, %v9751_v49 }
 0xb57   : > { %v1086_v13 = vmul.f32 1.442695, %v9752_v56 }
 0xb59   : > { %3383 = vmax.xlane.f32.xlu0 %v3382_v48  ;;  %v8080_v48 = vld [vmem:[#allocation2 + $0x18] sm:$0xff] }
 0xb5a   : > { %9753 = vst [vmem:[#allocation19_spill] sm:$0xff] %v8080_v48 }
 0xb5d   : > { %3389 = vmax.xlane.f32.xlu0 %v3388_v20 }
 0xb61   : > { %1178 = vadd.xlane.f32.xlu0 %v1177_v59  ;;  %v6439_v59 = vld [vmem:[%s6817_s19 + $0x8] sm:$0xff]  }
 0xb64   : > { %1204 = vperm.xlu1 %6308, %v6550_v32   ;;  %v1080_v32 = vmul.f32 1.442695, %v9743_v10 }
 0xb65   : > { %1184 = vadd.xlane.f32.xlu0 %v1183_v16  ;;  %v8089_v16 = vld [vmem:[#allocation2 + $0x8] sm:$0xff] }
 0xb66   : > { %6553 = vpow2.f32 %v1080_v32  ;;  %9755 = vst [vmem:[#allocation10_spill] sm:$0xff] %v8089_v16  ;;  %v1030_v32 = vld [vmem:[#allocation3 + $0x20] sm:$0xff] }
 0xb67   : > { %6555 = vpow2.f32 %v1082_v40 }
 0xb68   : > { %1214 = vperm.xlu1 %6308, %v6552_v42   ;;  %6557 = vpow2.f32 %v1076_v24  ;;  %v9759_v24 = vsub.f32 %v9757_v22, %v9758_v11 }
 0xb69   : > { %6559 = vpow2.f32 %v1086_v13 }
 0xb6a   : > { %v1084_v28 = vmul.f32 1.442695, %v9759_v24 }
 0xb6c   : > { %6561 = vpow2.f32 %v1084_v28 }
 0xb73   : > { %v6554_v54 = vpop.eup %6553 }
 0xb74   : > { %v8102_v8 = vpop.eup %6555 }
 0xb75   : > { %v1158_v49 = vmul.f32 %v8102_v8, %v1030_v32  ;;  %v8114_v56 = vpop.eup %6557  ;;  %v9760_v32 = vld [vmem:[#allocation16_spill] sm:$0xff] }
 0xb7b   : > { %3612 = vrot.lane.b32.xlu0 %v6433_v63, %s6760_s30 }
 0xb8c   : > { %3392 = vmax.xlane.f32.xlu1 %v3391_v31 }
 0xb90   : > { %3386 = vmax.xlane.f32.xlu1 %v3385_v51 }
 0xba1   : > { %1219 = vperm.xlu1 %6308, %v6554_v54  }
 0xba5   : > { %6309 = vset.pattern.permute.xlu1 %v9593_v1 }
 0xbce   : > { %v3372_v45 = vpop.xlane.xlu0 %3371 }
 0xbcf   : > { %v8078_v53 = vmax.f32 %v8075_v0, %v3372_v45  ;;  %v1032_v45 = vld [vmem:[#allocation3 + $0x30] sm:$0xff] }
 0xbd0   : > { %v3381_v20 = vpop.xlane.xlu1 %3380 }
 0xbd1   : > { %3740 = vst.msk [vmem:[#allocation2] sm:$0xff] %vm3739_vm7, %v8078_v53  ;;  %v8087_v33 = vmax.f32 %v8080_v48, %v3381_v20 }
 0xbd2   : > { %v3375_v63 = vpop.xlane.xlu0 %3374 }
 0xbd3   : > { %9754 = vst [vmem:[#allocation9_spill] sm:$0xff] %v8087_v33  ;;  %3743 = vst.msk [vmem:[#allocation2 + $0x18] sm:$0xff] %vm3739_vm7, %v8087_v33  ;;  %v8096_v55 = vmax.f32 %v8089_v16, %v3375_v63  ;;  %v1155_v63 = vmul.f32 %v8114_v56, %v1027_v17 }
 0xbd4   : > { %v1170_v10 = vpop.xlane.xlu1 %1169 }
 0xbd5   : > { %9756 = vst [vmem:[#allocation20_spill] sm:$0xff] %v8096_v55  ;;  %3741 = vst.msk [vmem:[#allocation2 + $0x8] sm:$0xff] %vm3739_vm7, %v8096_v55  ;;  %v1188_v35 = vadd.f32 %v1170_v10, %v1156_v60  ;;  %v8122_v60 = vpop.eup %6559 }
 0xbd6   : > { %v3378_v40 = vpop.xlane.xlu0 %3377  ;;  %v1160_v51 = vmul.f32 %v8122_v60, %v1032_v45 }
 0xbd7   : > { %1414 = vst.msk [vmem:[#allocation3 + $0x10] sm:$0xff] %vm1403_vm3, %v1188_v35  ;;  %v8111_v42 = vmax.f32 %v8104_v29, %v3378_v40  ;;  %v1029_v35 = vld [vmem:[#allocation3 + $0x18] sm:$0xff]  ;;  %v9761_v40 = vld [vmem:[#allocation18_spill] sm:$0xff] }
 0xbd8   : > { %v1176_v13 = vpop.xlane.xlu1 %1175  ;;  %v9762_v22 = vsub.f32 %v9760_v32, %v9761_v40  ;;  %v1157_v17 = vmul.f32 %v6554_v54, %v1029_v35  ;;  %v6434_v54 = vld [vmem:[%s6970_s26 + $0x18] sm:$0xff]   ;;  %v1031_v35 = vld [vmem:[#allocation3 + $0x28] sm:$0xff]  ;;  %v6562_v40 = vpop.eup %6561 }
 0xbd9   : > { %3742 = vst.msk [vmem:[#allocation2 + $0x10] sm:$0xff] %vm3739_vm7, %v8111_v42  ;;  %v1190_v50 = vadd.f32 %v1176_v13, %v1158_v49  ;;  %3438 = vperm.xlu1 %6309, %v8111_v42  }
 0xbda   : > { %v1167_v10 = vpop.xlane.xlu0 %1166  ;;  %v1088_v11 = vmul.f32 1.442695, %v9762_v22 }
 0xbdb   : > { %1416 = vst.msk [vmem:[#allocation3 + $0x20] sm:$0xff] %vm1403_vm3, %v1190_v50  ;;  %v1187_v24 = vadd.f32 %v1167_v10, %v1155_v63  ;;  %v8134_v50 = vld [vmem:[#allocation2 + $0x20] sm:$0xff] }
 0xbdc   : > { %v1182_v31 = vpop.xlane.xlu1 %1181  ;;  %6563 = vpow2.f32 %v1088_v11  ;;  %9763 = vst [vmem:[#allocation21_spill] sm:$0xff] %v8134_v50  ;;  %v1159_v11 = vmul.f32 %v6562_v40, %v1031_v35 }
 0xbdd   : > { %1413 = vst.msk [vmem:[#allocation3 + $0x8] sm:$0xff] %vm1403_vm3, %v1187_v24  ;;  %v1192_v49 = vadd.f32 %v1182_v31, %v1160_v51  ;;  %3428 = vperm.xlu1 %6309, %v8078_v53   ;;  %v8146_v51 = vld [vmem:[#allocation2 + $0x30] sm:$0xff] }
 0xbde   : > { %v1173_v13 = vpop.xlane.xlu0 %1172  ;;  %9765 = vst [vmem:[#allocation8_spill] sm:$0xff] %v8146_v51  ;;  %v6435_v24 = vld [vmem:[%s6970_s26 + $0x10] sm:$0xff]  }
 0xbdf   : > { %1418 = vst.msk [vmem:[#allocation3 + $0x30] sm:$0xff] %vm1403_vm3, %v1192_v49  ;;  %v1189_v28 = vadd.f32 %v1173_v13, %v1157_v17  ;;  %v1033_v17 = vld [vmem:[#allocation3 + $0x38] sm:$0xff] }
 0xbe1   : > { %1415 = vst.msk [vmem:[#allocation3 + $0x18] sm:$0xff] %vm1403_vm3, %v1189_v28  ;;  %3433 = vperm.xlu1 %6309, %v8096_v55  }
 0xbe2   : > { %v3384_v45 = vpop.xlane.xlu0 %3383 }
 0xbe3   : > { %v8137_v63 = vmax.f32 %v8134_v50, %v3384_v45  ;;  %v1196_v50 = vld [vmem:[#allocation4 + $0x10] sm:$0xff] }
 0xbe5   : > { %9764 = vst [vmem:[#allocation6_spill] sm:$0xff] %v8137_v63  ;;  %3744 = vst.msk [vmem:[#allocation2 + $0x20] sm:$0xff] %vm3739_vm7, %v8137_v63  ;;  %3448 = vperm.xlu0 %6310, %v8137_v63   ;;  %3443 = vperm.xlu1 %6309, %v8087_v33   ;;  %v9820_v63 = vld [vmem:[#allocation61_spill] sm:$0xff]  ;;  %v1197_v33 = vld [vmem:[#allocation4 + $0x18] sm:$0xff] }
 0xbe6   : > { %v3390_v10 = vpop.xlane.xlu0 %3389 }
 0xbe7   : > { %v8149_v32 = vmax.f32 %v8146_v51, %v3390_v10  ;;  %v6436_v10 = vld [vmem:[%s6970_s26] sm:$0xff]  }
 0xbe9   : > { %9766 = vst [vmem:[#allocation11_spill] sm:$0xff] %v8149_v32  ;;  %3746 = vst.msk [vmem:[#allocation2 + $0x30] sm:$0xff] %vm3739_vm7, %v8149_v32  ;;  %3616 = vrot.lane.b32.xlu1 %v6434_v54, %s6760_s30  ;;  %v6564_v28 = vpop.eup %6563  ;;  %v8163_v54 = vpop.permute.xlu1 %1204 }
 0xbea   : > { %v1179_v49 = vpop.xlane.xlu0 %1178  ;;  %v1161_v45 = vmul.f32 %v6564_v28, %v1033_v17 }
 0xbeb   : > { %v1191_v13 = vadd.f32 %v1179_v49, %v1159_v11  ;;  %v8167_v11 = vld [vmem:[#allocation2 + $0x38] sm:$0xff] }
 0xbec   : > { %9767 = vst [vmem:[#allocation13_spill] sm:$0xff] %v8167_v11 }
 0xbed   : > { %1417 = vst.msk [vmem:[#allocation3 + $0x28] sm:$0xff] %vm1403_vm3, %v1191_v13  ;;  %3614 = vrot.lane.b32.xlu1 %v6435_v24, %s6760_s30  ;;  %v8165_v35 = vpop.permute.xlu1 %1214 }
 0xbee   : > { %v1185_v31 = vpop.xlane.xlu0 %1184 }
 0xbef   : > { %v1193_v22 = vadd.f32 %v1185_v31, %v1161_v45  ;;  %v5777_v45 = vld [vmem:[%s6825_s22] sm:$0xff]   ;;  %v6438_v31 = vld [vmem:[%s6817_s19 + $0x10] sm:$0xff]  }
 0xbf0   : > { %v5778_v20 = vunpack.c.l.bf16 %v5777_v45 }
 0xbf1   : > { %1419 = vst.msk [vmem:[#allocation3 + $0x38] sm:$0xff] %vm1403_vm3, %v1193_v22  ;;  %3610 = vrot.lane.b32.xlu1 %v6436_v10, %s6760_s30  ;;  %v8177_v22 = vld [vmem:[#allocation2 + $0x28] sm:$0xff]  ;;  %vm5305_vm3 = vcmask 195584  }
 0xbf2   : > { %9769 = vst [vmem:[#allocation7_spill] sm:$0xff] %v8177_v22  ;;  %v3781_v10 = vmul.f32 0.35355338, %v5778_v20 }
 0xbf5   : > { %3458 = vperm.xlu1 %6309, %v8149_v32  }
 0xc15   : > { %v3393_v24 = vpop.xlane.xlu1 %3392 }
 0xc16   : > { %v8170_v49 = vmax.f32 %v8167_v11, %v3393_v24  ;;  %v6437_v24 = vld [vmem:[%s6817_s19 + $0x18] sm:$0xff]  }
 0xc18   : > { %9768 = vst [vmem:[#allocation5_spill] sm:$0xff] %v8170_v49  ;;  %3747 = vst.msk [vmem:[#allocation2 + $0x38] sm:$0xff] %vm3739_vm7, %v8170_v49  ;;  %3463 = vperm.xlu0 %6310, %v8170_v49   ;;  %v5782_v49 = vunpack.c.l.bf16 %v5826_v15 }
 0xc19   : > { %v3387_v17 = vpop.xlane.xlu1 %3386 }
 0xc1a   : > { %v8180_v13 = vmax.f32 %v8177_v22, %v3387_v17  ;;  %v5779_v17 = vunpack.c.h.bf16 %v5777_v45 }
 0xc1c   : > { %9770 = vst [vmem:[#allocation15_spill] sm:$0xff] %v8180_v13  ;;  %3745 = vst.msk [vmem:[#allocation2 + $0x28] sm:$0xff] %vm3739_vm7, %v8180_v13  ;;  %6311 = vset.pattern.permute.xlu0 %v9733_v61  ;;  %3453 = vperm.xlu1 %6309, %v8180_v13   ;;  %v3782_v1 = vmul.f32 0.35355338, %v5779_v17  ;;  %v5828_v17 = vld [vmem:[%s6825_s22 + $0x18] sm:$0xff]  }
 0xc1d   : > { %1209 = vperm.xlu0 %6311, %v8114_v56   ;;  %v5783_v56 = vunpack.c.h.bf16 %v5826_v15 }
 0xc1e   : > { %v3789_v45 = vpack.c.bf16 %v3782_v1, %v3781_v10  ;;  %v9772_v1 = vmov 2  }
 0xc1f   : > { %v3784_v11 = vmul.f32 0.35355338, %v5783_v56  ;;  %v9775_v56 = vld [vmem:[#allocation27_spill] sm:$0xff] }
 0xc20   : > { %3847 = vrot.lane.b32.xlu1 %v6437_v24, %s6762_s4  ;;  %v3783_v24 = vmul.f32 0.35355338, %v5782_v49 }
 0xc21   : > { %3845 = vrot.lane.b32.xlu0 %v6438_v31, %s6762_s4  ;;  %6312 = vset.pattern.permute.xlu1 %v9733_v61  ;;  %v5827_v31 = vld [vmem:[%s6825_s22 + $0x10] sm:$0xff]   ;;  %v9804_v61 = vld [vmem:[#allocation42_spill] sm:$0xff] }
 0xc22   : > { %v3790_v20 = vpack.c.bf16 %v3784_v11, %v3783_v24  ;;  %v5786_v15 = vunpack.c.l.bf16 %v5827_v31  ;;  %v5790_v11 = vunpack.c.l.bf16 %v5828_v17  ;;  %v9776_v24 = vld [vmem:[#allocation24_spill] sm:$0xff] }
 0xc24   : > { %3843 = vrot.lane.b32.xlu1 %v6439_v59, %s6762_s4  ;;  %v9771_v59 = vld [vmem:[#allocation23_spill] sm:$0xff]  ;;  %v3785_v49 = vmul.f32 0.35355338, %v5786_v15  ;;  %v9778_v15 = vld [vmem:[#allocation26_spill] sm:$0xff] }
 0xc25   : > { %1224 = vperm.xlu0 %6311, %v8102_v8   ;;  %v5787_v8 = vunpack.c.h.bf16 %v5827_v31 }
 0xc27   : > { %v3786_v10 = vmul.f32 0.35355338, %v5787_v8  ;;  %v9779_v8 = vld [vmem:[#allocation28_spill] sm:$0xff] }
 0xc28   : > { %3841 = vrot.lane.b32.xlu1 %v6440_v41, %s6762_s4  ;;  %v9773_v41 = vld [vmem:[#allocation22_spill] sm:$0xff] }
 0xc29   : > { %3813 = vrot.lane.b32.xlu0 %v3789_v45, %s6762_s4  ;;  %v3791_v45 = vpack.c.bf16 %v3786_v10, %v3785_v49 }
 0xc2c   : > { %1229 = vperm.xlu1 %6312, %v6562_v40   ;;  %v9774_v40 = vld [vmem:[#allocation25_spill] sm:$0xff] }
 0xc2d   : > { %1234 = vperm.xlu0 %6311, %v8122_v60   ;;  %v5791_v60 = vunpack.c.h.bf16 %v5828_v17 }
 0xc2f   : > { %v3788_v31 = vmul.f32 0.35355338, %v5791_v60 }
 0xc30   : > { %3815 = vrot.lane.b32.xlu1 %v3790_v20, %s6762_s4  ;;  %v3787_v20 = vmul.f32 0.35355338, %v5790_v11 }
 0xc31   : > { %1371 = vrot.lane.b32.xlu0 %v9771_v59, %s6763_s5 }
 0xc32   : > { %6314 = vset.pattern.permute.xlu0 %v9772_v1  ;;  %v3792_v59 = vpack.c.bf16 %v3788_v31, %v3787_v20 }
 0xc34   : > { %1239 = vperm.xlu1 %6312, %v6564_v28   ;;  %v9777_v28 = vld [vmem:[#allocation29_spill] sm:$0xff] }
 0xc35   : > { %1375 = vrot.lane.b32.xlu0 %v9773_v41, %s6763_s5  ;;  %v8218_v41 = vpop.permute.xlu1 %1219 }
 0xc38   : > { %1373 = vrot.lane.b32.xlu1 %v9774_v40, %s6763_s5 }
 0xc39   : > { %1379 = vrot.lane.b32.xlu0 %v9775_v56, %s6763_s5  ;;  %6313 = vset.pattern.permute.xlu1 %v9772_v1 }
 0xc3c   : > { %1377 = vrot.lane.b32.xlu1 %v9776_v24, %s6763_s5  ;;  %v9780_v24 = vld [vmem:[#allocation46_spill] sm:$0xff] }
 0xc3d   : > { %3817 = vrot.lane.b32.xlu0 %v3791_v45, %s6762_s4  ;;  %v1746_v20 = vsel %vm311_vm1, %v9780_v24, 0.0 }
 0xc40   : > { %1381 = vrot.lane.b32.xlu1 %v9777_v28, %s6763_s5 }
 0xc41   : > { %1383 = vrot.lane.b32.xlu0 %v9778_v15, %s6763_s5 }
 0xc44   : > { %3819 = vrot.lane.b32.xlu1 %v3792_v59, %s6762_s4 }
 0xc48   : > { %1385 = vrot.lane.b32.xlu1 %v9779_v8, %s6763_s5  ;;  %v9781_v8 = vld [vmem:[#allocation48_spill] sm:$0xff] }
 0xc54   : > { %v3439_v49 = vpop.permute.xlu1 %3438 }
 0xc55   : > { %v3468_v60 = vsub.f32 %v8010_v57, %v3439_v49  ;;  %v9782_v57 = vld [vmem:[#allocation49_spill] sm:$0xff] }
 0xc57   : > { %v3478_v28 = vmul.f32 1.442695, %v3468_v60 }
 0xc58   : > { %v3429_v10 = vpop.permute.xlu1 %3428 }
 0xc59   : > { %v3466_v17 = vsub.f32 %v8012_v7, %v3429_v10  ;;  %v1752_v7 = vsel %vm311_vm1, %v9781_v8, 0.0 }
 0xc5b   : > { %v3474_v40 = vmul.f32 1.442695, %v3466_v17  ;;  %v3613_v17 = vpop.permute.xlu0 %3612 }
 0xc5c   : > { %v3434_v11 = vpop.permute.xlu1 %3433 }
 0xc5d   : > { %v3467_v56 = vsub.f32 %v8020_v19, %v3434_v11  ;;  %6565 = vpow2.f32 %v3474_v40  ;;  %v1755_v19 = vsel %vm311_vm1, %v9782_v57, 0.0  ;;  %v9783_v40 = vld [vmem:[#allocation51_spill] sm:$0xff]  ;;  %v9788_v57 = vld [vmem:[#allocation33_spill] sm:$0xff] }
 0xc5e   : > { %v9784_v11 = vld [vmem:[#allocation47_spill] sm:$0xff] }
 0xc5f   : > { %v3476_v45 = vmul.f32 1.442695, %v3467_v56  ;;  %v1749_v60 = vsel %vm311_vm1, %v9784_v11, 0.0  ;;  %v9792_v11 = vld [vmem:[#allocation35_spill] sm:$0xff] }
 0xc60   : > { %1747 = vadd.xlane.f32.xlu0 %v1746_v20  ;;  %v3444_v31 = vpop.permute.xlu1 %3443  ;;  %v9785_v20 = vld [vmem:[#allocation53_spill] sm:$0xff] }
 0xc61   : > { %6567 = vpow2.f32 %v3476_v45  ;;  %v3469_v59 = vsub.f32 %v8016_v14, %v3444_v31  ;;  %v1761_v14 = vsel %vm311_vm1, %v9783_v40, 0.0  ;;  %v1767_v31 = vsel %vm311_vm1, %v9785_v20, 0.0 }
 0xc62   : > { %6569 = vpow2.f32 %v3478_v28  ;;  %v9786_v28 = vld [vmem:[#allocation50_spill] sm:$0xff] }
 0xc63   : > { %v3480_v15 = vmul.f32 1.442695, %v3469_v59  ;;  %v1758_v59 = vsel %vm311_vm1, %v9786_v28, 0.0  ;;  %v9795_v28 = vld [vmem:[#allocation31_spill] sm:$0xff] }
 0xc64   : > { %1753 = vadd.xlane.f32.xlu0 %v1752_v7  ;;  %v3617_v10 = vpop.permute.xlu1 %3616 }
 0xc65   : > { %6136 = vmatprep.subr.bf16.mxu0 %v3617_v10  ;;  %6571 = vpow2.f32 %v3480_v15 }
 0xc66   : > { %6137 = vmatpush3.bf16.msra.mxu0 %v3617_v10  ;;  %v9787_v10 = vld [vmem:[#allocation32_spill] sm:$0xff] }
 0xc68   : > { %1756 = vadd.xlane.f32.xlu0 %v1755_v19  ;;  %v3615_v49 = vpop.permute.xlu1 %3614  ;;  %v9789_v19 = vsub.f32 %v9787_v10, %v9788_v57  ;;  %v9797_v10 = vld [vmem:[#allocation36_spill] sm:$0xff]  ;;  %v9798_v57 = vld [vmem:[#allocation38_spill] sm:$0xff] }
 0xc69   : > { %6138 = vmatprep.subr.bf16.mxu0 %v3615_v49 }
 0xc6a   : > { %6139 = vmatpush3.bf16.msra.mxu0 %v3615_v49  ;;  %v8234_v56 = vpop.eup %6565  ;;  %v1658_v49 = vmul.f32 1.442695, %v9789_v19  ;;  %v9799_v19 = vsub.f32 %v9797_v10, %v9798_v57  ;;  %v9811_v10 = vld [vmem:[#allocation45_spill] sm:$0xff] }
 0xc6b   : > { %6140 = vmatprep.subr.bf16.mxu0 %v3613_v17 }
 0xc6c   : > { %1762 = vadd.xlane.f32.xlu0 %v1761_v14  ;;  %1750 = vadd.xlane.f32.xlu1 %v1749_v60  ;;  %v3611_v24 = vpop.permute.xlu1 %3610  ;;  %v9791_v14 = vld [vmem:[#allocation34_spill] sm:$0xff]  ;;  %6573 = vpow2.f32 %v1658_v49  ;;  %v9806_v49 = vld [vmem:[#allocation41_spill] sm:$0xff] }
 0xc6d   : > { %v9793_v60 = vsub.f32 %v9791_v14, %v9792_v11  ;;  %v9800_v14 = vld [vmem:[#allocation37_spill] sm:$0xff]  ;;  %v9801_v11 = vld [vmem:[#allocation39_spill] sm:$0xff] }
 0xc6e   : > { %v8236_v45 = vpop.eup %6567  ;;  %6141 = vmatpush3.bf16.msra.mxu0 %v3613_v17  ;;  %v9790_v17 = vld [vmem:[#allocation52_spill] sm:$0xff] }
 0xc6f   : > { %6142 = vmatprep.subr.bf16.mxu0 %v3611_v24  ;;  %v3586_v15 = vpack.c.bf16 %v8236_v45, %v8234_v56  ;;  %v8245_v8 = vpop.eup %6569  ;;  %v1764_v40 = vsel %vm311_vm1, %v9790_v17, 0.0  ;;  %v1660_v20 = vmul.f32 1.442695, %v9793_v60  ;;  %v1664_v17 = vmul.f32 1.442695, %v9799_v19 }
 0xc70   : > { %1768 = vadd.xlane.f32.xlu0 %v1767_v31  ;;  %1759 = vadd.xlane.f32.xlu1 %v1758_v59  ;;  %v9802_v60 = vsub.f32 %v9800_v14, %v9801_v11  ;;  %v9814_v14 = vld [vmem:[#allocation59_spill] sm:$0xff]  ;;  %v3449_v11 = vpop.permute.xlu0 %3448 }
 0xc71   : > { %6144 = vmatprep.mubr.msk.bf16.mxu0 %vm311_vm1, %v3586_v15  ;;  %6575 = vpow2.f32 %v1660_v20  ;;  %v9807_v20 = vld [vmem:[#allocation43_spill] sm:$0xff] }
 0xc72   : > { %6143 = vmatpush3.bf16.msra.mxu0 %v3611_v24  ;;  %v8247_v7 = vpop.eup %6571  ;;  %v9794_v24 = vld [vmem:[#allocation30_spill] sm:$0xff]  ;;  %v1666_v1 = vmul.f32 1.442695, %v9802_v60 }
 0xc73   : > { %v3587_v31 = vpack.c.bf16 %v8247_v7, %v8245_v8  ;;  %v9796_v59 = vsub.f32 %v9794_v24, %v9795_v28  ;;  %v9808_v28 = vsub.f32 %v9806_v49, %v9807_v20  ;;  %v9815_v49 = vld [vmem:[#allocation58_spill] sm:$0xff] }
 0xc74   : > { %1765 = vadd.xlane.f32.xlu1 %v1764_v40  ;;  %v9803_v40 = vld [vmem:[#allocation40_spill] sm:$0xff] }
 0xc75   : > { %6145 = vmatmul.mubr.msk.bf16.vlgmr.msra.gmra.mxu0 %vm311_vm1, %v3587_v31  ;;  %v1662_v15 = vmul.f32 1.442695, %v9796_v59  ;;  %v9805_v31 = vsub.f32 %v9803_v40, %v9804_v61  ;;  %v1670_v59 = vmul.f32 1.442695, %v9808_v28  ;;  %v9809_v61 = vld [vmem:[#allocation54_spill] sm:$0xff]  ;;  %v3470_v40 = vsub.f32 %v8036_v4, %v3449_v11 }
 0xc77   : > { %6577 = vpow2.f32 %v1662_v15  ;;  %v1668_v32 = vmul.f32 1.442695, %v9805_v31  ;;  %v3459_v31 = vpop.permute.xlu1 %3458 }
 0xc78   : > { %6579 = vpow2.f32 %v1664_v17  ;;  %v9813_v17 = vmov 3  }
 0xc79   : > { %6581 = vpow2.f32 %v1666_v1  ;;  %v8272_v51 = vpop.eup %6573  ;;  %v9810_v1 = vld [vmem:[#allocation44_spill] sm:$0xff] }
 0xc7a   : > { %6583 = vpow2.f32 %v1668_v32  ;;  %v9812_v57 = vsub.f32 %v9810_v1, %v9811_v10  ;;  %v3482_v1 = vmul.f32 1.442695, %v3470_v40 }
 0xc7b   : > { %6585 = vpow2.f32 %v1670_v59 }
 0xc7c   : > { %v1672_v19 = vmul.f32 1.442695, %v9812_v57 }
 0xc7e   : > { %v8274_v24 = vpop.eup %6575  ;;  %6587 = vpow2.f32 %v1672_v19 }
 0xc7f   : > { %6589 = vpow2.f32 %v3482_v1 }
 0xc84   : > { %v8281_v15 = vpop.eup %6577 }
 0xc85   : > { %1788 = vperm.xlu1 %6313, %v8272_v51   ;;  %v8290_v32 = vpop.eup %6579 }
 0xc86   : > { %1793 = vperm.xlu0 %6314, %v8274_v24   ;;  %v8295_v60 = vpop.eup %6581 }
 0xc87   : > { %v8301_v28 = vpop.eup %6583 }
 0xc88   : > { %v8306_v19 = vpop.eup %6585 }
 0xc89   : > { %1798 = vperm.xlu1 %6313, %v8281_v15  }
 0xc8a   : > { %1959 = vrot.lane.b32.xlu0 %v9809_v61, %s6764_s6  ;;  %v3472_v61 = vsub.f32 %v8030_v58, %v3459_v31 }
 0xc8b   : > { %6315 = vset.pattern.permute.xlu0 %v9813_v17 }
 0xc8c   : > { %v3486_v11 = vmul.f32 1.442695, %v3472_v61 }
 0xc8d   : > { %1803 = vperm.xlu1 %6313, %v8290_v32  }
 0xc8e   : > { %1963 = vrot.lane.b32.xlu0 %v9814_v14, %s6764_s6 }
 0xc91   : > { %1808 = vperm.xlu1 %6313, %v8295_v60  }
 0xc92   : > { %1967 = vrot.lane.b32.xlu0 %v9815_v49, %s6764_s6 }
 0xc93   : > { %v3464_v20 = vpop.permute.xlu0 %3463 }
 0xc94   : > { %v3473_v59 = vsub.f32 %v8054_v25, %v3464_v20  ;;  %v8310_v25 = vpop.eup %6587  ;;  %v9816_v20 = vld [vmem:[#allocation55_spill] sm:$0xff] }
 0xc95   : > { %1813 = vperm.xlu1 %6313, %v8301_v28  }
 0xc96   : > { %v3488_v10 = vmul.f32 1.442695, %v3473_v59 }
 0xc97   : > { %v3454_v57 = vpop.permute.xlu1 %3453 }
 0xc98   : > { %v3471_v4 = vsub.f32 %v8058_v6, %v3454_v57  ;;  %v1210_v14 = vpop.permute.xlu0 %1209  ;;  %6591 = vpow2.f32 %v3488_v10  ;;  %v9817_v10 = vld [vmem:[#allocation57_spill] sm:$0xff] }
 0xc99   : > { %1818 = vperm.xlu1 %6313, %v8306_v19  }
 0xc9a   : > { %v3484_v49 = vmul.f32 1.442695, %v3471_v4 }
 0xc9b   : > { %v3848_v13 = vpop.permute.xlu1 %3847 }
 0xc9c   : > { %6593 = vpow2.f32 %v3484_v49  ;;  %v3846_v58 = vpop.permute.xlu0 %3845  ;;  %6240 = vmatprep.subr.msk.bf16.mxu0 %vm294_vm0, %v3848_v13  ;;  %v3871_v40 = vsel %vm294_vm0, %v3848_v13, 0  ;;  %v8323_v13 = vpop.eup %6589 }
 0xc9d   : > { %6595 = vpow2.f32 %v3486_v11  ;;  %1823 = vperm.xlu1 %6313, %v8310_v25   ;;  %6153 = vmatpush3.bf16.xpose.msra.mxu0 %v3871_v40  ;;  %v3868_v59 = vsel %vm294_vm0, %v3846_v58, 0 }
 0xc9e   : > { %6241 = vmatprep.subr.msk.bf16.mxu0 %vm294_vm0, %v3846_v58  ;;  %v9819_v58 = vld [vmem:[#allocation56_spill] sm:$0xff] }
 0xc9f   : > { %v3844_v6 = vpop.permute.xlu1 %3843 }
 0xca0   : > { %v1225_v31 = vpop.permute.xlu0 %1224 }
 0xca1   : > { %1955 = vrot.lane.b32.xlu1 %v9816_v20, %s6764_s6  ;;  %v1194_v20 = vld [vmem:[#allocation4] sm:$0xff] }
 0xca2   : > { %6316 = vset.pattern.permute.xlu1 %v9813_v17 }
 0xca3   : > { %v3842_v61 = vpop.permute.xlu1 %3841 }
 0xca4   : > { %v3814_v1 = vpop.permute.xlu0 %3813 }
 0xca5   : > { %1957 = vrot.lane.b32.xlu1 %v9817_v10, %s6764_s6  ;;  %6155 = vmatpush3.bf16.xpose.msra.mxu0 %v3868_v59  ;;  %v8325_v4 = vpop.eup %6591  ;;  %v1242_v59 = vmul.f32 %v8163_v54, %v1194_v20  ;;  %v1244_v54 = vmul.f32 %v8165_v35, %v1196_v50 }
 0xca6   : > { %6242 = vmatprep.subr.msk.bf16.mxu0 %vm294_vm0, %v3844_v6  ;;  %9818 = vst [vmem:[#allocation17_spill] sm:$0xff] %v8325_v4 }
 0xca7   : > { %v1230_v57 = vpop.permute.xlu1 %1229 }
 0xca8   : > { %v1235_v11 = vpop.permute.xlu0 %1234 }
 0xca9   : > { %v8327_v49 = vpop.eup %6593  ;;  %1961 = vrot.lane.b32.xlu1 %v9819_v58, %s6764_s6  ;;  %v3865_v58 = vsel %vm294_vm0, %v3844_v6, 0 }
 0xcaa   : > { %v8331_v40 = vpop.eup %6595  ;;  %v3588_v10 = vpack.c.bf16 %v8327_v49, %v8323_v13 }
 0xcab   : > { %v3816_v17 = vpop.permute.xlu1 %3815  ;;  %v3589_v22 = vpack.c.bf16 %v8325_v4, %v8331_v40  ;;  %v2336_v4 = vsel %vm311_vm1, %v7649_v46, 0.0 }
 0xcac   : > { %v1372_v55 = vpop.permute.xlu0 %1371  ;;  %6148 = vmatprep.mubr.msk.bf16.mxu0 %vm311_vm1, %v3588_v10 }
 0xcad   : > { %v1395_v16 = vadd.f32 %v1372_v55, %v1242_v59  ;;  %1965 = vrot.lane.b32.xlu1 %v9820_v63, %s6764_s6  ;;  %6149 = vmatmul.mubr.msk.bf16.gmra.mxu0 %vm311_vm1, %v3589_v22  ;;  %v2330_v55 = vsel %vm311_vm1, %v7643_v47, 0.0  ;;  %v1195_v63 = vld [vmem:[#allocation4 + $0x8] sm:$0xff]  ;;  %v9821_v22 = vld [vmem:[#allocation60_spill] sm:$0xff]  ;;  %v3862_v47 = vsel %vm294_vm0, %v3842_v61, 0 }
 0xcae   : > { %6157 = vmatpush3.bf16.xpose.msra.mxu0 %v3865_v58  ;;  %6160 = vmatprep.mubr.msk.bf16.mxu0 %vm294_vm0, %v3814_v1  ;;  %v1243_v6 = vmul.f32 %v1210_v14, %v1195_v63  ;;  %v1198_v58 = vld [vmem:[#allocation4 + $0x20] sm:$0xff] }
 0xcaf   : > { %1421 = vst.msk [vmem:[#allocation4] sm:$0xff] %vm1420_vm8, %v1395_v16  ;;  %6243 = vmatprep.subr.msk.bf16.mxu0 %vm294_vm0, %v3842_v61  ;;  %v1240_v20 = vpop.permute.xlu1 %1239  ;;  %v1246_v1 = vmul.f32 %v1225_v31, %v1198_v58 }
 0xcb0   : > { %v1376_v10 = vpop.permute.xlu0 %1375 }
 0xcb1   : > { %v1397_v59 = vadd.f32 %v1376_v10, %v1244_v54  ;;  %2331 = vadd.xlane.f32.xlu0 %v2330_v55  ;;  %1969 = vrot.lane.b32.xlu1 %v9821_v22, %s6764_s6  ;;  %v1245_v54 = vmul.f32 %v8218_v41, %v1197_v33  ;;  %v9822_v55 = vld [vmem:[#allocation79_spill] sm:$0xff] }
 0xcb2   : > { %v2339_v63 = vsel %vm311_vm1, %v9822_v55, 0.0  ;;  %v1200_v22 = vld [vmem:[#allocation4 + $0x30] sm:$0xff] }
 0xcb3   : > { %1423 = vst.msk [vmem:[#allocation4 + $0x10] sm:$0xff] %vm1420_vm8, %v1397_v59  ;;  %v1374_v50 = vpop.permute.xlu1 %1373  ;;  %v1199_v59 = vld [vmem:[#allocation4 + $0x28] sm:$0xff]  ;;  %v1248_v61 = vmul.f32 %v1235_v11, %v1200_v22  ;;  %v9831_v22 = vld [vmem:[#allocation65_spill] sm:$0xff] }
 0xcb4   : > { %v1396_v16 = vadd.f32 %v1374_v50, %v1243_v6  ;;  %v1380_v35 = vpop.permute.xlu0 %1379  ;;  %v1247_v46 = vmul.f32 %v1230_v57, %v1199_v59  ;;  %v9823_v6 = vld [vmem:[#allocation80_spill] sm:$0xff] }
 0xcb5   : > { %v1399_v48 = vadd.f32 %v1380_v35, %v1246_v1  ;;  %2337 = vadd.xlane.f32.xlu0 %v2336_v4  ;;  %v2342_v58 = vsel %vm311_vm1, %v9823_v6, 0.0  ;;  %v9824_v1 = vld [vmem:[#allocation82_spill] sm:$0xff]  ;;  %v1201_v50 = vld [vmem:[#allocation4 + $0x38] sm:$0xff] }
 0xcb6   : > { %1422 = vst.msk [vmem:[#allocation4 + $0x8] sm:$0xff] %vm1420_vm8, %v1396_v16  ;;  %6159 = vmatpush3.bf16.xpose.msra.mxu0 %v3862_v47  ;;  %v2348_v11 = vsel %vm311_vm1, %v9824_v1, 0.0  ;;  %v1249_v16 = vmul.f32 %v1240_v20, %v1201_v50  ;;  %v9829_v20 = vld [vmem:[#allocation81_spill] sm:$0xff]  ;;  %v9838_v1 = vld [vmem:[#allocation66_spill] sm:$0xff] }
 0xcb7   : > { %1425 = vst.msk [vmem:[#allocation4 + $0x20] sm:$0xff] %vm1420_vm8, %v1399_v48  ;;  %v1378_v14 = vpop.permute.xlu1 %1377  ;;  %v2345_v59 = vsel %vm311_vm1, %v9829_v20, 0.0 }
 0xcb8   : > { %v1398_v31 = vadd.f32 %v1378_v14, %v1245_v54  ;;  %v3818_v10 = vpop.permute.xlu0 %3817  ;;  %v9825_v54 = vld [vmem:[#allocation62_spill] sm:$0xff]  ;;  %v9826_v14 = vld [vmem:[#allocation63_spill] sm:$0xff] }
 0xcb9   : > { %2340 = vadd.xlane.f32.xlu0 %v2339_v63 }
 0xcba   : > { %1424 = vst.msk [vmem:[#allocation4 + $0x18] sm:$0xff] %vm1420_vm8, %v1398_v31  ;;  %v9827_v31 = vsub.f32 %v9825_v54, %v9826_v14 }
 0xcbb   : > { %v1382_v4 = vpop.permute.xlu1 %1381 }
 0xcbc   : > { %v1400_v33 = vadd.f32 %v1382_v4, %v1247_v46  ;;  %v1384_v41 = vpop.permute.xlu0 %1383  ;;  %v9830_v46 = vld [vmem:[#allocation87_spill] sm:$0xff] }
 0xcbd   : > { %v1401_v48 = vadd.f32 %v1384_v41, %v1248_v61  ;;  %6161 = vmatmul.mubr.msk.bf16.vlgmr.msra.gmra.mxu0 %vm294_vm0, %v3816_v17  ;;  %2343 = vadd.xlane.f32.xlu0 %v2342_v58  ;;  %v2242_v17 = vmul.f32 1.442695, %v9827_v31  ;;  %v9832_v61 = vld [vmem:[#allocation67_spill] sm:$0xff]  ;;  %v9835_v58 = vmov 4   ;;  %v1610_v31 = vld [vmem:[#allocation3] sm:$0xff] }
 0xcbe   : > { %1426 = vst.msk [vmem:[#allocation4 + $0x28] sm:$0xff] %vm1420_vm8, %v1400_v33  ;;  %6164 = vmatprep.mubr.msk.bf16.mxu0 %vm294_vm0, %v3818_v10  ;;  %v9828_v10 = vld [vmem:[#allocation78_spill] sm:$0xff]  ;;  %v9833_v4 = vsub.f32 %v9831_v22, %v9832_v61  ;;  %v9834_v41 = vld [vmem:[#allocation83_spill] sm:$0xff] }
 0xcbf   : > { %1427 = vst.msk [vmem:[#allocation4 + $0x30] sm:$0xff] %vm1420_vm8, %v1401_v48  ;;  %v3820_v57 = vpop.permute.xlu1 %3819  ;;  %6597 = vpow2.f32 %v2242_v17  ;;  %v2333_v55 = vsel %vm311_vm1, %v9828_v10, 0.0  ;;  %v2351_v6 = vsel %vm311_vm1, %v9834_v41, 0.0  ;;  %v9836_v48 = vld [vmem:[#allocation86_spill] sm:$0xff]  ;;  %v9845_v10 = vld [vmem:[#allocation69_spill] sm:$0xff]  ;;  %v1612_v61 = vld [vmem:[#allocation3 + $0x10] sm:$0xff] }
 0xcc0   : > { %v2244_v33 = vmul.f32 1.442695, %v9833_v4  ;;  %v9844_v17 = vld [vmem:[#allocation90_spill] sm:$0xff] }
 0xcc1   : > { %2349 = vadd.xlane.f32.xlu0 %v2348_v11  ;;  %v9849_v41 = vld [vmem:[#allocation74_spill] sm:$0xff] }
 0xcc2   : > { %6599 = vpow2.f32 %v2244_v33  ;;  %v9848_v33 = vld [vmem:[#allocation72_spill] sm:$0xff] }
 0xcc3   : > { %v1386_v35 = vpop.permute.xlu1 %1385 }
 0xcc4   : > { %v1402_v47 = vadd.f32 %v1386_v35, %v1249_v16  ;;  %v9840_v16 = vld [vmem:[#allocation91_spill] sm:$0xff]  ;;  %v9841_v35 = vld [vmem:[#allocation68_spill] sm:$0xff] }
 0xcc5   : > { %6165 = vmatmul.mubr.msk.bf16.gmra.mxu0 %vm294_vm0, %v3820_v57  ;;  %v9837_v57 = vld [vmem:[#allocation64_spill] sm:$0xff] }
 0xcc6   : > { %1428 = vst.msk [vmem:[#allocation4 + $0x38] sm:$0xff] %vm1420_vm8, %v1402_v47  ;;  %v9839_v11 = vsub.f32 %v9837_v57, %v9838_v1  ;;  %v9842_v47 = vld [vmem:[#allocation70_spill] sm:$0xff]  ;;  %v1740_v57 = vmul.f32 %v8281_v15, %v1612_v61  ;;  %vm5382_vm8 = vcmask 519168  }
 0xcc7   : > { %v9843_v54 = vsub.f32 %v9841_v35, %v9842_v47  ;;  %v9852_v35 = vld [vmem:[#allocation75_spill] sm:$0xff]  ;;  %v1615_v15 = vld [vmem:[#allocation3 + $0x28] sm:$0xff] }
 0xcc8   : > { %v2246_v50 = vmul.f32 1.442695, %v9839_v11  ;;  %v1743_v61 = vmul.f32 %v8301_v28, %v1615_v15 }
 0xcc9   : > { %v2248_v14 = vmul.f32 1.442695, %v9843_v54 }
 0xcca   : > { %6601 = vpow2.f32 %v2246_v50  ;;  %v1613_v50 = vld [vmem:[#allocation3 + $0x18] sm:$0xff] }
 0xccb   : > { %6603 = vpow2.f32 %v2248_v14  ;;  %v1741_v14 = vmul.f32 %v8290_v32, %v1613_v50 }
 0xccc   : > { %v8376_v63 = vpop.eup %6597 }
 0xccf   : > { %v8410_v1 = vpop.eup %6599 }
 0xcd5   : > { %2334 = vadd.xlane.f32.xlu1 %v2333_v55  ;;  %v9846_v55 = vld [vmem:[#allocation71_spill] sm:$0xff] }
 0xcd6   : > { %v9847_v20 = vsub.f32 %v9845_v10, %v9846_v55  ;;  %v1611_v10 = vld [vmem:[#allocation3 + $0x8] sm:$0xff] }
 0xcd7   : > { %2372 = vperm.xlu0 %6315, %v8376_v63  }
 0xcd9   : > { %2346 = vadd.xlane.f32.xlu1 %v2345_v59  ;;  %v2250_v59 = vmul.f32 1.442695, %v9847_v20  ;;  %v9854_v20 = vld [vmem:[#allocation76_spill] sm:$0xff] }
 0xcdb   : > { %2541 = vrot.lane.b32.xlu0 %v9830_v46, %s6765_s7  ;;  %v1738_v46 = vmul.f32 %v8272_v51, %v1610_v31  ;;  %6605 = vpow2.f32 %v2250_v59  ;;  %v9851_v51 = vld [vmem:[#allocation73_spill] sm:$0xff]  ;;  %v8418_v31 = vpop.eup %6601 }
 0xcdc   : > { %6317 = vset.pattern.permute.xlu0 %v9835_v58  ;;  %v9853_v47 = vsub.f32 %v9851_v51, %v9852_v35  ;;  %v9855_v59 = vld [vmem:[#allocation77_spill] sm:$0xff]  ;;  %v8427_v32 = vpop.eup %6603  ;;  %v1616_v35 = vld [vmem:[#allocation3 + $0x30] sm:$0xff] }
 0xcdd   : > { %2352 = vadd.xlane.f32.xlu1 %v2351_v6  ;;  %v9850_v6 = vsub.f32 %v9848_v33, %v9849_v41 }
 0xcde   : > { %v2254_v54 = vmul.f32 1.442695, %v9853_v47 }
 0xcdf   : > { %2545 = vrot.lane.b32.xlu0 %v9836_v48, %s6765_s7  ;;  %v2252_v48 = vmul.f32 1.442695, %v9850_v6  ;;  %v1617_v6 = vld [vmem:[#allocation3 + $0x38] sm:$0xff] }
 0xce0   : > { %v1745_v50 = vmul.f32 %v8310_v25, %v1617_v6  ;;  %v9857_v6 = vld [vmem:[#allocation85_spill] sm:$0xff] }
 0xce1   : > { %6607 = vpow2.f32 %v2252_v48  ;;  %v1614_v48 = vld [vmem:[#allocation3 + $0x20] sm:$0xff] }
 0xce2   : > { %6609 = vpow2.f32 %v2254_v54  ;;  %v1742_v28 = vmul.f32 %v8295_v60, %v1614_v48 }
 0xce3   : > { %2549 = vrot.lane.b32.xlu0 %v9840_v16, %s6765_s7 }
 0xce7   : > { %2553 = vrot.lane.b32.xlu0 %v9844_v17, %s6765_s7 }
 0xce9   : > { %v1748_v22 = vpop.xlane.xlu0 %1747 }
 0xcea   : > { %v1770_v4 = vadd.f32 %v1748_v22, %v1738_v46  ;;  %v9856_v46 = vsub.f32 %v9854_v20, %v9855_v59  ;;  %v1780_v59 = vld [vmem:[#allocation4 + $0x10] sm:$0xff] }
 0xcec   : > { %1996 = vst.msk [vmem:[#allocation3] sm:$0xff] %vm1987_vm4, %v1770_v4  ;;  %v2256_v22 = vmul.f32 1.442695, %v9856_v46  ;;  %v1739_v4 = vmul.f32 %v8274_v24, %v1611_v10  ;;  %v8434_v24 = vpop.eup %6605 }
 0xced   : > { %v1754_v11 = vpop.xlane.xlu0 %1753 }
 0xcee   : > { %v1772_v16 = vadd.f32 %v1754_v11, %v1740_v57  ;;  %2377 = vperm.xlu1 %6316, %v8410_v1   ;;  %6611 = vpow2.f32 %v2256_v22 }
 0xcf0   : > { %1998 = vst.msk [vmem:[#allocation3 + $0x10] sm:$0xff] %vm1987_vm4, %v1772_v16 }
 0xcf1   : > { %v1757_v17 = vpop.xlane.xlu0 %1756 }
 0xcf2   : > { %v1773_v55 = vadd.f32 %v1757_v17, %v1741_v14  ;;  %2382 = vperm.xlu1 %6316, %v8418_v31   ;;  %v1744_v14 = vmul.f32 %v8306_v19, %v1616_v35  ;;  %v8440_v17 = vpop.eup %6607  ;;  %v2917_v19 = vsel %vm311_vm1, %v7916_v26, 0.0  ;;  %v1782_v26 = vld [vmem:[#allocation4 + $0x20] sm:$0xff] }
 0xcf3   : > { %v8444_v60 = vpop.eup %6609  ;;  %v9859_v35 = vld [vmem:[#allocation89_spill] sm:$0xff] }
 0xcf4   : > { %1999 = vst.msk [vmem:[#allocation3 + $0x18] sm:$0xff] %vm1987_vm4, %v1773_v55 }
 0xcf5   : > { %v1763_v33 = vpop.xlane.xlu0 %1762  ;;  %v1751_v41 = vpop.xlane.xlu1 %1750 }
 0xcf6   : > { %v1775_v57 = vadd.f32 %v1763_v33, %v1743_v61  ;;  %v1771_v11 = vadd.f32 %v1751_v41, %v1739_v4  ;;  %2387 = vperm.xlu1 %6316, %v8427_v32   ;;  %v2920_v41 = vsel %vm311_vm1, %v7919_v2, 0.0 }
 0xcf8   : > { %2001 = vst.msk [vmem:[#allocation3 + $0x28] sm:$0xff] %vm1987_vm4, %v1775_v57  ;;  %1997 = vst.msk [vmem:[#allocation3 + $0x8] sm:$0xff] %vm1987_vm4, %v1771_v11  ;;  %v2926_v57 = vsel %vm311_vm1, %v7941_v30, 0.0  ;;  %v9860_v30 = vld [vmem:[#allocation92_spill] sm:$0xff] }
 0xcf9   : > { %v1769_v16 = vpop.xlane.xlu0 %1768  ;;  %v1760_v51 = vpop.xlane.xlu1 %1759 }
 0xcfa   : > { %v1777_v47 = vadd.f32 %v1769_v16, %v1745_v50  ;;  %v1774_v54 = vadd.f32 %v1760_v51, %v1742_v28  ;;  %2392 = vperm.xlu1 %6316, %v8434_v24   ;;  %v9858_v50 = vld [vmem:[#allocation84_spill] sm:$0xff]  ;;  %v2932_v51 = vsel %vm311_vm1, %v7937_v39, 0.0  ;;  %v1778_v39 = vld [vmem:[#allocation4] sm:$0xff] }
 0xcfb   : > { %v8447_v20 = vpop.eup %6611 }
 0xcfc   : > { %2003 = vst.msk [vmem:[#allocation3 + $0x38] sm:$0xff] %vm1987_vm4, %v1777_v47  ;;  %2000 = vst.msk [vmem:[#allocation3 + $0x20] sm:$0xff] %vm1987_vm4, %v1774_v54  ;;  %v1784_v47 = vld [vmem:[#allocation4 + $0x30] sm:$0xff] }
 0xcfd   : > { %v1766_v25 = vpop.xlane.xlu1 %1765 }
 0xcfe   : > { %v1776_v15 = vadd.f32 %v1766_v25, %v1744_v14  ;;  %2397 = vperm.xlu1 %6316, %v8440_v17   ;;  %v9861_v14 = vld [vmem:[#allocation93_spill] sm:$0xff] }
 0xcff   : > { %v9862_v25 = vsub.f32 %v9860_v30, %v9861_v14  ;;  %v1785_v30 = vld [vmem:[#allocation4 + $0x38] sm:$0xff] }
 0xd00   : > { %2002 = vst.msk [vmem:[#allocation3 + $0x30] sm:$0xff] %vm1987_vm4, %v1776_v15  ;;  %vm5314_vm4 = vcmask 261120  }
 0xd01   : > { %v1794_v10 = vpop.permute.xlu0 %1793  ;;  %v1789_v55 = vpop.permute.xlu1 %1788  ;;  %v2826_v15 = vmul.f32 1.442695, %v9862_v25 }
 0xd02   : > { %2402 = vperm.xlu1 %6316, %v8444_v60  }
 0xd03   : > { %6613 = vpow2.f32 %v2826_v15  ;;  %v2194_v15 = vld [vmem:[#allocation3] sm:$0xff] }
 0xd05   : > { %v1799_v46 = vpop.permute.xlu1 %1798  ;;  %v1960_v61 = vpop.permute.xlu0 %1959 }
 0xd06   : > { %v1828_v22 = vmul.f32 %v1799_v46, %v1780_v59  ;;  %2918 = vadd.xlane.f32.xlu0 %v2917_v19  ;;  %2407 = vperm.xlu1 %6316, %v8447_v20   ;;  %v9863_v46 = vld [vmem:[#allocation88_spill] sm:$0xff] }
 0xd08   : > { %v1981_v4 = vadd.f32 %v1960_v61, %v1828_v22 }
 0xd09   : > { %v1804_v33 = vpop.permute.xlu1 %1803  ;;  %v1964_v28 = vpop.permute.xlu0 %1963 }
 0xd0a   : > { %2007 = vst.msk [vmem:[#allocation4 + $0x10] sm:$0xff] %vm2004_vm9, %v1981_v4  ;;  %2921 = vadd.xlane.f32.xlu0 %v2920_v41  ;;  %2539 = vrot.lane.b32.xlu1 %v9857_v6, %s6765_s7  ;;  %v1826_v4 = vmul.f32 %v1789_v55, %v1778_v39  ;;  %v2923_v39 = vsel %vm311_vm1, %v7914_v34, 0.0  ;;  %v2935_v34 = vsel %vm311_vm1, %v7943_v23, 0.0 }
 0xd0b   : > { %6318 = vset.pattern.permute.xlu1 %v9835_v58 }
 0xd0d   : > { %v1809_v48 = vpop.permute.xlu1 %1808  ;;  %v1968_v19 = vpop.permute.xlu0 %1967 }
 0xd0e   : > { %v1830_v11 = vmul.f32 %v1809_v48, %v1782_v26  ;;  %2927 = vadd.xlane.f32.xlu0 %v2926_v57  ;;  %2543 = vrot.lane.b32.xlu1 %v9858_v50, %s6765_s7  ;;  %v1779_v26 = vld [vmem:[#allocation4 + $0x8] sm:$0xff]  ;;  %v1781_v50 = vld [vmem:[#allocation4 + $0x18] sm:$0xff] }
 0xd0f   : > { %v1827_v48 = vmul.f32 %v1794_v10, %v1779_v26 }
 0xd10   : > { %v1983_v2 = vadd.f32 %v1964_v28, %v1830_v11  ;;  %v1829_v28 = vmul.f32 %v1804_v33, %v1781_v50  ;;  %v2200_v50 = vld [vmem:[#allocation3 + $0x30] sm:$0xff] }
 0xd11   : > { %v1814_v16 = vpop.permute.xlu1 %1813 }
 0xd12   : > { %2009 = vst.msk [vmem:[#allocation4 + $0x20] sm:$0xff] %vm2004_vm9, %v1983_v2  ;;  %2933 = vadd.xlane.f32.xlu0 %v2932_v51  ;;  %2547 = vrot.lane.b32.xlu1 %v9859_v35, %s6765_s7  ;;  %v8475_v35 = vpop.eup %6613 }
 0xd15   : > { %v1819_v54 = vpop.permute.xlu1 %1818 }
 0xd16   : > { %v1832_v59 = vmul.f32 %v1819_v54, %v1784_v47  ;;  %2551 = vrot.lane.b32.xlu1 %v9863_v46, %s6765_s7  ;;  %v1783_v47 = vld [vmem:[#allocation4 + $0x28] sm:$0xff] }
 0xd17   : > { %v1831_v54 = vmul.f32 %v1814_v16, %v1783_v47  ;;  %v2914_v16 = vsel %vm311_vm1, %v7912_v36, 0.0  ;;  %v2929_v36 = vsel %vm311_vm1, %v7935_v38, 0.0 }
 0xd18   : > { %v1985_v22 = vadd.f32 %v1968_v19, %v1832_v59  ;;  %v2322_v59 = vmul.f32 %v8376_v63, %v2194_v15  ;;  %v2196_v19 = vld [vmem:[#allocation3 + $0x10] sm:$0xff] }
 0xd19   : > { %v1824_v61 = vpop.permute.xlu1 %1823 }
 0xd1a   : > { %2011 = vst.msk [vmem:[#allocation4 + $0x30] sm:$0xff] %vm2004_vm9, %v1985_v22  ;;  %v1833_v14 = vmul.f32 %v1824_v61, %v1785_v30  ;;  %v2324_v61 = vmul.f32 %v8418_v31, %v2196_v19 }
 0xd1d   : > { %v1956_v41 = vpop.permute.xlu1 %1955 }
 0xd1e   : > { %v1979_v6 = vadd.f32 %v1956_v41, %v1826_v4  ;;  %v2197_v41 = vld [vmem:[#allocation3 + $0x18] sm:$0xff] }
 0xd1f   : > { %v2325_v63 = vmul.f32 %v8427_v32, %v2197_v41  ;;  %v2328_v32 = vmul.f32 %v8444_v60, %v2200_v50 }
 0xd20   : > { %2005 = vst.msk [vmem:[#allocation4] sm:$0xff] %vm2004_vm9, %v1979_v6 }
 0xd21   : > { %v1958_v57 = vpop.permute.xlu1 %1957 }
 0xd22   : > { %v1980_v11 = vadd.f32 %v1958_v57, %v1827_v48  ;;  %v2198_v48 = vld [vmem:[#allocation3 + $0x20] sm:$0xff] }
 0xd23   : > { %v2326_v31 = vmul.f32 %v8434_v24, %v2198_v48  ;;  %v2199_v24 = vld [vmem:[#allocation3 + $0x28] sm:$0xff] }
 0xd24   : > { %2006 = vst.msk [vmem:[#allocation4 + $0x8] sm:$0xff] %vm2004_vm9, %v1980_v11  ;;  %v2327_v23 = vmul.f32 %v8440_v17, %v2199_v24 }
 0xd25   : > { %v1962_v2 = vpop.permute.xlu1 %1961 }
 0xd26   : > { %v1982_v51 = vadd.f32 %v1962_v2, %v1829_v28 }
 0xd28   : > { %2008 = vst.msk [vmem:[#allocation4 + $0x18] sm:$0xff] %vm2004_vm9, %v1982_v51  ;;  %2956 = vperm.xlu0 %6317, %v8475_v35   ;;  %v2195_v51 = vld [vmem:[#allocation3 + $0x8] sm:$0xff] }
 0xd29   : > { %v1966_v55 = vpop.permute.xlu1 %1965  ;;  %v2323_v47 = vmul.f32 %v8410_v1, %v2195_v51 }
 0xd2a   : > { %v1984_v10 = vadd.f32 %v1966_v55, %v1831_v54 }
 0xd2c   : > { %2010 = vst.msk [vmem:[#allocation4 + $0x28] sm:$0xff] %vm2004_vm9, %v1984_v10 }
 0xd2d   : > { %v1970_v25 = vpop.permute.xlu1 %1969 }
 0xd2e   : > { %v1986_v33 = vadd.f32 %v1970_v25, %v1833_v14  ;;  %v2201_v14 = vld [vmem:[#allocation3 + $0x38] sm:$0xff] }
 0xd30   : > { %2012 = vst.msk [vmem:[#allocation4 + $0x38] sm:$0xff] %vm2004_vm9, %v1986_v33  ;;  %v2329_v33 = vmul.f32 %v8447_v20, %v2201_v14  ;;  %v2365_v20 = vld [vmem:[#allocation4 + $0x18] sm:$0xff]  ;;  %v9869_v14 = vld [vmem:[#allocation94_spill] sm:$0xff] }
 0xd35   : > { %v8500_v10 = vpop.f32.mrf.mxu0 }
 0xd37   : > { %v8504_v60 = vpop.f32.mrf.mxu0 }
 0xd3a   : > { %v2332_v46 = vpop.xlane.xlu0 %2331  ;;  %2915 = vadd.xlane.f32.xlu1 %v2914_v16  ;;  %v8508_v16 = vpop.f32.mrf.mxu0 }
 0xd3b   : > { %v2354_v22 = vadd.f32 %v2332_v46, %v2322_v59  ;;  %v2363_v46 = vld [vmem:[#allocation4 + $0x8] sm:$0xff] }
 0xd3d   : > { %2580 = vst.msk [vmem:[#allocation3] sm:$0xff] %vm2571_vm5, %v2354_v22 }
 0xd3e   : > { %v2338_v4 = vpop.xlane.xlu0 %2337  ;;  %2924 = vadd.xlane.f32.xlu1 %v2923_v39 }
 0xd3f   : > { %v2356_v6 = vadd.f32 %v2338_v4, %v2324_v61  ;;  %v8511_v61 = vpop.f32.mrf.mxu0 }
 0xd41   : > { %2582 = vst.msk [vmem:[#allocation3 + $0x10] sm:$0xff] %vm2571_vm5, %v2356_v6 }
 0xd42   : > { %v2341_v26 = vpop.xlane.xlu0 %2340  ;;  %2930 = vadd.xlane.f32.xlu1 %v2929_v36 }
 0xd43   : > { %v2357_v57 = vadd.f32 %v2341_v26, %v2325_v63 }
 0xd45   : > { %2583 = vst.msk [vmem:[#allocation3 + $0x18] sm:$0xff] %vm2571_vm5, %v2357_v57 }
 0xd46   : > { %v2344_v11 = vpop.xlane.xlu0 %2343  ;;  %2936 = vadd.xlane.f32.xlu1 %v2935_v34  ;;  %v2367_v34 = vld [vmem:[#allocation4 + $0x28] sm:$0xff] }
 0xd47   : > { %v2358_v28 = vadd.f32 %v2344_v11, %v2326_v31 }
 0xd49   : > { %2584 = vst.msk [vmem:[#allocation3 + $0x20] sm:$0xff] %vm2571_vm5, %v2358_v28 }
 0xd4a   : > { %v2350_v38 = vpop.xlane.xlu0 %2349 }
 0xd4b   : > { %v2360_v2 = vadd.f32 %v2350_v38, %v2328_v32  ;;  %v9866_v32 = vld [vmem:[#allocation95_spill] sm:$0xff]  ;;  %v9867_v38 = vld [vmem:[#allocation97_spill] sm:$0xff] }
 0xd4d   : > { %2586 = vst.msk [vmem:[#allocation3 + $0x30] sm:$0xff] %vm2571_vm5, %v2360_v2  ;;  %v9868_v2 = vsub.f32 %v9866_v32, %v9867_v38 }
 0xd4f   : > { %v2828_v51 = vmul.f32 1.442695, %v9868_v2 }
 0xd51   : > { %6615 = vpow2.f32 %v2828_v51  ;;  %v9874_v51 = vld [vmem:[#allocation103_spill] sm:$0xff] }
 0xd52   : > { %v2373_v15 = vpop.permute.xlu0 %2372 }
 0xd56   : > { %v2542_v17 = vpop.permute.xlu0 %2541 }
 0xd5a   : > { %v2546_v26 = vpop.permute.xlu0 %2545 }
 0xd5e   : > { %v2335_v54 = vpop.xlane.xlu1 %2334 }
 0xd5f   : > { %v2355_v55 = vadd.f32 %v2335_v54, %v2323_v47  ;;  %v2550_v47 = vpop.permute.xlu0 %2549 }
 0xd61   : > { %2581 = vst.msk [vmem:[#allocation3 + $0x8] sm:$0xff] %vm2571_vm5, %v2355_v55 }
 0xd62   : > { %v2347_v30 = vpop.xlane.xlu1 %2346 }
 0xd63   : > { %v2359_v25 = vadd.f32 %v2347_v30, %v2327_v23 }
 0xd65   : > { %2585 = vst.msk [vmem:[#allocation3 + $0x28] sm:$0xff] %vm2571_vm5, %v2359_v25  ;;  %v9870_v25 = vld [vmem:[#allocation96_spill] sm:$0xff] }
 0xd66   : > { %v2353_v1 = vpop.xlane.xlu1 %2352 }
 0xd67   : > { %v2361_v59 = vadd.f32 %v2353_v1, %v2329_v33  ;;  %v9871_v33 = vsub.f32 %v9869_v14, %v9870_v25 }
 0xd69   : > { %2587 = vst.msk [vmem:[#allocation3 + $0x38] sm:$0xff] %vm2571_vm5, %v2361_v59  ;;  %v2830_v1 = vmul.f32 1.442695, %v9871_v33  ;;  %vm5323_vm5 = vcmask 326656  }
 0xd6a   : > { %v2378_v19 = vpop.permute.xlu1 %2377 }
 0xd6b   : > { %v2411_v22 = vmul.f32 %v2378_v19, %v2363_v46  ;;  %v2369_v19 = vld [vmem:[#allocation4 + $0x38] sm:$0xff]  ;;  %6617 = vpow2.f32 %v2830_v1  ;;  %v2779_v1 = vld [vmem:[#allocation3 + $0x8] sm:$0xff] }
 0xd6d   : > { %v2564_v39 = vadd.f32 %v2542_v17, %v2411_v22  ;;  %v8514_v41 = vpop.f32.mrf.mxu0 }
 0xd6e   : > { %v2383_v4 = vpop.permute.xlu1 %2382 }
 0xd6f   : > { %2590 = vst.msk [vmem:[#allocation4 + $0x8] sm:$0xff] %vm2588_vm10, %v2564_v39  ;;  %v8516_v63 = vpop.f32.mrf.mxu0 }
 0xd71   : > { %v8518_v31 = vpop.f32.mrf.mxu0 }
 0xd72   : > { %v2388_v6 = vpop.permute.xlu1 %2387  ;;  %9864 = vst [vmem:[#allocation12_spill] sm:$0xff] %v8518_v31 }
 0xd73   : > { %v2413_v36 = vmul.f32 %v2388_v6, %v2365_v20  ;;  %v8521_v50 = vpop.f32.mrf.mxu0  ;;  %v9872_v20 = vld [vmem:[#allocation100_spill] sm:$0xff] }
 0xd74   : > { %9865 = vst [vmem:[#allocation14_spill] sm:$0xff] %v8521_v50  ;;  %v9873_v6 = vsub.f32 %v9872_v20, %v7781_v43  ;;  %v9612_v20 = vmov 6  }
 0xd75   : > { %v2566_v48 = vadd.f32 %v2546_v26, %v2413_v36  ;;  %v2362_v26 = vld [vmem:[#allocation4] sm:$0xff]  ;;  %6319 = vset.pattern.permute.xlu0 %v9612_v20 }
 0xd76   : > { %v2393_v57 = vpop.permute.xlu1 %2392  ;;  %v2834_v36 = vmul.f32 1.442695, %v9873_v6 }
 0xd77   : > { %2592 = vst.msk [vmem:[#allocation4 + $0x18] sm:$0xff] %vm2588_vm10, %v2566_v48  ;;  %v2554_v48 = vpop.permute.xlu0 %2553 }
 0xd78   : > { %6619 = vpow2.f32 %v2834_v36 }
 0xd7a   : > { %v2398_v11 = vpop.permute.xlu1 %2397 }
 0xd7b   : > { %v2415_v28 = vmul.f32 %v2398_v11, %v2367_v34  ;;  %v2410_v34 = vmul.f32 %v2373_v15, %v2362_v26 }
 0xd7d   : > { %v2568_v54 = vadd.f32 %v2550_v47, %v2415_v28  ;;  %v8526_v24 = vpop.f32.mrf.mxu0  ;;  %v9875_v47 = vsub.f32 %v9874_v51, %v7802_v27  ;;  %v6616_v27 = vpop.eup %6615 }
 0xd7e   : > { %v3960_v55 = vsel %vm311_vm1, %v8526_v24, -inf  ;;  %v2403_v23 = vpop.permute.xlu1 %2402 }
 0xd7f   : > { %2594 = vst.msk [vmem:[#allocation4 + $0x28] sm:$0xff] %vm2588_vm10, %v2568_v54  ;;  %3961 = vmax.xlane.f32.xlu1 %v3960_v55  ;;  %v8531_v30 = vpop.f32.mrf.mxu0  ;;  %v2838_v43 = vmul.f32 1.442695, %v9875_v47  ;;  %v2364_v54 = vld [vmem:[#allocation4 + $0x10] sm:$0xff] }
 0xd80   : > { %v3954_v46 = vsel %vm311_vm1, %v8531_v30, -inf  ;;  %v2412_v55 = vmul.f32 %v2383_v4, %v2364_v54 }
 0xd81   : > { %v8536_v59 = vpop.f32.mrf.mxu0  ;;  %6621 = vpow2.f32 %v2838_v43 }
 0xd82   : > { %v2408_v22 = vpop.permute.xlu1 %2407  ;;  %v3963_v15 = vsel %vm311_vm1, %v8536_v59, -inf }
 0xd83   : > { %3955 = vmax.xlane.f32.xlu1 %v3954_v46  ;;  %v8540_v17 = vpop.f32.mrf.mxu0  ;;  %v2417_v39 = vmul.f32 %v2408_v22, %v2369_v19  ;;  %v2366_v46 = vld [vmem:[#allocation4 + $0x20] sm:$0xff] }
 0xd84   : > { %v3957_v28 = vsel %vm311_vm1, %v8540_v17, -inf  ;;  %v2414_v22 = vmul.f32 %v2393_v57, %v2366_v46  ;;  %v2784_v46 = vld [vmem:[#allocation3 + $0x30] sm:$0xff] }
 0xd85   : > { %v2570_v11 = vadd.f32 %v2554_v48, %v2417_v39  ;;  %v8548_v38 = vpop.f32.mrf.mxu0  ;;  %v2907_v39 = vmul.f32 %v6616_v27, %v2779_v1  ;;  %v2780_v48 = vld [vmem:[#allocation3 + $0x10] sm:$0xff] }
 0xd86   : > { %v2540_v32 = vpop.permute.xlu1 %2539  ;;  %v3972_v19 = vsel %vm311_vm1, %v8548_v38, -inf }
 0xd87   : > { %2596 = vst.msk [vmem:[#allocation4 + $0x38] sm:$0xff] %vm2588_vm10, %v2570_v11  ;;  %3958 = vmax.xlane.f32.xlu1 %v3957_v28  ;;  %v2563_v2 = vadd.f32 %v2540_v32, %v2410_v34  ;;  %v8556_v25 = vpop.f32.mrf.mxu0  ;;  %v2368_v34 = vld [vmem:[#allocation4 + $0x30] sm:$0xff]  ;;  %v8564_v28 = vpop.eup %6617 }
 0xd88   : > { %v2416_v32 = vmul.f32 %v2403_v23, %v2368_v34  ;;  %v3966_v57 = vsel %vm311_vm1, %v8556_v25, -inf  ;;  %v2908_v51 = vmul.f32 %v8564_v28, %v2780_v48  ;;  %v9876_v48 = vld [vmem:[#allocation98_spill] sm:$0xff]  ;;  %v9877_v34 = vld [vmem:[#allocation99_spill] sm:$0xff] }
 0xd89   : > { %2589 = vst.msk [vmem:[#allocation4] sm:$0xff] %vm2588_vm10, %v2563_v2  ;;  %v8562_v6 = vpop.f32.mrf.mxu0 }
 0xd8a   : > { %v2544_v14 = vpop.permute.xlu1 %2543 }
 0xd8b   : > { %3964 = vmax.xlane.f32.xlu1 %v3963_v15  ;;  %v2565_v33 = vadd.f32 %v2544_v14, %v2412_v55  ;;  %v8571_v47 = vpop.f32.mrf.mxu0  ;;  %v2782_v55 = vld [vmem:[#allocation3 + $0x20] sm:$0xff]  ;;  %v8573_v14 = vpop.eup %6619 }
 0xd8c   : > { %v3969_v23 = vsel %vm311_vm1, %v8571_v47, -inf }
 0xd8d   : > { %2591 = vst.msk [vmem:[#allocation4 + $0x10] sm:$0xff] %vm2588_vm10, %v2565_v33  ;;  %v2910_v33 = vmul.f32 %v8573_v14, %v2782_v55 }
 0xd8e   : > { %v2548_v4 = vpop.permute.xlu1 %2547 }
 0xd8f   : > { %3973 = vmax.xlane.f32.xlu1 %v3972_v19  ;;  %v2567_v36 = vadd.f32 %v2548_v4, %v2414_v22  ;;  %v2919_v26 = vpop.xlane.xlu0 %2918  ;;  %v8580_v22 = vpop.eup %6621  ;;  %v3975_v4 = vsel %vm311_vm1, %v8562_v6, -inf }
 0xd90   : > { %v2939_v11 = vadd.f32 %v2919_v26, %v2907_v39  ;;  %v2912_v39 = vmul.f32 %v8580_v22, %v2784_v46 }
 0xd91   : > { %2593 = vst.msk [vmem:[#allocation4 + $0x20] sm:$0xff] %vm2588_vm10, %v2567_v36 }
 0xd92   : > { %3165 = vst.msk [vmem:[#allocation3 + $0x8] sm:$0xff] %vm3155_vm6, %v2939_v11  ;;  %v2552_v2 = vpop.permute.xlu1 %2551  ;;  %v9878_v11 = vsub.f32 %v9876_v48, %v9877_v34 }
 0xd93   : > { %3967 = vmax.xlane.f32.xlu1 %v3966_v57  ;;  %v2569_v43 = vadd.f32 %v2552_v2, %v2416_v32  ;;  %v2922_v54 = vpop.xlane.xlu0 %2921  ;;  %v9879_v57 = vld [vmem:[#allocation101_spill] sm:$0xff]  ;;  %v9880_v2 = vld [vmem:[#allocation102_spill] sm:$0xff] }
 0xd94   : > { %v2940_v15 = vadd.f32 %v2922_v54, %v2908_v51  ;;  %v2832_v32 = vmul.f32 1.442695, %v9878_v11  ;;  %v9881_v51 = vsub.f32 %v9879_v57, %v9880_v2  ;;  %v9882_v54 = vsub.f32 %v7799_v44, %v7805_v18  ;;  %v8611_v2 = vld [vmem:[#allocation2 + $0x10] sm:$0xff] }
 0xd95   : > { %2595 = vst.msk [vmem:[#allocation4 + $0x30] sm:$0xff] %vm2588_vm10, %v2569_v43 }
 0xd96   : > { %3166 = vst.msk [vmem:[#allocation3 + $0x10] sm:$0xff] %vm3155_vm6, %v2940_v15  ;;  %6623 = vpow2.f32 %v2832_v32  ;;  %v2836_v43 = vmul.f32 1.442695, %v9881_v51  ;;  %v2840_v55 = vmul.f32 1.442695, %v9882_v54  ;;  %v2778_v15 = vld [vmem:[#allocation3] sm:$0xff] }
 0xd97   : > { %3970 = vmax.xlane.f32.xlu1 %v3969_v23  ;;  %v2928_v1 = vpop.xlane.xlu0 %2927  ;;  %v5829_v54 = vld [vmem:[%s6825_s22 + $0x8] sm:$0xff]  }
 0xd98   : > { %v2942_v19 = vadd.f32 %v2928_v1, %v2910_v33  ;;  %6625 = vpow2.f32 %v2836_v43  ;;  %v2781_v33 = vld [vmem:[#allocation3 + $0x18] sm:$0xff] }
 0xd99   : > { %6627 = vpow2.f32 %v2840_v55  ;;  %v8620_v55 = vld [vmem:[#allocation2] sm:$0xff] }
 0xd9a   : > { %3168 = vst.msk [vmem:[#allocation3 + $0x20] sm:$0xff] %vm3155_vm6, %v2942_v19 }
 0xd9b   : > { %3976 = vmax.xlane.f32.xlu1 %v3975_v4  ;;  %v2934_v36 = vpop.xlane.xlu0 %2933 }
 0xd9c   : > { %v2944_v26 = vadd.f32 %v2934_v36, %v2912_v39  ;;  %v2783_v39 = vld [vmem:[#allocation3 + $0x28] sm:$0xff] }
 0xd9e   : > { %3170 = vst.msk [vmem:[#allocation3 + $0x30] sm:$0xff] %vm3155_vm6, %v2944_v26 }
 0xda3   : > { %v8598_v46 = vpop.eup %6623 }
 0xda4   : > { %v2909_v19 = vmul.f32 %v8598_v46, %v2781_v33  ;;  %v8630_v33 = vld [vmem:[#allocation2 + $0x8] sm:$0xff] }
 0xda5   : > { %v8602_v26 = vpop.eup %6625 }
 0xda6   : > { %v2911_v44 = vmul.f32 %v8602_v26, %v2783_v39  ;;  %v8606_v34 = vpop.eup %6627  ;;  %v8640_v39 = vld [vmem:[#allocation2 + $0x18] sm:$0xff] }
 0xda7   : > { %9883 = vst [vmem:[#allocation16_spill] sm:$0xff] %v8640_v39 }
 0xdac   : > { %2961 = vperm.xlu1 %6318, %v6616_v27   ;;  %v2906_v27 = vmul.f32 %v8475_v35, %v2778_v15  ;;  %v2785_v35 = vld [vmem:[#allocation3 + $0x38] sm:$0xff] }
 0xdad   : > { %v2913_v11 = vmul.f32 %v8606_v34, %v2785_v35  ;;  %v6441_v35 = vld [vmem:[%s6970_s26 + $0x18] sm:$0xff]  }
 0xdb0   : > { %6320 = vset.pattern.permute.xlu1 %v9612_v20  ;;  %v6447_v20 = vld [vmem:[%s6817_s19] sm:$0xff]  }
 0xdc3   : > { %v2916_v23 = vpop.xlane.xlu1 %2915 }
 0xdc4   : > { %v2938_v1 = vadd.f32 %v2916_v23, %v2906_v27 }
 0xdc6   : > { %3164 = vst.msk [vmem:[#allocation3] sm:$0xff] %vm3155_vm6, %v2938_v1 }
 0xdc7   : > { %v2925_v4 = vpop.xlane.xlu1 %2924 }
 0xdc8   : > { %v2941_v36 = vadd.f32 %v2925_v4, %v2909_v19  ;;  %v5798_v4 = vunpack.c.l.bf16 %v5829_v54 }
 0xdca   : > { %3167 = vst.msk [vmem:[#allocation3 + $0x18] sm:$0xff] %vm3155_vm6, %v2941_v36 }
 0xdcb   : > { %v2931_v18 = vpop.xlane.xlu1 %2930 }
 0xdcc   : > { %v2943_v48 = vadd.f32 %v2931_v18, %v2911_v44 }
 0xdce   : > { %3169 = vst.msk [vmem:[#allocation3 + $0x28] sm:$0xff] %vm3155_vm6, %v2943_v48  ;;  %v6443_v48 = vld [vmem:[%s6970_s26 + $0x10] sm:$0xff]  }
 0xdcf   : > { %v2937_v32 = vpop.xlane.xlu1 %2936 }
 0xdd0   : > { %v2945_v57 = vadd.f32 %v2937_v32, %v2913_v11  ;;  %v8653_v11 = vld [vmem:[#allocation2 + $0x30] sm:$0xff] }
 0xdd1   : > { %9885 = vst [vmem:[#allocation23_spill] sm:$0xff] %v8653_v11 }
 0xdd2   : > { %3171 = vst.msk [vmem:[#allocation3 + $0x38] sm:$0xff] %vm3155_vm6, %v2945_v57  ;;  %vm5332_vm6 = vcmask 392192  }
 0xe08   : > { %v3962_v51 = vpop.xlane.xlu1 %3961 }
 0xe09   : > { %v8614_v43 = vmax.f32 %v8611_v2, %v3962_v51 }
 0xe0b   : > { %4326 = vst.msk [vmem:[#allocation2 + $0x10] sm:$0xff] %vm4323_vm11, %v8614_v43 }
 0xe0c   : > { %v3956_v15 = vpop.xlane.xlu1 %3955 }
 0xe0d   : > { %v8623_v27 = vmax.f32 %v8620_v55, %v3956_v15  ;;  %v6442_v15 = vld [vmem:[%s6970_s26 + $0x8] sm:$0xff]  }
 0xe0f   : > { %4324 = vst.msk [vmem:[#allocation2] sm:$0xff] %vm4323_vm11, %v8623_v27  ;;  %4012 = vperm.xlu0 %6319, %v8623_v27  }
 0xe10   : > { %v3959_v1 = vpop.xlane.xlu1 %3958 }
 0xe11   : > { %v8633_v19 = vmax.f32 %v8630_v33, %v3959_v1  ;;  %v6444_v1 = vld [vmem:[%s6970_s26] sm:$0xff]  }
 0xe13   : > { %4325 = vst.msk [vmem:[#allocation2 + $0x8] sm:$0xff] %vm4323_vm11, %v8633_v19  ;;  %4017 = vperm.xlu1 %6320, %v8633_v19  }
 0xe14   : > { %v3965_v36 = vpop.xlane.xlu1 %3964 }
 0xe15   : > { %v8643_v44 = vmax.f32 %v8640_v39, %v3965_v36  ;;  %v8666_v36 = vld [vmem:[#allocation2 + $0x20] sm:$0xff] }
 0xe16   : > { %9887 = vst [vmem:[#allocation25_spill] sm:$0xff] %v8666_v36 }
 0xe17   : > { %9884 = vst [vmem:[#allocation18_spill] sm:$0xff] %v8643_v44  ;;  %4327 = vst.msk [vmem:[#allocation2 + $0x18] sm:$0xff] %vm4323_vm11, %v8643_v44  ;;  %4022 = vperm.xlu1 %6320, %v8614_v43   ;;  %4027 = vperm.xlu0 %6319, %v8643_v44  }
 0xe18   : > { %v3974_v32 = vpop.xlane.xlu1 %3973 }
 0xe19   : > { %v8656_v57 = vmax.f32 %v8653_v11, %v3974_v32  ;;  %v5831_v11 = vld [vmem:[%s6825_s22 + $0x18] sm:$0xff]  }
 0xe1a   : > { %v5806_v44 = vunpack.c.l.bf16 %v5831_v11  ;;  %v5807_v39 = vunpack.c.h.bf16 %v5831_v11 }
 0xe1b   : > { %9886 = vst [vmem:[#allocation22_spill] sm:$0xff] %v8656_v57  ;;  %4330 = vst.msk [vmem:[#allocation2 + $0x30] sm:$0xff] %vm4323_vm11, %v8656_v57  ;;  %4200 = vrot.lane.b32.xlu1 %v6441_v35, %s6762_s4  ;;  %4198 = vrot.lane.b32.xlu0 %v6443_v48, %s6762_s4  ;;  %v8677_v35 = vld [vmem:[#allocation2 + $0x28] sm:$0xff] }
 0xe1c   : > { %v3968_v18 = vpop.xlane.xlu1 %3967  ;;  %9889 = vst [vmem:[#allocation24_spill] sm:$0xff] %v8677_v35 }
 0xe1d   : > { %v8669_v23 = vmax.f32 %v8666_v36, %v3968_v18  ;;  %v6445_v18 = vld [vmem:[%s6817_s19 + $0x18] sm:$0xff]  }
 0xe1f   : > { %9888 = vst [vmem:[#allocation27_spill] sm:$0xff] %v8669_v23  ;;  %4328 = vst.msk [vmem:[#allocation2 + $0x20] sm:$0xff] %vm4323_vm11, %v8669_v23  ;;  %4196 = vrot.lane.b32.xlu1 %v6442_v15, %s6762_s4  ;;  %4194 = vrot.lane.b32.xlu0 %v6444_v1, %s6762_s4  ;;  %v8687_v15 = vld [vmem:[#allocation2 + $0x38] sm:$0xff] }
 0xe20   : > { %v3971_v48 = vpop.xlane.xlu1 %3970  ;;  %9891 = vst [vmem:[#allocation26_spill] sm:$0xff] %v8687_v15 }
 0xe21   : > { %v8680_v51 = vmax.f32 %v8677_v35, %v3971_v48  ;;  %v5793_v48 = vld [vmem:[%s6825_s22] sm:$0xff]   ;;  %v5799_v35 = vunpack.c.h.bf16 %v5829_v54 }
 0xe23   : > { %9890 = vst [vmem:[#allocation29_spill] sm:$0xff] %v8680_v51  ;;  %4329 = vst.msk [vmem:[#allocation2 + $0x28] sm:$0xff] %vm4323_vm11, %v8680_v51  ;;  %4042 = vperm.xlu1 %6320, %v8656_v57   ;;  %v4368_v36 = vmul.f32 0.35355338, %v5799_v35 }
 0xe24   : > { %v3977_v1 = vpop.xlane.xlu1 %3976 }
 0xe25   : > { %v8690_v32 = vmax.f32 %v8687_v15, %v3977_v1  ;;  %v6446_v1 = vld [vmem:[%s6817_s19 + $0x8] sm:$0xff]   ;;  %v5794_v15 = vunpack.c.l.bf16 %v5793_v48 }
 0xe27   : > { %9892 = vst [vmem:[#allocation28_spill] sm:$0xff] %v8690_v32  ;;  %4331 = vst.msk [vmem:[#allocation2 + $0x38] sm:$0xff] %vm4323_vm11, %v8690_v32  ;;  %4032 = vperm.xlu1 %6320, %v8669_v23   ;;  %4047 = vperm.xlu0 %6319, %v8690_v32   ;;  %v6448_v32 = vld [vmem:[%s6817_s19 + $0x10] sm:$0xff]   ;;  %s9392_s19 = scalar_lea.vmem %s9507_s3, %s6811_s16 }
 0xe28   : > { %v5830_v23 = vld [vmem:[%s6825_s22 + $0x10] sm:$0xff]  }
 0xe29   : > { %v5802_v31 = vunpack.c.l.bf16 %v5830_v23  ;;  %v5803_v57 = vunpack.c.h.bf16 %v5830_v23  ;;  %v4371_v23 = vmul.f32 0.35355338, %v5806_v44 }
 0xe2b   : > { %4431 = vrot.lane.b32.xlu1 %v6445_v18, %s6767_s8  ;;  %4037 = vperm.xlu0 %6319, %v8680_v51   ;;  %v5795_v18 = vunpack.c.h.bf16 %v5793_v48  ;;  %v4367_v51 = vmul.f32 0.35355338, %v5798_v4  ;;  %v4369_v50 = vmul.f32 0.35355338, %v5802_v31  ;;  %v4372_v4 = vmul.f32 0.35355338, %v5807_v39 }
 0xe2c   : > { %6322 = vset.pattern.permute.xlu1 %v9835_v58  ;;  %v9904_v39 = vld [vmem:[#allocation20_spill] sm:$0xff] }
 0xe2d   : > { %v4374_v54 = vpack.c.bf16 %v4368_v36, %v4367_v51  ;;  %v9906_v51 = vld [vmem:[#allocation7_spill] sm:$0xff] }
 0xe2e   : > { %v9907_v36 = vld [vmem:[#allocation15_spill] sm:$0xff] }
 0xe2f   : > { %4427 = vrot.lane.b32.xlu1 %v6446_v1, %s6767_s8  ;;  %6321 = vset.pattern.permute.xlu0 %v9835_v58  ;;  %v4365_v1 = vmul.f32 0.35355338, %v5794_v15  ;;  %v4366_v58 = vmul.f32 0.35355338, %v5795_v18 }
 0xe30   : > { %2966 = vperm.xlu0 %6321, %v8564_v28   ;;  %v4370_v28 = vmul.f32 0.35355338, %v5803_v57 }
 0xe31   : > { %v4373_v48 = vpack.c.bf16 %v4366_v58, %v4365_v1  ;;  %v9893_v58 = vmov 5  }
 0xe33   : > { %4425 = vrot.lane.b32.xlu1 %v6447_v20, %s6767_s8  ;;  %v4375_v20 = vpack.c.bf16 %v4370_v28, %v4369_v50  ;;  %v9899_v50 = vld [vmem:[#allocation17_spill] sm:$0xff] }
 0xe34   : > { %4429 = vrot.lane.b32.xlu0 %v6448_v32, %s6767_s8  ;;  %v9908_v32 = vsub.f32 %v9906_v51, %v9907_v36 }
 0xe36   : > { %v3420_v35 = vmul.f32 1.442695, %v9908_v32 }
 0xe37   : > { %2976 = vperm.xlu1 %6322, %v8573_v14   ;;  %v4376_v14 = vpack.c.bf16 %v4372_v4, %v4371_v23 }
 0xe38   : > { %2971 = vperm.xlu0 %6321, %v8598_v46   ;;  %v9901_v46 = vld [vmem:[#allocation6_spill] sm:$0xff] }
 0xe3b   : > { %4399 = vrot.lane.b32.xlu1 %v4374_v54, %s6767_s8 }
 0xe3c   : > { %4397 = vrot.lane.b32.xlu0 %v4373_v48, %s6767_s8  ;;  %v9909_v48 = vld [vmem:[#allocation8_spill] sm:$0xff] }
 0xe3f   : > { %4401 = vrot.lane.b32.xlu1 %v4375_v20, %s6767_s8  ;;  %v9910_v20 = vld [vmem:[#allocation11_spill] sm:$0xff] }
 0xe40   : > { %2981 = vperm.xlu0 %6321, %v8602_v26   ;;  %v8763_v26 = vpop.permute.xlu1 %2961  ;;  %v9911_v23 = vsub.f32 %v9909_v48, %v9910_v20 }
 0xe43   : > { %2986 = vperm.xlu1 %6322, %v8580_v22   ;;  %v9900_v22 = vld [vmem:[#allocation21_spill] sm:$0xff] }
 0xe44   : > { %4403 = vrot.lane.b32.xlu0 %v4376_v14, %s6767_s8 }
 0xe47   : > { %3123 = vrot.lane.b32.xlu1 %v7996_v62, %s6768_s9  ;;  %v3498_v62 = vsel %vm311_vm1, %v8234_v56, 0.0  ;;  %v9895_v56 = vsub.f32 %v8104_v29, %v8111_v42  ;;  %v9902_v29 = vsub.f32 %v9900_v22, %v9901_v46 }
 0xe48   : > { %2991 = vperm.xlu0 %6321, %v8606_v34   ;;  %6323 = vset.pattern.permute.xlu1 %v9893_v58  ;;  %v9903_v34 = vld [vmem:[#allocation10_spill] sm:$0xff] }
 0xe49   : > { %v3418_v42 = vmul.f32 1.442695, %v9902_v29  ;;  %v9905_v44 = vsub.f32 %v9903_v34, %v9904_v39 }
 0xe4b   : > { %3127 = vrot.lane.b32.xlu1 %v7994_v5, %s6768_s9  ;;  %v3501_v5 = vsel %vm311_vm1, %v8236_v45, 0.0  ;;  %v3414_v45 = vmul.f32 1.442695, %v9895_v56  ;;  %v3412_v11 = vmul.f32 1.442695, %v9905_v44 }
 0xe4c   : > { %3125 = vrot.lane.b32.xlu0 %v8000_v37, %s6768_s9  ;;  %v3510_v37 = vsel %vm311_vm1, %v8323_v13, 0.0  ;;  %v9896_v13 = vld [vmem:[#allocation19_spill] sm:$0xff] }
 0xe4d   : > { %6324 = vset.pattern.permute.xlu0 %v9893_v58 }
 0xe4f   : > { %3131 = vrot.lane.b32.xlu1 %v8004_v52, %s6768_s9 }
 0xe50   : > { %3129 = vrot.lane.b32.xlu0 %v7998_v12, %s6768_s9  ;;  %v3504_v12 = vsel %vm311_vm1, %v8245_v8, 0.0  ;;  %v3513_v8 = vsel %vm311_vm1, %v8327_v49, 0.0 }
 0xe53   : > { %3135 = vrot.lane.b32.xlu1 %v8002_v3, %s6768_s9  ;;  %v9894_v3 = vsub.f32 %v8075_v0, %v8078_v53  ;;  %v9897_v0 = vld [vmem:[#allocation9_spill] sm:$0xff] }
 0xe54   : > { %3133 = vrot.lane.b32.xlu0 %v8008_v9, %s6768_s9  ;;  %v3507_v9 = vsel %vm311_vm1, %v8247_v7, 0.0  ;;  %v9898_v53 = vsub.f32 %v9896_v13, %v9897_v0  ;;  %v3519_v7 = vsel %vm311_vm1, %v9899_v50, 0.0  ;;  %v9915_v13 = vsub.f32 %v8630_v33, %v8633_v19 }
 0xe55   : > { %v3410_v52 = vmul.f32 1.442695, %v9894_v3  ;;  %v9912_v3 = vld [vmem:[#allocation13_spill] sm:$0xff] }
 0xe56   : > { %v3416_v31 = vmul.f32 1.442695, %v9898_v53  ;;  %v3996_v0 = vmul.f32 1.442695, %v9915_v13 }
 0xe57   : > { %6629 = vpow2.f32 %v3410_v52  ;;  %v9913_v52 = vld [vmem:[#allocation5_spill] sm:$0xff] }
 0xe58   : > { %3137 = vrot.lane.b32.xlu0 %v8006_v21, %s6768_s9  ;;  %v3516_v21 = vsel %vm311_vm1, %v8331_v40, 0.0  ;;  %6631 = vpow2.f32 %v3414_v45  ;;  %v8756_v40 = vpop.permute.xlu0 %2956 }
 0xe59   : > { %6633 = vpow2.f32 %v3416_v31 }
 0xe5a   : > { %6635 = vpow2.f32 %v3418_v42  ;;  %v9916_v42 = vmov 6  }
 0xe5b   : > { %6637 = vpow2.f32 %v3412_v11 }
 0xe5c   : > { %6639 = vpow2.f32 %v3420_v35 }
 0xe64   : > { %v8772_v1 = vpop.eup %6629 }
 0xe77   : > { %3499 = vadd.xlane.f32.xlu1 %v3498_v62  ;;  %3502 = vadd.xlane.f32.xlu0 %v3501_v5  ;;  %v8779_v62 = vpop.eup %6631 }
 0xe78   : > { %v8787_v45 = vpop.eup %6633 }
 0xe7b   : > { %3511 = vadd.xlane.f32.xlu1 %v3510_v37  ;;  %3505 = vadd.xlane.f32.xlu0 %v3504_v12 }
 0xe7f   : > { %3517 = vadd.xlane.f32.xlu1 %v3516_v21  ;;  %3508 = vadd.xlane.f32.xlu0 %v3507_v9  ;;  %v9914_v21 = vsub.f32 %v9912_v3, %v9913_v52  ;;  %v9922_v52 = vld [vmem:[#allocation14_spill] sm:$0xff] }
 0xe81   : > { %v3424_v9 = vmul.f32 1.442695, %v9914_v21 }
 0xe83   : > { %3514 = vadd.xlane.f32.xlu0 %v3513_v8 }
 0xe87   : > { %3520 = vadd.xlane.f32.xlu0 %v3519_v7 }
 0xe8a   : > { %v4013_v49 = vpop.permute.xlu0 %4012 }
 0xe8b   : > { %v4050_v57 = vsub.f32 %v8531_v30, %v4013_v49  ;;  %v3422_v30 = vmul.f32 1.442695, %v9911_v23 }
 0xe8d   : > { %v4058_v15 = vmul.f32 1.442695, %v4050_v57 }
 0xe8e   : > { %v4018_v18 = vpop.permute.xlu1 %4017 }
 0xe8f   : > { %v4051_v54 = vsub.f32 %v8540_v17, %v4018_v18  ;;  %6641 = vpow2.f32 %v4058_v15 }
 0xe90   : > { %3540 = vperm.xlu1 %6323, %v8772_v1  }
 0xe91   : > { %v4060_v28 = vmul.f32 1.442695, %v4051_v54 }
 0xe92   : > { %v4028_v4 = vpop.permute.xlu0 %4027  ;;  %v4023_v14 = vpop.permute.xlu1 %4022 }
 0xe93   : > { %6643 = vpow2.f32 %v4060_v28  ;;  %v4053_v5 = vsub.f32 %v8536_v59, %v4028_v4  ;;  %v4052_v37 = vsub.f32 %v8526_v24, %v4023_v14  ;;  %v8790_v59 = vpop.eup %6635  ;;  %v9917_v28 = vsub.f32 %v8611_v2, %v8614_v43  ;;  %v9920_v14 = vld [vmem:[#allocation18_spill] sm:$0xff] }
 0xe94   : > { %3550 = vperm.xlu1 %6323, %v8779_v62   ;;  %6645 = vpow2.f32 %v3422_v30  ;;  %v8795_v53 = vpop.eup %6637 }
 0xe95   : > { %v4064_v17 = vmul.f32 1.442695, %v4053_v5  ;;  %v4062_v12 = vmul.f32 1.442695, %v4052_v37  ;;  %v8799_v31 = vpop.eup %6639  ;;  %v3998_v48 = vmul.f32 1.442695, %v9917_v28 }
 0xe96   : > { %v4201_v56 = vpop.permute.xlu1 %4200  ;;  %v4199_v8 = vpop.permute.xlu0 %4198 }
 0xe97   : > { %6647 = vpow2.f32 %v4064_v17  ;;  %6168 = vmatprep.subr.bf16.mxu1 %v4201_v56 }
 0xe98   : > { %6649 = vpow2.f32 %v4062_v12  ;;  %3555 = vperm.xlu1 %6323, %v8787_v45   ;;  %6169 = vmatpush3.bf16.msra.mxu1 %v4201_v56  ;;  %v9924_v56 = vld [vmem:[#allocation22_spill] sm:$0xff] }
 0xe99   : > { %6170 = vmatprep.subr.bf16.mxu1 %v4199_v8  ;;  %6651 = vpow2.f32 %v3424_v9  ;;  %v9923_v9 = vld [vmem:[#allocation23_spill] sm:$0xff] }
 0xe9a   : > { %v4197_v24 = vpop.permute.xlu1 %4196  ;;  %v4195_v50 = vpop.permute.xlu0 %4194  ;;  %6653 = vpow2.f32 %v3996_v0 }
 0xe9c   : > { %3560 = vperm.xlu1 %6323, %v8790_v59   ;;  %6171 = vmatpush3.bf16.msra.mxu1 %v4199_v8  ;;  %v8801_v22 = vpop.eup %6641  ;;  %v9925_v8 = vsub.f32 %v9923_v9, %v9924_v56  ;;  %v2949_v9 = vld [vmem:[#allocation4 + $0x18] sm:$0xff] }
 0xe9d   : > { %3545 = vperm.xlu0 %6324, %v8795_v53   ;;  %6172 = vmatprep.subr.bf16.mxu1 %v4197_v24 }
 0xe9e   : > { %v4043_v7 = vpop.permute.xlu1 %4042 }
 0xea0   : > { %v8803_v46 = vpop.eup %6643  ;;  %3565 = vperm.xlu1 %6323, %v8799_v31   ;;  %6173 = vmatpush3.bf16.msra.mxu1 %v4197_v24  ;;  %v4006_v24 = vmul.f32 1.442695, %v9925_v8 }
 0xea1   : > { %3711 = vrot.lane.b32.xlu0 %v8500_v10, %s6769_s10  ;;  %6174 = vmatprep.subr.bf16.mxu1 %v4195_v50  ;;  %v4170_v33 = vpack.c.bf16 %v8803_v46, %v8801_v22  ;;  %v8811_v49 = vpop.eup %6645  ;;  %v4056_v10 = vsub.f32 %v8548_v38, %v4043_v7  ;;  %v9926_v7 = vld [vmem:[#allocation12_spill] sm:$0xff] }
 0xea2   : > { %v4048_v19 = vpop.permute.xlu0 %4047  ;;  %v4033_v29 = vpop.permute.xlu1 %4032  ;;  %6326 = vset.pattern.permute.xlu0 %v9916_v42 }
 0xea3   : > { %v4057_v34 = vsub.f32 %v8562_v6, %v4048_v19  ;;  %v4054_v39 = vsub.f32 %v8556_v25, %v4033_v29  ;;  %6176 = vmatprep.mubr.msk.bf16.mxu1 %vm311_vm1, %v4170_v33  ;;  %v4070_v15 = vmul.f32 1.442695, %v4056_v10  ;;  %v9927_v33 = vld [vmem:[#allocation25_spill] sm:$0xff]  ;;  %v9928_v19 = vld [vmem:[#allocation27_spill] sm:$0xff] }
 0xea4   : > { %v8816_v44 = vpop.eup %6647  ;;  %3570 = vperm.xlu1 %6323, %v8811_v49   ;;  %6175 = vmatpush3.bf16.msra.mxu1 %v4195_v50  ;;  %v9929_v29 = vsub.f32 %v9927_v33, %v9928_v19  ;;  %v2952_v33 = vld [vmem:[#allocation4 + $0x30] sm:$0xff] }
 0xea5   : > { %v8820_v11 = vpop.eup %6649  ;;  %v4072_v57 = vmul.f32 1.442695, %v4057_v34  ;;  %3715 = vrot.lane.b32.xlu0 %v8516_v63, %s6769_s10  ;;  %v4066_v51 = vmul.f32 1.442695, %v4054_v39 }
 0xea6   : > { %v4171_v6 = vpack.c.bf16 %v8816_v44, %v8820_v11  ;;  %v4038_v25 = vpop.permute.xlu0 %4037  ;;  %v4432_v36 = vpop.permute.xlu1 %4431  ;;  %v4002_v34 = vmul.f32 1.442695, %v9929_v29 }
 0xea7   : > { %v8826_v32 = vpop.eup %6651  ;;  %v4055_v35 = vsub.f32 %v8571_v47, %v4038_v25  ;;  %6244 = vmatprep.subr.msk.bf16.mxu1 %vm294_vm0, %v4432_v36  ;;  %v4455_v38 = vsel %vm294_vm0, %v4432_v36, 0  ;;  %6655 = vpow2.f32 %v4072_v57  ;;  %v9930_v36 = vld [vmem:[#allocation26_spill] sm:$0xff] }
 0xea8   : > { %6177 = vmatmul.mubr.msk.bf16.vlgmr.msra.gmra.mxu1 %vm311_vm1, %v4171_v6  ;;  %3575 = vperm.xlu1 %6323, %v8826_v32   ;;  %6657 = vpow2.f32 %v4066_v51  ;;  %v8835_v47 = vpop.eup %6653  ;;  %v2946_v51 = vld [vmem:[#allocation4] sm:$0xff] }
 0xea9   : > { %v4068_v63 = vmul.f32 1.442695, %v4055_v35  ;;  %3719 = vrot.lane.b32.xlu0 %v8514_v41, %s6769_s10  ;;  %6185 = vmatpush3.bf16.xpose.msra.mxu1 %v4455_v38  ;;  %v2994_v25 = vmul.f32 %v8756_v40, %v2946_v51  ;;  %v9931_v35 = vld [vmem:[#allocation28_spill] sm:$0xff] }
 0xeaa   : > { %v4428_v18 = vpop.permute.xlu1 %4427  ;;  %v9932_v38 = vsub.f32 %v9930_v36, %v9931_v35  ;;  %v9933_v40 = vld [vmem:[#allocation24_spill] sm:$0xff]  ;;  %v4091_v35 = vsel %vm311_vm1, %v8816_v44, 0.0  ;;  %v4085_v44 = vsel %vm311_vm1, %v8803_v46, 0.0 }
 0xeab   : > { %6659 = vpow2.f32 %v4068_v63  ;;  %v2967_v54 = vpop.permute.xlu0 %2966  ;;  %v4449_v12 = vsel %vm294_vm0, %v4428_v18, 0 }
 0xeac   : > { %6661 = vpow2.f32 %v4070_v15  ;;  %3707 = vrot.lane.b32.xlu1 %v8504_v60, %s6769_s10  ;;  %v9918_v60 = vsub.f32 %v8620_v55, %v8623_v27  ;;  %v4008_v15 = vmul.f32 1.442695, %v9932_v38 }
 0xead   : > { %4129 = vperm.xlu0 %6326, %v8835_v47   ;;  %6325 = vset.pattern.permute.xlu1 %v9916_v42  ;;  %6663 = vpow2.f32 %v3998_v48 }
 0xeae   : > { %v4426_v41 = vpop.permute.xlu1 %4425  ;;  %v3994_v30 = vmul.f32 1.442695, %v9918_v60  ;;  %v9934_v60 = vld [vmem:[#allocation29_spill] sm:$0xff] }
 0xeaf   : > { %v4430_v20 = vpop.permute.xlu0 %4429  ;;  %v4446_v10 = vsel %vm294_vm0, %v4426_v41, 0 }
 0xeb0   : > { %3709 = vrot.lane.b32.xlu1 %v8511_v61, %s6769_s10  ;;  %6245 = vmatprep.subr.msk.bf16.mxu1 %vm294_vm0, %v4430_v20  ;;  %v4452_v23 = vsel %vm294_vm0, %v4430_v20, 0  ;;  %6665 = vpow2.f32 %v3994_v30  ;;  %v9919_v61 = vld [vmem:[#allocation16_spill] sm:$0xff]  ;;  %v2947_v20 = vld [vmem:[#allocation4 + $0x8] sm:$0xff]  ;;  %v9935_v30 = vsub.f32 %v9933_v40, %v9934_v60  ;;  %v3364_v40 = vld [vmem:[#allocation3 + $0x10] sm:$0xff] }
 0xeb1   : > { %6187 = vmatpush3.bf16.xpose.msra.mxu1 %v4452_v23  ;;  %v9921_v5 = vsub.f32 %v9919_v61, %v9920_v14  ;;  %v2995_v14 = vmul.f32 %v8763_v26, %v2947_v20  ;;  %v3366_v60 = vld [vmem:[#allocation3 + $0x20] sm:$0xff]  ;;  %v3492_v46 = vmul.f32 %v8779_v62, %v3364_v40 }
 0xeb2   : > { %v2977_v4 = vpop.permute.xlu1 %2976  ;;  %6246 = vmatprep.subr.msk.bf16.mxu1 %vm294_vm0, %v4428_v18  ;;  %v4004_v61 = vmul.f32 1.442695, %v9935_v30 }
 0xeb3   : > { %v2972_v2 = vpop.permute.xlu0 %2971  ;;  %v4000_v37 = vmul.f32 1.442695, %v9921_v5 }
 0xeb4   : > { %3713 = vrot.lane.b32.xlu1 %v8508_v16, %s6769_s10  ;;  %v8854_v43 = vpop.eup %6655  ;;  %v2997_v56 = vmul.f32 %v2972_v2, %v2949_v9 }
 0xeb5   : > { %v8860_v3 = vpop.eup %6657  ;;  %6667 = vpow2.f32 %v4000_v37 }
 0xeb6   : > { %v4400_v17 = vpop.permute.xlu1 %4399  ;;  %6669 = vpow2.f32 %v4006_v24 }
 0xeb7   : > { %v4398_v55 = vpop.permute.xlu0 %4397  ;;  %6671 = vpow2.f32 %v4002_v34 }
 0xeb8   : > { %v8862_v27 = vpop.eup %6659  ;;  %3717 = vrot.lane.b32.xlu1 %v9922_v52, %s6769_s10  ;;  %6673 = vpow2.f32 %v4008_v15  ;;  %v2950_v52 = vld [vmem:[#allocation4 + $0x20] sm:$0xff] }
 0xeb9   : > { %v8866_v21 = vpop.eup %6661  ;;  %v4172_v16 = vpack.c.bf16 %v8862_v27, %v8860_v3  ;;  %6189 = vmatpush3.bf16.xpose.msra.mxu1 %v4449_v12  ;;  %6675 = vpow2.f32 %v4004_v61  ;;  %v4097_v15 = vsel %vm311_vm1, %v8862_v27, 0.0 }
 0xeba   : > { %v4402_v13 = vpop.permute.xlu1 %4401  ;;  %v4173_v0 = vpack.c.bf16 %v8854_v43, %v8866_v21  ;;  %6247 = vmatprep.subr.msk.bf16.mxu1 %vm294_vm0, %v4426_v41  ;;  %v8885_v57 = vpop.eup %6663  ;;  %v2948_v41 = vld [vmem:[#allocation4 + $0x10] sm:$0xff] }
 0xebb   : > { %v2982_v50 = vpop.permute.xlu0 %2981  ;;  %6180 = vmatprep.mubr.msk.bf16.mxu1 %vm311_vm1, %v4172_v16  ;;  %v2996_v23 = vmul.f32 %v2967_v54, %v2948_v41  ;;  %v2998_v54 = vmul.f32 %v2977_v4, %v2950_v52  ;;  %v2951_v4 = vld [vmem:[#allocation4 + $0x28] sm:$0xff]  ;;  %v4100_v41 = vsel %vm311_vm1, %v8866_v21, 0.0  ;;  %v3494_v21 = vmul.f32 %v8790_v59, %v3366_v60 }
 0xebc   : > { %3721 = vrot.lane.b32.xlu1 %v9926_v7, %s6769_s10  ;;  %6181 = vmatmul.mubr.msk.bf16.gmra.mxu1 %vm311_vm1, %v4173_v0  ;;  %v4088_v7 = vsel %vm311_vm1, %v8820_v11, 0.0  ;;  %v2999_v2 = vmul.f32 %v2982_v50, %v2951_v4  ;;  %v4082_v11 = vsel %vm311_vm1, %v8801_v22, 0.0 }
 0xebd   : > { %6192 = vmatprep.mubr.msk.bf16.mxu1 %vm294_vm0, %v4398_v55  ;;  %v8892_v18 = vpop.eup %6665 }
 0xebe   : > { %v2987_v39 = vpop.permute.xlu1 %2986 }
 0xebf   : > { %v4404_v6 = vpop.permute.xlu0 %4403  ;;  %v3000_v19 = vmul.f32 %v2987_v39, %v2952_v33 }
 0xec0   : > { %4134 = vperm.xlu1 %6325, %v8885_v57  }
 0xec1   : > { %6191 = vmatpush3.bf16.xpose.msra.mxu1 %v4446_v10 }
 0xec2   : > { %v3124_v63 = vpop.permute.xlu1 %3123  ;;  %v8900_v37 = vpop.eup %6667 }
 0xec3   : > { %v3147_v28 = vadd.f32 %v3124_v63, %v2994_v25  ;;  %v2992_v48 = vpop.permute.xlu0 %2991  ;;  %v8907_v8 = vpop.eup %6669  ;;  %v2953_v25 = vld [vmem:[#allocation4 + $0x38] sm:$0xff]  ;;  %v3363_v63 = vld [vmem:[#allocation3 + $0x8] sm:$0xff] }
 0xec4   : > { %4124 = vperm.xlu1 %6325, %v8892_v18   ;;  %v8914_v29 = vpop.eup %6671  ;;  %v3001_v50 = vmul.f32 %v2992_v48, %v2953_v25  ;;  %v3491_v48 = vmul.f32 %v8795_v53, %v3363_v63  ;;  %v4094_v53 = vsel %vm311_vm1, %v8860_v3, 0.0  ;;  %v3367_v3 = vld [vmem:[#allocation3 + $0x28] sm:$0xff] }
 0xec5   : > { %3173 = vst.msk [vmem:[#allocation4] sm:$0xff] %vm3172_vm12, %v3147_v28  ;;  %v8922_v39 = vpop.eup %6673  ;;  %v3362_v28 = vld [vmem:[#allocation3] sm:$0xff] }
 0xec6   : > { %v3128_v5 = vpop.permute.xlu1 %3127  ;;  %v8928_v22 = vpop.eup %6675 }
 0xec7   : > { %v3149_v12 = vadd.f32 %v3128_v5, %v2996_v23  ;;  %v3126_v55 = vpop.permute.xlu0 %3125  ;;  %v3368_v5 = vld [vmem:[#allocation3 + $0x30] sm:$0xff] }
 0xec8   : > { %v3148_v16 = vadd.f32 %v3126_v55, %v2995_v14  ;;  %4139 = vperm.xlu1 %6325, %v8900_v37   ;;  %6193 = vmatmul.mubr.msk.bf16.vlgmr.msra.gmra.mxu1 %vm294_vm0, %v4400_v17  ;;  %v3365_v14 = vld [vmem:[#allocation3 + $0x18] sm:$0xff]  ;;  %v3496_v62 = vmul.f32 %v8811_v49, %v3368_v5 }
 0xec9   : > { %3175 = vst.msk [vmem:[#allocation4 + $0x10] sm:$0xff] %vm3172_vm12, %v3149_v12  ;;  %6196 = vmatprep.mubr.msk.bf16.mxu1 %vm294_vm0, %v4402_v13  ;;  %v3493_v52 = vmul.f32 %v8787_v45, %v3365_v14 }
 0xeca   : > { %3174 = vst.msk [vmem:[#allocation4 + $0x8] sm:$0xff] %vm3172_vm12, %v3148_v16  ;;  %v3132_v26 = vpop.permute.xlu1 %3131 }
 0xecb   : > { %v3151_v24 = vadd.f32 %v3132_v26, %v2998_v54  ;;  %v3130_v0 = vpop.permute.xlu0 %3129 }
 0xecc   : > { %v3150_v17 = vadd.f32 %v3130_v0, %v2997_v56  ;;  %4154 = vperm.xlu1 %6325, %v8907_v8   ;;  %4089 = vadd.xlane.f32.xlu0 %v4088_v7  ;;  %v3495_v56 = vmul.f32 %v8799_v31, %v3367_v3  ;;  %v3369_v0 = vld [vmem:[#allocation3 + $0x38] sm:$0xff]  ;;  %v3530_v63 = vld [vmem:[#allocation4] sm:$0xff] }
 0xecd   : > { %3177 = vst.msk [vmem:[#allocation4 + $0x20] sm:$0xff] %vm3172_vm12, %v3151_v24  ;;  %v3497_v45 = vmul.f32 %v8826_v32, %v3369_v0 }
 0xece   : > { %3176 = vst.msk [vmem:[#allocation4 + $0x18] sm:$0xff] %vm3172_vm12, %v3150_v17  ;;  %v3136_v13 = vpop.permute.xlu1 %3135 }
 0xecf   : > { %v3153_v34 = vadd.f32 %v3136_v13, %v3000_v19  ;;  %v3134_v10 = vpop.permute.xlu0 %3133 }
 0xed0   : > { %v3152_v51 = vadd.f32 %v3134_v10, %v2999_v2  ;;  %4144 = vperm.xlu1 %6325, %v8914_v29   ;;  %4083 = vadd.xlane.f32.xlu0 %v4082_v11  ;;  %v3532_v13 = vld [vmem:[#allocation4 + $0x10] sm:$0xff] }
 0xed1   : > { %3179 = vst.msk [vmem:[#allocation4 + $0x30] sm:$0xff] %vm3172_vm12, %v3153_v34  ;;  %6197 = vmatmul.mubr.msk.bf16.gmra.mxu1 %vm294_vm0, %v4404_v6  ;;  %v4103_v6 = vsel %vm311_vm1, %v8854_v43, 0.0  ;;  %v3490_v43 = vmul.f32 %v8772_v1, %v3362_v28 }
 0xed2   : > { %3178 = vst.msk [vmem:[#allocation4 + $0x28] sm:$0xff] %vm3172_vm12, %v3152_v51 }
 0xed3   : > { %v3138_v36 = vpop.permute.xlu0 %3137 }
 0xed4   : > { %v3154_v38 = vadd.f32 %v3138_v36, %v3001_v50  ;;  %4159 = vperm.xlu1 %6325, %v8922_v39   ;;  %4092 = vadd.xlane.f32.xlu0 %v4091_v35  ;;  %v3534_v51 = vld [vmem:[#allocation4 + $0x20] sm:$0xff] }
 0xed5   : > { %v3533_v60 = vld [vmem:[#allocation4 + $0x18] sm:$0xff] }
 0xed6   : > { %3180 = vst.msk [vmem:[#allocation4 + $0x38] sm:$0xff] %vm3172_vm12, %v3154_v38 }
 0xed8   : > { %4149 = vperm.xlu1 %6325, %v8928_v22   ;;  %4104 = vadd.xlane.f32.xlu0 %v4103_v6  ;;  %v3536_v35 = vld [vmem:[#allocation4 + $0x30] sm:$0xff] }
 0xedc   : > { %4098 = vadd.xlane.f32.xlu0 %v4097_v15 }
 0xedd   : > { %v3537_v14 = vld [vmem:[#allocation4 + $0x38] sm:$0xff] }
 0xefc   : > { %4086 = vadd.xlane.f32.xlu1 %v4085_v44 }
 0xf00   : > { %v3503_v20 = vpop.xlane.xlu0 %3502  ;;  %4101 = vadd.xlane.f32.xlu1 %v4100_v41  ;;  %v3500_v23 = vpop.xlane.xlu1 %3499 }
 0xf01   : > { %v3523_v27 = vadd.f32 %v3503_v20, %v3491_v48  ;;  %v3522_v30 = vadd.f32 %v3500_v23, %v3490_v43  ;;  %v3531_v43 = vld [vmem:[#allocation4 + $0x8] sm:$0xff] }
 0xf03   : > { %3749 = vst.msk [vmem:[#allocation3 + $0x8] sm:$0xff] %vm3739_vm7, %v3523_v27  ;;  %3748 = vst.msk [vmem:[#allocation3] sm:$0xff] %vm3739_vm7, %v3522_v30 }
 0xf04   : > { %v3506_v61 = vpop.xlane.xlu0 %3505  ;;  %4095 = vadd.xlane.f32.xlu1 %v4094_v53  ;;  %v3512_v1 = vpop.xlane.xlu1 %3511  ;;  %v3535_v53 = vld [vmem:[#allocation4 + $0x28] sm:$0xff] }
 0xf05   : > { %v3524_v12 = vadd.f32 %v3506_v61, %v3492_v46  ;;  %v3526_v55 = vadd.f32 %v3512_v1, %v3494_v21 }
 0xf07   : > { %3750 = vst.msk [vmem:[#allocation3 + $0x10] sm:$0xff] %vm3739_vm7, %v3524_v12  ;;  %3752 = vst.msk [vmem:[#allocation3 + $0x20] sm:$0xff] %vm3739_vm7, %v3526_v55 }
 0xf08   : > { %v3509_v16 = vpop.xlane.xlu0 %3508  ;;  %v3518_v54 = vpop.xlane.xlu1 %3517 }
 0xf09   : > { %v3525_v9 = vadd.f32 %v3509_v16, %v3493_v52  ;;  %v3528_v59 = vadd.f32 %v3518_v54, %v3496_v62 }
 0xf0a   : > { %v3946_v3 = vld [vmem:[#allocation3] sm:$0xff] }
 0xf0b   : > { %3751 = vst.msk [vmem:[#allocation3 + $0x18] sm:$0xff] %vm3739_vm7, %v3525_v9  ;;  %3754 = vst.msk [vmem:[#allocation3 + $0x30] sm:$0xff] %vm3739_vm7, %v3528_v59  ;;  %v4074_v59 = vmul.f32 %v8892_v18, %v3946_v3 }
 0xf0c   : > { %v3515_v26 = vpop.xlane.xlu0 %3514  ;;  %v3541_v24 = vpop.permute.xlu1 %3540 }
 0xf0d   : > { %v3527_v7 = vadd.f32 %v3515_v26, %v3495_v56  ;;  %v3578_v28 = vmul.f32 %v3541_v24, %v3530_v63 }
 0xf0e   : > { %v3948_v62 = vld [vmem:[#allocation3 + $0x10] sm:$0xff] }
 0xf0f   : > { %3753 = vst.msk [vmem:[#allocation3 + $0x28] sm:$0xff] %vm3739_vm7, %v3527_v7  ;;  %v4076_v16 = vmul.f32 %v8885_v57, %v3948_v62  ;;  %v6771_v62 = vmov 7  }
 0xf10   : > { %v3521_v49 = vpop.xlane.xlu0 %3520  ;;  %v3551_v33 = vpop.permute.xlu1 %3550  ;;  %6327 = vset.pattern.permute.xlu1 %v6771_v62  ;;  %6328 = vset.pattern.permute.xlu0 %v6771_v62 }
 0xf11   : > { %v3529_v17 = vadd.f32 %v3521_v49, %v3497_v45  ;;  %v3580_v34 = vmul.f32 %v3551_v33, %v3532_v13 }
 0xf12   : > { %v3949_v26 = vld [vmem:[#allocation3 + $0x18] sm:$0xff]  ;;  %v3952_v63 = vld [vmem:[#allocation3 + $0x30] sm:$0xff] }
 0xf13   : > { %3755 = vst.msk [vmem:[#allocation3 + $0x38] sm:$0xff] %vm3739_vm7, %v3529_v17  ;;  %v4077_v0 = vmul.f32 %v8900_v37, %v3949_v26  ;;  %vm5341_vm7 = vcmask 457728  }
 0xf14   : > { %v3556_v4 = vpop.permute.xlu1 %3555 }
 0xf15   : > { %v3581_v27 = vmul.f32 %v3556_v4, %v3533_v60 }
 0xf16   : > { %v3951_v4 = vld [vmem:[#allocation3 + $0x28] sm:$0xff] }
 0xf18   : > { %v3546_v19 = vpop.permute.xlu0 %3545  ;;  %v3561_v2 = vpop.permute.xlu1 %3560 }
 0xf19   : > { %v3582_v25 = vmul.f32 %v3561_v2, %v3534_v51  ;;  %v3579_v20 = vmul.f32 %v3546_v19, %v3531_v43  ;;  %v4079_v2 = vmul.f32 %v8928_v22, %v3951_v4  ;;  %v3950_v43 = vld [vmem:[#allocation3 + $0x20] sm:$0xff] }
 0xf1a   : > { %v3953_v49 = vld [vmem:[#allocation3 + $0x38] sm:$0xff] }
 0xf1b   : > { %v4081_v57 = vmul.f32 %v8922_v39, %v3953_v49 }
 0xf1c   : > { %v3712_v31 = vpop.permute.xlu0 %3711  ;;  %v3566_v10 = vpop.permute.xlu1 %3565 }
 0xf1d   : > { %v3733_v11 = vadd.f32 %v3712_v31, %v3580_v34  ;;  %v3583_v21 = vmul.f32 %v3566_v10, %v3535_v53 }
 0xf1f   : > { %3759 = vst.msk [vmem:[#allocation4 + $0x10] sm:$0xff] %vm3756_vm13, %v3733_v11 }
 0xf20   : > { %v3716_v50 = vpop.permute.xlu0 %3715  ;;  %v3571_v32 = vpop.permute.xlu1 %3570 }
 0xf21   : > { %v3735_v36 = vadd.f32 %v3716_v50, %v3582_v25  ;;  %v3584_v38 = vmul.f32 %v3571_v32, %v3536_v35 }
 0xf23   : > { %3761 = vst.msk [vmem:[#allocation4 + $0x20] sm:$0xff] %vm3756_vm13, %v3735_v36 }
 0xf24   : > { %v3720_v6 = vpop.permute.xlu0 %3719  ;;  %v3576_v15 = vpop.permute.xlu1 %3575 }
 0xf25   : > { %v3737_v44 = vadd.f32 %v3720_v6, %v3584_v38  ;;  %v3585_v5 = vmul.f32 %v3576_v15, %v3537_v14  ;;  %v3947_v38 = vld [vmem:[#allocation3 + $0x8] sm:$0xff] }
 0xf26   : > { %v4075_v15 = vmul.f32 %v8835_v47, %v3947_v38  ;;  %v4116_v3 = vld [vmem:[#allocation4 + $0x10] sm:$0xff] }
 0xf27   : > { %3763 = vst.msk [vmem:[#allocation4 + $0x30] sm:$0xff] %vm3756_vm13, %v3737_v44 }
 0xf28   : > { %v3708_v48 = vpop.permute.xlu1 %3707  ;;  %v8965_v52 = vpop.permute.xlu0 %4129 }
 0xf29   : > { %v3731_v41 = vadd.f32 %v3708_v48, %v3578_v28  ;;  %v4080_v48 = vmul.f32 %v8907_v8, %v3952_v63 }
 0xf2b   : > { %3757 = vst.msk [vmem:[#allocation4] sm:$0xff] %vm3756_vm13, %v3731_v41 }
 0xf2c   : > { %v3710_v23 = vpop.permute.xlu1 %3709 }
 0xf2d   : > { %v3732_v40 = vadd.f32 %v3710_v23, %v3579_v20  ;;  %v4078_v23 = vmul.f32 %v8914_v29, %v3950_v43 }
 0xf2f   : > { %3758 = vst.msk [vmem:[#allocation4 + $0x8] sm:$0xff] %vm3756_vm13, %v3732_v40 }
 0xf30   : > { %v3714_v30 = vpop.permute.xlu1 %3713 }
 0xf31   : > { %v3734_v46 = vadd.f32 %v3714_v30, %v3581_v27 }
 0xf33   : > { %3760 = vst.msk [vmem:[#allocation4 + $0x18] sm:$0xff] %vm3756_vm13, %v3734_v46 }
 0xf34   : > { %v3718_v61 = vpop.permute.xlu1 %3717 }
 0xf35   : > { %v3736_v1 = vadd.f32 %v3718_v61, %v3583_v21 }
 0xf37   : > { %3762 = vst.msk [vmem:[#allocation4 + $0x28] sm:$0xff] %vm3756_vm13, %v3736_v1 }
 0xf38   : > { %v3722_v12 = vpop.permute.xlu1 %3721 }
 0xf39   : > { %v3738_v55 = vadd.f32 %v3722_v12, %v3585_v5 }
 0xf3a   : > { %v4117_v49 = vld [vmem:[#allocation4 + $0x18] sm:$0xff] }
 0xf3b   : > { %3764 = vst.msk [vmem:[#allocation4 + $0x38] sm:$0xff] %vm3756_vm13, %v3738_v55 }
 0xf3c   : > { %v8972_v7 = vpop.permute.xlu1 %4134 }
 0xf3e   : > { %v4119_v38 = vld [vmem:[#allocation4 + $0x28] sm:$0xff] }
 0xf40   : > { %v8976_v18 = vpop.permute.xlu1 %4124 }
 0xf44   : > { %v8981_v31 = vpop.permute.xlu1 %4139 }
 0xf48   : > { %v8983_v11 = vpop.permute.xlu1 %4154 }
 0xf4c   : > { %v8985_v25 = vpop.permute.xlu1 %4144 }
 0xf50   : > { %v8987_v22 = vpop.permute.xlu1 %4159 }
 0xf54   : > { %v8989_v35 = vpop.permute.xlu1 %4149 }
 0xf55   : > { %v4090_v54 = vpop.xlane.xlu0 %4089 }
 0xf56   : > { %v4108_v9 = vadd.f32 %v4090_v54, %v4076_v16 }
 0xf58   : > { %4334 = vst.msk [vmem:[#allocation3 + $0x10] sm:$0xff] %vm4323_vm11, %v4108_v9  ;;  %v4164_v9 = vmul.f32 %v8972_v7, %v4116_v3  ;;  %v4527_v3 = vld [vmem:[#allocation2 + $0x28] sm:$0xff] }
 0xf59   : > { %v4084_v56 = vpop.xlane.xlu0 %4083 }
 0xf5a   : > { %v4106_v24 = vadd.f32 %v4084_v56, %v4074_v59  ;;  %v4114_v59 = vld [vmem:[#allocation4] sm:$0xff] }
 0xf5b   : > { %v4162_v26 = vmul.f32 %v8976_v18, %v4114_v59  ;;  %v4120_v18 = vld [vmem:[#allocation4 + $0x30] sm:$0xff] }
 0xf5c   : > { %4332 = vst.msk [vmem:[#allocation3] sm:$0xff] %vm4323_vm11, %v4106_v24 }
 0xf5d   : > { %v4093_v45 = vpop.xlane.xlu0 %4092 }
 0xf5e   : > { %v4109_v33 = vadd.f32 %v4093_v45, %v4077_v0 }
 0xf60   : > { %4335 = vst.msk [vmem:[#allocation3 + $0x18] sm:$0xff] %vm4323_vm11, %v4109_v33  ;;  %v4165_v33 = vmul.f32 %v8981_v31, %v4117_v49  ;;  %v4121_v31 = vld [vmem:[#allocation4 + $0x38] sm:$0xff] }
 0xf61   : > { %v4105_v17 = vpop.xlane.xlu0 %4104 }
 0xf62   : > { %v4113_v19 = vadd.f32 %v4105_v17, %v4081_v57  ;;  %v4115_v17 = vld [vmem:[#allocation4 + $0x8] sm:$0xff] }
 0xf63   : > { %v4163_v7 = vmul.f32 %v8965_v52, %v4115_v17 }
 0xf64   : > { %4339 = vst.msk [vmem:[#allocation3 + $0x38] sm:$0xff] %vm4323_vm11, %v4113_v19 }
 0xf65   : > { %v4099_v13 = vpop.xlane.xlu0 %4098 }
 0xf66   : > { %v4111_v37 = vadd.f32 %v4099_v13, %v4079_v2  ;;  %v4168_v13 = vmul.f32 %v8983_v11, %v4120_v18 }
 0xf68   : > { %4337 = vst.msk [vmem:[#allocation3 + $0x28] sm:$0xff] %vm4323_vm11, %v4111_v37  ;;  %v6178_v34 = vpop.f32.mrf.mxu1 }
 0xf69   : > { %4295 = vrot.lane.b32.xlu0 %v6178_v34, %s6770_s11 }
 0xf6a   : > { %v4252_v10 = vpop.f32.mrf.mxu1 }
 0xf6b   : > { %4291 = vrot.lane.b32.xlu1 %v4252_v10, %s6770_s11  ;;  %v4118_v10 = vld [vmem:[#allocation4 + $0x20] sm:$0xff] }
 0xf6c   : > { %v6179_v39 = vpop.f32.mrf.mxu1 }
 0xf6e   : > { %v4255_v51 = vpop.f32.mrf.mxu1 }
 0xf6f   : > { %4297 = vrot.lane.b32.xlu1 %v6179_v39, %s6770_s11  ;;  %v4166_v39 = vmul.f32 %v8985_v25, %v4118_v10  ;;  %v4522_v25 = vld [vmem:[#allocation2] sm:$0xff] }
 0xf73   : > { %4293 = vrot.lane.b32.xlu1 %v4255_v51, %s6770_s11  ;;  %v4169_v51 = vmul.f32 %v8987_v22, %v4121_v31 }
 0xf7c   : > { %v6182_v50 = vpop.f32.mrf.mxu1 }
 0xf7d   : > { %4303 = vrot.lane.b32.xlu0 %v6182_v50, %s6770_s11 }
 0xf7e   : > { %v4268_v32 = vpop.f32.mrf.mxu1 }
 0xf80   : > { %v6183_v36 = vpop.f32.mrf.mxu1 }
 0xf81   : > { %4299 = vrot.lane.b32.xlu0 %v4268_v32, %s6770_s11  ;;  %4305 = vrot.lane.b32.xlu1 %v6183_v36, %s6770_s11 }
 0xf82   : > { %v4271_v6 = vpop.f32.mrf.mxu1 }
 0xf85   : > { %4301 = vrot.lane.b32.xlu1 %v4271_v6, %s6770_s11  ;;  %v4087_v44 = vpop.xlane.xlu1 %4086  ;;  %v4167_v6 = vmul.f32 %v8989_v35, %v4119_v38 }
 0xf86   : > { %v4107_v28 = vadd.f32 %v4087_v44, %v4075_v15 }
 0xf88   : > { %4333 = vst.msk [vmem:[#allocation3 + $0x8] sm:$0xff] %vm4323_vm11, %v4107_v28  ;;  %v8996_v60 = vpop.f32.mrf.mxu1  ;;  %v6449_v28 = vld [vmem:[%s6970_s26 + $0x8] sm:$0xff]  }
 0xf89   : > { %v4102_v41 = vpop.xlane.xlu1 %4101  ;;  %v4544_v29 = vsel %vm311_vm1, %v8996_v60, -inf }
 0xf8a   : > { %v4112_v20 = vadd.f32 %v4102_v41, %v4080_v48  ;;  %v8999_v47 = vpop.f32.mrf.mxu1  ;;  %v4524_v48 = vld [vmem:[#allocation2 + $0x10] sm:$0xff] }
 0xf8b   : > { %v4538_v53 = vsel %vm311_vm1, %v8999_v47, -inf }
 0xf8c   : > { %4338 = vst.msk [vmem:[#allocation3 + $0x30] sm:$0xff] %vm4323_vm11, %v4112_v20  ;;  %v9001_v30 = vpop.f32.mrf.mxu1  ;;  %v4525_v20 = vld [vmem:[#allocation2 + $0x18] sm:$0xff] }
 0xf8d   : > { %v4096_v40 = vpop.xlane.xlu1 %4095  ;;  %v4547_v1 = vsel %vm311_vm1, %v9001_v30, -inf }
 0xf8e   : > { %v4110_v27 = vadd.f32 %v4096_v40, %v4078_v23  ;;  %v9003_v46 = vpop.f32.mrf.mxu1 }
 0xf8f   : > { %v4541_v5 = vsel %vm311_vm1, %v9003_v46, -inf }
 0xf90   : > { %4336 = vst.msk [vmem:[#allocation3 + $0x20] sm:$0xff] %vm4323_vm11, %v4110_v27  ;;  %v4523_v27 = vld [vmem:[#allocation2 + $0x8] sm:$0xff] }
 0xf91   : > { %v9005_v8 = vpop.f32.mrf.mxu1 }
 0xf92   : > { %v4556_v12 = vsel %vm311_vm1, %v9005_v8, -inf }
 0xf93   : > { %v9009_v21 = vpop.f32.mrf.mxu1 }
 0xf94   : > { %v4550_v16 = vsel %vm311_vm1, %v9009_v21, -inf }
 0xf95   : > { %v9013_v61 = vpop.f32.mrf.mxu1 }
 0xf96   : > { %v4559_v54 = vsel %vm311_vm1, %v9013_v61, -inf }
 0xf97   : > { %v9017_v14 = vpop.f32.mrf.mxu1 }
 0xf98   : > { %v4553_v55 = vsel %vm311_vm1, %v9017_v14, -inf }
 0xfa0   : > { %4539 = vmax.xlane.f32.xlu0 %v4538_v53 }
 0xfa4   : > { %4545 = vmax.xlane.f32.xlu0 %v4544_v29 }
 0xfa8   : > { %4548 = vmax.xlane.f32.xlu0 %v4547_v1 }
 0xfa9   : > { %4542 = vmax.xlane.f32.xlu1 %v4541_v5 }
 0xfac   : > { %4557 = vmax.xlane.f32.xlu0 %v4556_v12  ;;  %v4528_v12 = vld [vmem:[#allocation2 + $0x30] sm:$0xff] }
 0xfad   : > { %4554 = vmax.xlane.f32.xlu1 %v4553_v55 }
 0xfb0   : > { %4551 = vmax.xlane.f32.xlu0 %v4550_v16 }
 0xfb1   : > { %4560 = vmax.xlane.f32.xlu1 %v4559_v54 }
 0xfdb   : > { %v4296_v56 = vpop.permute.xlu0 %4295 }
 0xfdc   : > { %v4317_v24 = vadd.f32 %v4296_v56, %v4164_v9 }
 0xfdd   : > { %v4292_v0 = vpop.permute.xlu1 %4291 }
 0xfde   : > { %4343 = vst.msk [vmem:[#allocation4 + $0x10] sm:$0xff] %vm4340_vm14, %v4317_v24  ;;  %v4315_v45 = vadd.f32 %v4292_v0, %v4162_v26  ;;  %v4526_v26 = vld [vmem:[#allocation2 + $0x20] sm:$0xff] }
 0xfe0   : > { %4341 = vst.msk [vmem:[#allocation4] sm:$0xff] %vm4340_vm14, %v4315_v45  ;;  %v4529_v45 = vld [vmem:[#allocation2 + $0x38] sm:$0xff] }
 0xfe1   : > { %v4298_v57 = vpop.permute.xlu1 %4297 }
 0xfe2   : > { %v4318_v4 = vadd.f32 %v4298_v57, %v4165_v33 }
 0xfe4   : > { %4344 = vst.msk [vmem:[#allocation4 + $0x18] sm:$0xff] %vm4340_vm14, %v4318_v4 }
 0xfe5   : > { %v4294_v19 = vpop.permute.xlu1 %4293 }
 0xfe6   : > { %v4316_v2 = vadd.f32 %v4294_v19, %v4163_v7 }
 0xfe8   : > { %4342 = vst.msk [vmem:[#allocation4 + $0x8] sm:$0xff] %vm4340_vm14, %v4316_v2 }
 0xfef   : > { %v4304_v37 = vpop.permute.xlu0 %4303 }
 0xff0   : > { %v4321_v34 = vadd.f32 %v4304_v37, %v4168_v13 }
 0xff2   : > { %4347 = vst.msk [vmem:[#allocation4 + $0x30] sm:$0xff] %vm4340_vm14, %v4321_v34  ;;  %v6450_v34 = vld [vmem:[%s6970_s26 + $0x18] sm:$0xff]  }
 0xff3   : > { %v4300_v50 = vpop.permute.xlu0 %4299  ;;  %v4306_v32 = vpop.permute.xlu1 %4305 }
 0xff4   : > { %v4319_v52 = vadd.f32 %v4300_v50, %v4166_v39  ;;  %v4322_v36 = vadd.f32 %v4306_v32, %v4169_v51  ;;  %v6451_v51 = vld [vmem:[%s6970_s26 + $0x10] sm:$0xff]  }
 0xff6   : > { %4345 = vst.msk [vmem:[#allocation4 + $0x20] sm:$0xff] %vm4340_vm14, %v4319_v52  ;;  %4348 = vst.msk [vmem:[#allocation4 + $0x38] sm:$0xff] %vm4340_vm14, %v4322_v36  ;;  %v6452_v52 = vld [vmem:[%s6970_s26] sm:$0xff]  }
 0xff7   : > { %v4302_v11 = vpop.permute.xlu1 %4301 }
 0xff8   : > { %v4320_v15 = vadd.f32 %v4302_v11, %v4167_v6  ;;  %v9936_v6 = vmov 1  }
 0xffa   : > { %4346 = vst.msk [vmem:[#allocation4 + $0x28] sm:$0xff] %vm4340_vm14, %v4320_v15 }
0x1029   : > { %v4540_v22 = vpop.xlane.xlu0 %4539 }
0x102a   : > { %v4562_v44 = vmax.f32 %v4522_v25, %v4540_v22 }
0x102c   : > { %v4570_v63 = vsub.f32 %v4522_v25, %v4562_v44  ;;  %4908 = vst.msk [vmem:[#allocation2] sm:$0xff] %vm4907_vm15, %v4562_v44  ;;  %4596 = vperm.xlu0 %6328, %v4562_v44   ;;  %v9937_v25 = vmov 0  }
0x102d   : > { %v4546_v41 = vpop.xlane.xlu0 %4545 }
0x102e   : > { %v4578_v35 = vmul.f32 1.442695, %v4570_v63  ;;  %v4564_v43 = vmax.f32 %v4524_v48, %v4546_v41 }
0x1030   : > { %6677 = vpow2.f32 %v4578_v35  ;;  %4910 = vst.msk [vmem:[#allocation2 + $0x10] sm:$0xff] %vm4907_vm15, %v4564_v43  ;;  %4606 = vperm.xlu1 %6327, %v4564_v43   ;;  %4780 = vrot.lane.b32.xlu0 %v6449_v28, %s6767_s8  ;;  %v4572_v2 = vsub.f32 %v4524_v48, %v4564_v43 }
0x1031   : > { %v4549_v23 = vpop.xlane.xlu0 %4548 }
0x1032   : > { %v4565_v40 = vmax.f32 %v4525_v20, %v4549_v23  ;;  %v4543_v53 = vpop.xlane.xlu1 %4542  ;;  %v4582_v13 = vmul.f32 1.442695, %v4572_v2 }
0x1033   : > { %v4563_v29 = vmax.f32 %v4523_v27, %v4543_v53 }
0x1034   : > { %v4573_v1 = vsub.f32 %v4525_v20, %v4565_v40  ;;  %4911 = vst.msk [vmem:[#allocation2 + $0x18] sm:$0xff] %vm4907_vm15, %v4565_v40  ;;  %4611 = vperm.xlu1 %6327, %v4565_v40  }
0x1035   : > { %v4571_v5 = vsub.f32 %v4523_v27, %v4563_v29  ;;  %4909 = vst.msk [vmem:[#allocation2 + $0x8] sm:$0xff] %vm4907_vm15, %v4563_v29  ;;  %v4558_v55 = vpop.xlane.xlu0 %4557 }
0x1036   : > { %v4584_v16 = vmul.f32 1.442695, %v4573_v1  ;;  %v4568_v54 = vmax.f32 %v4528_v12, %v4558_v55  ;;  %v4555_v9 = vpop.xlane.xlu1 %4554 }
0x1037   : > { %v4567_v59 = vmax.f32 %v4527_v3, %v4555_v9  ;;  %v4580_v56 = vmul.f32 1.442695, %v4571_v5 }
0x1038   : > { %6679 = vpow2.f32 %v4584_v16  ;;  %4914 = vst.msk [vmem:[#allocation2 + $0x30] sm:$0xff] %vm4907_vm15, %v4568_v54  ;;  %4601 = vperm.xlu1 %6327, %v4563_v29   ;;  %v4576_v37 = vsub.f32 %v4528_v12, %v4568_v54 }
0x1039   : > { %4913 = vst.msk [vmem:[#allocation2 + $0x28] sm:$0xff] %vm4907_vm15, %v4567_v59  ;;  %v4552_v24 = vpop.xlane.xlu0 %4551  ;;  %6681 = vpow2.f32 %v4580_v56  ;;  %v4575_v17 = vsub.f32 %v4527_v3, %v4567_v59 }
0x103a   : > { %v4566_v0 = vmax.f32 %v4526_v26, %v4552_v24  ;;  %v4561_v49 = vpop.xlane.xlu1 %4560  ;;  %v4590_v31 = vmul.f32 1.442695, %v4576_v37 }
0x103b   : > { %v4569_v33 = vmax.f32 %v4529_v45, %v4561_v49  ;;  %v4588_v19 = vmul.f32 1.442695, %v4575_v17 }
0x103c   : > { %4912 = vst.msk [vmem:[#allocation2 + $0x20] sm:$0xff] %vm4907_vm15, %v4566_v0  ;;  %4626 = vperm.xlu1 %6327, %v4568_v54   ;;  %v4574_v39 = vsub.f32 %v4526_v26, %v4566_v0 }
0x103d   : > { %v9056_v57 = vpop.eup %6677  ;;  %v4577_v4 = vsub.f32 %v4529_v45, %v4569_v33  ;;  %4915 = vst.msk [vmem:[#allocation2 + $0x38] sm:$0xff] %vm4907_vm15, %v4569_v33 }
0x103e   : > { %4708 = vperm.xlu0 %6328, %v9056_v57   ;;  %v4586_v32 = vmul.f32 1.442695, %v4574_v39 }
0x103f   : > { %v4592_v7 = vmul.f32 1.442695, %v4577_v4 }
0x1040   : > { %4616 = vperm.xlu1 %6327, %v4566_v0  }
0x1041   : > { %6683 = vpow2.f32 %v4592_v7 }
0x1042   : > { %6685 = vpow2.f32 %v4588_v19 }
0x1043   : > { %6687 = vpow2.f32 %v4582_v13 }
0x1044   : > { %4631 = vperm.xlu1 %6327, %v4569_v33   ;;  %6689 = vpow2.f32 %v4590_v31 }
0x1045   : > { %v9060_v18 = vpop.eup %6679  ;;  %6691 = vpow2.f32 %v4586_v32 }
0x1046   : > { %4723 = vperm.xlu0 %6328, %v9060_v18   ;;  %v9064_v10 = vpop.eup %6681 }
0x1048   : > { %4621 = vperm.xlu1 %6327, %v4567_v59  }
0x104a   : > { %4713 = vperm.xlu0 %6328, %v9064_v10  }
0x104c   : > { %4784 = vrot.lane.b32.xlu1 %v6450_v34, %s6767_s8 }
0x104e   : > { %v9069_v50 = vpop.eup %6683 }
0x104f   : > { %4743 = vperm.xlu0 %6328, %v9069_v50   ;;  %v9074_v36 = vpop.eup %6685 }
0x1050   : > { %4782 = vrot.lane.b32.xlu1 %v6451_v51, %s6767_s8  ;;  %v9078_v38 = vpop.eup %6687 }
0x1051   : > { %v9082_v11 = vpop.eup %6689 }
0x1052   : > { %v9085_v15 = vpop.eup %6691 }
0x1053   : > { %4733 = vperm.xlu0 %6328, %v9074_v36  }
0x1054   : > { %4778 = vrot.lane.b32.xlu1 %v6452_v52, %s6767_s8 }
0x1057   : > { %6337 = vset.pattern.permute.xlu0 %v9936_v6 }
0x1058   : > { %4718 = vperm.xlu1 %6327, %v9078_v38  }
0x105c   : > { %4738 = vperm.xlu1 %6327, %v9082_v11  }
0x1060   : > { %4728 = vperm.xlu1 %6327, %v9085_v15  }
0x1064   : > { %6329 = vset.pattern.permute.xlu1 %v9937_v25 }
0x10a7   : > { %v4597_v22 = vpop.permute.xlu0 %4596 }
0x10a8   : > { %v4634_v44 = vsub.f32 %v8999_v47, %v4597_v22 }
0x10aa   : > { %v4642_v63 = vmul.f32 1.442695, %v4634_v44 }
0x10ab   : > { %v4607_v28 = vpop.permute.xlu1 %4606 }
0x10ac   : > { %6693 = vpow2.f32 %v4642_v63  ;;  %v4636_v48 = vsub.f32 %v8996_v60, %v4607_v28 }
0x10ae   : > { %v4646_v41 = vmul.f32 1.442695, %v4636_v48  ;;  %v4530_v48 = vld [vmem:[#allocation3] sm:$0xff] }
0x10af   : > { %v4612_v35 = vpop.permute.xlu1 %4611 }
0x10b0   : > { %6695 = vpow2.f32 %v4646_v41  ;;  %v4637_v43 = vsub.f32 %v9001_v30, %v4612_v35  ;;  %v4658_v41 = vmul.f32 %v9056_v57, %v4530_v48  ;;  %v4531_v57 = vld [vmem:[#allocation3 + $0x8] sm:$0xff] }
0x10b2   : > { %v4648_v20 = vmul.f32 1.442695, %v4637_v43 }
0x10b3   : > { %v4602_v23 = vpop.permute.xlu1 %4601 }
0x10b4   : > { %6697 = vpow2.f32 %v4648_v20  ;;  %v4635_v40 = vsub.f32 %v9003_v46, %v4602_v23  ;;  %v4532_v23 = vld [vmem:[#allocation3 + $0x10] sm:$0xff] }
0x10b6   : > { %v4644_v27 = vmul.f32 1.442695, %v4635_v40  ;;  %v4660_v40 = vmul.f32 %v9078_v38, %v4532_v23  ;;  %v4536_v38 = vld [vmem:[#allocation3 + $0x30] sm:$0xff] }
0x10b7   : > { %v4627_v53 = vpop.permute.xlu1 %4626 }
0x10b8   : > { %6699 = vpow2.f32 %v4644_v27  ;;  %v4640_v47 = vsub.f32 %v9005_v8, %v4627_v53 }
0x10b9   : > { %v6694_v29 = vpop.eup %6693 }
0x10ba   : > { %v4654_v1 = vmul.f32 1.442695, %v4640_v47  ;;  %v4666_v5 = vsel %vm311_vm1, %v6694_v29, 0.0  ;;  %v4533_v47 = vld [vmem:[#allocation3 + $0x18] sm:$0xff] }
0x10bb   : > { %4667 = vadd.xlane.f32.xlu1 %v4666_v5  ;;  %v4617_v60 = vpop.permute.xlu1 %4616 }
0x10bc   : > { %6701 = vpow2.f32 %v4654_v1  ;;  %v4638_v12 = vsub.f32 %v9009_v21, %v4617_v60 }
0x10bd   : > { %v6696_v30 = vpop.eup %6695 }
0x10be   : > { %v4650_v55 = vmul.f32 1.442695, %v4638_v12  ;;  %v4672_v16 = vsel %vm311_vm1, %v6696_v30, 0.0  ;;  %v4659_v12 = vmul.f32 %v9064_v10, %v4531_v57 }
0x10bf   : > { %4673 = vadd.xlane.f32.xlu0 %v4672_v16  ;;  %v4632_v46 = vpop.permute.xlu1 %4631 }
0x10c0   : > { %6703 = vpow2.f32 %v4650_v55  ;;  %v4641_v54 = vsub.f32 %v9013_v61, %v4632_v46  ;;  %v4664_v46 = vmul.f32 %v9082_v11, %v4536_v38 }
0x10c1   : > { %v6698_v3 = vpop.eup %6697 }
0x10c2   : > { %v4656_v8 = vmul.f32 1.442695, %v4641_v54  ;;  %v4675_v9 = vsel %vm311_vm1, %v6698_v3, 0.0  ;;  %v4755_v37 = vpack.c.bf16 %v6698_v3, %v6696_v30  ;;  %v4534_v3 = vld [vmem:[#allocation3 + $0x20] sm:$0xff] }
0x10c3   : > { %4676 = vadd.xlane.f32.xlu1 %v4675_v9  ;;  %v4622_v59 = vpop.permute.xlu1 %4621 }
0x10c4   : > { %6705 = vpow2.f32 %v4656_v8  ;;  %v4639_v56 = vsub.f32 %v9017_v14, %v4622_v59  ;;  %v4781_v14 = vpop.permute.xlu0 %4780  ;;  %v4662_v8 = vmul.f32 %v9085_v15, %v4534_v3 }
0x10c5   : > { %v6700_v26 = vpop.eup %6699 }
0x10c6   : > { %v4652_v21 = vmul.f32 1.442695, %v4639_v56  ;;  %v4669_v24 = vsel %vm311_vm1, %v6700_v26, 0.0  ;;  %v4754_v0 = vpack.c.bf16 %v6700_v26, %v6694_v29  ;;  %v4661_v29 = vmul.f32 %v9060_v18, %v4533_v47  ;;  %v4537_v56 = vld [vmem:[#allocation3 + $0x38] sm:$0xff] }
0x10c7   : > { %4670 = vadd.xlane.f32.xlu0 %v4669_v24  ;;  %v4785_v45 = vpop.permute.xlu1 %4784  ;;  %v4665_v10 = vmul.f32 %v9069_v50, %v4537_v56  ;;  %v9939_v50 = vmov 2  }
0x10c8   : > { %6707 = vpow2.f32 %v4652_v21  ;;  %6200 = vmatprep.subr.bf16.mxu0 %v4785_v45  ;;  %6208 = vmatprep.mubr.msk.bf16.mxu0 %vm311_vm1, %v4754_v0  ;;  %v9109_v51 = vpop.permute.xlu0 %4708  ;;  %v4535_v0 = vld [vmem:[#allocation3 + $0x28] sm:$0xff] }
0x10c9   : > { %v6702_v61 = vpop.eup %6701  ;;  %6201 = vmatpush3.bf16.msra.mxu0 %v4785_v45  ;;  %v4663_v11 = vmul.f32 %v9074_v36, %v4535_v0 }
0x10ca   : > { %v4684_v49 = vsel %vm311_vm1, %v6702_v61, 0.0 }
0x10cb   : > { %4685 = vadd.xlane.f32.xlu0 %v4684_v49  ;;  %v4783_v33 = vpop.permute.xlu1 %4782 }
0x10cc   : > { %6202 = vmatprep.subr.bf16.mxu0 %v4783_v33  ;;  %v9111_v32 = vpop.permute.xlu0 %4723 }
0x10cd   : > { %v6704_v17 = vpop.eup %6703  ;;  %6203 = vmatpush3.bf16.msra.mxu0 %v4783_v33  ;;  %v9938_v33 = vmov 3  }
0x10ce   : > { %v4678_v4 = vsel %vm311_vm1, %v6704_v17, 0.0  ;;  %6204 = vmatprep.subr.bf16.mxu0 %v4781_v14 }
0x10cf   : > { %4679 = vadd.xlane.f32.xlu0 %v4678_v4  ;;  %v4779_v19 = vpop.permute.xlu1 %4778 }
0x10d0   : > { %v9115_v22 = vpop.permute.xlu0 %4713 }
0x10d1   : > { %v6706_v7 = vpop.eup %6705  ;;  %6205 = vmatpush3.bf16.msra.mxu0 %v4781_v14  ;;  %v9940_v14 = vmov 4  }
0x10d2   : > { %v4687_v2 = vsel %vm311_vm1, %v6706_v7, 0.0  ;;  %6206 = vmatprep.subr.bf16.mxu0 %v4779_v19  ;;  %v4757_v39 = vpack.c.bf16 %v6706_v7, %v6702_v61 }
0x10d3   : > { %4688 = vadd.xlane.f32.xlu1 %v4687_v2  ;;  %v9113_v52 = vpop.permute.xlu1 %4718 }
0x10d4   : > { %v9119_v63 = vpop.permute.xlu0 %4743 }
0x10d5   : > { %v6708_v13 = vpop.eup %6707  ;;  %6207 = vmatpush3.bf16.msra.mxu0 %v4779_v19 }
0x10d6   : > { %v4681_v34 = vsel %vm311_vm1, %v6708_v13, 0.0  ;;  %v4756_v31 = vpack.c.bf16 %v6708_v13, %v6704_v17 }
0x10d7   : > { %4682 = vadd.xlane.f32.xlu1 %v4681_v34  ;;  %v9117_v44 = vpop.permute.xlu1 %4738 }
0x10d8   : > { %6209 = vmatmul.mubr.msk.bf16.vlgmr.msra.gmra.mxu0 %vm311_vm1, %v4755_v37  ;;  %v9124_v35 = vpop.permute.xlu0 %4733 }
0x10d9   : > { %6212 = vmatprep.mubr.msk.bf16.mxu0 %vm311_vm1, %v4756_v31 }
0x10db   : > { %v9121_v28 = vpop.permute.xlu1 %4728 }
0x10e0   : > { %6213 = vmatmul.mubr.msk.bf16.gmra.mxu0 %vm311_vm1, %v4757_v39  ;;  %vm4924_vm1 = vcmask 523712  }
0x1144   : > { %v4668_v43 = vpop.xlane.xlu1 %4667 }
0x1145   : > { %v4690_v20 = vadd.f32 %v4668_v43, %v4658_v41 }
0x1147   : > { %4916 = vst.msk [vmem:[#allocation3] sm:$0xff] %vm4907_vm15, %v4690_v20 }
0x1148   : > { %v4674_v27 = vpop.xlane.xlu0 %4673 }
0x1149   : > { %v4692_v53 = vadd.f32 %v4674_v27, %v4660_v40 }
0x114b   : > { %4918 = vst.msk [vmem:[#allocation3 + $0x10] sm:$0xff] %vm4907_vm15, %v4692_v53 }
0x114c   : > { %v4677_v1 = vpop.xlane.xlu1 %4676 }
0x114d   : > { %v4693_v5 = vadd.f32 %v4677_v1, %v4661_v29 }
0x114e   : > { %v4944_v60 = vld [vmem:[#allocation3] sm:$0xff] }
0x114f   : > { %6709 = vrcp.f32 %v4944_v60  ;;  %4919 = vst.msk [vmem:[#allocation3 + $0x18] sm:$0xff] %vm4907_vm15, %v4693_v5 }
0x1150   : > { %v4671_v30 = vpop.xlane.xlu0 %4670 }
0x1151   : > { %v4691_v55 = vadd.f32 %v4671_v30, %v4659_v12 }
0x1152   : > { %v4946_v16 = vld [vmem:[#allocation3 + $0x10] sm:$0xff] }
0x1153   : > { %6711 = vrcp.f32 %v4946_v16  ;;  %4917 = vst.msk [vmem:[#allocation3 + $0x8] sm:$0xff] %vm4907_vm15, %v4691_v55 }
0x1154   : > { %v4686_v54 = vpop.xlane.xlu0 %4685 }
0x1155   : > { %v4696_v18 = vadd.f32 %v4686_v54, %v4664_v46 }
0x1156   : > { %v4947_v61 = vld [vmem:[#allocation3 + $0x18] sm:$0xff] }
0x1157   : > { %4922 = vst.msk [vmem:[#allocation3 + $0x30] sm:$0xff] %vm4907_vm15, %v4696_v18  ;;  %6713 = vrcp.f32 %v4947_v61 }
0x1158   : > { %v4680_v9 = vpop.xlane.xlu0 %4679 }
0x1159   : > { %v4694_v59 = vadd.f32 %v4680_v9, %v4662_v8 }
0x115a   : > { %v4945_v36 = vld [vmem:[#allocation3 + $0x8] sm:$0xff] }
0x115b   : > { %4920 = vst.msk [vmem:[#allocation3 + $0x20] sm:$0xff] %vm4907_vm15, %v4694_v59  ;;  %6715 = vrcp.f32 %v4945_v36 }
0x115c   : > { %v6710_v26 = vpop.eup %6709  ;;  %v4689_v21 = vpop.xlane.xlu1 %4688 }
0x115d   : > { %v4697_v24 = vadd.f32 %v4689_v21, %v4665_v10  ;;  %5009 = vperm.xlu0 %6337, %v6710_v26  }
0x115e   : > { %v4950_v7 = vld [vmem:[#allocation3 + $0x30] sm:$0xff] }
0x115f   : > { %4923 = vst.msk [vmem:[#allocation3 + $0x38] sm:$0xff] %vm4907_vm15, %v4697_v24  ;;  %6717 = vrcp.f32 %v4950_v7 }
0x1160   : > { %v9140_v45 = vpop.eup %6711  ;;  %v4683_v15 = vpop.xlane.xlu1 %4682 }
0x1161   : > { %v4695_v49 = vadd.f32 %v4683_v15, %v4663_v11  ;;  %4972 = vperm.xlu1 %6329, %v9140_v45   ;;  %6339 = vset.pattern.permute.xlu0 %v9938_v33 }
0x1162   : > { %5089 = vperm.xlu0 %6339, %v6710_v26   ;;  %v4948_v2 = vld [vmem:[#allocation3 + $0x20] sm:$0xff] }
0x1163   : > { %4921 = vst.msk [vmem:[#allocation3 + $0x28] sm:$0xff] %vm4907_vm15, %v4695_v49  ;;  %6719 = vrcp.f32 %v4948_v2 }
0x1164   : > { %v9152_v17 = vpop.eup %6713 }
0x1165   : > { %6330 = vset.pattern.permute.xlu1 %v9936_v6 }
0x1166   : > { %5017 = vperm.xlu1 %6330, %v9140_v45   ;;  %6341 = vset.pattern.permute.xlu0 %v9893_v58  ;;  %v4951_v37 = vld [vmem:[#allocation3 + $0x38] sm:$0xff] }
0x1167   : > { %5169 = vperm.xlu0 %6341, %v6710_v26   ;;  %6721 = vrcp.f32 %v4951_v37 }
0x1168   : > { %v6716_v4 = vpop.eup %6715 }
0x116a   : > { %6331 = vset.pattern.permute.xlu1 %v9939_v50  ;;  %v4949_v34 = vld [vmem:[#allocation3 + $0x28] sm:$0xff] }
0x116b   : > { %5057 = vperm.xlu1 %6331, %v9140_v45   ;;  %6343 = vset.pattern.permute.xlu0 %v6771_v62  ;;  %6723 = vrcp.f32 %v4949_v34 }
0x116c   : > { %5249 = vperm.xlu0 %6343, %v6710_v26   ;;  %v9175_v19 = vpop.eup %6717 }
0x116f   : > { %6332 = vset.pattern.permute.xlu1 %v9938_v33 }
0x1170   : > { %5097 = vperm.xlu1 %6332, %v9140_v45   ;;  %6345 = vset.pattern.permute.xlu0 %v9936_v6  ;;  %v9192_v13 = vpop.eup %6719 }
0x1171   : > { %5021 = vperm.xlu0 %6345, %v9152_v17  }
0x1174   : > { %6333 = vset.pattern.permute.xlu1 %v9940_v14  ;;  %v9207_v31 = vpop.eup %6721 }
0x1175   : > { %5137 = vperm.xlu1 %6333, %v9140_v45   ;;  %6347 = vset.pattern.permute.xlu0 %v9938_v33 }
0x1176   : > { %5101 = vperm.xlu0 %6347, %v9152_v17  }
0x1178   : > { %v6724_v48 = vpop.eup %6723 }
0x1179   : > { %6334 = vset.pattern.permute.xlu1 %v9893_v58 }
0x117a   : > { %5177 = vperm.xlu1 %6334, %v9140_v45   ;;  %6349 = vset.pattern.permute.xlu0 %v9893_v58 }
0x117b   : > { %5181 = vperm.xlu0 %6349, %v9152_v17  }
0x117e   : > { %6335 = vset.pattern.permute.xlu1 %v9916_v42 }
0x117f   : > { %5217 = vperm.xlu1 %6335, %v9140_v45   ;;  %6351 = vset.pattern.permute.xlu0 %v9937_v25 }
0x1180   : > { %4967 = vperm.xlu0 %6351, %v6716_v4  }
0x1183   : > { %6336 = vset.pattern.permute.xlu1 %v9937_v25 }
0x1184   : > { %4962 = vperm.xlu1 %6336, %v6710_v26   ;;  %6353 = vset.pattern.permute.xlu0 %v9939_v50 }
0x1185   : > { %5053 = vperm.xlu0 %6353, %v6716_v4  }
0x1188   : > { %6338 = vset.pattern.permute.xlu1 %v9939_v50 }
0x1189   : > { %5049 = vperm.xlu1 %6338, %v6710_v26   ;;  %6355 = vset.pattern.permute.xlu0 %v9940_v14 }
0x118a   : > { %5133 = vperm.xlu0 %6355, %v6716_v4  }
0x118d   : > { %6340 = vset.pattern.permute.xlu1 %v9940_v14 }
0x118e   : > { %5129 = vperm.xlu1 %6340, %v6710_v26   ;;  %6357 = vset.pattern.permute.xlu0 %v9916_v42 }
0x118f   : > { %5213 = vperm.xlu0 %6357, %v6716_v4  }
0x1192   : > { %6342 = vset.pattern.permute.xlu1 %v9916_v42 }
0x1193   : > { %5209 = vperm.xlu1 %6342, %v6710_v26   ;;  %6359 = vset.pattern.permute.xlu0 %v9937_v25 }
0x1194   : > { %4992 = vperm.xlu0 %6359, %v9175_v19  }
0x1197   : > { %6344 = vset.pattern.permute.xlu1 %v9937_v25 }
0x1198   : > { %6361 = vset.pattern.permute.xlu0 %v9939_v50  ;;  %4977 = vperm.xlu1 %6344, %v9152_v17   ;;  %v9219_v39 = vpop.f32.mrf.mxu0 }
0x1199   : > { %5073 = vperm.xlu0 %6361, %v9175_v19  }
0x119a   : > { %v4836_v41 = vpop.f32.mrf.mxu0 }
0x119c   : > { %6346 = vset.pattern.permute.xlu1 %v9939_v50  ;;  %v6211_v43 = vpop.f32.mrf.mxu0 }
0x119d   : > { %6363 = vset.pattern.permute.xlu0 %v9940_v14  ;;  %5061 = vperm.xlu1 %6346, %v9152_v17  }
0x119e   : > { %5153 = vperm.xlu0 %6363, %v9175_v19   ;;  %v4839_v20 = vpop.f32.mrf.mxu0 }
0x11a0   : > { %v6214_v23 = vpop.f32.mrf.mxu0 }
0x11a1   : > { %6348 = vset.pattern.permute.xlu1 %v9940_v14 }
0x11a2   : > { %6365 = vset.pattern.permute.xlu0 %v9916_v42  ;;  %5141 = vperm.xlu1 %6348, %v9152_v17  }
0x11a3   : > { %5233 = vperm.xlu0 %6365, %v9175_v19  }
0x11a6   : > { %6350 = vset.pattern.permute.xlu1 %v9916_v42 }
0x11a7   : > { %6366 = vset.pattern.permute.xlu0 %v9937_v25  ;;  %5221 = vperm.xlu1 %6350, %v9152_v17  }
0x11a8   : > { %4982 = vperm.xlu0 %6366, %v9192_v13  }
0x11ab   : > { %6352 = vset.pattern.permute.xlu1 %v9936_v6 }
0x11ac   : > { %6368 = vset.pattern.permute.xlu0 %v9939_v50  ;;  %5013 = vperm.xlu1 %6352, %v6716_v4  }
0x11ad   : > { %5065 = vperm.xlu0 %6368, %v9192_v13  }
0x11b0   : > { %6354 = vset.pattern.permute.xlu1 %v9938_v33 }
0x11b1   : > { %6370 = vset.pattern.permute.xlu0 %v9940_v14  ;;  %5093 = vperm.xlu1 %6354, %v6716_v4  }
0x11b2   : > { %5145 = vperm.xlu0 %6370, %v9192_v13  }
0x11b5   : > { %6356 = vset.pattern.permute.xlu1 %v9893_v58 }
0x11b6   : > { %6372 = vset.pattern.permute.xlu0 %v9916_v42  ;;  %5173 = vperm.xlu1 %6356, %v6716_v4  }
0x11b7   : > { %5225 = vperm.xlu0 %6372, %v9192_v13  }
0x11ba   : > { %6358 = vset.pattern.permute.xlu1 %v6771_v62 }
0x11bb   : > { %6374 = vset.pattern.permute.xlu0 %v9936_v6  ;;  %5253 = vperm.xlu1 %6358, %v6716_v4  }
0x11bc   : > { %5037 = vperm.xlu0 %6374, %v9207_v31  }
0x11bf   : > { %6360 = vset.pattern.permute.xlu1 %v9936_v6 }
0x11c0   : > { %5033 = vperm.xlu1 %6360, %v9175_v19   ;;  %6376 = vset.pattern.permute.xlu0 %v9938_v33 }
0x11c1   : > { %5117 = vperm.xlu0 %6376, %v9207_v31  }
0x11c4   : > { %6362 = vset.pattern.permute.xlu1 %v9938_v33 }
0x11c5   : > { %5113 = vperm.xlu1 %6362, %v9175_v19   ;;  %6378 = vset.pattern.permute.xlu0 %v9893_v58 }
0x11c6   : > { %5197 = vperm.xlu0 %6378, %v9207_v31  }
0x11c9   : > { %6364 = vset.pattern.permute.xlu1 %v9893_v58 }
0x11ca   : > { %5193 = vperm.xlu1 %6364, %v9175_v19   ;;  %6381 = vset.pattern.permute.xlu0 %v9936_v6 }
0x11cb   : > { %5029 = vperm.xlu0 %6381, %v6724_v48  }
0x11ce   : > { %6367 = vset.pattern.permute.xlu1 %v9936_v6  ;;  %v4852_v6 = vpop.f32.mrf.mxu0 }
0x11cf   : > { %5025 = vperm.xlu1 %6367, %v9192_v13   ;;  %6383 = vset.pattern.permute.xlu0 %v9938_v33 }
0x11d0   : > { %5109 = vperm.xlu0 %6383, %v6724_v48   ;;  %v6215_v47 = vpop.f32.mrf.mxu0 }
0x11d2   : > { %v4855_v1 = vpop.f32.mrf.mxu0 }
0x11d3   : > { %6369 = vset.pattern.permute.xlu1 %v9938_v33 }
0x11d4   : > { %5105 = vperm.xlu1 %6369, %v9192_v13   ;;  %6385 = vset.pattern.permute.xlu0 %v9893_v58 }
0x11d5   : > { %5189 = vperm.xlu0 %6385, %v6724_v48  }
0x11d8   : > { %v9230_v40 = vpop.permute.xlu0 %5009  ;;  %6371 = vset.pattern.permute.xlu1 %v9893_v58 }
0x11d9   : > { %5185 = vperm.xlu1 %6371, %v9192_v13   ;;  %4881 = vrot.lane.b32.xlu0 %v6211_v43, %s6772_s12 }
0x11da   : > { %6388 = vset.pattern.permute.xlu0 %v6771_v62 }
0x11dc   : > { %v9236_v27 = vpop.permute.xlu1 %4972 }
0x11dd   : > { %v9238_v53 = vpop.permute.xlu0 %5089  ;;  %6373 = vset.pattern.permute.xlu1 %v9937_v25  ;;  %4877 = vrot.lane.b32.xlu0 %v4839_v20, %s6772_s12 }
0x11de   : > { %4997 = vperm.xlu1 %6373, %v9207_v31  }
0x11e1   : > { %4889 = vrot.lane.b32.xlu0 %v6215_v47, %s6772_s12  ;;  %v9244_v58 = vpop.permute.xlu1 %5017  ;;  %v4699_v47 = vld [vmem:[#allocation4 + $0x8] sm:$0xff] }
0x11e2   : > { %v9246_v29 = vpop.permute.xlu0 %5169  ;;  %6375 = vset.pattern.permute.xlu1 %v9939_v50 }
0x11e3   : > { %5077 = vperm.xlu1 %6375, %v9207_v31  }
0x11e5   : > { %4885 = vrot.lane.b32.xlu0 %v4855_v1, %s6772_s12  ;;  %v4747_v1 = vmul.f32 %v9115_v22, %v4699_v47 }
0x11e6   : > { %v9251_v5 = vpop.permute.xlu1 %5057 }
0x11e7   : > { %v9253_v60 = vpop.permute.xlu0 %5249  ;;  %6377 = vset.pattern.permute.xlu1 %v9940_v14 }
0x11e8   : > { %5157 = vperm.xlu1 %6377, %v9207_v31  }
0x11e9   : > { %5261 = vperm.xlu0 %6388, %v9152_v17  }
0x11eb   : > { %v9258_v57 = vpop.permute.xlu1 %5097 }
0x11ec   : > { %v9260_v12 = vpop.permute.xlu0 %5021  ;;  %6379 = vset.pattern.permute.xlu1 %v9916_v42 }
0x11ed   : > { %5237 = vperm.xlu1 %6379, %v9207_v31   ;;  %5269 = vperm.xlu0 %6388, %v6724_v48  }
0x11f0   : > { %v9264_v30 = vpop.permute.xlu1 %5137 }
0x11f1   : > { %v9266_v55 = vpop.permute.xlu0 %5101  ;;  %6380 = vset.pattern.permute.xlu1 %v9937_v25  ;;  %5277 = vperm.xlu0 %6388, %v9207_v31  }
0x11f2   : > { %4987 = vperm.xlu1 %6380, %v6724_v48  }
0x11f5   : > { %v9270_v16 = vpop.permute.xlu1 %5177 }
0x11f6   : > { %v9272_v38 = vpop.permute.xlu0 %5181  ;;  %6382 = vset.pattern.permute.xlu1 %v9939_v50 }
0x11f7   : > { %5069 = vperm.xlu1 %6382, %v6724_v48  }
0x11fa   : > { %v9275_v46 = vpop.permute.xlu1 %5217 }
0x11fb   : > { %v9277_v54 = vpop.permute.xlu0 %4967  ;;  %6384 = vset.pattern.permute.xlu1 %v9940_v14 }
0x11fc   : > { %5149 = vperm.xlu1 %6384, %v6724_v48  }
0x11ff   : > { %v9280_v18 = vpop.permute.xlu1 %4962 }
0x1200   : > { %v9282_v25 = vpop.permute.xlu0 %5053  ;;  %6386 = vset.pattern.permute.xlu1 %v9916_v42 }
0x1201   : > { %5229 = vperm.xlu1 %6386, %v6724_v48  }
0x1204   : > { %v9285_v3 = vpop.permute.xlu1 %5049 }
0x1205   : > { %v9287_v8 = vpop.permute.xlu0 %5133  ;;  %4879 = vrot.lane.b32.xlu1 %v9219_v39, %s6772_s12 }
0x1206   : > { %6387 = vset.pattern.permute.xlu1 %v6771_v62 }
0x1209   : > { %4875 = vrot.lane.b32.xlu1 %v4836_v41, %s6772_s12  ;;  %v9293_v9 = vpop.permute.xlu1 %5129  ;;  %v4701_v41 = vld [vmem:[#allocation4 + $0x18] sm:$0xff] }
0x120a   : > { %v9295_v59 = vpop.permute.xlu0 %5213  ;;  %v4749_v43 = vmul.f32 %v9111_v32, %v4701_v41  ;;  %v4703_v41 = vld [vmem:[#allocation4 + $0x28] sm:$0xff] }
0x120d   : > { %4887 = vrot.lane.b32.xlu1 %v6214_v23, %s6772_s12 }
0x120e   : > { %v9298_v56 = vpop.permute.xlu1 %5209 }
0x120f   : > { %v9300_v42 = vpop.permute.xlu0 %4992 }
0x1211   : > { %4883 = vrot.lane.b32.xlu1 %v4852_v6, %s6772_s12 }
0x1213   : > { %v4978_v10 = vpop.permute.xlu1 %4977 }
0x1214   : > { %v9303_v26 = vpop.permute.xlu0 %5073 }
0x1215   : > { %5257 = vperm.xlu1 %6387, %v9140_v45  }
0x1218   : > { %v5062_v62 = vpop.permute.xlu1 %5061 }
0x1219   : > { %v9306_v21 = vpop.permute.xlu0 %5153  ;;  %5265 = vperm.xlu1 %6387, %v9192_v13  }
0x121a   : > { %9941 = vst [vmem:[#allocation46_spill] sm:$0xff] %v9306_v21 }
0x121d   : > { %5273 = vperm.xlu1 %6387, %v9175_v19   ;;  %v9310_v24 = vpop.permute.xlu1 %5141 }
0x121e   : > { %v9312_v0 = vpop.permute.xlu0 %5233 }
0x121f   : > { %9942 = vst [vmem:[#allocation48_spill] sm:$0xff] %v9312_v0 }
0x1222   : > { %v9314_v11 = vpop.permute.xlu1 %5221 }
0x1223   : > { %v9316_v61 = vpop.permute.xlu0 %4982 }
0x1227   : > { %v5014_v15 = vpop.permute.xlu1 %5013 }
0x1228   : > { %v9318_v49 = vpop.permute.xlu0 %5065 }
0x1229   : > { %9943 = vst [vmem:[#allocation49_spill] sm:$0xff] %v9318_v49 }
0x122c   : > { %v9320_v33 = vpop.permute.xlu1 %5093 }
0x122d   : > { %v9322_v45 = vpop.permute.xlu0 %5145 }
0x122e   : > { %9944 = vst [vmem:[#allocation51_spill] sm:$0xff] %v9322_v45 }
0x1231   : > { %v9324_v50 = vpop.permute.xlu1 %5173 }
0x1232   : > { %v9326_v36 = vpop.permute.xlu0 %5225 }
0x1233   : > { %9945 = vst [vmem:[#allocation47_spill] sm:$0xff] %v9326_v36 }
0x1236   : > { %v9328_v17 = vpop.permute.xlu1 %5253 }
0x1237   : > { %v9330_v14 = vpop.permute.xlu0 %5037 }
0x123b   : > { %v9332_v4 = vpop.permute.xlu1 %5033 }
0x123c   : > { %v9334_v7 = vpop.permute.xlu0 %5117 }
0x1240   : > { %v9336_v19 = vpop.permute.xlu1 %5113 }
0x1241   : > { %9946 = vst [vmem:[#allocation53_spill] sm:$0xff] %v9336_v19  ;;  %v9338_v2 = vpop.permute.xlu0 %5197 }
0x1245   : > { %v9340_v13 = vpop.permute.xlu1 %5193 }
0x1246   : > { %9947 = vst [vmem:[#allocation50_spill] sm:$0xff] %v9340_v13  ;;  %v9342_v37 = vpop.permute.xlu0 %5029  ;;  %v4705_v13 = vld [vmem:[#allocation4 + $0x38] sm:$0xff] }
0x124a   : > { %v9344_v34 = vpop.permute.xlu1 %5025 }
0x124b   : > { %v9346_v31 = vpop.permute.xlu0 %5109 }
0x124f   : > { %v9348_v39 = vpop.permute.xlu1 %5105 }
0x1250   : > { %9948 = vst [vmem:[#allocation32_spill] sm:$0xff] %v9348_v39  ;;  %v9350_v48 = vpop.permute.xlu0 %5189  ;;  %v4753_v39 = vmul.f32 %v9119_v63, %v4705_v13 }
0x1254   : > { %v4882_v20 = vpop.permute.xlu0 %4881  ;;  %v9353_v23 = vpop.permute.xlu1 %5185 }
0x1255   : > { %v4902_v6 = vadd.f32 %v4882_v20, %v4749_v43  ;;  %v4751_v43 = vmul.f32 %v9124_v35, %v4703_v41 }
0x1257   : > { %4928 = vst.msk [vmem:[#allocation4 + $0x18] sm:$0xff] %vm4924_vm1, %v4902_v6 }
0x1258   : > { %v4878_v36 = vpop.permute.xlu0 %4877 }
0x1259   : > { %v4900_v0 = vadd.f32 %v4878_v36, %v4747_v1  ;;  %v4998_v45 = vpop.permute.xlu1 %4997 }
0x125b   : > { %4926 = vst.msk [vmem:[#allocation4 + $0x8] sm:$0xff] %vm4924_vm1, %v4900_v0 }
0x125c   : > { %v4890_v21 = vpop.permute.xlu0 %4889 }
0x125d   : > { %v4906_v32 = vadd.f32 %v4890_v21, %v4753_v39 }
0x125e   : > { %v5078_v19 = vpop.permute.xlu1 %5077  ;;  %v4939_v49 = vld [vmem:[#allocation4 + $0x18] sm:$0xff] }
0x125f   : > { %4932 = vst.msk [vmem:[#allocation4 + $0x38] sm:$0xff] %vm4924_vm1, %v4906_v32  ;;  %v5043_v22 = vmul.f32 %v9260_v12, %v4939_v49  ;;  %v5003_v20 = vmul.f32 %v4978_v10, %v4939_v49  ;;  %v5083_v6 = vmul.f32 %v5062_v62, %v4939_v49  ;;  %v5123_v10 = vmul.f32 %v9266_v55, %v4939_v49 }
0x1260   : > { %v4886_v36 = vpop.permute.xlu0 %4885  ;;  %v5203_v62 = vmul.f32 %v9272_v38, %v4939_v49  ;;  %v5163_v32 = vmul.f32 %v9310_v24, %v4939_v49 }
0x1261   : > { %v4904_v47 = vadd.f32 %v4886_v36, %v4751_v43  ;;  %v5291_v63 = vsel %vm294_vm0, %v5003_v20, %v5043_v22 }
0x1262   : > { %v4937_v0 = vld [vmem:[#allocation4 + $0x8] sm:$0xff]  ;;  %v5300_v21 = vsel %vm5296_vm2, %v5291_v63, %v5083_v6 }
0x1263   : > { %v5001_v35 = vmul.f32 %v9277_v54, %v4937_v0  ;;  %v5041_v13 = vmul.f32 %v5014_v15, %v4937_v0  ;;  %v5081_v39 = vmul.f32 %v9282_v25, %v4937_v0  ;;  %4930 = vst.msk [vmem:[#allocation4 + $0x28] sm:$0xff] %vm4924_vm1, %v4904_v47  ;;  %v5158_v12 = vpop.permute.xlu1 %5157  ;;  %v5121_v43 = vmul.f32 %v9320_v33, %v4937_v0 }
0x1264   : > { %v5262_v1 = vpop.permute.xlu0 %5261  ;;  %v5243_v54 = vmul.f32 %v9314_v11, %v4939_v49  ;;  %v5309_v25 = vsel %vm5305_vm3, %v5300_v21, %v5123_v10  ;;  %v5161_v55 = vmul.f32 %v9287_v8, %v4937_v0  ;;  %v5241_v47 = vmul.f32 %v9295_v59, %v4937_v0 }
0x1265   : > { %v5289_v41 = vsel %vm294_vm0, %v5001_v35, %v5041_v13  ;;  %v5283_v20 = vmul.f32 %v5262_v1, %v4939_v49  ;;  %v5318_v38 = vsel %vm5314_vm4, %v5309_v25, %v5163_v32  ;;  %v5201_v11 = vmul.f32 %v9324_v50, %v4937_v0 }
0x1266   : > { %v4943_v15 = vld [vmem:[#allocation4 + $0x38] sm:$0xff]  ;;  %v5298_v22 = vsel %vm5296_vm2, %v5289_v41, %v5081_v39  ;;  %v5281_v63 = vmul.f32 %v9328_v17, %v4937_v0  ;;  %v5327_v21 = vsel %vm5323_vm5, %v5318_v38, %v5203_v62 }
0x1267   : > { %v5007_v36 = vmul.f32 %v4998_v45, %v4943_v15  ;;  %v5047_v24 = vmul.f32 %v9330_v14, %v4943_v15  ;;  %v5087_v6 = vmul.f32 %v5078_v19, %v4943_v15  ;;  %v5307_v33 = vsel %vm5305_vm3, %v5298_v22, %v5121_v43 }
0x1268   : > { %v5270_v35 = vpop.permute.xlu0 %5269  ;;  %v5238_v8 = vpop.permute.xlu1 %5237  ;;  %v5127_v45 = vmul.f32 %v9334_v7, %v4943_v15  ;;  %v5316_v13 = vsel %vm5314_vm4, %v5307_v33, %v5161_v55  ;;  %v5336_v14 = vsel %vm5332_vm6, %v5327_v21, %v5243_v54  ;;  %v5167_v19 = vmul.f32 %v5158_v12, %v4943_v15 }
0x1269   : > { %v5295_v49 = vsel %vm294_vm0, %v5007_v36, %v5047_v24  ;;  %v5325_v50 = vsel %vm5323_vm5, %v5316_v13, %v5201_v11  ;;  %v5345_v17 = vsel %vm5341_vm7, %v5336_v14, %v5283_v20  ;;  %v5207_v10 = vmul.f32 %v9338_v2, %v4943_v15  ;;  %v4700_v14 = vld [vmem:[#allocation4 + $0x10] sm:$0xff] }
0x126a   : > { %v5304_v59 = vsel %vm5296_vm2, %v5295_v49, %v5087_v6  ;;  %v5334_v0 = vsel %vm5332_vm6, %v5325_v50, %v5241_v47  ;;  %v5675_v39 = vpack.c.bf16 %v5345_v17, %v5345_v17  ;;  %v5247_v1 = vmul.f32 %v5238_v8, %v4943_v15  ;;  %v4941_v20 = vld [vmem:[#allocation4 + $0x28] sm:$0xff] }
0x126b   : > { %v5313_v7 = vsel %vm5305_vm3, %v5304_v59, %v5127_v45  ;;  %v5343_v62 = vsel %vm5341_vm7, %v5334_v0, %v5281_v63  ;;  %v5045_v6 = vmul.f32 %v9342_v37, %v4941_v20  ;;  %v5125_v11 = vmul.f32 %v9346_v31, %v4941_v20 }
0x126c   : > { %v5322_v12 = vsel %vm5314_vm4, %v5313_v7, %v5167_v19  ;;  %v5278_v32 = vpop.permute.xlu0 %5277  ;;  %v5673_v41 = vpack.c.bf16 %v5343_v62, %v5343_v62  ;;  %5386 = vst.msk [vmem:[%s9392_s19 + $0xc] sm:$0xf] %vm5382_vm8, %v5675_v39  ;;  %v5205_v49 = vmul.f32 %v9350_v48, %v4941_v20  ;;  %v5285_v59 = vmul.f32 %v5270_v35, %v4941_v20  ;;  %v4698_v39 = vld [vmem:[#allocation4] sm:$0xff] }
0x126d   : > { %v5331_v43 = vsel %vm5323_vm5, %v5322_v12, %v5207_v10  ;;  %v5287_v54 = vmul.f32 %v5278_v32, %v4943_v15  ;;  %v4988_v25 = vpop.permute.xlu1 %4987  ;;  %v4748_v19 = vmul.f32 %v9113_v52, %v4700_v14  ;;  %v4746_v10 = vmul.f32 %v9109_v51, %v4698_v39  ;;  %v4704_v12 = vld [vmem:[#allocation4 + $0x30] sm:$0xff]  ;;  %v4702_v32 = vld [vmem:[#allocation4 + $0x20] sm:$0xff] }
0x126e   : > { %v5340_v22 = vsel %vm5332_vm6, %v5331_v43, %v5247_v1  ;;  %5384 = vst.msk [vmem:[%s9392_s19 + $0x4] sm:$0xf] %vm5382_vm8, %v5673_v41  ;;  %v5005_v38 = vmul.f32 %v4988_v25, %v4941_v20  ;;  %v4752_v62 = vmul.f32 %v9117_v44, %v4704_v12  ;;  %v4750_v43 = vmul.f32 %v9121_v28, %v4702_v32 }
0x126f   : > { %v5349_v55 = vsel %vm5341_vm7, %v5340_v22, %v5287_v54 }
0x1270   : > { %v5679_v2 = vpack.c.bf16 %v5349_v55, %v5349_v55  ;;  %v5293_v47 = vsel %vm294_vm0, %v5005_v38, %v5045_v6 }
0x1272   : > { %5390 = vst.msk [vmem:[%s9392_s19 + $0x1c] sm:$0xf] %vm5382_vm8, %v5679_v2  ;;  %v5070_v36 = vpop.permute.xlu1 %5069 }
0x1273   : > { %v5085_v24 = vmul.f32 %v5070_v36, %v4941_v20 }
0x1275   : > { %v5302_v15 = vsel %vm5296_vm2, %v5293_v47, %v5085_v24 }
0x1276   : > { %v5311_v21 = vsel %vm5305_vm3, %v5302_v15, %v5125_v11 }
0x1277   : > { %v5150_v33 = vpop.permute.xlu1 %5149 }
0x1278   : > { %v5165_v63 = vmul.f32 %v5150_v33, %v4941_v20 }
0x127a   : > { %v5320_v8 = vsel %vm5314_vm4, %v5311_v21, %v5165_v63 }
0x127b   : > { %v5329_v37 = vsel %vm5323_vm5, %v5320_v8, %v5205_v49 }
0x127c   : > { %v5230_v45 = vpop.permute.xlu1 %5229 }
0x127d   : > { %v5245_v13 = vmul.f32 %v5230_v45, %v4941_v20 }
0x127f   : > { %v5338_v50 = vsel %vm5332_vm6, %v5329_v37, %v5245_v13 }
0x1280   : > { %v5347_v31 = vsel %vm5341_vm7, %v5338_v50, %v5285_v59  ;;  %v4880_v17 = vpop.permute.xlu1 %4879 }
0x1281   : > { %v5677_v7 = vpack.c.bf16 %v5347_v31, %v5347_v31  ;;  %v4901_v0 = vadd.f32 %v4880_v17, %v4748_v19 }
0x1283   : > { %5388 = vst.msk [vmem:[%s9392_s19 + $0x14] sm:$0xf] %vm5382_vm8, %v5677_v7  ;;  %v9950_v7 = vld [vmem:[#allocation53_spill] sm:$0xff] }
0x1284   : > { %4927 = vst.msk [vmem:[#allocation4 + $0x10] sm:$0xff] %vm4924_vm1, %v4901_v0  ;;  %v4876_v48 = vpop.permute.xlu1 %4875  ;;  %v9951_v0 = vld [vmem:[#allocation46_spill] sm:$0xff] }
0x1285   : > { %v4899_v35 = vadd.f32 %v4876_v48, %v4746_v10  ;;  %v9952_v48 = vld [vmem:[#allocation32_spill] sm:$0xff] }
0x1287   : > { %4925 = vst.msk [vmem:[#allocation4] sm:$0xff] %vm4924_vm1, %v4899_v35 }
0x1288   : > { %v4888_v52 = vpop.permute.xlu1 %4887 }
0x1289   : > { %v4905_v1 = vadd.f32 %v4888_v52, %v4752_v62  ;;  %v9953_v62 = vld [vmem:[#allocation50_spill] sm:$0xff] }
0x128b   : > { %v4938_v41 = vld [vmem:[#allocation4 + $0x10] sm:$0xff]  ;;  %4931 = vst.msk [vmem:[#allocation4 + $0x30] sm:$0xff] %vm4924_vm1, %v4905_v1 }
0x128c   : > { %v5002_v51 = vmul.f32 %v9236_v27, %v4938_v41  ;;  %v5042_v54 = vmul.f32 %v9244_v58, %v4938_v41  ;;  %v5082_v25 = vmul.f32 %v9251_v5, %v4938_v41  ;;  %v4884_v22 = vpop.permute.xlu1 %4883  ;;  %v5122_v27 = vmul.f32 %v9258_v57, %v4938_v41 }
0x128d   : > { %v4903_v55 = vadd.f32 %v4884_v22, %v4750_v43  ;;  %v5162_v58 = vmul.f32 %v9264_v30, %v4938_v41  ;;  %v5202_v5 = vmul.f32 %v9270_v16, %v4938_v41  ;;  %v5242_v24 = vmul.f32 %v9275_v46, %v4938_v41 }
0x128e   : > { %v5290_v44 = vsel %vm294_vm0, %v5002_v51, %v5042_v54  ;;  %v4936_v2 = vld [vmem:[#allocation4] sm:$0xff] }
0x128f   : > { %v5299_v20 = vsel %vm5296_vm2, %v5290_v44, %v5082_v25  ;;  %v5000_v38 = vmul.f32 %v9280_v18, %v4936_v2  ;;  %v5040_v36 = vmul.f32 %v9230_v40, %v4936_v2  ;;  %v5080_v28 = vmul.f32 %v9285_v3, %v4936_v2  ;;  %4929 = vst.msk [vmem:[#allocation4 + $0x20] sm:$0xff] %vm4924_vm1, %v4903_v55  ;;  %v9955_v25 = vld [vmem:[#allocation48_spill] sm:$0xff]  ;;  %v9956_v44 = vld [vmem:[#allocation47_spill] sm:$0xff] }
0x1290   : > { %v5258_v6 = vpop.permute.xlu1 %5257  ;;  %v5120_v47 = vmul.f32 %v9238_v53, %v4936_v2  ;;  %v5308_v18 = vsel %vm5305_vm3, %v5299_v20, %v5122_v27  ;;  %v5160_v3 = vmul.f32 %v9293_v9, %v4936_v2  ;;  %v5200_v33 = vmul.f32 %v9246_v29, %v4936_v2 }
0x1291   : > { %v5288_v15 = vsel %vm294_vm0, %v5000_v38, %v5040_v36  ;;  %v5282_v40 = vmul.f32 %v5258_v6, %v4938_v41  ;;  %v5317_v30 = vsel %vm5314_vm4, %v5308_v18, %v5162_v58  ;;  %v5240_v21 = vmul.f32 %v9298_v56, %v4936_v2 }
0x1292   : > { %v5297_v57 = vsel %vm5296_vm2, %v5288_v15, %v5080_v28  ;;  %v4942_v11 = vld [vmem:[#allocation4 + $0x30] sm:$0xff]  ;;  %v5326_v46 = vsel %vm5323_vm5, %v5317_v30, %v5202_v5  ;;  %v5280_v49 = vmul.f32 %v9253_v60, %v4936_v2  ;;  %v9949_v60 = vld [vmem:[#allocation49_spill] sm:$0xff] }
0x1293   : > { %v5306_v16 = vsel %vm5305_vm3, %v5297_v57, %v5120_v47  ;;  %v5006_v53 = vmul.f32 %v9300_v42, %v4942_v11  ;;  %v5046_v63 = vmul.f32 %v9332_v4, %v4942_v11  ;;  %v5335_v29 = vsel %vm5332_vm6, %v5326_v46, %v5242_v24 }
0x1294   : > { %v5315_v8 = vsel %vm5314_vm4, %v5306_v16, %v5160_v3  ;;  %v5266_v9 = vpop.permute.xlu1 %5265  ;;  %v5344_v13 = vsel %vm5341_vm7, %v5335_v29, %v5282_v40  ;;  %v5086_v14 = vmul.f32 %v9303_v26, %v4942_v11  ;;  %v5126_v26 = vmul.f32 %v9950_v7, %v4942_v11 }
0x1295   : > { %v5324_v45 = vsel %vm5323_vm5, %v5315_v8, %v5200_v33  ;;  %v5674_v59 = vpack.c.bf16 %v5344_v13, %v5344_v13  ;;  %v5294_v56 = vsel %vm294_vm0, %v5006_v53, %v5046_v63  ;;  %v5166_v39 = vmul.f32 %v9951_v0, %v4942_v11 }
0x1296   : > { %v5333_v42 = vsel %vm5332_vm6, %v5324_v45, %v5240_v21  ;;  %v4940_v4 = vld [vmem:[#allocation4 + $0x20] sm:$0xff]  ;;  %v5206_v52 = vmul.f32 %v9953_v62, %v4942_v11  ;;  %v5246_v22 = vmul.f32 %v9955_v25, %v4942_v11 }
0x1297   : > { %v5342_v37 = vsel %vm5341_vm7, %v5333_v42, %v5280_v49  ;;  %v5004_v19 = vmul.f32 %v9316_v61, %v4940_v4  ;;  %v5044_v50 = vmul.f32 %v9344_v34, %v4940_v4  ;;  %v5084_v31 = vmul.f32 %v9949_v60, %v4940_v4  ;;  %5385 = vst.msk [vmem:[%s9392_s19 + $0x8] sm:$0xf] %vm5382_vm8, %v5674_v59  ;;  %v9954_v34 = vld [vmem:[#allocation51_spill] sm:$0xff] }
0x1298   : > { %v5672_v17 = vpack.c.bf16 %v5342_v37, %v5342_v37  ;;  %v5274_v10 = vpop.permute.xlu1 %5273  ;;  %v5124_v35 = vmul.f32 %v9952_v48, %v4940_v4  ;;  %v5303_v61 = vsel %vm5296_vm2, %v5294_v56, %v5086_v14  ;;  %v5164_v1 = vmul.f32 %v9954_v34, %v4940_v4 }
0x1299   : > { %v5292_v12 = vsel %vm294_vm0, %v5004_v19, %v5044_v50  ;;  %v5312_v41 = vsel %vm5305_vm3, %v5303_v61, %v5126_v26  ;;  %v5286_v43 = vmul.f32 %v5274_v10, %v4942_v11  ;;  %v5204_v51 = vmul.f32 %v9353_v23, %v4940_v4 }
0x129a   : > { %5383 = vst.msk [vmem:[%s9392_s19] sm:$0xf] %vm5382_vm8, %v5672_v17  ;;  %v5301_v32 = vsel %vm5296_vm2, %v5292_v12, %v5084_v31  ;;  %v5321_v55 = vsel %vm5314_vm4, %v5312_v41, %v5166_v39  ;;  %v5244_v2 = vmul.f32 %v9956_v44, %v4940_v4  ;;  %v5284_v28 = vmul.f32 %v5266_v9, %v4940_v4 }
0x129b   : > { %v5310_v54 = vsel %vm5305_vm3, %v5301_v32, %v5124_v35  ;;  %v5330_v38 = vsel %vm5323_vm5, %v5321_v55, %v5206_v52 }
0x129c   : > { %v5319_v20 = vsel %vm5314_vm4, %v5310_v54, %v5164_v1  ;;  %v5339_v27 = vsel %vm5332_vm6, %v5330_v38, %v5246_v22 }
0x129d   : > { %v5328_v36 = vsel %vm5323_vm5, %v5319_v20, %v5204_v51  ;;  %v5348_v58 = vsel %vm5341_vm7, %v5339_v27, %v5286_v43 }
0x129e   : > { %v5337_v23 = vsel %vm5332_vm6, %v5328_v36, %v5244_v2  ;;  %v5678_v24 = vpack.c.bf16 %v5348_v58, %v5348_v58 }
0x129f   : > { %v5346_v5 = vsel %vm5341_vm7, %v5337_v23, %v5284_v28 }
0x12a0   : > { %v5676_v6 = vpack.c.bf16 %v5346_v5, %v5346_v5  ;;  %5389 = vst.msk [vmem:[%s9392_s19 + $0x18] sm:$0xf] %vm5382_vm8, %v5678_v24 }
0x12a2   : > { %5387 = vst.msk [vmem:[%s9392_s19 + $0x10] sm:$0xf] %vm5382_vm8, %v5676_v6 }
0x12a3 PF: > { %s13_s14 = sadd.s32 1, %s6747_s14   ;;  %s9957_s12 = smov %s6743_s13 }
0x12a4   : > { %p10_p5 = scmp.ge.s32.totalorder %s13_s14, 4   ;;  %s9958_s13 = smov %s9960_s15 }
0x12a6   :  { %12 = sbr.rel (!%p10_p5) target bundleno = 2 (0x2), region = 76 }

</bundles_post_ra>
